<compile_context>
chip_gen: v5e
topology: v5e:2x2
jax: 0.10.0
libtpu: 0.0.40
codegen_flags: <defaults>
</compile_context>

<pallas_src>
import functools

import jax
import jax.numpy as jnp
from jax.experimental import pallas as pl
from jax.experimental.pallas import tpu as pltpu

LANE = 128


def _round_up(x, m):
    return ((x + m - 1) // m) * m


# ------------------------------ Pallas kernel -------------------------------
def _fused_taps_kernel(*args, offsets, cins):
    """One deep-K MXU matmul per batch grid step.

    args = (*x_refs, w_ref, b_ref, o_ref, k_scratch)
      x_refs[i]: (cins[i], P_i)  channel-major, flattened halo-padded slab (resident)
      w_ref:     (M, K)          fused tap weights, K = len(offsets) * sum(cins),
                                 tap-major / (input, channel)-minor
      b_ref:     (M, 1)
      o_ref:     (M, N)          N multiple of 128 -> lane-dense stores
      k_scratch: (K, N)          VMEM scratch holding the stacked shifted views
    """
    n_in = len(cins)
    x_refs = args[:n_in]
    w_ref, b_ref, o_ref, k_scr = args[n_in:]
    n = o_ref.shape[-1]

    row = 0                                   # static python int
    for off in offsets:                       # static unroll (<= 27 taps)
        for xr, c in zip(x_refs, cins):
            k_scr[row:row + c, :] = xr[:, off:off + n]
            row += c

    acc = jnp.dot(w_ref[...], k_scr[...], preferred_element_type=jnp.float32)
    o_ref[...] = jnp.maximum(acc + b_ref[...], 0.0).astype(o_ref.dtype)


def _fused_taps_conv(slabs, w_flat, bias, offsets, n_out):
    """out[b] = relu(bias + w_flat @ stack_t([slab_i[b][:, off_t:off_t+n_out]]))

    slabs  : list of (B, C_i, P_i) f32, halo-padded + tail-padded flattened volumes
    w_flat : (M, K) with K = len(offsets) * sum(C_i)
    bias   : (M,)
    offsets: tuple of static python ints (shifts along the flattened axis)
    n_out  : static, multiple of 128
    returns (B, M, n_out) f32
    """
    B = slabs[0].shape[0]
    cins = tuple(int(s.shape[1]) for s in slabs)
    M, K = w_flat.shape
    T = len(offsets)
    assert K == T * sum(cins)
    assert n_out % LANE == 0
    max_off = max(offsets)
    for s in slabs:
        assert s.shape[0] == B and s.shape[2] >= max_off + n_out

    kernel = functools.partial(
        _fused_taps_kernel,
        offsets=tuple(int(o) for o in offsets),
        cins=cins)

    in_specs = [pl.BlockSpec((None, c, int(s.shape[2])), lambda b: (b, 0, 0))
                for c, s in zip(cins, slabs)]
    in_specs += [pl.BlockSpec((M, K), lambda b: (0, 0)),     # fused weights, resident
                 pl.BlockSpec((M, 1), lambda b: (0, 0))]     # bias, resident

    return pl.pallas_call(
        kernel,
        out_shape=jax.ShapeDtypeStruct((B, M, n_out), jnp.float32),
        grid=(B,),
        in_specs=in_specs,
        out_specs=pl.BlockSpec((None, M, n_out), lambda b: (b, 0, 0)),
        scratch_shapes=[pltpu.VMEM((K, n_out), jnp.float32)],
        compiler_params=pltpu.CompilerParams(
            dimension_semantics=("parallel",)),
    )(*slabs, w_flat, bias.reshape(M, 1))


# ------------------------------- slab helper --------------------------------
def _make_slab(x, halo_lo, halo_hi, min_p):
    """Single jnp.pad: spatial halo + extra high-side depth planes so the flattened
    length is >= min_p.  x: (B, C, D, H, W) -> (B, C, P) channel-major slab."""
    B, C, D, H, W = x.shape
    dlo, hlo, wlo = halo_lo
    dhi, hhi, whi = halo_hi
    Hp, Wp = H + hlo + hhi, W + wlo + whi
    plane = Hp * Wp
    Dp = D + dlo + dhi
    extra = max(0, min_p - Dp * plane)
    extra_d = (extra + plane - 1) // plane
    xp = jnp.pad(x, ((0, 0), (0, 0), (dlo, dhi + extra_d), (hlo, hhi), (wlo, whi)))
    P = (Dp + extra_d) * plane
    return xp.reshape(B, C, P)


# ------------------------------- conv wrappers -------------------------------
def conv3d_relu(xs, w, b):
    """Conv3d(k=3, stride=1, pad=1) + ReLU over the channel concatenation of `xs`
    WITHOUT materializing the concat.  xs: list of (B, Ci, D, H, W) with
    sum(Ci) == w.shape[1]; w: (Cout, Cin_tot, 3, 3, 3)."""
    B, _, D, H, W = xs[0].shape
    Cout, Cin_tot = w.shape[0], w.shape[1]
    assert sum(int(x.shape[1]) for x in xs) == Cin_tot
    Hp, Wp = H + 2, W + 2
    plane = Hp * Wp
    n_out = _round_up(D * plane, LANE)
    offsets = tuple(kd * plane + kh * Wp + kw
                    for kd in range(3) for kh in range(3) for kw in range(3))
    min_p = max(offsets) + n_out

    slabs = [_make_slab(xi, (1, 1, 1), (1, 1, 1), min_p) for xi in xs]

    # (Cout, Cin_tot, kd, kh, kw) -> (Cout, kd, kh, kw, Cin_tot) -> (Cout, 27*Cin_tot)
    # column index = tap * Cin_tot + c, with the torch.cat channel order (x1 then x2u),
    # matching the tap-major / channel-minor RHS built in the kernel.
    w_flat = jnp.transpose(w, (0, 2, 3, 4, 1)).reshape(Cout, 27 * Cin_tot)

    y = _fused_taps_conv(slabs, w_flat, b, offsets, n_out)     # (B, Cout, n_out)
    # keep the valid bases n = d*plane + h*Wp + w with d<D, h<H, w<W
    return y[:, :, :D * plane].reshape(B, Cout, D, Hp, Wp)[:, :, :, :H, :W]


def convT3d_relu(x, w, b):
    """ConvTranspose3d(k=3, stride=2, pad=1, out_pad=1) + ReLU via the sub-pixel
    (output-parity-class) decomposition, with all 8 parity classes folded into the
    M rows of a single block weight matrix (one matmul per batch).
    x: (B, Cin, D, H, W); w: (Cin, Cout, 3, 3, 3) (PyTorch layout)."""
    B, Cin, D, H, W = x.shape
    Cout = w.shape[1]
    D1, H1, W1 = D + 1, H + 1, W + 1
    plane = H1 * W1
    n_out = _round_up(D * plane, LANE)

    # Per output voxel o = 2m + p (per dim): p=0 -> kernel index 1, input shift 0;
    #                                         p=1 -> (k=2, shift 0) and (k=0, shift 1)
    k_of = {(0, 0): 1, (0, 1): None, (1, 0): 2, (1, 1): 0}
    shifts = [(sd, sh, sw) for sd in range(2) for sh in range(2) for sw in range(2)]
    offsets = tuple(sd * plane + sh * W1 + sw for sd, sh, sw in shifts)
    min_p = max(offsets) + n_out

    slab = _make_slab(x, (0, 0, 0), (1, 1, 1), min_p)          # high-side halo

    # Block LHS (8*Cout, 8*Cin): row block g = parity class (pd,ph,pw),
    # col block s = input shift (sd,sh,sw); zeros where the class has no contribution.
    w_oi = jnp.transpose(w, (1, 0, 2, 3, 4))                   # (Cout, Cin, 3, 3, 3)
    zero = jnp.zeros((Cout, Cin), jnp.float32)
    row_blocks = []
    for pd in range(2):
        for ph in range(2):
            for pw in range(2):
                cols = []
                for sd, sh, sw in shifts:
                    kd, kh, kw = k_of[(pd, sd)], k_of[(ph, sh)], k_of[(pw, sw)]
                    if kd is None or kh is None or kw is None:
                        cols.append(zero)
                    else:
                        cols.append(w_oi[:, :, kd, kh, kw])
                row_blocks.append(jnp.concatenate(cols, axis=1))   # (Cout, 8*Cin)
    w_big = jnp.concatenate(row_blocks, axis=0)                    # (8*Cout, 8*Cin)
    b_big = jnp.tile(b, 8)                                         # row g*Cout+o -> b[o]

    y = _fused_taps_conv([slab], w_big, b_big, offsets, n_out)     # (B, 8*Cout, n_out)
    y = y[:, :, :D * plane].reshape(B, 8, Cout, D, H1, W1)[..., :H, :W]
    # interleave parity classes: out[:, :, 2d+pd, 2h+ph, 2w+pw] = class(pd,ph,pw)
    y = y.reshape(B, 2, 2, 2, Cout, D, H, W)
    y = jnp.transpose(y, (0, 4, 5, 1, 6, 2, 7, 3))                 # B,C,D,pd,H,ph,W,pw
    return y.reshape(B, Cout, 2 * D, 2 * H, 2 * W)


def up_forward(x1, x2, params):
    """`up` forward: x1 skip (B, outC, 2D, 2H, 2W), x2 low-res (B, inC, D, H, W)."""
    x2u = convT3d_relu(x2, params["wT"], params["bT"])          # (B, inC, 2D, 2H, 2W)
    # concat-free: conv1 consumes x1 and x2u as two separate slabs (torch.cat order).
    x = conv3d_relu([x1, x2u], params["w1"], params["b1"])
    x = conv3d_relu([x], params["w2"], params["b2"])
    return x


# --------------------------- plain-JAX reference ---------------------------
def _conv3d_ref(x, w, b):
    y = jax.lax.conv_general_dilated(
        x, w, window_strides=(1, 1, 1), padding=((1, 1), (1, 1), (1, 1)),
        dimension_numbers=("NCDHW", "OIDHW", "NCDHW"),
        precision=jax.lax.Precision.HIGHEST)
    return jax.nn.relu(y + b[None, :, None, None, None])


def _convT3d_ref(x, w, b):
    wf = jnp.flip(w, axis=(2, 3, 4)).transpose(1, 0, 2, 3, 4)   # (Cout, Cin, 3, 3, 3)
    y = jax.lax.conv_general_dilated(
        x, wf, window_strides=(1, 1, 1), padding=((1, 2), (1, 2), (1, 2)),
        lhs_dilation=(2, 2, 2),
        dimension_numbers=("NCDHW", "OIDHW", "NCDHW"),
        precision=jax.lax.Precision.HIGHEST)
    return jax.nn.relu(y + b[None, :, None, None, None])


def _up_ref(x1, x2, params):
    x2u = _convT3d_ref(x2, params["wT"], params["bT"])
    x = jnp.concatenate([x1, x2u], axis=1)
    x = _conv3d_ref(x, params["w1"], params["b1"])
    x = _conv3d_ref(x, params["w2"], params["b2"])
    return x


# ----------------------------------- main -----------------------------------
if __name__ == "__main__":
    inC, outC = 4, 4
    B, D, H, W = 2, 4, 4, 4          # x2 spatial; x1 / output spatial is 2x

    key = jax.random.PRNGKey(0)
    ks = jax.random.split(key, 8)
    x2 = jax.random.normal(ks[0], (B, inC, D, H, W), jnp.float32)
    x1 = jax.random.normal(ks[1], (B, outC, 2 * D, 2 * H, 2 * W), jnp.float32)

    params = {
        # ConvTranspose3d(inC, inC, 3): weight shape (Cin, Cout, 3, 3, 3)
        "wT": 0.1 * jax.random.normal(ks[2], (inC, inC, 3, 3, 3), jnp.float32),
        "bT": 0.1 * jax.random.normal(ks[3], (inC,), jnp.float32),
        # double_conv(inC+outC, outC): Conv3d weights (Cout, Cin, 3, 3, 3)
        "w1": 0.1 * jax.random.normal(ks[4], (outC, inC + outC, 3, 3, 3), jnp.float32),
        "b1": 0.1 * jax.random.normal(ks[5], (outC,), jnp.float32),
        "w2": 0.1 * jax.random.normal(ks[6], (outC, outC, 3, 3, 3), jnp.float32),
        "b2": 0.1 * jax.random.normal(ks[7], (outC,), jnp.float32),
    }

    up_fn = jax.jit(up_forward)
    out = jax.block_until_ready(up_fn(x1, x2, params))
    assert out.shape == (B, outC, 2 * D, 2 * H, 2 * W), out.shape

    ref = jax.block_until_ready(jax.jit(_up_ref)(x1, x2, params))
    if not jnp.allclose(out, ref, atol=1e-3, rtol=1e-3):
        err = float(jnp.max(jnp.abs(out - ref)))
        raise AssertionError(f"Pallas output does not match JAX reference (max err={err})")

    print("KERNEL_OK")
</pallas_src>

<mosaic_0001>
module attributes {stable_mosaic.version = 11 : i64} {
  func.func @_fused_taps_kernel(%arg0: i32, %arg1: memref<1x4x175xf32, #tpu.memory_space<vmem>>, %arg2: memref<32x32xf32, #tpu.memory_space<vmem>>, %arg3: memref<32x1xf32, #tpu.memory_space<vmem>>, %arg4: memref<1x32x128xf32, #tpu.memory_space<vmem>>, %arg5: memref<32x128xf32, #tpu.memory_space<vmem>>) attributes {dimension_semantics = [#tpu.dimension_semantics<parallel>], iteration_bounds = array<i64: 2>, scalar_prefetch = 0 : i64, scratch_operands = 1 : i64, tpu.core_type = #tpu.core_type<tc>, window_params = [{transform_indices = @transform_0, window_bounds = array<i64: 1, 4, 175>}, {pipeline_mode = #tpu.pipeline_mode<synchronous>, transform_indices = @transform_1, window_bounds = array<i64: 32, 32>}, {pipeline_mode = #tpu.pipeline_mode<synchronous>, transform_indices = @transform_2, window_bounds = array<i64: 32, 1>}, {transform_indices = @transform_3, window_bounds = array<i64: 1, 32, 128>}]} {
    %c0 = arith.constant 0 : index
    %c0_0 = arith.constant 0 : index
    %c0_1 = arith.constant 0 : index
    %0 = vector.load %arg1[%c0, %c0_0, %c0_1] : memref<1x4x175xf32, #tpu.memory_space<vmem>>, vector<1x4x128xf32>
    %1 = vector.shape_cast %0 : vector<1x4x128xf32> to vector<4x128xf32>
    %c0_2 = arith.constant 0 : index
    %c0_3 = arith.constant 0 : index
    %2 = vector.load %arg5[%c0_2, %c0_3] : memref<32x128xf32, #tpu.memory_space<vmem>>, vector<4x128xf32>
    tpu.vector_store %arg5[%c0_2, %c0_3], %1 {strides = array<i32>} : memref<32x128xf32, #tpu.memory_space<vmem>>, vector<4x128xf32>,
    %c0_4 = arith.constant 0 : index
    %c0_5 = arith.constant 0 : index
    %c1 = arith.constant 1 : index
    %3 = vector.load %arg1[%c0_4, %c0_5, %c1] : memref<1x4x175xf32, #tpu.memory_space<vmem>>, vector<1x4x128xf32>
    %4 = vector.shape_cast %3 : vector<1x4x128xf32> to vector<4x128xf32>
    %c4 = arith.constant 4 : index
    %c0_6 = arith.constant 0 : index
    %5 = vector.load %arg5[%c4, %c0_6] : memref<32x128xf32, #tpu.memory_space<vmem>>, vector<4x128xf32>
    tpu.vector_store %arg5[%c4, %c0_6], %4 {strides = array<i32>} : memref<32x128xf32, #tpu.memory_space<vmem>>, vector<4x128xf32>,
    %c0_7 = arith.constant 0 : index
    %c0_8 = arith.constant 0 : index
    %c5 = arith.constant 5 : index
    %6 = vector.load %arg1[%c0_7, %c0_8, %c5] : memref<1x4x175xf32, #tpu.memory_space<vmem>>, vector<1x4x128xf32>
    %7 = vector.shape_cast %6 : vector<1x4x128xf32> to vector<4x128xf32>
    %c8 = arith.constant 8 : index
    %c0_9 = arith.constant 0 : index
    %8 = vector.load %arg5[%c8, %c0_9] : memref<32x128xf32, #tpu.memory_space<vmem>>, vector<4x128xf32>
    tpu.vector_store %arg5[%c8, %c0_9], %7 {strides = array<i32>} : memref<32x128xf32, #tpu.memory_space<vmem>>, vector<4x128xf32>,
    %c0_10 = arith.constant 0 : index
    %c0_11 = arith.constant 0 : index
    %c6 = arith.constant 6 : index
    %9 = vector.load %arg1[%c0_10, %c0_11, %c6] : memref<1x4x175xf32, #tpu.memory_space<vmem>>, vector<1x4x128xf32>
    %10 = vector.shape_cast %9 : vector<1x4x128xf32> to vector<4x128xf32>
    %c12 = arith.constant 12 : index
    %c0_12 = arith.constant 0 : index
    %11 = vector.load %arg5[%c12, %c0_12] : memref<32x128xf32, #tpu.memory_space<vmem>>, vector<4x128xf32>
    tpu.vector_store %arg5[%c12, %c0_12], %10 {strides = array<i32>} : memref<32x128xf32, #tpu.memory_space<vmem>>, vector<4x128xf32>,
    %c0_13 = arith.constant 0 : index
    %c0_14 = arith.constant 0 : index
    %c25 = arith.constant 25 : index
    %12 = vector.load %arg1[%c0_13, %c0_14, %c25] : memref<1x4x175xf32, #tpu.memory_space<vmem>>, vector<1x4x128xf32>
    %13 = vector.shape_cast %12 : vector<1x4x128xf32> to vector<4x128xf32>
    %c16 = arith.constant 16 : index
    %c0_15 = arith.constant 0 : index
    %14 = vector.load %arg5[%c16, %c0_15] : memref<32x128xf32, #tpu.memory_space<vmem>>, vector<4x128xf32>
    tpu.vector_store %arg5[%c16, %c0_15], %13 {strides = array<i32>} : memref<32x128xf32, #tpu.memory_space<vmem>>, vector<4x128xf32>,
    %c0_16 = arith.constant 0 : index
    %c0_17 = arith.constant 0 : index
    %c26 = arith.constant 26 : index
    %15 = vector.load %arg1[%c0_16, %c0_17, %c26] : memref<1x4x175xf32, #tpu.memory_space<vmem>>, vector<1x4x128xf32>
    %16 = vector.shape_cast %15 : vector<1x4x128xf32> to vector<4x128xf32>
    %c20 = arith.constant 20 : index
    %c0_18 = arith.constant 0 : index
    %17 = vector.load %arg5[%c20, %c0_18] : memref<32x128xf32, #tpu.memory_space<vmem>>, vector<4x128xf32>
    tpu.vector_store %arg5[%c20, %c0_18], %16 {strides = array<i32>} : memref<32x128xf32, #tpu.memory_space<vmem>>, vector<4x128xf32>,
    %c0_19 = arith.constant 0 : index
    %c0_20 = arith.constant 0 : index
    %c30 = arith.constant 30 : index
    %18 = vector.load %arg1[%c0_19, %c0_20, %c30] : memref<1x4x175xf32, #tpu.memory_space<vmem>>, vector<1x4x128xf32>
    %19 = vector.shape_cast %18 : vector<1x4x128xf32> to vector<4x128xf32>
    %c24 = arith.constant 24 : index
    %c0_21 = arith.constant 0 : index
    %20 = vector.load %arg5[%c24, %c0_21] : memref<32x128xf32, #tpu.memory_space<vmem>>, vector<4x128xf32>
    tpu.vector_store %arg5[%c24, %c0_21], %19 {strides = array<i32>} : memref<32x128xf32, #tpu.memory_space<vmem>>, vector<4x128xf32>,
    %c0_22 = arith.constant 0 : index
    %c0_23 = arith.constant 0 : index
    %c31 = arith.constant 31 : index
    %21 = vector.load %arg1[%c0_22, %c0_23, %c31] : memref<1x4x175xf32, #tpu.memory_space<vmem>>, vector<1x4x128xf32>
    %22 = vector.shape_cast %21 : vector<1x4x128xf32> to vector<4x128xf32>
    %c28 = arith.constant 28 : index
    %c0_24 = arith.constant 0 : index
    %23 = vector.load %arg5[%c28, %c0_24] : memref<32x128xf32, #tpu.memory_space<vmem>>, vector<4x128xf32>
    tpu.vector_store %arg5[%c28, %c0_24], %22 {strides = array<i32>} : memref<32x128xf32, #tpu.memory_space<vmem>>, vector<4x128xf32>,
    %c0_25 = arith.constant 0 : index
    %c0_26 = arith.constant 0 : index
    %24 = vector.load %arg2[%c0_25, %c0_26] : memref<32x32xf32, #tpu.memory_space<vmem>>, vector<32x32xf32>
    %c0_27 = arith.constant 0 : index
    %c0_28 = arith.constant 0 : index
    %25 = vector.load %arg5[%c0_27, %c0_28] : memref<32x128xf32, #tpu.memory_space<vmem>>, vector<32x128xf32>
    %cst = arith.constant dense<0.000000e+00> : vector<32x128xf32>
    %26 = tpu.matmul %24, %25, %cst {dimension_numbers = #tpu.dot_dimension_numbers<[1], [0], [0], [1], [0, 0, 1, 1], [], []>} : vector<32x32xf32>, vector<32x128xf32>, vector<32x128xf32> -> vector<32x128xf32>
    %c0_29 = arith.constant 0 : index
    %c0_30 = arith.constant 0 : index
    %27 = vector.load %arg3[%c0_29, %c0_30] : memref<32x1xf32, #tpu.memory_space<vmem>>, vector<32x1xf32>
    %28 = vector.broadcast %27 : vector<32x1xf32> to vector<32x128xf32>
    %29 = arith.addf %26, %28 : vector<32x128xf32>
    %cst_31 = arith.constant 0.000000e+00 : f32
    %30 = vector.broadcast %cst_31 : f32 to vector<32x128xf32>
    %31 = arith.maximumf %29, %30 : vector<32x128xf32>
    %c0_32 = arith.constant 0 : index
    %c0_33 = arith.constant 0 : index
    %c0_34 = arith.constant 0 : index
    %32 = vector.load %arg4[%c0_32, %c0_33, %c0_34] : memref<1x32x128xf32, #tpu.memory_space<vmem>>, vector<1x32x128xf32>
    %33 = vector.shape_cast %32 : vector<1x32x128xf32> to vector<32x128xf32>
    %34 = vector.shape_cast %31 : vector<32x128xf32> to vector<1x32x128xf32>
    tpu.vector_store %arg4[%c0_32, %c0_33, %c0_34], %34 {strides = array<i32>} : memref<1x32x128xf32, #tpu.memory_space<vmem>>, vector<1x32x128xf32>,
    return
  }
  func.func @transform_0(%arg0: i32) -> (i32, i32, i32) {
    %c0_i32 = arith.constant 0 : i32
    %c0_i32_0 = arith.constant 0 : i32
    %c0_i32_1 = arith.constant 0 : i32
    return %arg0, %c0_i32, %c0_i32_0 : i32, i32, i32
  }
  func.func @transform_1(%arg0: i32) -> (i32, i32) {
    %c0_i32 = arith.constant 0 : i32
    %c0_i32_0 = arith.constant 0 : i32
    %c0_i32_1 = arith.constant 0 : i32
    return %c0_i32, %c0_i32_0 : i32, i32
  }
  func.func @transform_2(%arg0: i32) -> (i32, i32) {
    %c0_i32 = arith.constant 0 : i32
    %c0_i32_0 = arith.constant 0 : i32
    %c0_i32_1 = arith.constant 0 : i32
    return %c0_i32, %c0_i32_0 : i32, i32
  }
  func.func @transform_3(%arg0: i32) -> (i32, i32, i32) {
    %c0_i32 = arith.constant 0 : i32
    %c0_i32_0 = arith.constant 0 : i32
    %c0_i32_1 = arith.constant 0 : i32
    return %arg0, %c0_i32, %c0_i32_0 : i32, i32, i32
  }
}

module attributes {stable_mosaic.version = 11 : i64} {
  func.func @_fused_taps_kernel(%arg0: i32, %arg1: memref<1x4x1200xf32, #tpu.memory_space<vmem>>, %arg2: memref<1x4x1200xf32, #tpu.memory_space<vmem>>, %arg3: memref<4x216xf32, #tpu.memory_space<vmem>>, %arg4: memref<4x1xf32, #tpu.memory_space<vmem>>, %arg5: memref<1x4x896xf32, #tpu.memory_space<vmem>>, %arg6: memref<216x896xf32, #tpu.memory_space<vmem>>) attributes {dimension_semantics = [#tpu.dimension_semantics<parallel>], iteration_bounds = array<i64: 2>, scalar_prefetch = 0 : i64, scratch_operands = 1 : i64, tpu.core_type = #tpu.core_type<tc>, window_params = [{transform_indices = @transform_0, window_bounds = array<i64: 1, 4, 1200>}, {transform_indices = @transform_1, window_bounds = array<i64: 1, 4, 1200>}, {pipeline_mode = #tpu.pipeline_mode<synchronous>, transform_indices = @transform_2, window_bounds = array<i64: 4, 216>}, {pipeline_mode = #tpu.pipeline_mode<synchronous>, transform_indices = @transform_3, window_bounds = array<i64: 4, 1>}, {transform_indices = @transform_4, window_bounds = array<i64: 1, 4, 896>}]} {
    %c0 = arith.constant 0 : index
    %c0_0 = arith.constant 0 : index
    %c0_1 = arith.constant 0 : index
    %0 = vector.load %arg1[%c0, %c0_0, %c0_1] : memref<1x4x1200xf32, #tpu.memory_space<vmem>>, vector<1x4x896xf32>
    %1 = vector.shape_cast %0 : vector<1x4x896xf32> to vector<4x896xf32>
    %c0_2 = arith.constant 0 : index
    %c0_3 = arith.constant 0 : index
    %2 = vector.load %arg6[%c0_2, %c0_3] : memref<216x896xf32, #tpu.memory_space<vmem>>, vector<4x896xf32>
    tpu.vector_store %arg6[%c0_2, %c0_3], %1 {strides = array<i32>} : memref<216x896xf32, #tpu.memory_space<vmem>>, vector<4x896xf32>,
    %c0_4 = arith.constant 0 : index
    %c0_5 = arith.constant 0 : index
    %c0_6 = arith.constant 0 : index
    %3 = vector.load %arg2[%c0_4, %c0_5, %c0_6] : memref<1x4x1200xf32, #tpu.memory_space<vmem>>, vector<1x4x896xf32>
    %4 = vector.shape_cast %3 : vector<1x4x896xf32> to vector<4x896xf32>
    %c4 = arith.constant 4 : index
    %c0_7 = arith.constant 0 : index
    %5 = vector.load %arg6[%c4, %c0_7] : memref<216x896xf32, #tpu.memory_space<vmem>>, vector<4x896xf32>
    tpu.vector_store %arg6[%c4, %c0_7], %4 {strides = array<i32>} : memref<216x896xf32, #tpu.memory_space<vmem>>, vector<4x896xf32>,
    %c0_8 = arith.constant 0 : index
    %c0_9 = arith.constant 0 : index
    %c1 = arith.constant 1 : index
    %6 = vector.load %arg1[%c0_8, %c0_9, %c1] : memref<1x4x1200xf32, #tpu.memory_space<vmem>>, vector<1x4x896xf32>
    %7 = vector.shape_cast %6 : vector<1x4x896xf32> to vector<4x896xf32>
    %c8 = arith.constant 8 : index
    %c0_10 = arith.constant 0 : index
    %8 = vector.load %arg6[%c8, %c0_10] : memref<216x896xf32, #tpu.memory_space<vmem>>, vector<4x896xf32>
    tpu.vector_store %arg6[%c8, %c0_10], %7 {strides = array<i32>} : memref<216x896xf32, #tpu.memory_space<vmem>>, vector<4x896xf32>,
    %c0_11 = arith.constant 0 : index
    %c0_12 = arith.constant 0 : index
    %c1_13 = arith.constant 1 : index
    %9 = vector.load %arg2[%c0_11, %c0_12, %c1_13] : memref<1x4x1200xf32, #tpu.memory_space<vmem>>, vector<1x4x896xf32>
    %10 = vector.shape_cast %9 : vector<1x4x896xf32> to vector<4x896xf32>
    %c12 = arith.constant 12 : index
    %c0_14 = arith.constant 0 : index
    %11 = vector.load %arg6[%c12, %c0_14] : memref<216x896xf32, #tpu.memory_space<vmem>>, vector<4x896xf32>
    tpu.vector_store %arg6[%c12, %c0_14], %10 {strides = array<i32>} : memref<216x896xf32, #tpu.memory_space<vmem>>, vector<4x896xf32>,
    %c0_15 = arith.constant 0 : index
    %c0_16 = arith.constant 0 : index
    %c2 = arith.constant 2 : index
    %12 = vector.load %arg1[%c0_15, %c0_16, %c2] : memref<1x4x1200xf32, #tpu.memory_space<vmem>>, vector<1x4x896xf32>
    %13 = vector.shape_cast %12 : vector<1x4x896xf32> to vector<4x896xf32>
    %c16 = arith.constant 16 : index
    %c0_17 = arith.constant 0 : index
    %14 = vector.load %arg6[%c16, %c0_17] : memref<216x896xf32, #tpu.memory_space<vmem>>, vector<4x896xf32>
    tpu.vector_store %arg6[%c16, %c0_17], %13 {strides = array<i32>} : memref<216x896xf32, #tpu.memory_space<vmem>>, vector<4x896xf32>,
    %c0_18 = arith.constant 0 : index
    %c0_19 = arith.constant 0 : index
    %c2_20 = arith.constant 2 : index
    %15 = vector.load %arg2[%c0_18, %c0_19, %c2_20] : memref<1x4x1200xf32, #tpu.memory_space<vmem>>, vector<1x4x896xf32>
    %16 = vector.shape_cast %15 : vector<1x4x896xf32> to vector<4x896xf32>
    %c20 = arith.constant 20 : index
    %c0_21 = arith.constant 0 : index
    %17 = vector.load %arg6[%c20, %c0_21] : memref<216x896xf32, #tpu.memory_space<vmem>>, vector<4x896xf32>
    tpu.vector_store %arg6[%c20, %c0_21], %16 {strides = array<i32>} : memref<216x896xf32, #tpu.memory_space<vmem>>, vector<4x896xf32>,
    %c0_22 = arith.constant 0 : index
    %c0_23 = arith.constant 0 : index
    %c10 = arith.constant 10 : index
    %18 = vector.load %arg1[%c0_22, %c0_23, %c10] : memref<1x4x1200xf32, #tpu.memory_space<vmem>>, vector<1x4x896xf32>
    %19 = vector.shape_cast %18 : vector<1x4x896xf32> to vector<4x896xf32>
    %c24 = arith.constant 24 : index
    %c0_24 = arith.constant 0 : index
    %20 = vector.load %arg6[%c24, %c0_24] : memref<216x896xf32, #tpu.memory_space<vmem>>, vector<4x896xf32>
    tpu.vector_store %arg6[%c24, %c0_24], %19 {strides = array<i32>} : memref<216x896xf32, #tpu.memory_space<vmem>>, vector<4x896xf32>,
    %c0_25 = arith.constant 0 : index
    %c0_26 = arith.constant 0 : index
    %c10_27 = arith.constant 10 : index
    %21 = vector.load %arg2[%c0_25, %c0_26, %c10_27] : memref<1x4x1200xf32, #tpu.memory_space<vmem>>, vector<1x4x896xf32>
    %22 = vector.shape_cast %21 : vector<1x4x896xf32> to vector<4x896xf32>
    %c28 = arith.constant 28 : index
    %c0_28 = arith.constant 0 : index
    %23 = vector.load %arg6[%c28, %c0_28] : memref<216x896xf32, #tpu.memory_space<vmem>>, vector<4x896xf32>
    tpu.vector_store %arg6[%c28, %c0_28], %22 {strides = array<i32>} : memref<216x896xf32, #tpu.memory_space<vmem>>, vector<4x896xf32>,
    %c0_29 = arith.constant 0 : index
    %c0_30 = arith.constant 0 : index
    %c11 = arith.constant 11 : index
    %24 = vector.load %arg1[%c0_29, %c0_30, %c11] : memref<1x4x1200xf32, #tpu.memory_space<vmem>>, vector<1x4x896xf32>
    %25 = vector.shape_cast %24 : vector<1x4x896xf32> to vector<4x896xf32>
    %c32 = arith.constant 32 : index
    %c0_31 = arith.constant 0 : index
    %26 = vector.load %arg6[%c32, %c0_31] : memref<216x896xf32, #tpu.memory_space<vmem>>, vector<4x896xf32>
    tpu.vector_store %arg6[%c32, %c0_31], %25 {strides = array<i32>} : memref<216x896xf32, #tpu.memory_space<vmem>>, vector<4x896xf32>,
    %c0_32 = arith.constant 0 : index
    %c0_33 = arith.constant 0 : index
    %c11_34 = arith.constant 11 : index
    %27 = vector.load %arg2[%c0_32, %c0_33, %c11_34] : memref<1x4x1200xf32, #tpu.memory_space<vmem>>, vector<1x4x896xf32>
    %28 = vector.shape_cast %27 : vector<1x4x896xf32> to vector<4x896xf32>
    %c36 = arith.constant 36 : index
    %c0_35 = arith.constant 0 : index
    %29 = vector.load %arg6[%c36, %c0_35] : memref<216x896xf32, #tpu.memory_space<vmem>>, vector<4x896xf32>
    tpu.vector_store %arg6[%c36, %c0_35], %28 {strides = array<i32>} : memref<216x896xf32, #tpu.memory_space<vmem>>, vector<4x896xf32>,
    %c0_36 = arith.constant 0 : index
    %c0_37 = arith.constant 0 : index
    %c12_38 = arith.constant 12 : index
    %30 = vector.load %arg1[%c0_36, %c0_37, %c12_38] : memref<1x4x1200xf32, #tpu.memory_space<vmem>>, vector<1x4x896xf32>
    %31 = vector.shape_cast %30 : vector<1x4x896xf32> to vector<4x896xf32>
    %c40 = arith.constant 40 : index
    %c0_39 = arith.constant 0 : index
    %32 = vector.load %arg6[%c40, %c0_39] : memref<216x896xf32, #tpu.memory_space<vmem>>, vector<4x896xf32>
    tpu.vector_store %arg6[%c40, %c0_39], %31 {strides = array<i32>} : memref<216x896xf32, #tpu.memory_space<vmem>>, vector<4x896xf32>,
    %c0_40 = arith.constant 0 : index
    %c0_41 = arith.constant 0 : index
    %c12_42 = arith.constant 12 : index
    %33 = vector.load %arg2[%c0_40, %c0_41, %c12_42] : memref<1x4x1200xf32, #tpu.memory_space<vmem>>, vector<1x4x896xf32>
    %34 = vector.shape_cast %33 : vector<1x4x896xf32> to vector<4x896xf32>
    %c44 = arith.constant 44 : index
    %c0_43 = arith.constant 0 : index
    %35 = vector.load %arg6[%c44, %c0_43] : memref<216x896xf32, #tpu.memory_space<vmem>>, vector<4x896xf32>
    tpu.vector_store %arg6[%c44, %c0_43], %34 {strides = array<i32>} : memref<216x896xf32, #tpu.memory_space<vmem>>, vector<4x896xf32>,
    %c0_44 = arith.constant 0 : index
    %c0_45 = arith.constant 0 : index
    %c20_46 = arith.constant 20 : index
    %36 = vector.load %arg1[%c0_44, %c0_45, %c20_46] : memref<1x4x1200xf32, #tpu.memory_space<vmem>>, vector<1x4x896xf32>
    %37 = vector.shape_cast %36 : vector<1x4x896xf32> to vector<4x896xf32>
    %c48 = arith.constant 48 : index
    %c0_47 = arith.constant 0 : index
    %38 = vector.load %arg6[%c48, %c0_47] : memref<216x896xf32, #tpu.memory_space<vmem>>, vector<4x896xf32>
    tpu.vector_store %arg6[%c48, %c0_47], %37 {strides = array<i32>} : memref<216x896xf32, #tpu.memory_space<vmem>>, vector<4x896xf32>,
    %c0_48 = arith.constant 0 : index
    %c0_49 = arith.constant 0 : index
    %c20_50 = arith.constant 20 : index
    %39 = vector.load %arg2[%c0_48, %c0_49, %c20_50] : memref<1x4x1200xf32, #tpu.memory_space<vmem>>, vector<1x4x896xf32>
    %40 = vector.shape_cast %39 : vector<1x4x896xf32> to vector<4x896xf32>
    %c52 = arith.constant 52 : index
    %c0_51 = arith.constant 0 : index
    %41 = vector.load %arg6[%c52, %c0_51] : memref<216x896xf32, #tpu.memory_space<vmem>>, vector<4x896xf32>
    tpu.vector_store %arg6[%c52, %c0_51], %40 {strides = array<i32>} : memref<216x896xf32, #tpu.memory_space<vmem>>, vector<4x896xf32>,
    %c0_52 = arith.constant 0 : index
    %c0_53 = arith.constant 0 : index
    %c21 = arith.constant 21 : index
    %42 = vector.load %arg1[%c0_52, %c0_53, %c21] : memref<1x4x1200xf32, #tpu.memory_space<vmem>>, vector<1x4x896xf32>
    %43 = vector.shape_cast %42 : vector<1x4x896xf32> to vector<4x896xf32>
    %c56 = arith.constant 56 : index
    %c0_54 = arith.constant 0 : index
    %44 = vector.load %arg6[%c56, %c0_54] : memref<216x896xf32, #tpu.memory_space<vmem>>, vector<4x896xf32>
    tpu.vector_store %arg6[%c56, %c0_54], %43 {strides = array<i32>} : memref<216x896xf32, #tpu.memory_space<vmem>>, vector<4x896xf32>,
    %c0_55 = arith.constant 0 : index
    %c0_56 = arith.constant 0 : index
    %c21_57 = arith.constant 21 : index
    %45 = vector.load %arg2[%c0_55, %c0_56, %c21_57] : memref<1x4x1200xf32, #tpu.memory_space<vmem>>, vector<1x4x896xf32>
    %46 = vector.shape_cast %45 : vector<1x4x896xf32> to vector<4x896xf32>
    %c60 = arith.constant 60 : index
    %c0_58 = arith.constant 0 : index
    %47 = vector.load %arg6[%c60, %c0_58] : memref<216x896xf32, #tpu.memory_space<vmem>>, vector<4x896xf32>
    tpu.vector_store %arg6[%c60, %c0_58], %46 {strides = array<i32>} : memref<216x896xf32, #tpu.memory_space<vmem>>, vector<4x896xf32>,
    %c0_59 = arith.constant 0 : index
    %c0_60 = arith.constant 0 : index
    %c22 = arith.constant 22 : index
    %48 = vector.load %arg1[%c0_59, %c0_60, %c22] : memref<1x4x1200xf32, #tpu.memory_space<vmem>>, vector<1x4x896xf32>
    %49 = vector.shape_cast %48 : vector<1x4x896xf32> to vector<4x896xf32>
    %c64 = arith.constant 64 : index
    %c0_61 = arith.constant 0 : index
    %50 = vector.load %arg6[%c64, %c0_61] : memref<216x896xf32, #tpu.memory_space<vmem>>, vector<4x896xf32>
    tpu.vector_store %arg6[%c64, %c0_61], %49 {strides = array<i32>} : memref<216x896xf32, #tpu.memory_space<vmem>>, vector<4x896xf32>,
    %c0_62 = arith.constant 0 : index
    %c0_63 = arith.constant 0 : index
    %c22_64 = arith.constant 22 : index
    %51 = vector.load %arg2[%c0_62, %c0_63, %c22_64] : memref<1x4x1200xf32, #tpu.memory_space<vmem>>, vector<1x4x896xf32>
    %52 = vector.shape_cast %51 : vector<1x4x896xf32> to vector<4x896xf32>
    %c68 = arith.constant 68 : index
    %c0_65 = arith.constant 0 : index
    %53 = vector.load %arg6[%c68, %c0_65] : memref<216x896xf32, #tpu.memory_space<vmem>>, vector<4x896xf32>
    tpu.vector_store %arg6[%c68, %c0_65], %52 {strides = array<i32>} : memref<216x896xf32, #tpu.memory_space<vmem>>, vector<4x896xf32>,
    %c0_66 = arith.constant 0 : index
    %c0_67 = arith.constant 0 : index
    %c100 = arith.constant 100 : index
    %54 = vector.load %arg1[%c0_66, %c0_67, %c100] : memref<1x4x1200xf32, #tpu.memory_space<vmem>>, vector<1x4x896xf32>
    %55 = vector.shape_cast %54 : vector<1x4x896xf32> to vector<4x896xf32>
    %c72 = arith.constant 72 : index
    %c0_68 = arith.constant 0 : index
    %56 = vector.load %arg6[%c72, %c0_68] : memref<216x896xf32, #tpu.memory_space<vmem>>, vector<4x896xf32>
    tpu.vector_store %arg6[%c72, %c0_68], %55 {strides = array<i32>} : memref<216x896xf32, #tpu.memory_space<vmem>>, vector<4x896xf32>,
    %c0_69 = arith.constant 0 : index
    %c0_70 = arith.constant 0 : index
    %c100_71 = arith.constant 100 : index
    %57 = vector.load %arg2[%c0_69, %c0_70, %c100_71] : memref<1x4x1200xf32, #tpu.memory_space<vmem>>, vector<1x4x896xf32>
    %58 = vector.shape_cast %57 : vector<1x4x896xf32> to vector<4x896xf32>
    %c76 = arith.constant 76 : index
    %c0_72 = arith.constant 0 : index
    %59 = vector.load %arg6[%c76, %c0_72] : memref<216x896xf32, #tpu.memory_space<vmem>>, vector<4x896xf32>
    tpu.vector_store %arg6[%c76, %c0_72], %58 {strides = array<i32>} : memref<216x896xf32, #tpu.memory_space<vmem>>, vector<4x896xf32>,
    %c0_73 = arith.constant 0 : index
    %c0_74 = arith.constant 0 : index
    %c101 = arith.constant 101 : index
    %60 = vector.load %arg1[%c0_73, %c0_74, %c101] : memref<1x4x1200xf32, #tpu.memory_space<vmem>>, vector<1x4x896xf32>
    %61 = vector.shape_cast %60 : vector<1x4x896xf32> to vector<4x896xf32>
    %c80 = arith.constant 80 : index
    %c0_75 = arith.constant 0 : index
    %62 = vector.load %arg6[%c80, %c0_75] : memref<216x896xf32, #tpu.memory_space<vmem>>, vector<4x896xf32>
    tpu.vector_store %arg6[%c80, %c0_75], %61 {strides = array<i32>} : memref<216x896xf32, #tpu.memory_space<vmem>>, vector<4x896xf32>,
    %c0_76 = arith.constant 0 : index
    %c0_77 = arith.constant 0 : index
    %c101_78 = arith.constant 101 : index
    %63 = vector.load %arg2[%c0_76, %c0_77, %c101_78] : memref<1x4x1200xf32, #tpu.memory_space<vmem>>, vector<1x4x896xf32>
    %64 = vector.shape_cast %63 : vector<1x4x896xf32> to vector<4x896xf32>
    %c84 = arith.constant 84 : index
    %c0_79 = arith.constant 0 : index
    %65 = vector.load %arg6[%c84, %c0_79] : memref<216x896xf32, #tpu.memory_space<vmem>>, vector<4x896xf32>
    tpu.vector_store %arg6[%c84, %c0_79], %64 {strides = array<i32>} : memref<216x896xf32, #tpu.memory_space<vmem>>, vector<4x896xf32>,
    %c0_80 = arith.constant 0 : index
    %c0_81 = arith.constant 0 : index
    %c102 = arith.constant 102 : index
    %66 = vector.load %arg1[%c0_80, %c0_81, %c102] : memref<1x4x1200xf32, #tpu.memory_space<vmem>>, vector<1x4x896xf32>
    %67 = vector.shape_cast %66 : vector<1x4x896xf32> to vector<4x896xf32>
    %c88 = arith.constant 88 : index
    %c0_82 = arith.constant 0 : index
    %68 = vector.load %arg6[%c88, %c0_82] : memref<216x896xf32, #tpu.memory_space<vmem>>, vector<4x896xf32>
    tpu.vector_store %arg6[%c88, %c0_82], %67 {strides = array<i32>} : memref<216x896xf32, #tpu.memory_space<vmem>>, vector<4x896xf32>,
    %c0_83 = arith.constant 0 : index
    %c0_84 = arith.constant 0 : index
    %c102_85 = arith.constant 102 : index
    %69 = vector.load %arg2[%c0_83, %c0_84, %c102_85] : memref<1x4x1200xf32, #tpu.memory_space<vmem>>, vector<1x4x896xf32>
    %70 = vector.shape_cast %69 : vector<1x4x896xf32> to vector<4x896xf32>
    %c92 = arith.constant 92 : index
    %c0_86 = arith.constant 0 : index
    %71 = vector.load %arg6[%c92, %c0_86] : memref<216x896xf32, #tpu.memory_space<vmem>>, vector<4x896xf32>
    tpu.vector_store %arg6[%c92, %c0_86], %70 {strides = array<i32>} : memref<216x896xf32, #tpu.memory_space<vmem>>, vector<4x896xf32>,
    %c0_87 = arith.constant 0 : index
    %c0_88 = arith.constant 0 : index
    %c110 = arith.constant 110 : index
    %72 = vector.load %arg1[%c0_87, %c0_88, %c110] : memref<1x4x1200xf32, #tpu.memory_space<vmem>>, vector<1x4x896xf32>
    %73 = vector.shape_cast %72 : vector<1x4x896xf32> to vector<4x896xf32>
    %c96 = arith.constant 96 : index
    %c0_89 = arith.constant 0 : index
    %74 = vector.load %arg6[%c96, %c0_89] : memref<216x896xf32, #tpu.memory_space<vmem>>, vector<4x896xf32>
    tpu.vector_store %arg6[%c96, %c0_89], %73 {strides = array<i32>} : memref<216x896xf32, #tpu.memory_space<vmem>>, vector<4x896xf32>,
    %c0_90 = arith.constant 0 : index
    %c0_91 = arith.constant 0 : index
    %c110_92 = arith.constant 110 : index
    %75 = vector.load %arg2[%c0_90, %c0_91, %c110_92] : memref<1x4x1200xf32, #tpu.memory_space<vmem>>, vector<1x4x896xf32>
    %76 = vector.shape_cast %75 : vector<1x4x896xf32> to vector<4x896xf32>
    %c100_93 = arith.constant 100 : index
    %c0_94 = arith.constant 0 : index
    %77 = vector.load %arg6[%c100_93, %c0_94] : memref<216x896xf32, #tpu.memory_space<vmem>>, vector<4x896xf32>
    tpu.vector_store %arg6[%c100_93, %c0_94], %76 {strides = array<i32>} : memref<216x896xf32, #tpu.memory_space<vmem>>, vector<4x896xf32>,
    %c0_95 = arith.constant 0 : index
    %c0_96 = arith.constant 0 : index
    %c111 = arith.constant 111 : index
    %78 = vector.load %arg1[%c0_95, %c0_96, %c111] : memref<1x4x1200xf32, #tpu.memory_space<vmem>>, vector<1x4x896xf32>
    %79 = vector.shape_cast %78 : vector<1x4x896xf32> to vector<4x896xf32>
    %c104 = arith.constant 104 : index
    %c0_97 = arith.constant 0 : index
    %80 = vector.load %arg6[%c104, %c0_97] : memref<216x896xf32, #tpu.memory_space<vmem>>, vector<4x896xf32>
    tpu.vector_store %arg6[%c104, %c0_97], %79 {strides = array<i32>} : memref<216x896xf32, #tpu.memory_space<vmem>>, vector<4x896xf32>,
    %c0_98 = arith.constant 0 : index
    %c0_99 = arith.constant 0 : index
    %c111_100 = arith.constant 111 : index
    %81 = vector.load %arg2[%c0_98, %c0_99, %c111_100] : memref<1x4x1200xf32, #tpu.memory_space<vmem>>, vector<1x4x896xf32>
    %82 = vector.shape_cast %81 : vector<1x4x896xf32> to vector<4x896xf32>
    %c108 = arith.constant 108 : index
    %c0_101 = arith.constant 0 : index
    %83 = vector.load %arg6[%c108, %c0_101] : memref<216x896xf32, #tpu.memory_space<vmem>>, vector<4x896xf32>
    tpu.vector_store %arg6[%c108, %c0_101], %82 {strides = array<i32>} : memref<216x896xf32, #tpu.memory_space<vmem>>, vector<4x896xf32>,
    %c0_102 = arith.constant 0 : index
    %c0_103 = arith.constant 0 : index
    %c112 = arith.constant 112 : index
    %84 = vector.load %arg1[%c0_102, %c0_103, %c112] : memref<1x4x1200xf32, #tpu.memory_space<vmem>>, vector<1x4x896xf32>
    %85 = vector.shape_cast %84 : vector<1x4x896xf32> to vector<4x896xf32>
    %c112_104 = arith.constant 112 : index
    %c0_105 = arith.constant 0 : index
    %86 = vector.load %arg6[%c112_104, %c0_105] : memref<216x896xf32, #tpu.memory_space<vmem>>, vector<4x896xf32>
    tpu.vector_store %arg6[%c112_104, %c0_105], %85 {strides = array<i32>} : memref<216x896xf32, #tpu.memory_space<vmem>>, vector<4x896xf32>,
    %c0_106 = arith.constant 0 : index
    %c0_107 = arith.constant 0 : index
    %c112_108 = arith.constant 112 : index
    %87 = vector.load %arg2[%c0_106, %c0_107, %c112_108] : memref<1x4x1200xf32, #tpu.memory_space<vmem>>, vector<1x4x896xf32>
    %88 = vector.shape_cast %87 : vector<1x4x896xf32> to vector<4x896xf32>
    %c116 = arith.constant 116 : index
    %c0_109 = arith.constant 0 : index
    %89 = vector.load %arg6[%c116, %c0_109] : memref<216x896xf32, #tpu.memory_space<vmem>>, vector<4x896xf32>
    tpu.vector_store %arg6[%c116, %c0_109], %88 {strides = array<i32>} : memref<216x896xf32, #tpu.memory_space<vmem>>, vector<4x896xf32>,
    %c0_110 = arith.constant 0 : index
    %c0_111 = arith.constant 0 : index
    %c120 = arith.constant 120 : index
    %90 = vector.load %arg1[%c0_110, %c0_111, %c120] : memref<1x4x1200xf32, #tpu.memory_space<vmem>>, vector<1x4x896xf32>
    %91 = vector.shape_cast %90 : vector<1x4x896xf32> to vector<4x896xf32>
    %c120_112 = arith.constant 120 : index
    %c0_113 = arith.constant 0 : index
    %92 = vector.load %arg6[%c120_112, %c0_113] : memref<216x896xf32, #tpu.memory_space<vmem>>, vector<4x896xf32>
    tpu.vector_store %arg6[%c120_112, %c0_113], %91 {strides = array<i32>} : memref<216x896xf32, #tpu.memory_space<vmem>>, vector<4x896xf32>,
    %c0_114 = arith.constant 0 : index
    %c0_115 = arith.constant 0 : index
    %c120_116 = arith.constant 120 : index
    %93 = vector.load %arg2[%c0_114, %c0_115, %c120_116] : memref<1x4x1200xf32, #tpu.memory_space<vmem>>, vector<1x4x896xf32>
    %94 = vector.shape_cast %93 : vector<1x4x896xf32> to vector<4x896xf32>
    %c124 = arith.constant 124 : index
    %c0_117 = arith.constant 0 : index
    %95 = vector.load %arg6[%c124, %c0_117] : memref<216x896xf32, #tpu.memory_space<vmem>>, vector<4x896xf32>
    tpu.vector_store %arg6[%c124, %c0_117], %94 {strides = array<i32>} : memref<216x896xf32, #tpu.memory_space<vmem>>, vector<4x896xf32>,
    %c0_118 = arith.constant 0 : index
    %c0_119 = arith.constant 0 : index
    %c121 = arith.constant 121 : index
    %96 = vector.load %arg1[%c0_118, %c0_119, %c121] : memref<1x4x1200xf32, #tpu.memory_space<vmem>>, vector<1x4x896xf32>
    %97 = vector.shape_cast %96 : vector<1x4x896xf32> to vector<4x896xf32>
    %c128 = arith.constant 128 : index
    %c0_120 = arith.constant 0 : index
    %98 = vector.load %arg6[%c128, %c0_120] : memref<216x896xf32, #tpu.memory_space<vmem>>, vector<4x896xf32>
    tpu.vector_store %arg6[%c128, %c0_120], %97 {strides = array<i32>} : memref<216x896xf32, #tpu.memory_space<vmem>>, vector<4x896xf32>,
    %c0_121 = arith.constant 0 : index
    %c0_122 = arith.constant 0 : index
    %c121_123 = arith.constant 121 : index
    %99 = vector.load %arg2[%c0_121, %c0_122, %c121_123] : memref<1x4x1200xf32, #tpu.memory_space<vmem>>, vector<1x4x896xf32>
    %100 = vector.shape_cast %99 : vector<1x4x896xf32> to vector<4x896xf32>
    %c132 = arith.constant 132 : index
    %c0_124 = arith.constant 0 : index
    %101 = vector.load %arg6[%c132, %c0_124] : memref<216x896xf32, #tpu.memory_space<vmem>>, vector<4x896xf32>
    tpu.vector_store %arg6[%c132, %c0_124], %100 {strides = array<i32>} : memref<216x896xf32, #tpu.memory_space<vmem>>, vector<4x896xf32>,
    %c0_125 = arith.constant 0 : index
    %c0_126 = arith.constant 0 : index
    %c122 = arith.constant 122 : index
    %102 = vector.load %arg1[%c0_125, %c0_126, %c122] : memref<1x4x1200xf32, #tpu.memory_space<vmem>>, vector<1x4x896xf32>
    %103 = vector.shape_cast %102 : vector<1x4x896xf32> to vector<4x896xf32>
    %c136 = arith.constant 136 : index
    %c0_127 = arith.constant 0 : index
    %104 = vector.load %arg6[%c136, %c0_127] : memref<216x896xf32, #tpu.memory_space<vmem>>, vector<4x896xf32>
    tpu.vector_store %arg6[%c136, %c0_127], %103 {strides = array<i32>} : memref<216x896xf32, #tpu.memory_space<vmem>>, vector<4x896xf32>,
    %c0_128 = arith.constant 0 : index
    %c0_129 = arith.constant 0 : index
    %c122_130 = arith.constant 122 : index
    %105 = vector.load %arg2[%c0_128, %c0_129, %c122_130] : memref<1x4x1200xf32, #tpu.memory_space<vmem>>, vector<1x4x896xf32>
    %106 = vector.shape_cast %105 : vector<1x4x896xf32> to vector<4x896xf32>
    %c140 = arith.constant 140 : index
    %c0_131 = arith.constant 0 : index
    %107 = vector.load %arg6[%c140, %c0_131] : memref<216x896xf32, #tpu.memory_space<vmem>>, vector<4x896xf32>
    tpu.vector_store %arg6[%c140, %c0_131], %106 {strides = array<i32>} : memref<216x896xf32, #tpu.memory_space<vmem>>, vector<4x896xf32>,
    %c0_132 = arith.constant 0 : index
    %c0_133 = arith.constant 0 : index
    %c200 = arith.constant 200 : index
    %108 = vector.load %arg1[%c0_132, %c0_133, %c200] : memref<1x4x1200xf32, #tpu.memory_space<vmem>>, vector<1x4x896xf32>
    %109 = vector.shape_cast %108 : vector<1x4x896xf32> to vector<4x896xf32>
    %c144 = arith.constant 144 : index
    %c0_134 = arith.constant 0 : index
    %110 = vector.load %arg6[%c144, %c0_134] : memref<216x896xf32, #tpu.memory_space<vmem>>, vector<4x896xf32>
    tpu.vector_store %arg6[%c144, %c0_134], %109 {strides = array<i32>} : memref<216x896xf32, #tpu.memory_space<vmem>>, vector<4x896xf32>,
    %c0_135 = arith.constant 0 : index
    %c0_136 = arith.constant 0 : index
    %c200_137 = arith.constant 200 : index
    %111 = vector.load %arg2[%c0_135, %c0_136, %c200_137] : memref<1x4x1200xf32, #tpu.memory_space<vmem>>, vector<1x4x896xf32>
    %112 = vector.shape_cast %111 : vector<1x4x896xf32> to vector<4x896xf32>
    %c148 = arith.constant 148 : index
    %c0_138 = arith.constant 0 : index
    %113 = vector.load %arg6[%c148, %c0_138] : memref<216x896xf32, #tpu.memory_space<vmem>>, vector<4x896xf32>
    tpu.vector_store %arg6[%c148, %c0_138], %112 {strides = array<i32>} : memref<216x896xf32, #tpu.memory_space<vmem>>, vector<4x896xf32>,
    %c0_139 = arith.constant 0 : index
    %c0_140 = arith.constant 0 : index
    %c201 = arith.constant 201 : index
    %114 = vector.load %arg1[%c0_139, %c0_140, %c201] : memref<1x4x1200xf32, #tpu.memory_space<vmem>>, vector<1x4x896xf32>
    %115 = vector.shape_cast %114 : vector<1x4x896xf32> to vector<4x896xf32>
    %c152 = arith.constant 152 : index
    %c0_141 = arith.constant 0 : index
    %116 = vector.load %arg6[%c152, %c0_141] : memref<216x896xf32, #tpu.memory_space<vmem>>, vector<4x896xf32>
    tpu.vector_store %arg6[%c152, %c0_141], %115 {strides = array<i32>} : memref<216x896xf32, #tpu.memory_space<vmem>>, vector<4x896xf32>,
    %c0_142 = arith.constant 0 : index
    %c0_143 = arith.constant 0 : index
    %c201_144 = arith.constant 201 : index
    %117 = vector.load %arg2[%c0_142, %c0_143, %c201_144] : memref<1x4x1200xf32, #tpu.memory_space<vmem>>, vector<1x4x896xf32>
    %118 = vector.shape_cast %117 : vector<1x4x896xf32> to vector<4x896xf32>
    %c156 = arith.constant 156 : index
    %c0_145 = arith.constant 0 : index
    %119 = vector.load %arg6[%c156, %c0_145] : memref<216x896xf32, #tpu.memory_space<vmem>>, vector<4x896xf32>
    tpu.vector_store %arg6[%c156, %c0_145], %118 {strides = array<i32>} : memref<216x896xf32, #tpu.memory_space<vmem>>, vector<4x896xf32>,
    %c0_146 = arith.constant 0 : index
    %c0_147 = arith.constant 0 : index
    %c202 = arith.constant 202 : index
    %120 = vector.load %arg1[%c0_146, %c0_147, %c202] : memref<1x4x1200xf32, #tpu.memory_space<vmem>>, vector<1x4x896xf32>
    %121 = vector.shape_cast %120 : vector<1x4x896xf32> to vector<4x896xf32>
    %c160 = arith.constant 160 : index
    %c0_148 = arith.constant 0 : index
    %122 = vector.load %arg6[%c160, %c0_148] : memref<216x896xf32, #tpu.memory_space<vmem>>, vector<4x896xf32>
    tpu.vector_store %arg6[%c160, %c0_148], %121 {strides = array<i32>} : memref<216x896xf32, #tpu.memory_space<vmem>>, vector<4x896xf32>,
    %c0_149 = arith.constant 0 : index
    %c0_150 = arith.constant 0 : index
    %c202_151 = arith.constant 202 : index
    %123 = vector.load %arg2[%c0_149, %c0_150, %c202_151] : memref<1x4x1200xf32, #tpu.memory_space<vmem>>, vector<1x4x896xf32>
    %124 = vector.shape_cast %123 : vector<1x4x896xf32> to vector<4x896xf32>
    %c164 = arith.constant 164 : index
    %c0_152 = arith.constant 0 : index
    %125 = vector.load %arg6[%c164, %c0_152] : memref<216x896xf32, #tpu.memory_space<vmem>>, vector<4x896xf32>
    tpu.vector_store %arg6[%c164, %c0_152], %124 {strides = array<i32>} : memref<216x896xf32, #tpu.memory_space<vmem>>, vector<4x896xf32>,
    %c0_153 = arith.constant 0 : index
    %c0_154 = arith.constant 0 : index
    %c210 = arith.constant 210 : index
    %126 = vector.load %arg1[%c0_153, %c0_154, %c210] : memref<1x4x1200xf32, #tpu.memory_space<vmem>>, vector<1x4x896xf32>
    %127 = vector.shape_cast %126 : vector<1x4x896xf32> to vector<4x896xf32>
    %c168 = arith.constant 168 : index
    %c0_155 = arith.constant 0 : index
    %128 = vector.load %arg6[%c168, %c0_155] : memref<216x896xf32, #tpu.memory_space<vmem>>, vector<4x896xf32>
    tpu.vector_store %arg6[%c168, %c0_155], %127 {strides = array<i32>} : memref<216x896xf32, #tpu.memory_space<vmem>>, vector<4x896xf32>,
    %c0_156 = arith.constant 0 : index
    %c0_157 = arith.constant 0 : index
    %c210_158 = arith.constant 210 : index
    %129 = vector.load %arg2[%c0_156, %c0_157, %c210_158] : memref<1x4x1200xf32, #tpu.memory_space<vmem>>, vector<1x4x896xf32>
    %130 = vector.shape_cast %129 : vector<1x4x896xf32> to vector<4x896xf32>
    %c172 = arith.constant 172 : index
    %c0_159 = arith.constant 0 : index
    %131 = vector.load %arg6[%c172, %c0_159] : memref<216x896xf32, #tpu.memory_space<vmem>>, vector<4x896xf32>
    tpu.vector_store %arg6[%c172, %c0_159], %130 {strides = array<i32>} : memref<216x896xf32, #tpu.memory_space<vmem>>, vector<4x896xf32>,
    %c0_160 = arith.constant 0 : index
    %c0_161 = arith.constant 0 : index
    %c211 = arith.constant 211 : index
    %132 = vector.load %arg1[%c0_160, %c0_161, %c211] : memref<1x4x1200xf32, #tpu.memory_space<vmem>>, vector<1x4x896xf32>
    %133 = vector.shape_cast %132 : vector<1x4x896xf32> to vector<4x896xf32>
    %c176 = arith.constant 176 : index
    %c0_162 = arith.constant 0 : index
    %134 = vector.load %arg6[%c176, %c0_162] : memref<216x896xf32, #tpu.memory_space<vmem>>, vector<4x896xf32>
    tpu.vector_store %arg6[%c176, %c0_162], %133 {strides = array<i32>} : memref<216x896xf32, #tpu.memory_space<vmem>>, vector<4x896xf32>,
    %c0_163 = arith.constant 0 : index
    %c0_164 = arith.constant 0 : index
    %c211_165 = arith.constant 211 : index
    %135 = vector.load %arg2[%c0_163, %c0_164, %c211_165] : memref<1x4x1200xf32, #tpu.memory_space<vmem>>, vector<1x4x896xf32>
    %136 = vector.shape_cast %135 : vector<1x4x896xf32> to vector<4x896xf32>
    %c180 = arith.constant 180 : index
    %c0_166 = arith.constant 0 : index
    %137 = vector.load %arg6[%c180, %c0_166] : memref<216x896xf32, #tpu.memory_space<vmem>>, vector<4x896xf32>
    tpu.vector_store %arg6[%c180, %c0_166], %136 {strides = array<i32>} : memref<216x896xf32, #tpu.memory_space<vmem>>, vector<4x896xf32>,
    %c0_167 = arith.constant 0 : index
    %c0_168 = arith.constant 0 : index
    %c212 = arith.constant 212 : index
    %138 = vector.load %arg1[%c0_167, %c0_168, %c212] : memref<1x4x1200xf32, #tpu.memory_space<vmem>>, vector<1x4x896xf32>
    %139 = vector.shape_cast %138 : vector<1x4x896xf32> to vector<4x896xf32>
    %c184 = arith.constant 184 : index
    %c0_169 = arith.constant 0 : index
    %140 = vector.load %arg6[%c184, %c0_169] : memref<216x896xf32, #tpu.memory_space<vmem>>, vector<4x896xf32>
    tpu.vector_store %arg6[%c184, %c0_169], %139 {strides = array<i32>} : memref<216x896xf32, #tpu.memory_space<vmem>>, vector<4x896xf32>,
    %c0_170 = arith.constant 0 : index
    %c0_171 = arith.constant 0 : index
    %c212_172 = arith.constant 212 : index
    %141 = vector.load %arg2[%c0_170, %c0_171, %c212_172] : memref<1x4x1200xf32, #tpu.memory_space<vmem>>, vector<1x4x896xf32>
    %142 = vector.shape_cast %141 : vector<1x4x896xf32> to vector<4x896xf32>
    %c188 = arith.constant 188 : index
    %c0_173 = arith.constant 0 : index
    %143 = vector.load %arg6[%c188, %c0_173] : memref<216x896xf32, #tpu.memory_space<vmem>>, vector<4x896xf32>
    tpu.vector_store %arg6[%c188, %c0_173], %142 {strides = array<i32>} : memref<216x896xf32, #tpu.memory_space<vmem>>, vector<4x896xf32>,
    %c0_174 = arith.constant 0 : index
    %c0_175 = arith.constant 0 : index
    %c220 = arith.constant 220 : index
    %144 = vector.load %arg1[%c0_174, %c0_175, %c220] : memref<1x4x1200xf32, #tpu.memory_space<vmem>>, vector<1x4x896xf32>
    %145 = vector.shape_cast %144 : vector<1x4x896xf32> to vector<4x896xf32>
    %c192 = arith.constant 192 : index
    %c0_176 = arith.constant 0 : index
    %146 = vector.load %arg6[%c192, %c0_176] : memref<216x896xf32, #tpu.memory_space<vmem>>, vector<4x896xf32>
    tpu.vector_store %arg6[%c192, %c0_176], %145 {strides = array<i32>} : memref<216x896xf32, #tpu.memory_space<vmem>>, vector<4x896xf32>,
    %c0_177 = arith.constant 0 : index
    %c0_178 = arith.constant 0 : index
    %c220_179 = arith.constant 220 : index
    %147 = vector.load %arg2[%c0_177, %c0_178, %c220_179] : memref<1x4x1200xf32, #tpu.memory_space<vmem>>, vector<1x4x896xf32>
    %148 = vector.shape_cast %147 : vector<1x4x896xf32> to vector<4x896xf32>
    %c196 = arith.constant 196 : index
    %c0_180 = arith.constant 0 : index
    %149 = vector.load %arg6[%c196, %c0_180] : memref<216x896xf32, #tpu.memory_space<vmem>>, vector<4x896xf32>
    tpu.vector_store %arg6[%c196, %c0_180], %148 {strides = array<i32>} : memref<216x896xf32, #tpu.memory_space<vmem>>, vector<4x896xf32>,
    %c0_181 = arith.constant 0 : index
    %c0_182 = arith.constant 0 : index
    %c221 = arith.constant 221 : index
    %150 = vector.load %arg1[%c0_181, %c0_182, %c221] : memref<1x4x1200xf32, #tpu.memory_space<vmem>>, vector<1x4x896xf32>
    %151 = vector.shape_cast %150 : vector<1x4x896xf32> to vector<4x896xf32>
    %c200_183 = arith.constant 200 : index
    %c0_184 = arith.constant 0 : index
    %152 = vector.load %arg6[%c200_183, %c0_184] : memref<216x896xf32, #tpu.memory_space<vmem>>, vector<4x896xf32>
    tpu.vector_store %arg6[%c200_183, %c0_184], %151 {strides = array<i32>} : memref<216x896xf32, #tpu.memory_space<vmem>>, vector<4x896xf32>,
    %c0_185 = arith.constant 0 : index
    %c0_186 = arith.constant 0 : index
    %c221_187 = arith.constant 221 : index
    %153 = vector.load %arg2[%c0_185, %c0_186, %c221_187] : memref<1x4x1200xf32, #tpu.memory_space<vmem>>, vector<1x4x896xf32>
    %154 = vector.shape_cast %153 : vector<1x4x896xf32> to vector<4x896xf32>
    %c204 = arith.constant 204 : index
    %c0_188 = arith.constant 0 : index
    %155 = vector.load %arg6[%c204, %c0_188] : memref<216x896xf32, #tpu.memory_space<vmem>>, vector<4x896xf32>
    tpu.vector_store %arg6[%c204, %c0_188], %154 {strides = array<i32>} : memref<216x896xf32, #tpu.memory_space<vmem>>, vector<4x896xf32>,
    %c0_189 = arith.constant 0 : index
    %c0_190 = arith.constant 0 : index
    %c222 = arith.constant 222 : index
    %156 = vector.load %arg1[%c0_189, %c0_190, %c222] : memref<1x4x1200xf32, #tpu.memory_space<vmem>>, vector<1x4x896xf32>
    %157 = vector.shape_cast %156 : vector<1x4x896xf32> to vector<4x896xf32>
    %c208 = arith.constant 208 : index
    %c0_191 = arith.constant 0 : index
    %158 = vector.load %arg6[%c208, %c0_191] : memref<216x896xf32, #tpu.memory_space<vmem>>, vector<4x896xf32>
    tpu.vector_store %arg6[%c208, %c0_191], %157 {strides = array<i32>} : memref<216x896xf32, #tpu.memory_space<vmem>>, vector<4x896xf32>,
    %c0_192 = arith.constant 0 : index
    %c0_193 = arith.constant 0 : index
    %c222_194 = arith.constant 222 : index
    %159 = vector.load %arg2[%c0_192, %c0_193, %c222_194] : memref<1x4x1200xf32, #tpu.memory_space<vmem>>, vector<1x4x896xf32>
    %160 = vector.shape_cast %159 : vector<1x4x896xf32> to vector<4x896xf32>
    %c212_195 = arith.constant 212 : index
    %c0_196 = arith.constant 0 : index
    %161 = vector.load %arg6[%c212_195, %c0_196] : memref<216x896xf32, #tpu.memory_space<vmem>>, vector<4x896xf32>
    tpu.vector_store %arg6[%c212_195, %c0_196], %160 {strides = array<i32>} : memref<216x896xf32, #tpu.memory_space<vmem>>, vector<4x896xf32>,
    %c0_197 = arith.constant 0 : index
    %c0_198 = arith.constant 0 : index
    %162 = vector.load %arg3[%c0_197, %c0_198] : memref<4x216xf32, #tpu.memory_space<vmem>>, vector<4x216xf32>
    %c0_199 = arith.constant 0 : index
    %c0_200 = arith.constant 0 : index
    %163 = vector.load %arg6[%c0_199, %c0_200] : memref<216x896xf32, #tpu.memory_space<vmem>>, vector<216x896xf32>
    %cst = arith.constant dense<0.000000e+00> : vector<4x896xf32>
    %164 = tpu.matmul %162, %163, %cst {dimension_numbers = #tpu.dot_dimension_numbers<[1], [0], [0], [1], [0, 0, 1, 1], [], []>} : vector<4x216xf32>, vector<216x896xf32>, vector<4x896xf32> -> vector<4x896xf32>
    %c0_201 = arith.constant 0 : index
    %c0_202 = arith.constant 0 : index
    %165 = vector.load %arg4[%c0_201, %c0_202] : memref<4x1xf32, #tpu.memory_space<vmem>>, vector<4x1xf32>
    %166 = vector.broadcast %165 : vector<4x1xf32> to vector<4x896xf32>
    %167 = arith.addf %164, %166 : vector<4x896xf32>
    %cst_203 = arith.constant 0.000000e+00 : f32
    %168 = vector.broadcast %cst_203 : f32 to vector<4x896xf32>
    %169 = arith.maximumf %167, %168 : vector<4x896xf32>
    %c0_204 = arith.constant 0 : index
    %c0_205 = arith.constant 0 : index
    %c0_206 = arith.constant 0 : index
    %170 = vector.load %arg5[%c0_204, %c0_205, %c0_206] : memref<1x4x896xf32, #tpu.memory_space<vmem>>, vector<1x4x896xf32>
    %171 = vector.shape_cast %170 : vector<1x4x896xf32> to vector<4x896xf32>
    %172 = vector.shape_cast %169 : vector<4x896xf32> to vector<1x4x896xf32>
    tpu.vector_store %arg5[%c0_204, %c0_205, %c0_206], %172 {strides = array<i32>} : memref<1x4x896xf32, #tpu.memory_space<vmem>>, vector<1x4x896xf32>,
    return
  }
  func.func @transform_0(%arg0: i32) -> (i32, i32, i32) {
    %c0_i32 = arith.constant 0 : i32
    %c0_i32_0 = arith.constant 0 : i32
    %c0_i32_1 = arith.constant 0 : i32
    return %arg0, %c0_i32, %c0_i32_0 : i32, i32, i32
  }
  func.func @transform_1(%arg0: i32) -> (i32, i32, i32) {
    %c0_i32 = arith.constant 0 : i32
    %c0_i32_0 = arith.constant 0 : i32
    %c0_i32_1 = arith.constant 0 : i32
    return %arg0, %c0_i32, %c0_i32_0 : i32, i32, i32
  }
  func.func @transform_2(%arg0: i32) -> (i32, i32) {
    %c0_i32 = arith.constant 0 : i32
    %c0_i32_0 = arith.constant 0 : i32
    %c0_i32_1 = arith.constant 0 : i32
    return %c0_i32, %c0_i32_0 : i32, i32
  }
  func.func @transform_3(%arg0: i32) -> (i32, i32) {
    %c0_i32 = arith.constant 0 : i32
    %c0_i32_0 = arith.constant 0 : i32
    %c0_i32_1 = arith.constant 0 : i32
    return %c0_i32, %c0_i32_0 : i32, i32
  }
  func.func @transform_4(%arg0: i32) -> (i32, i32, i32) {
    %c0_i32 = arith.constant 0 : i32
    %c0_i32_0 = arith.constant 0 : i32
    %c0_i32_1 = arith.constant 0 : i32
    return %arg0, %c0_i32, %c0_i32_0 : i32, i32, i32
  }
}

module attributes {stable_mosaic.version = 11 : i64} {
  func.func @_fused_taps_kernel(%arg0: i32, %arg1: memref<1x4x1200xf32, #tpu.memory_space<vmem>>, %arg2: memref<4x108xf32, #tpu.memory_space<vmem>>, %arg3: memref<4x1xf32, #tpu.memory_space<vmem>>, %arg4: memref<1x4x896xf32, #tpu.memory_space<vmem>>, %arg5: memref<108x896xf32, #tpu.memory_space<vmem>>) attributes {dimension_semantics = [#tpu.dimension_semantics<parallel>], iteration_bounds = array<i64: 2>, scalar_prefetch = 0 : i64, scratch_operands = 1 : i64, tpu.core_type = #tpu.core_type<tc>, window_params = [{transform_indices = @transform_0, window_bounds = array<i64: 1, 4, 1200>}, {pipeline_mode = #tpu.pipeline_mode<synchronous>, transform_indices = @transform_1, window_bounds = array<i64: 4, 108>}, {pipeline_mode = #tpu.pipeline_mode<synchronous>, transform_indices = @transform_2, window_bounds = array<i64: 4, 1>}, {transform_indices = @transform_3, window_bounds = array<i64: 1, 4, 896>}]} {
    %c0 = arith.constant 0 : index
    %c0_0 = arith.constant 0 : index
    %c0_1 = arith.constant 0 : index
    %0 = vector.load %arg1[%c0, %c0_0, %c0_1] : memref<1x4x1200xf32, #tpu.memory_space<vmem>>, vector<1x4x896xf32>
    %1 = vector.shape_cast %0 : vector<1x4x896xf32> to vector<4x896xf32>
    %c0_2 = arith.constant 0 : index
    %c0_3 = arith.constant 0 : index
    %2 = vector.load %arg5[%c0_2, %c0_3] : memref<108x896xf32, #tpu.memory_space<vmem>>, vector<4x896xf32>
    tpu.vector_store %arg5[%c0_2, %c0_3], %1 {strides = array<i32>} : memref<108x896xf32, #tpu.memory_space<vmem>>, vector<4x896xf32>,
    %c0_4 = arith.constant 0 : index
    %c0_5 = arith.constant 0 : index
    %c1 = arith.constant 1 : index
    %3 = vector.load %arg1[%c0_4, %c0_5, %c1] : memref<1x4x1200xf32, #tpu.memory_space<vmem>>, vector<1x4x896xf32>
    %4 = vector.shape_cast %3 : vector<1x4x896xf32> to vector<4x896xf32>
    %c4 = arith.constant 4 : index
    %c0_6 = arith.constant 0 : index
    %5 = vector.load %arg5[%c4, %c0_6] : memref<108x896xf32, #tpu.memory_space<vmem>>, vector<4x896xf32>
    tpu.vector_store %arg5[%c4, %c0_6], %4 {strides = array<i32>} : memref<108x896xf32, #tpu.memory_space<vmem>>, vector<4x896xf32>,
    %c0_7 = arith.constant 0 : index
    %c0_8 = arith.constant 0 : index
    %c2 = arith.constant 2 : index
    %6 = vector.load %arg1[%c0_7, %c0_8, %c2] : memref<1x4x1200xf32, #tpu.memory_space<vmem>>, vector<1x4x896xf32>
    %7 = vector.shape_cast %6 : vector<1x4x896xf32> to vector<4x896xf32>
    %c8 = arith.constant 8 : index
    %c0_9 = arith.constant 0 : index
    %8 = vector.load %arg5[%c8, %c0_9] : memref<108x896xf32, #tpu.memory_space<vmem>>, vector<4x896xf32>
    tpu.vector_store %arg5[%c8, %c0_9], %7 {strides = array<i32>} : memref<108x896xf32, #tpu.memory_space<vmem>>, vector<4x896xf32>,
    %c0_10 = arith.constant 0 : index
    %c0_11 = arith.constant 0 : index
    %c10 = arith.constant 10 : index
    %9 = vector.load %arg1[%c0_10, %c0_11, %c10] : memref<1x4x1200xf32, #tpu.memory_space<vmem>>, vector<1x4x896xf32>
    %10 = vector.shape_cast %9 : vector<1x4x896xf32> to vector<4x896xf32>
    %c12 = arith.constant 12 : index
    %c0_12 = arith.constant 0 : index
    %11 = vector.load %arg5[%c12, %c0_12] : memref<108x896xf32, #tpu.memory_space<vmem>>, vector<4x896xf32>
    tpu.vector_store %arg5[%c12, %c0_12], %10 {strides = array<i32>} : memref<108x896xf32, #tpu.memory_space<vmem>>, vector<4x896xf32>,
    %c0_13 = arith.constant 0 : index
    %c0_14 = arith.constant 0 : index
    %c11 = arith.constant 11 : index
    %12 = vector.load %arg1[%c0_13, %c0_14, %c11] : memref<1x4x1200xf32, #tpu.memory_space<vmem>>, vector<1x4x896xf32>
    %13 = vector.shape_cast %12 : vector<1x4x896xf32> to vector<4x896xf32>
    %c16 = arith.constant 16 : index
    %c0_15 = arith.constant 0 : index
    %14 = vector.load %arg5[%c16, %c0_15] : memref<108x896xf32, #tpu.memory_space<vmem>>, vector<4x896xf32>
    tpu.vector_store %arg5[%c16, %c0_15], %13 {strides = array<i32>} : memref<108x896xf32, #tpu.memory_space<vmem>>, vector<4x896xf32>,
    %c0_16 = arith.constant 0 : index
    %c0_17 = arith.constant 0 : index
    %c12_18 = arith.constant 12 : index
    %15 = vector.load %arg1[%c0_16, %c0_17, %c12_18] : memref<1x4x1200xf32, #tpu.memory_space<vmem>>, vector<1x4x896xf32>
    %16 = vector.shape_cast %15 : vector<1x4x896xf32> to vector<4x896xf32>
    %c20 = arith.constant 20 : index
    %c0_19 = arith.constant 0 : index
    %17 = vector.load %arg5[%c20, %c0_19] : memref<108x896xf32, #tpu.memory_space<vmem>>, vector<4x896xf32>
    tpu.vector_store %arg5[%c20, %c0_19], %16 {strides = array<i32>} : memref<108x896xf32, #tpu.memory_space<vmem>>, vector<4x896xf32>,
    %c0_20 = arith.constant 0 : index
    %c0_21 = arith.constant 0 : index
    %c20_22 = arith.constant 20 : index
    %18 = vector.load %arg1[%c0_20, %c0_21, %c20_22] : memref<1x4x1200xf32, #tpu.memory_space<vmem>>, vector<1x4x896xf32>
    %19 = vector.shape_cast %18 : vector<1x4x896xf32> to vector<4x896xf32>
    %c24 = arith.constant 24 : index
    %c0_23 = arith.constant 0 : index
    %20 = vector.load %arg5[%c24, %c0_23] : memref<108x896xf32, #tpu.memory_space<vmem>>, vector<4x896xf32>
    tpu.vector_store %arg5[%c24, %c0_23], %19 {strides = array<i32>} : memref<108x896xf32, #tpu.memory_space<vmem>>, vector<4x896xf32>,
    %c0_24 = arith.constant 0 : index
    %c0_25 = arith.constant 0 : index
    %c21 = arith.constant 21 : index
    %21 = vector.load %arg1[%c0_24, %c0_25, %c21] : memref<1x4x1200xf32, #tpu.memory_space<vmem>>, vector<1x4x896xf32>
    %22 = vector.shape_cast %21 : vector<1x4x896xf32> to vector<4x896xf32>
    %c28 = arith.constant 28 : index
    %c0_26 = arith.constant 0 : index
    %23 = vector.load %arg5[%c28, %c0_26] : memref<108x896xf32, #tpu.memory_space<vmem>>, vector<4x896xf32>
    tpu.vector_store %arg5[%c28, %c0_26], %22 {strides = array<i32>} : memref<108x896xf32, #tpu.memory_space<vmem>>, vector<4x896xf32>,
    %c0_27 = arith.constant 0 : index
    %c0_28 = arith.constant 0 : index
    %c22 = arith.constant 22 : index
    %24 = vector.load %arg1[%c0_27, %c0_28, %c22] : memref<1x4x1200xf32, #tpu.memory_space<vmem>>, vector<1x4x896xf32>
    %25 = vector.shape_cast %24 : vector<1x4x896xf32> to vector<4x896xf32>
    %c32 = arith.constant 32 : index
    %c0_29 = arith.constant 0 : index
    %26 = vector.load %arg5[%c32, %c0_29] : memref<108x896xf32, #tpu.memory_space<vmem>>, vector<4x896xf32>
    tpu.vector_store %arg5[%c32, %c0_29], %25 {strides = array<i32>} : memref<108x896xf32, #tpu.memory_space<vmem>>, vector<4x896xf32>,
    %c0_30 = arith.constant 0 : index
    %c0_31 = arith.constant 0 : index
    %c100 = arith.constant 100 : index
    %27 = vector.load %arg1[%c0_30, %c0_31, %c100] : memref<1x4x1200xf32, #tpu.memory_space<vmem>>, vector<1x4x896xf32>
    %28 = vector.shape_cast %27 : vector<1x4x896xf32> to vector<4x896xf32>
    %c36 = arith.constant 36 : index
    %c0_32 = arith.constant 0 : index
    %29 = vector.load %arg5[%c36, %c0_32] : memref<108x896xf32, #tpu.memory_space<vmem>>, vector<4x896xf32>
    tpu.vector_store %arg5[%c36, %c0_32], %28 {strides = array<i32>} : memref<108x896xf32, #tpu.memory_space<vmem>>, vector<4x896xf32>,
    %c0_33 = arith.constant 0 : index
    %c0_34 = arith.constant 0 : index
    %c101 = arith.constant 101 : index
    %30 = vector.load %arg1[%c0_33, %c0_34, %c101] : memref<1x4x1200xf32, #tpu.memory_space<vmem>>, vector<1x4x896xf32>
    %31 = vector.shape_cast %30 : vector<1x4x896xf32> to vector<4x896xf32>
    %c40 = arith.constant 40 : index
    %c0_35 = arith.constant 0 : index
    %32 = vector.load %arg5[%c40, %c0_35] : memref<108x896xf32, #tpu.memory_space<vmem>>, vector<4x896xf32>
    tpu.vector_store %arg5[%c40, %c0_35], %31 {strides = array<i32>} : memref<108x896xf32, #tpu.memory_space<vmem>>, vector<4x896xf32>,
    %c0_36 = arith.constant 0 : index
    %c0_37 = arith.constant 0 : index
    %c102 = arith.constant 102 : index
    %33 = vector.load %arg1[%c0_36, %c0_37, %c102] : memref<1x4x1200xf32, #tpu.memory_space<vmem>>, vector<1x4x896xf32>
    %34 = vector.shape_cast %33 : vector<1x4x896xf32> to vector<4x896xf32>
    %c44 = arith.constant 44 : index
    %c0_38 = arith.constant 0 : index
    %35 = vector.load %arg5[%c44, %c0_38] : memref<108x896xf32, #tpu.memory_space<vmem>>, vector<4x896xf32>
    tpu.vector_store %arg5[%c44, %c0_38], %34 {strides = array<i32>} : memref<108x896xf32, #tpu.memory_space<vmem>>, vector<4x896xf32>,
    %c0_39 = arith.constant 0 : index
    %c0_40 = arith.constant 0 : index
    %c110 = arith.constant 110 : index
    %36 = vector.load %arg1[%c0_39, %c0_40, %c110] : memref<1x4x1200xf32, #tpu.memory_space<vmem>>, vector<1x4x896xf32>
    %37 = vector.shape_cast %36 : vector<1x4x896xf32> to vector<4x896xf32>
    %c48 = arith.constant 48 : index
    %c0_41 = arith.constant 0 : index
    %38 = vector.load %arg5[%c48, %c0_41] : memref<108x896xf32, #tpu.memory_space<vmem>>, vector<4x896xf32>
    tpu.vector_store %arg5[%c48, %c0_41], %37 {strides = array<i32>} : memref<108x896xf32, #tpu.memory_space<vmem>>, vector<4x896xf32>,
    %c0_42 = arith.constant 0 : index
    %c0_43 = arith.constant 0 : index
    %c111 = arith.constant 111 : index
    %39 = vector.load %arg1[%c0_42, %c0_43, %c111] : memref<1x4x1200xf32, #tpu.memory_space<vmem>>, vector<1x4x896xf32>
    %40 = vector.shape_cast %39 : vector<1x4x896xf32> to vector<4x896xf32>
    %c52 = arith.constant 52 : index
    %c0_44 = arith.constant 0 : index
    %41 = vector.load %arg5[%c52, %c0_44] : memref<108x896xf32, #tpu.memory_space<vmem>>, vector<4x896xf32>
    tpu.vector_store %arg5[%c52, %c0_44], %40 {strides = array<i32>} : memref<108x896xf32, #tpu.memory_space<vmem>>, vector<4x896xf32>,
    %c0_45 = arith.constant 0 : index
    %c0_46 = arith.constant 0 : index
    %c112 = arith.constant 112 : index
    %42 = vector.load %arg1[%c0_45, %c0_46, %c112] : memref<1x4x1200xf32, #tpu.memory_space<vmem>>, vector<1x4x896xf32>
    %43 = vector.shape_cast %42 : vector<1x4x896xf32> to vector<4x896xf32>
    %c56 = arith.constant 56 : index
    %c0_47 = arith.constant 0 : index
    %44 = vector.load %arg5[%c56, %c0_47] : memref<108x896xf32, #tpu.memory_space<vmem>>, vector<4x896xf32>
    tpu.vector_store %arg5[%c56, %c0_47], %43 {strides = array<i32>} : memref<108x896xf32, #tpu.memory_space<vmem>>, vector<4x896xf32>,
    %c0_48 = arith.constant 0 : index
    %c0_49 = arith.constant 0 : index
    %c120 = arith.constant 120 : index
    %45 = vector.load %arg1[%c0_48, %c0_49, %c120] : memref<1x4x1200xf32, #tpu.memory_space<vmem>>, vector<1x4x896xf32>
    %46 = vector.shape_cast %45 : vector<1x4x896xf32> to vector<4x896xf32>
    %c60 = arith.constant 60 : index
    %c0_50 = arith.constant 0 : index
    %47 = vector.load %arg5[%c60, %c0_50] : memref<108x896xf32, #tpu.memory_space<vmem>>, vector<4x896xf32>
    tpu.vector_store %arg5[%c60, %c0_50], %46 {strides = array<i32>} : memref<108x896xf32, #tpu.memory_space<vmem>>, vector<4x896xf32>,
    %c0_51 = arith.constant 0 : index
    %c0_52 = arith.constant 0 : index
    %c121 = arith.constant 121 : index
    %48 = vector.load %arg1[%c0_51, %c0_52, %c121] : memref<1x4x1200xf32, #tpu.memory_space<vmem>>, vector<1x4x896xf32>
    %49 = vector.shape_cast %48 : vector<1x4x896xf32> to vector<4x896xf32>
    %c64 = arith.constant 64 : index
    %c0_53 = arith.constant 0 : index
    %50 = vector.load %arg5[%c64, %c0_53] : memref<108x896xf32, #tpu.memory_space<vmem>>, vector<4x896xf32>
    tpu.vector_store %arg5[%c64, %c0_53], %49 {strides = array<i32>} : memref<108x896xf32, #tpu.memory_space<vmem>>, vector<4x896xf32>,
    %c0_54 = arith.constant 0 : index
    %c0_55 = arith.constant 0 : index
    %c122 = arith.constant 122 : index
    %51 = vector.load %arg1[%c0_54, %c0_55, %c122] : memref<1x4x1200xf32, #tpu.memory_space<vmem>>, vector<1x4x896xf32>
    %52 = vector.shape_cast %51 : vector<1x4x896xf32> to vector<4x896xf32>
    %c68 = arith.constant 68 : index
    %c0_56 = arith.constant 0 : index
    %53 = vector.load %arg5[%c68, %c0_56] : memref<108x896xf32, #tpu.memory_space<vmem>>, vector<4x896xf32>
    tpu.vector_store %arg5[%c68, %c0_56], %52 {strides = array<i32>} : memref<108x896xf32, #tpu.memory_space<vmem>>, vector<4x896xf32>,
    %c0_57 = arith.constant 0 : index
    %c0_58 = arith.constant 0 : index
    %c200 = arith.constant 200 : index
    %54 = vector.load %arg1[%c0_57, %c0_58, %c200] : memref<1x4x1200xf32, #tpu.memory_space<vmem>>, vector<1x4x896xf32>
    %55 = vector.shape_cast %54 : vector<1x4x896xf32> to vector<4x896xf32>
    %c72 = arith.constant 72 : index
    %c0_59 = arith.constant 0 : index
    %56 = vector.load %arg5[%c72, %c0_59] : memref<108x896xf32, #tpu.memory_space<vmem>>, vector<4x896xf32>
    tpu.vector_store %arg5[%c72, %c0_59], %55 {strides = array<i32>} : memref<108x896xf32, #tpu.memory_space<vmem>>, vector<4x896xf32>,
    %c0_60 = arith.constant 0 : index
    %c0_61 = arith.constant 0 : index
    %c201 = arith.constant 201 : index
    %57 = vector.load %arg1[%c0_60, %c0_61, %c201] : memref<1x4x1200xf32, #tpu.memory_space<vmem>>, vector<1x4x896xf32>
    %58 = vector.shape_cast %57 : vector<1x4x896xf32> to vector<4x896xf32>
    %c76 = arith.constant 76 : index
    %c0_62 = arith.constant 0 : index
    %59 = vector.load %arg5[%c76, %c0_62] : memref<108x896xf32, #tpu.memory_space<vmem>>, vector<4x896xf32>
    tpu.vector_store %arg5[%c76, %c0_62], %58 {strides = array<i32>} : memref<108x896xf32, #tpu.memory_space<vmem>>, vector<4x896xf32>,
    %c0_63 = arith.constant 0 : index
    %c0_64 = arith.constant 0 : index
    %c202 = arith.constant 202 : index
    %60 = vector.load %arg1[%c0_63, %c0_64, %c202] : memref<1x4x1200xf32, #tpu.memory_space<vmem>>, vector<1x4x896xf32>
    %61 = vector.shape_cast %60 : vector<1x4x896xf32> to vector<4x896xf32>
    %c80 = arith.constant 80 : index
    %c0_65 = arith.constant 0 : index
    %62 = vector.load %arg5[%c80, %c0_65] : memref<108x896xf32, #tpu.memory_space<vmem>>, vector<4x896xf32>
    tpu.vector_store %arg5[%c80, %c0_65], %61 {strides = array<i32>} : memref<108x896xf32, #tpu.memory_space<vmem>>, vector<4x896xf32>,
    %c0_66 = arith.constant 0 : index
    %c0_67 = arith.constant 0 : index
    %c210 = arith.constant 210 : index
    %63 = vector.load %arg1[%c0_66, %c0_67, %c210] : memref<1x4x1200xf32, #tpu.memory_space<vmem>>, vector<1x4x896xf32>
    %64 = vector.shape_cast %63 : vector<1x4x896xf32> to vector<4x896xf32>
    %c84 = arith.constant 84 : index
    %c0_68 = arith.constant 0 : index
    %65 = vector.load %arg5[%c84, %c0_68] : memref<108x896xf32, #tpu.memory_space<vmem>>, vector<4x896xf32>
    tpu.vector_store %arg5[%c84, %c0_68], %64 {strides = array<i32>} : memref<108x896xf32, #tpu.memory_space<vmem>>, vector<4x896xf32>,
    %c0_69 = arith.constant 0 : index
    %c0_70 = arith.constant 0 : index
    %c211 = arith.constant 211 : index
    %66 = vector.load %arg1[%c0_69, %c0_70, %c211] : memref<1x4x1200xf32, #tpu.memory_space<vmem>>, vector<1x4x896xf32>
    %67 = vector.shape_cast %66 : vector<1x4x896xf32> to vector<4x896xf32>
    %c88 = arith.constant 88 : index
    %c0_71 = arith.constant 0 : index
    %68 = vector.load %arg5[%c88, %c0_71] : memref<108x896xf32, #tpu.memory_space<vmem>>, vector<4x896xf32>
    tpu.vector_store %arg5[%c88, %c0_71], %67 {strides = array<i32>} : memref<108x896xf32, #tpu.memory_space<vmem>>, vector<4x896xf32>,
    %c0_72 = arith.constant 0 : index
    %c0_73 = arith.constant 0 : index
    %c212 = arith.constant 212 : index
    %69 = vector.load %arg1[%c0_72, %c0_73, %c212] : memref<1x4x1200xf32, #tpu.memory_space<vmem>>, vector<1x4x896xf32>
    %70 = vector.shape_cast %69 : vector<1x4x896xf32> to vector<4x896xf32>
    %c92 = arith.constant 92 : index
    %c0_74 = arith.constant 0 : index
    %71 = vector.load %arg5[%c92, %c0_74] : memref<108x896xf32, #tpu.memory_space<vmem>>, vector<4x896xf32>
    tpu.vector_store %arg5[%c92, %c0_74], %70 {strides = array<i32>} : memref<108x896xf32, #tpu.memory_space<vmem>>, vector<4x896xf32>,
    %c0_75 = arith.constant 0 : index
    %c0_76 = arith.constant 0 : index
    %c220 = arith.constant 220 : index
    %72 = vector.load %arg1[%c0_75, %c0_76, %c220] : memref<1x4x1200xf32, #tpu.memory_space<vmem>>, vector<1x4x896xf32>
    %73 = vector.shape_cast %72 : vector<1x4x896xf32> to vector<4x896xf32>
    %c96 = arith.constant 96 : index
    %c0_77 = arith.constant 0 : index
    %74 = vector.load %arg5[%c96, %c0_77] : memref<108x896xf32, #tpu.memory_space<vmem>>, vector<4x896xf32>
    tpu.vector_store %arg5[%c96, %c0_77], %73 {strides = array<i32>} : memref<108x896xf32, #tpu.memory_space<vmem>>, vector<4x896xf32>,
    %c0_78 = arith.constant 0 : index
    %c0_79 = arith.constant 0 : index
    %c221 = arith.constant 221 : index
    %75 = vector.load %arg1[%c0_78, %c0_79, %c221] : memref<1x4x1200xf32, #tpu.memory_space<vmem>>, vector<1x4x896xf32>
    %76 = vector.shape_cast %75 : vector<1x4x896xf32> to vector<4x896xf32>
    %c100_80 = arith.constant 100 : index
    %c0_81 = arith.constant 0 : index
    %77 = vector.load %arg5[%c100_80, %c0_81] : memref<108x896xf32, #tpu.memory_space<vmem>>, vector<4x896xf32>
    tpu.vector_store %arg5[%c100_80, %c0_81], %76 {strides = array<i32>} : memref<108x896xf32, #tpu.memory_space<vmem>>, vector<4x896xf32>,
    %c0_82 = arith.constant 0 : index
    %c0_83 = arith.constant 0 : index
    %c222 = arith.constant 222 : index
    %78 = vector.load %arg1[%c0_82, %c0_83, %c222] : memref<1x4x1200xf32, #tpu.memory_space<vmem>>, vector<1x4x896xf32>
    %79 = vector.shape_cast %78 : vector<1x4x896xf32> to vector<4x896xf32>
    %c104 = arith.constant 104 : index
    %c0_84 = arith.constant 0 : index
    %80 = vector.load %arg5[%c104, %c0_84] : memref<108x896xf32, #tpu.memory_space<vmem>>, vector<4x896xf32>
    tpu.vector_store %arg5[%c104, %c0_84], %79 {strides = array<i32>} : memref<108x896xf32, #tpu.memory_space<vmem>>, vector<4x896xf32>,
    %c0_85 = arith.constant 0 : index
    %c0_86 = arith.constant 0 : index
    %81 = vector.load %arg2[%c0_85, %c0_86] : memref<4x108xf32, #tpu.memory_space<vmem>>, vector<4x108xf32>
    %c0_87 = arith.constant 0 : index
    %c0_88 = arith.constant 0 : index
    %82 = vector.load %arg5[%c0_87, %c0_88] : memref<108x896xf32, #tpu.memory_space<vmem>>, vector<108x896xf32>
    %cst = arith.constant dense<0.000000e+00> : vector<4x896xf32>
    %83 = tpu.matmul %81, %82, %cst {dimension_numbers = #tpu.dot_dimension_numbers<[1], [0], [0], [1], [0, 0, 1, 1], [], []>} : vector<4x108xf32>, vector<108x896xf32>, vector<4x896xf32> -> vector<4x896xf32>
    %c0_89 = arith.constant 0 : index
    %c0_90 = arith.constant 0 : index
    %84 = vector.load %arg3[%c0_89, %c0_90] : memref<4x1xf32, #tpu.memory_space<vmem>>, vector<4x1xf32>
    %85 = vector.broadcast %84 : vector<4x1xf32> to vector<4x896xf32>
    %86 = arith.addf %83, %85 : vector<4x896xf32>
    %cst_91 = arith.constant 0.000000e+00 : f32
    %87 = vector.broadcast %cst_91 : f32 to vector<4x896xf32>
    %88 = arith.maximumf %86, %87 : vector<4x896xf32>
    %c0_92 = arith.constant 0 : index
    %c0_93 = arith.constant 0 : index
    %c0_94 = arith.constant 0 : index
    %89 = vector.load %arg4[%c0_92, %c0_93, %c0_94] : memref<1x4x896xf32, #tpu.memory_space<vmem>>, vector<1x4x896xf32>
    %90 = vector.shape_cast %89 : vector<1x4x896xf32> to vector<4x896xf32>
    %91 = vector.shape_cast %88 : vector<4x896xf32> to vector<1x4x896xf32>
    tpu.vector_store %arg4[%c0_92, %c0_93, %c0_94], %91 {strides = array<i32>} : memref<1x4x896xf32, #tpu.memory_space<vmem>>, vector<1x4x896xf32>,
    return
  }
  func.func @transform_0(%arg0: i32) -> (i32, i32, i32) {
    %c0_i32 = arith.constant 0 : i32
    %c0_i32_0 = arith.constant 0 : i32
    %c0_i32_1 = arith.constant 0 : i32
    return %arg0, %c0_i32, %c0_i32_0 : i32, i32, i32
  }
  func.func @transform_1(%arg0: i32) -> (i32, i32) {
    %c0_i32 = arith.constant 0 : i32
    %c0_i32_0 = arith.constant 0 : i32
    %c0_i32_1 = arith.constant 0 : i32
    return %c0_i32, %c0_i32_0 : i32, i32
  }
  func.func @transform_2(%arg0: i32) -> (i32, i32) {
    %c0_i32 = arith.constant 0 : i32
    %c0_i32_0 = arith.constant 0 : i32
    %c0_i32_1 = arith.constant 0 : i32
    return %c0_i32, %c0_i32_0 : i32, i32
  }
  func.func @transform_3(%arg0: i32) -> (i32, i32, i32) {
    %c0_i32 = arith.constant 0 : i32
    %c0_i32_0 = arith.constant 0 : i32
    %c0_i32_1 = arith.constant 0 : i32
    return %arg0, %c0_i32, %c0_i32_0 : i32, i32, i32
  }
}

</mosaic_0001>

<bundles_post_ra>
// kernel: tile.8
= control target key start
LH: loop header
LB: loop body
LE: loop exit
PB: predicated region body
PF: predicated region fallthrough
CT: control target
= control target key end

     0   :  { %s22_s0 = inlined_call_operand.vmem [shape: f32[4], index: 0, kind: input, shape index: {}]   ;;  %s23_s1 = inlined_call_operand.vmem [shape: f32[8,4], index: 1, kind: output, shape index: {}]  }
   0x1   :  { %v4_v0 = vld [vmem:[%s22_s0] ss:$0 sm:$0xff] }
   0x2   :  { %5 = vst [vmem:[%s23_s1] sm:$0xff] %v4_v0 }

// kernel: tile.0
= control target key start
LH: loop header
LB: loop body
LE: loop exit
PB: predicated region body
PF: predicated region fallthrough
CT: control target
= control target key end

     0   :  { %vm3_vm0 = vcmask 7168   ;;  %s30_s8 = smov 125   ;;  %s31_s11 = smov 126   ;;  %s57_s0 = inlined_call_operand.vmem [shape: f32[8,4], index: 0, kind: input, shape index: {}]   ;;  %s58_s1 = inlined_call_operand.vmem [shape: f32[32,1], index: 1, kind: output, shape index: {}]  }
   0x1   :  { %v5_v0 = vld [vmem:[%s57_s0] sm:$0xff]   ;;  %s29_s0 = smov 127  }
   0x2   :  { %6 = vrot.lane.b32.xlu0 %v5_v0, %s29_s0  ;;  %18 = vrot.lane.b32.xlu1 %v5_v0, %s30_s8  ;;  %4 = vst.msk [vmem:[%s58_s1] ss:$4 sm:$0xff] %vm3_vm0, %v5_v0  }
   0xa   :  { %12 = vrot.lane.b32.xlu0 %v5_v0, %s31_s11 }
  0x74   :  { %v7_v1 = vpop.permute.xlu0 %6   ;;  %v19_v2 = vpop.permute.xlu1 %18  }
  0x75   :  { %23 = vst.msk [vmem:[%s58_s1 + $0x1] ss:$4 sm:$0xff] %vm3_vm0, %v7_v1  }
  0x76   :  { %25 = vst.msk [vmem:[%s58_s1 + $0x3] ss:$4 sm:$0xff] %vm3_vm0, %v19_v2  }
  0x7c   :  { %v13_v3 = vpop.permute.xlu0 %12  }
  0x7d   :  { %24 = vst.msk [vmem:[%s58_s1 + $0x2] ss:$4 sm:$0xff] %vm3_vm0, %v13_v3  }

// kernel: up_forward.3
= control target key start
LH: loop header
LB: loop body
LE: loop exit
PB: predicated region body
PF: predicated region fallthrough
CT: control target
= control target key end

     0   :  { %s485_s12 = smov 0   ;;  %s534_s0 = inlined_call_operand.vmem [shape: f32[2,4,175], index: 0, kind: input, shape index: {}]   ;;  %s535_s1 = inlined_call_operand.vmem [shape: f32[32,32], index: 1, kind: input, shape index: {}]   ;;  %s536_s2 = inlined_call_operand.vmem [shape: f32[32,1], index: 2, kind: input, shape index: {}]   ;;  %s537_s3 = inlined_call_operand.vmem [shape: f32[2,32,128], index: 3, kind: output, shape index: {}]  }
   0x1 LB: > { %s401_s13 = sadd.s32 4294967295, %s455_s12   ;;  %p405_p0 = scmp.ge.s32.totalorder %s455_s12, 1  ;;  %s455_s12 = sphi %s485_s12, %s13_s12  }
   0x2   : > { %p137_p1 = scmp.lt.s32.totalorder %s455_s12, 3 }
   0x4   : > { %p138_p2 = pnand %p405_p0, %p137_p1 }
   0x5   : > { %p161_p3 = scmp.lt.s32.totalorder (!%p138_p2), %s401_s13, 1  ;;  %s457_s18 = smov (!%p138_p2), 123  }
   0x6   : > { %141 = sbr.rel (%p138_p2) target bundleno = 351 (0x15f), region = 32  ;;  %s458_s19 = smov (!%p138_p2), 122  }
   0x7   : > { %s459_s20 = smov (!%p138_p2), 103   ;;  %s460_s21 = smov (!%p138_p2), 102  }
   0x8   : > { %s461_s22 = smov (!%p138_p2), 98   ;;  %s462_s23 = smov (!%p138_p2), 97  }
   0x9   : > { %s463_s24 = smov (!%p138_p2), 127  }
   0xb   : > { %s539_s13 = smov (!%p161_p3, %s401_s13), 1  ;;  %vm195_vm0 = vcmask 1006592   ;;  %vm221_vm1 = vcmask 842752   ;;  %vm208_vm2 = vcmask 998400   ;;  %vm234_vm3 = vcmask 834560   ;;  %v273_v29 = vld [vmem:[%s536_s2 + $0x8] sm:$0xff] }
   0xc   : > { %s416_s14 = sshll.u32 %s539_s13, 3  ;;  %v274_v30 = vld [vmem:[%s536_s2 + $0x10] sm:$0xff]  ;;  %vm247_vm4 = vcmask 801792   ;;  %v464_v31 = vmov 0   ;;  %v272_v32 = vld [vmem:[%s536_s2] sm:$0xff]  ;;  %vm260_vm5 = vcmask 793600  }
   0xd   : > { %s499_s17 = scalar_lea.vmem %s534_s0, %s416_s14  ;;  %448 = vset.pattern.permute.xlu1 %v464_v31  ;;  %447 = vset.pattern.permute.xlu0 %v464_v31  ;;  %v275_v36 = vld [vmem:[%s536_s2 + $0x18] sm:$0xff]  ;;  %vm182_vm6 = vcmask 1039360   ;;  %v264_v46 = vld [vmem:[%s535_s1] sm:$0xff]  ;;  %vm296_vm7 = vcmask 261120   ;;  %v266_v47 = vld [vmem:[%s535_s1 + $0x10] sm:$0xff]  ;;  %s417_s16 = sshll.u32 %s539_s13, 5 }
   0xe   : > { %v173_v0 = vld [vmem:[%s499_s17] sm:$0xff]  ;;  %446 = vset.pattern.permute.xlu2 %v464_v31  ;;  %v267_v48 = vld [vmem:[%s535_s1 + $0x18] sm:$0xff]  ;;  %v265_v49 = vld [vmem:[%s535_s1 + $0x8] sm:$0xff] }
   0xf   : > { %175 = vst [vmem:[#allocation1] ss:$2 sm:$0xff] %v173_v0  ;;  %v171_v27 = vld [vmem:[%s499_s17] sm:$0xf] }
  0x10   : > { %172 = vst [vmem:[#allocation2] sm:$0xf] %v171_v27 }
  0x16   : > { %v176_v1 = vld.sshfl [vmem:[#allocation1] sm:$0xff pattern:$0x75316420]  ;;  %v177_v2 = vld.sshfl [vmem:[#allocation1 + $0x8] sm:$0xff pattern:$0x75316420] }
  0x17   : > { %188 = vst [vmem:[#allocation1] ss:$2 sm:$0xff] %v173_v0 }
  0x1e   : > { %v190_v3 = vld.sshfl [vmem:[#allocation1 + $0x8] sm:$0xff pattern:$0x75316420]  ;;  %v189_v4 = vld.sshfl [vmem:[#allocation1] sm:$0xff pattern:$0x75316420] }
  0x1f   : > { %193 = vrot.lane.b32.xlu0 %v190_v3, %s457_s18  ;;  %191 = vrot.lane.b32.xlu2 %v189_v4, %s457_s18  ;;  %201 = vst [vmem:[#allocation1] ss:$2 sm:$0xff] %v173_v0 }
  0x26   : > { %v202_v5 = vld.sshfl [vmem:[#allocation1] sm:$0xff pattern:$0x75316420]  ;;  %v203_v6 = vld.sshfl [vmem:[#allocation1 + $0x8] sm:$0xff pattern:$0x75316420] }
  0x27   : > { %204 = vrot.lane.b32.xlu1 %v202_v5, %s458_s19  ;;  %214 = vst [vmem:[#allocation1] ss:$2 sm:$0xff] %v173_v0 }
  0x2e   : > { %v215_v7 = vld.sshfl [vmem:[#allocation1] sm:$0xff pattern:$0x75316420]  ;;  %v216_v8 = vld.sshfl [vmem:[#allocation1 + $0x8] sm:$0xff pattern:$0x75316420] }
  0x2f   : > { %227 = vst [vmem:[#allocation1] ss:$2 sm:$0xff] %v173_v0  ;;  %217 = vrot.lane.b32.xlu2 %v215_v7, %s459_s20 }
  0x36   : > { %v228_v9 = vld.sshfl [vmem:[#allocation1] sm:$0xff pattern:$0x75316420]  ;;  %v229_v10 = vld.sshfl [vmem:[#allocation1 + $0x8] sm:$0xff pattern:$0x75316420] }
  0x37   : > { %230 = vrot.lane.b32.xlu0 %v228_v9, %s460_s21  ;;  %232 = vrot.lane.b32.xlu1 %v229_v10, %s460_s21  ;;  %240 = vst [vmem:[#allocation1] ss:$2 sm:$0xff] %v173_v0 }
  0x38   : > { %219 = vrot.lane.b32.xlu2 %v216_v8, %s459_s20 }
  0x3e   : > { %v241_v11 = vld.sshfl [vmem:[#allocation1] sm:$0xff pattern:$0x75316420]  ;;  %v242_v12 = vld.sshfl [vmem:[#allocation1 + $0x8] sm:$0xff pattern:$0x75316420] }
  0x3f   : > { %243 = vrot.lane.b32.xlu0 %v241_v11, %s461_s22  ;;  %253 = vst [vmem:[#allocation1] ss:$2 sm:$0xff] %v173_v0 }
  0x40   : > { %206 = vrot.lane.b32.xlu2 %v203_v6, %s458_s19  ;;  %s170_s19 = scalar_lea.vmem %s537_s3, %s417_s16 }
  0x46   : > { %v254_v13 = vld.sshfl [vmem:[#allocation1] sm:$0xff pattern:$0x75316420]  ;;  %v255_v14 = vld.sshfl [vmem:[#allocation1 + $0x8] sm:$0xff pattern:$0x75316420] }
  0x47   : > { %245 = vrot.lane.b32.xlu0 %v242_v12, %s461_s22  ;;  %256 = vrot.lane.b32.xlu1 %v254_v13, %s462_s23 }
  0x48   : > { %278 = vperm.xlu2 %446, %v272_v32  }
  0x4f   : > { %258 = vrot.lane.b32.xlu1 %v255_v14, %s462_s23  ;;  %178 = vrot.lane.b32.xlu0 %v176_v1, %s463_s24 }
  0x50   : > { %293 = vperm.xlu2 %446, %v275_v36  }
  0x57   : > { %180 = vrot.lane.b32.xlu1 %v177_v2, %s463_s24  ;;  %283 = vperm.xlu0 %447, %v273_v29  }
  0x5f   : > { %288 = vperm.xlu1 %448, %v274_v30  }
  0x79   : > { %v192_v15 = vpop.permute.xlu2 %191 }
  0x89   : > { %v218_v16 = vpop.permute.xlu2 %217 }
  0x91   : > { %v194_v17 = vpop.permute.xlu0 %193 }
  0x92   : > { %v196_v18 = vsel %vm195_vm0, %v192_v15, %v194_v17  ;;  %v220_v19 = vpop.permute.xlu2 %219 }
  0x93   : > { %198 = vst [vmem:[#allocation2 + $0x8] sm:$0xf] %v196_v18  ;;  %v222_v20 = vsel %vm221_vm1, %v218_v16, %v220_v19 }
  0x94   : > { %224 = vst [vmem:[#allocation2 + $0x10] sm:$0xf] %v222_v20 }
  0x99   : > { %v205_v21 = vpop.permute.xlu1 %204 }
  0x9a   : > { %v207_v22 = vpop.permute.xlu2 %206 }
  0x9b   : > { %v209_v23 = vsel %vm208_vm2, %v205_v21, %v207_v22 }
  0x9c   : > { %211 = vst [vmem:[#allocation2 + $0xc] sm:$0xf] %v209_v23 }
  0xa2   : > { %v279_v50 = vpop.permute.xlu2 %278 }
  0xa3   : > { %v269_v44 = vld [vmem:[#allocation2 + $0x8] sm:$0xff] }
  0xa9   : > { %v231_v24 = vpop.permute.xlu0 %230  ;;  %v233_v25 = vpop.permute.xlu1 %232 }
  0xaa   : > { %v235_v26 = vsel %vm234_vm3, %v231_v24, %v233_v25  ;;  %v294_v60 = vpop.permute.xlu2 %293 }
  0xab   : > { %237 = vst [vmem:[#allocation2 + $0x14] sm:$0xf] %v235_v26 }
  0xb1   : > { %v244_v28 = vpop.permute.xlu0 %243 }
  0xb2   : > { %v270_v43 = vld [vmem:[#allocation2 + $0x10] sm:$0xff] }
  0xb9   : > { %v246_v33 = vpop.permute.xlu0 %245  ;;  %v257_v34 = vpop.permute.xlu1 %256 }
  0xba   : > { %v248_v35 = vsel %vm247_vm4, %v244_v28, %v246_v33 }
  0xbb   : > { %250 = vst [vmem:[#allocation2 + $0x18] sm:$0xf] %v248_v35 }
  0xc1   : > { %v259_v37 = vpop.permute.xlu1 %258  ;;  %v179_v39 = vpop.permute.xlu0 %178 }
  0xc2   : > { %v261_v38 = vsel %vm260_vm5, %v257_v34, %v259_v37 }
  0xc3   : > { %263 = vst [vmem:[#allocation2 + $0x1c] sm:$0xf] %v261_v38 }
  0xc9   : > { %v181_v40 = vpop.permute.xlu1 %180  ;;  %v284_v51 = vpop.permute.xlu0 %283 }
  0xca   : > { %v183_v41 = vsel %vm182_vm6, %v179_v39, %v181_v40  ;;  %v271_v42 = vld [vmem:[#allocation2 + $0x18] sm:$0xff] }
  0xcb   : > { %185 = vst [vmem:[#allocation2 + $0x4] sm:$0xf] %v183_v41  ;;  %321 = vmatpush.msra.mxu0 %v271_v42  ;;  %418 = vmatpush.msra.mxu1 %v271_v42 }
  0xcc   : > { %419 = vmatpush.msra.mxu2 %v271_v42  ;;  %420 = vmatpush.msra.mxu3 %v271_v42 }
  0xcd   : > { %322 = vmatpush.msra.mxu0 %v270_v43  ;;  %421 = vmatpush.msra.mxu1 %v270_v43 }
  0xce   : > { %422 = vmatpush.msra.mxu2 %v270_v43  ;;  %423 = vmatpush.msra.mxu3 %v270_v43 }
  0xcf   : > { %323 = vmatpush.msra.mxu0 %v269_v44  ;;  %424 = vmatpush.msra.mxu1 %v269_v44 }
  0xd0   : > { %425 = vmatpush.msra.mxu2 %v269_v44  ;;  %426 = vmatpush.msra.mxu3 %v269_v44 }
  0xd1   : > { %v289_v57 = vpop.permute.xlu1 %288 }
  0xd2   : > { %v268_v45 = vld [vmem:[#allocation2] sm:$0xff] }
  0xd3   : > { %324 = vmatpush.msra.mxu0 %v268_v45  ;;  %427 = vmatpush.msra.mxu1 %v268_v45 }
  0xd4   : > { %428 = vmatpush.msra.mxu2 %v268_v45  ;;  %429 = vmatpush.msra.mxu3 %v268_v45 }
  0xd5   : > { %410 = vmatmul.msk.f32.vlgmr.msra.gmra.mxu0 %vm296_vm7, %v264_v46  ;;  %412 = vmatmul.msk.f32.vlgmr.msra.gmra.mxu2 %vm296_vm7, %v266_v47 }
  0xd6   : > { %413 = vmatmul.msk.f32.vlgmr.msra.gmra.mxu3 %vm296_vm7, %v267_v48  ;;  %411 = vmatmul.msk.f32.vlgmr.msra.gmra.mxu1 %vm296_vm7, %v265_v49 }
 0x152   : > { %v326_v52 = vpop.f32.mrf.mxu0 }
 0x153   : > { %v327_v53 = vadd.f32 %v326_v52, %v279_v50  ;;  %v329_v54 = vpop.f32.mrf.mxu1 }
 0x154   : > { %v330_v55 = vadd.f32 %v329_v54, %v284_v51 }
 0x155   : > { %v338_v56 = vmax.f32 %v327_v53, 0.0 }
 0x156   : > { %v339_v58 = vmax.f32 %v330_v55, 0.0 }
 0x157   : > { %342 = vst [vmem:[%s170_s19] sm:$0xff] %v338_v56 }
 0x158   : > { %343 = vst [vmem:[%s170_s19 + $0x8] sm:$0xff] %v339_v58  ;;  %v332_v59 = vpop.f32.mrf.mxu2 }
 0x159   : > { %v333_v61 = vadd.f32 %v332_v59, %v289_v57  ;;  %v335_v62 = vpop.f32.mrf.mxu3 }
 0x15a   : > { %v336_v63 = vadd.f32 %v335_v62, %v294_v60 }
 0x15b   : > { %v340_v0 = vmax.f32 %v333_v61, 0.0 }
 0x15c   : > { %v341_v1 = vmax.f32 %v336_v63, 0.0 }
 0x15d   : > { %344 = vst [vmem:[%s170_s19 + $0x10] sm:$0xff] %v340_v0 }
 0x15e   : > { %345 = vst [vmem:[%s170_s19 + $0x18] sm:$0xff] %v341_v1 }
 0x15f PF: > { %s13_s12 = sadd.s32 1, %s455_s12  }
 0x160   : > { %p10_p4 = scmp.ge.s32.totalorder %s13_s12, 4  }
 0x162   :  { %12 = sbr.rel (!%p10_p4) target bundleno = 1 (0x1), region = 62 }

// kernel: up_forward.5
= control target key start
LH: loop header
LB: loop body
LE: loop exit
PB: predicated region body
PF: predicated region fallthrough
CT: control target
= control target key end

     0   :  { %s2274_s12 = smov 0   ;;  %s3440_s0 = inlined_call_operand.vmem [shape: f32[2,4,1200], index: 0, kind: input, shape index: {}]   ;;  %s3441_s1 = inlined_call_operand.vmem [shape: f32[4,108], index: 1, kind: input, shape index: {}]   ;;  %s3442_s2 = inlined_call_operand.vmem [shape: f32[4,1], index: 2, kind: input, shape index: {}]   ;;  %s3443_s3 = inlined_call_operand.vmem [shape: f32[2,4,896], index: 3, kind: output, shape index: {}]  }
   0x1 LB: > { %s2157_s13 = sadd.s32 4294967295, %s2225_s12   ;;  %p2161_p0 = scmp.ge.s32.totalorder %s2225_s12, 1  ;;  %s2225_s12 = sphi %s2274_s12, %s13_s12  }
   0x2   : > { %p137_p1 = scmp.lt.s32.totalorder %s2225_s12, 3 }
   0x4   : > { %p138_p2 = pnand %p2161_p0, %p137_p1 }
   0x6   : > { %141 = sbr.rel (%p138_p2) target bundleno = 870 (0x366), region = 32 }
   0xb   : > { %p161_p3 = scmp.lt.s32.totalorder %s2157_s13, 1  ;;  %s2227_s18 = smov 127   ;;  %vm247_vm0 = vcmask 1039360   ;;  %vm308_vm1 = vcmask 1031168   ;;  %vm370_vm2 = vcmask 965632   ;;  %vm431_vm3 = vcmask 957440  }
   0xc   : > { %s2228_s19 = smov 126   ;;  %s2229_s20 = smov 118   ;;  %vm493_vm4 = vcmask 949248   ;;  %vm554_vm5 = vcmask 883712   ;;  %vm616_vm6 = vcmask 875520   ;;  %vm677_vm7 = vcmask 867328  }
   0xd   : > { %s3453_s13 = smov (!%p161_p3, %s2157_s13), 1  ;;  %s2230_s21 = smov 117   ;;  %vm739_vm8 = vcmask 228352   ;;  %vm800_vm9 = vcmask 220160   ;;  %vm862_vm10 = vcmask 211968   ;;  %vm923_vm11 = vcmask 146432  }
   0xe   : > { %s2180_s14 = smul.u32 40, %s3453_s13  ;;  %s2231_s22 = smov 116   ;;  %vm985_vm12 = vcmask 138240   ;;  %vm1046_vm13 = vcmask 130048   ;;  %vm1108_vm14 = vcmask 64512   ;;  %vm1169_vm15 = vcmask 56320  }
   0xf   : > { %s2232_s23 = smov 108   ;;  %s2233_s24 = smov 107  }
  0x10   : > { %s2288_s17 = scalar_lea.vmem %s3440_s0, %s2180_s14  ;;  %s2234_s25 = smov 106  }
  0x11   : > { %v2291_v0 = vld [vmem:[%s2288_s17 + $0x10] sm:$0xff]  ;;  %v2294_v1 = vld [vmem:[%s2288_s17 + $0x8] sm:$0xff]  ;;  %v2297_v2 = vld [vmem:[%s2288_s17] sm:$0xff]  ;;  %s2235_s26 = smov 28   ;;  %s2236_s27 = smov 27  }
  0x12   : > { %183 = vst [vmem:[#allocation1 + $0x20] ss:$2 sm:$0xff] %v2291_v0  ;;  %v174_v3 = vld [vmem:[%s2288_s17 + $0x18] sm:$0xf]  ;;  %s2237_s28 = smov 26   ;;  %s2238_s29 = smov 18  }
  0x13   : > { %181 = vst [vmem:[#allocation1 + $0x10] ss:$2 sm:$0xff] %v2294_v1  ;;  %v2307_v11 = vld [vmem:[%s2288_s17 + $0x18] sm:$0xff]  ;;  %s2239_s30 = smov 17   ;;  %s2240_s4 = smov 16  }
  0x14   : > { %179 = vst [vmem:[#allocation1] ss:$2 sm:$0xff] %v2297_v2  ;;  %s2241_s5 = smov 8   ;;  %s2242_s6 = smov 7  }
  0x15   : > { %185 = vst [vmem:[#allocation1 + $0x30] ss:$2 sm:$0xff] %v174_v3  ;;  %s2243_s7 = smov 6   ;;  %s2244_s8 = smov 34  }
  0x16   : > { %s2245_s9 = smov 56   ;;  %s2246_s10 = smov 36  }
  0x17   : > { %s2247_s11 = smov 35   ;;  %s2248_s14 = smov 45  }
  0x18   : > { %s2249_s15 = smov 44   ;;  %s2250_s16 = smov 46  }
  0x19   : > { %v190_v4 = vld.sshfl [vmem:[#allocation1 + $0x20] sm:$0xff pattern:$0x75316420]  ;;  %v191_v5 = vld.sshfl [vmem:[#allocation1 + $0x28] sm:$0xff pattern:$0x75316420] }
  0x1a   : > { %220 = vst [vmem:[#allocation1 + $0x21] ss:$2 sm:$0xff] %v2291_v0  ;;  %v188_v6 = vld.sshfl [vmem:[#allocation1 + $0x10] sm:$0xff pattern:$0x75316420] }
  0x1b   : > { %204 = vst [vmem:[#allocation2 + $0x30] sm:$0xf] %v190_v4  ;;  %v189_v7 = vld.sshfl [vmem:[#allocation1 + $0x18] sm:$0xff pattern:$0x75316420] }
  0x1c   : > { %205 = vst [vmem:[#allocation2 + $0xf0] sm:$0xf] %v191_v5  ;;  %v186_v8 = vld.sshfl [vmem:[#allocation1] sm:$0xff pattern:$0x75316420] }
  0x1d   : > { %218 = vst [vmem:[#allocation1 + $0x11] ss:$2 sm:$0xff] %v2294_v1  ;;  %v187_v9 = vld.sshfl [vmem:[#allocation1 + $0x8] sm:$0xff pattern:$0x75316420] }
  0x1e   : > { %202 = vst [vmem:[#allocation2 + $0x10] sm:$0xf] %v188_v6  ;;  %v192_v10 = vld.sshfl [vmem:[#allocation1 + $0x30] sm:$0xff pattern:$0x75316420] }
  0x1f   : > { %203 = vst [vmem:[#allocation2 + $0x48] sm:$0xf] %v189_v7 }
  0x20   : > { %216 = vst [vmem:[#allocation1 + $0x1] ss:$2 sm:$0xff] %v2297_v2 }
  0x21   : > { %v227_v12 = vld.sshfl [vmem:[#allocation1 + $0x20] sm:$0xff pattern:$0x75316420]  ;;  %200 = vst [vmem:[#allocation2 + $0x2b0] sm:$0xf] %v186_v8 }
  0x22   : > { %239 = vrot.lane.b32.xlu2 %v227_v12, %s2227_s18  ;;  %201 = vst [vmem:[#allocation2 + $0xd0] sm:$0xf] %v187_v9  ;;  %v228_v15 = vld.sshfl [vmem:[#allocation1 + $0x28] sm:$0xff pattern:$0x75316420] }
  0x23   : > { %222 = vst [vmem:[#allocation1 + $0x31] ss:$2 sm:$0xff] %v2307_v11 }
  0x24   : > { %v225_v13 = vld.sshfl [vmem:[#allocation1 + $0x10] sm:$0xff pattern:$0x75316420]  ;;  %v226_v14 = vld.sshfl [vmem:[#allocation1 + $0x18] sm:$0xff pattern:$0x75316420] }
  0x25   : > { %235 = vrot.lane.b32.xlu1 %v225_v13, %s2227_s18  ;;  %206 = vst [vmem:[#allocation2 + $0xf8] sm:$0xf] %v192_v10 }
  0x26   : > { %279 = vst [vmem:[#allocation1 + $0x10] ss:$2 sm:$0xff] %v2294_v1 }
  0x27   : > { %v223_v16 = vld.sshfl [vmem:[#allocation1] sm:$0xff pattern:$0x75316420]  ;;  %v224_v17 = vld.sshfl [vmem:[#allocation1 + $0x8] sm:$0xff pattern:$0x75316420] }
  0x28   : > { %231 = vrot.lane.b32.xlu0 %v223_v16, %s2227_s18  ;;  %277 = vst [vmem:[#allocation1] ss:$2 sm:$0xff] %v2297_v2 }
  0x29   : > { %281 = vst [vmem:[#allocation1 + $0x20] ss:$2 sm:$0xff] %v2291_v0 }
  0x2a   : > { %241 = vrot.lane.b32.xlu2 %v228_v15, %s2227_s18  ;;  %v230_v18 = vld.sshfl [vmem:[#allocation1 + $0x38] sm:$0xff pattern:$0x75316420]  ;;  %v229_v19 = vld.sshfl [vmem:[#allocation1 + $0x30] sm:$0xff pattern:$0x75316420] }
  0x2b   : > { %283 = vst [vmem:[#allocation1 + $0x30] ss:$2 sm:$0xff] %v2307_v11 }
  0x2d   : > { %237 = vrot.lane.b32.xlu1 %v226_v14, %s2227_s18  ;;  %v286_v20 = vld.sshfl [vmem:[#allocation1 + $0x10] sm:$0xff pattern:$0x75316420]  ;;  %v287_v21 = vld.sshfl [vmem:[#allocation1 + $0x18] sm:$0xff pattern:$0x75316420] }
  0x2e   : > { %341 = vst [vmem:[#allocation1 + $0x11] ss:$2 sm:$0xff] %v2294_v1 }
  0x2f   : > { %v284_v22 = vld.sshfl [vmem:[#allocation1] sm:$0xff pattern:$0x75316420]  ;;  %v285_v23 = vld.sshfl [vmem:[#allocation1 + $0x8] sm:$0xff pattern:$0x75316420] }
  0x30   : > { %233 = vrot.lane.b32.xlu0 %v224_v17, %s2227_s18  ;;  %v289_v24 = vld.sshfl [vmem:[#allocation1 + $0x28] sm:$0xff pattern:$0x75316420]  ;;  %339 = vst [vmem:[#allocation1 + $0x1] ss:$2 sm:$0xff] %v2297_v2 }
  0x31   : > { %v288_v25 = vld.sshfl [vmem:[#allocation1 + $0x20] sm:$0xff pattern:$0x75316420] }
  0x32   : > { %292 = vrot.lane.b32.xlu2 %v284_v22, %s2228_s19  ;;  %v290_v26 = vld.sshfl [vmem:[#allocation1 + $0x30] sm:$0xff pattern:$0x75316420]  ;;  %v291_v27 = vld.sshfl [vmem:[#allocation1 + $0x38] sm:$0xff pattern:$0x75316420] }
  0x33   : > { %343 = vst [vmem:[#allocation1 + $0x21] ss:$2 sm:$0xff] %v2291_v0 }
  0x34   : > { %345 = vst [vmem:[#allocation1 + $0x31] ss:$2 sm:$0xff] %v2307_v11 }
  0x35   : > { %245 = vrot.lane.b32.xlu1 %v230_v18, %s2227_s18  ;;  %v348_v28 = vld.sshfl [vmem:[#allocation1 + $0x10] sm:$0xff pattern:$0x75316420]  ;;  %v349_v29 = vld.sshfl [vmem:[#allocation1 + $0x18] sm:$0xff pattern:$0x75316420] }
  0x36   : > { %402 = vst [vmem:[#allocation1 + $0x10] ss:$2 sm:$0xff] %v2294_v1 }
  0x37   : > { %v347_v30 = vld.sshfl [vmem:[#allocation1 + $0x8] sm:$0xff pattern:$0x75316420]  ;;  %v346_v31 = vld.sshfl [vmem:[#allocation1] sm:$0xff pattern:$0x75316420] }
  0x38   : > { %243 = vrot.lane.b32.xlu0 %v229_v19, %s2227_s18  ;;  %400 = vst [vmem:[#allocation1] ss:$2 sm:$0xff] %v2297_v2  ;;  %s2252_s18 = smov 55  }
  0x3a   : > { %298 = vrot.lane.b32.xlu2 %v287_v21, %s2228_s19  ;;  %v350_v32 = vld.sshfl [vmem:[#allocation1 + $0x20] sm:$0xff pattern:$0x75316420]  ;;  %v351_v33 = vld.sshfl [vmem:[#allocation1 + $0x28] sm:$0xff pattern:$0x75316420] }
  0x3b   : > { %404 = vst [vmem:[#allocation1 + $0x20] ss:$2 sm:$0xff] %v2291_v0  ;;  %v353_v34 = vld.sshfl [vmem:[#allocation1 + $0x38] sm:$0xff pattern:$0x75316420] }
  0x3c   : > { %v352_v35 = vld.sshfl [vmem:[#allocation1 + $0x30] sm:$0xff pattern:$0x75316420] }
  0x3d   : > { %296 = vrot.lane.b32.xlu1 %v286_v20, %s2228_s19  ;;  %406 = vst [vmem:[#allocation1 + $0x30] ss:$2 sm:$0xff] %v2307_v11  ;;  %v409_v40 = vld.sshfl [vmem:[#allocation1 + $0x10] sm:$0xff pattern:$0x75316420] }
  0x3e   : > { %v410_v41 = vld.sshfl [vmem:[#allocation1 + $0x18] sm:$0xff pattern:$0x75316420] }
  0x3f   : > { %v408_v36 = vld.sshfl [vmem:[#allocation1 + $0x8] sm:$0xff pattern:$0x75316420]  ;;  %v407_v37 = vld.sshfl [vmem:[#allocation1] sm:$0xff pattern:$0x75316420] }
  0x40   : > { %294 = vrot.lane.b32.xlu0 %v285_v23, %s2228_s19  ;;  %462 = vst [vmem:[#allocation1 + $0x1] ss:$2 sm:$0xff] %v2297_v2 }
  0x41   : > { %464 = vst [vmem:[#allocation1 + $0x11] ss:$2 sm:$0xff] %v2294_v1 }
  0x42   : > { %304 = vrot.lane.b32.xlu2 %v290_v26, %s2228_s19  ;;  %v412_v38 = vld.sshfl [vmem:[#allocation1 + $0x28] sm:$0xff pattern:$0x75316420]  ;;  %v411_v39 = vld.sshfl [vmem:[#allocation1 + $0x20] sm:$0xff pattern:$0x75316420] }
  0x43   : > { %466 = vst [vmem:[#allocation1 + $0x21] ss:$2 sm:$0xff] %v2291_v0 }
  0x44   : > { %v414_v42 = vld.sshfl [vmem:[#allocation1 + $0x38] sm:$0xff pattern:$0x75316420]  ;;  %v413_v43 = vld.sshfl [vmem:[#allocation1 + $0x30] sm:$0xff pattern:$0x75316420] }
  0x45   : > { %302 = vrot.lane.b32.xlu1 %v289_v24, %s2228_s19  ;;  %468 = vst [vmem:[#allocation1 + $0x31] ss:$2 sm:$0xff] %v2307_v11 }
  0x47   : > { %v469_v44 = vld.sshfl [vmem:[#allocation1] sm:$0xff pattern:$0x75316420]  ;;  %v470_v45 = vld.sshfl [vmem:[#allocation1 + $0x8] sm:$0xff pattern:$0x75316420] }
  0x48   : > { %300 = vrot.lane.b32.xlu0 %v288_v25, %s2228_s19  ;;  %523 = vst [vmem:[#allocation1] ss:$2 sm:$0xff] %v2297_v2  ;;  %v471_v46 = vld.sshfl [vmem:[#allocation1 + $0x10] sm:$0xff pattern:$0x75316420] }
  0x49   : > { %v472_v47 = vld.sshfl [vmem:[#allocation1 + $0x18] sm:$0xff pattern:$0x75316420] }
  0x4a   : > { %356 = vrot.lane.b32.xlu2 %v347_v30, %s2229_s20  ;;  %525 = vst [vmem:[#allocation1 + $0x10] ss:$2 sm:$0xff] %v2294_v1  ;;  %v474_v48 = vld.sshfl [vmem:[#allocation1 + $0x28] sm:$0xff pattern:$0x75316420] }
  0x4b   : > { %v473_v49 = vld.sshfl [vmem:[#allocation1 + $0x20] sm:$0xff pattern:$0x75316420] }
  0x4c   : > { %527 = vst [vmem:[#allocation1 + $0x20] ss:$2 sm:$0xff] %v2291_v0  ;;  %v475_v50 = vld.sshfl [vmem:[#allocation1 + $0x30] sm:$0xff pattern:$0x75316420] }
  0x4d   : > { %354 = vrot.lane.b32.xlu1 %v346_v31, %s2229_s20  ;;  %v476_v51 = vld.sshfl [vmem:[#allocation1 + $0x38] sm:$0xff pattern:$0x75316420] }
  0x4e   : > { %529 = vst [vmem:[#allocation1 + $0x30] ss:$2 sm:$0xff] %v2307_v11 }
  0x4f   : > { %v531_v52 = vld.sshfl [vmem:[#allocation1 + $0x8] sm:$0xff pattern:$0x75316420]  ;;  %v530_v53 = vld.sshfl [vmem:[#allocation1] sm:$0xff pattern:$0x75316420] }
  0x50   : > { %306 = vrot.lane.b32.xlu0 %v291_v27, %s2228_s19  ;;  %585 = vst [vmem:[#allocation1 + $0x1] ss:$2 sm:$0xff] %v2297_v2 }
  0x51   : > { %v532_v54 = vld.sshfl [vmem:[#allocation1 + $0x10] sm:$0xff pattern:$0x75316420]  ;;  %v533_v55 = vld.sshfl [vmem:[#allocation1 + $0x18] sm:$0xff pattern:$0x75316420] }
  0x52   : > { %362 = vrot.lane.b32.xlu2 %v350_v32, %s2229_s20  ;;  %587 = vst [vmem:[#allocation1 + $0x11] ss:$2 sm:$0xff] %v2294_v1 }
  0x53   : > { %v534_v56 = vld.sshfl [vmem:[#allocation1 + $0x20] sm:$0xff pattern:$0x75316420]  ;;  %v535_v57 = vld.sshfl [vmem:[#allocation1 + $0x28] sm:$0xff pattern:$0x75316420] }
  0x54   : > { %589 = vst [vmem:[#allocation1 + $0x21] ss:$2 sm:$0xff] %v2291_v0 }
  0x55   : > { %360 = vrot.lane.b32.xlu1 %v349_v29, %s2229_s20  ;;  %v537_v59 = vld.sshfl [vmem:[#allocation1 + $0x38] sm:$0xff pattern:$0x75316420]  ;;  %v536_v60 = vld.sshfl [vmem:[#allocation1 + $0x30] sm:$0xff pattern:$0x75316420] }
  0x56   : > { %591 = vst [vmem:[#allocation1 + $0x31] ss:$2 sm:$0xff] %v2307_v11 }
  0x57   : > { %v593_v63 = vld.sshfl [vmem:[#allocation1 + $0x8] sm:$0xff pattern:$0x75316420]  ;;  %v592_v3 = vld.sshfl [vmem:[#allocation1] sm:$0xff pattern:$0x75316420] }
  0x58   : > { %358 = vrot.lane.b32.xlu0 %v348_v28, %s2229_s20  ;;  %646 = vst [vmem:[#allocation1] ss:$2 sm:$0xff] %v2297_v2 }
  0x59   : > { %v594_v5 = vld.sshfl [vmem:[#allocation1 + $0x10] sm:$0xff pattern:$0x75316420]  ;;  %v595_v8 = vld.sshfl [vmem:[#allocation1 + $0x18] sm:$0xff pattern:$0x75316420] }
  0x5a   : > { %368 = vrot.lane.b32.xlu2 %v353_v34, %s2229_s20  ;;  %648 = vst [vmem:[#allocation1 + $0x10] ss:$2 sm:$0xff] %v2294_v1 }
  0x5b   : > { %v597_v6 = vld.sshfl [vmem:[#allocation1 + $0x28] sm:$0xff pattern:$0x75316420]  ;;  %v596_v7 = vld.sshfl [vmem:[#allocation1 + $0x20] sm:$0xff pattern:$0x75316420] }
  0x5c   : > { %650 = vst [vmem:[#allocation1 + $0x20] ss:$2 sm:$0xff] %v2291_v0 }
  0x5d   : > { %366 = vrot.lane.b32.xlu1 %v352_v35, %s2229_s20  ;;  %v599_v10 = vld.sshfl [vmem:[#allocation1 + $0x38] sm:$0xff pattern:$0x75316420]  ;;  %v598_v12 = vld.sshfl [vmem:[#allocation1 + $0x30] sm:$0xff pattern:$0x75316420] }
  0x5e   : > { %652 = vst [vmem:[#allocation1 + $0x30] ss:$2 sm:$0xff] %v2307_v11 }
  0x5f   : > { %v653_v16 = vld.sshfl [vmem:[#allocation1] sm:$0xff pattern:$0x75316420]  ;;  %v2369_v17 = vld.sshfl [vmem:[#allocation1 + $0x8] sm:$0xff pattern:$0x75316420] }
  0x60   : > { %364 = vrot.lane.b32.xlu0 %v351_v33, %s2229_s20  ;;  %708 = vst [vmem:[#allocation1 + $0x1] ss:$2 sm:$0xff] %v2297_v2 }
  0x61   : > { %v655_v21 = vld.sshfl [vmem:[#allocation1 + $0x10] sm:$0xff pattern:$0x75316420]  ;;  %v656_v23 = vld.sshfl [vmem:[#allocation1 + $0x18] sm:$0xff pattern:$0x75316420] }
  0x62   : > { %419 = vrot.lane.b32.xlu2 %v409_v40, %s2230_s21  ;;  %710 = vst [vmem:[#allocation1 + $0x11] ss:$2 sm:$0xff] %v2294_v1 }
  0x63   : > { %v2380_v27 = vld.sshfl [vmem:[#allocation1 + $0x28] sm:$0xff pattern:$0x75316420]  ;;  %v2383_v28 = vld.sshfl [vmem:[#allocation1 + $0x20] sm:$0xff pattern:$0x75316420] }
  0x64   : > { %712 = vst [vmem:[#allocation1 + $0x21] ss:$2 sm:$0xff] %v2291_v0 }
  0x65   : > { %417 = vrot.lane.b32.xlu1 %v408_v36, %s2230_s21  ;;  %v659_v34 = vld.sshfl [vmem:[#allocation1 + $0x30] sm:$0xff pattern:$0x75316420]  ;;  %v2393_v35 = vld.sshfl [vmem:[#allocation1 + $0x38] sm:$0xff pattern:$0x75316420] }
  0x66   : > { %714 = vst [vmem:[#allocation1 + $0x31] ss:$2 sm:$0xff] %v2307_v11 }
  0x68   : > { %415 = vrot.lane.b32.xlu0 %v407_v37, %s2230_s21 }
  0x6a   : > { %425 = vrot.lane.b32.xlu2 %v412_v38, %s2230_s21  ;;  %v716_v38 = vld.sshfl [vmem:[#allocation1 + $0x8] sm:$0xff pattern:$0x75316420] }
  0x6d   : > { %423 = vrot.lane.b32.xlu1 %v411_v39, %s2230_s21  ;;  %v715_v39 = vld.sshfl [vmem:[#allocation1] sm:$0xff pattern:$0x75316420] }
  0x6e   : > { %769 = vst [vmem:[#allocation1] ss:$2 sm:$0xff] %v2297_v2 }
  0x70   : > { %421 = vrot.lane.b32.xlu0 %v410_v41, %s2230_s21 }
  0x72   : > { %477 = vrot.lane.b32.xlu2 %v469_v44, %s2231_s22 }
  0x75   : > { %429 = vrot.lane.b32.xlu1 %v414_v42, %s2230_s21 }
  0x78   : > { %427 = vrot.lane.b32.xlu0 %v413_v43, %s2230_s21 }
  0x7a   : > { %483 = vrot.lane.b32.xlu2 %v472_v47, %s2231_s22  ;;  %v718_v47 = vld.sshfl [vmem:[#allocation1 + $0x18] sm:$0xff pattern:$0x75316420] }
  0x7c   : > { %v240_v58 = vpop.permute.xlu2 %239 }
  0x7d   : > { %481 = vrot.lane.b32.xlu1 %v471_v46, %s2231_s22  ;;  %v2408_v46 = vld.sshfl [vmem:[#allocation1 + $0x10] sm:$0xff pattern:$0x75316420] }
  0x7e   : > { %771 = vst [vmem:[#allocation1 + $0x10] ss:$2 sm:$0xff] %v2294_v1 }
  0x80   : > { %479 = vrot.lane.b32.xlu0 %v470_v45, %s2231_s22 }
  0x82   : > { %489 = vrot.lane.b32.xlu2 %v475_v50, %s2231_s22 }
  0x84   : > { %v242_v61 = vpop.permute.xlu2 %241 }
  0x85   : > { %487 = vrot.lane.b32.xlu1 %v474_v48, %s2231_s22  ;;  %v252_v62 = vsel %vm247_vm0, %v240_v58, %v242_v61 }
  0x86   : > { %266 = vst [vmem:[#allocation2 + $0x30] sm:$0xf0] %v252_v62  ;;  %v2435_v62 = vld.sshfl [vmem:[#allocation1] sm:$0xff pattern:$0x75316420] }
  0x88   : > { %485 = vrot.lane.b32.xlu0 %v473_v49, %s2231_s22 }
  0x8a   : > { %540 = vrot.lane.b32.xlu2 %v531_v52, %s2232_s23  ;;  %v719_v52 = vld.sshfl [vmem:[#allocation1 + $0x20] sm:$0xff pattern:$0x75316420] }
  0x8c   : > { %v2359_v4 = vpop.permute.xlu2 %292 }
  0x8d   : > { %538 = vrot.lane.b32.xlu1 %v530_v53, %s2232_s23  ;;  %v2418_v53 = vld.sshfl [vmem:[#allocation1 + $0x28] sm:$0xff pattern:$0x75316420] }
  0x8e   : > { %773 = vst [vmem:[#allocation1 + $0x20] ss:$2 sm:$0xff] %v2291_v0 }
  0x90   : > { %491 = vrot.lane.b32.xlu0 %v476_v51, %s2231_s22 }
  0x92   : > { %546 = vrot.lane.b32.xlu2 %v534_v56, %s2232_s23  ;;  %v722_v56 = vld.sshfl [vmem:[#allocation1 + $0x38] sm:$0xff pattern:$0x75316420] }
  0x94   : > { %v2364_v9 = vpop.permute.xlu2 %298 }
  0x95   : > { %544 = vrot.lane.b32.xlu1 %v533_v55, %s2232_s23 }
  0x97   : > { %v236_v13 = vpop.permute.xlu1 %235 }
  0x98   : > { %542 = vrot.lane.b32.xlu0 %v532_v54, %s2232_s23 }
  0x9a   : > { %v232_v14 = vpop.permute.xlu0 %231  ;;  %552 = vrot.lane.b32.xlu2 %v537_v59, %s2232_s23 }
  0x9c   : > { %v2367_v15 = vpop.permute.xlu2 %304 }
  0x9d   : > { %550 = vrot.lane.b32.xlu1 %v536_v60, %s2232_s23 }
  0x9f   : > { %v238_v18 = vpop.permute.xlu1 %237 }
  0xa0   : > { %548 = vrot.lane.b32.xlu0 %v535_v57, %s2232_s23  ;;  %v250_v19 = vsel %vm247_vm0, %v236_v13, %v238_v18  ;;  %v251_v20 = vsel %vm247_vm0, %v238_v18, %v240_v58  ;;  %v721_v57 = vld.sshfl [vmem:[#allocation1 + $0x30] sm:$0xff pattern:$0x75316420]  ;;  %s2181_s23 = smul.u32 28, %s3453_s13 }
  0xa1   : > { %264 = vst [vmem:[#allocation2 + $0x10] sm:$0xf0] %v250_v19 }
  0xa2   : > { %265 = vst [vmem:[#allocation2 + $0x48] sm:$0xf0] %v251_v20  ;;  %v234_v22 = vpop.permute.xlu0 %233  ;;  %604 = vrot.lane.b32.xlu2 %v594_v5, %s2233_s24 }
  0xa3   : > { %v248_v24 = vsel %vm247_vm0, %v232_v14, %v234_v22  ;;  %v249_v25 = vsel %vm247_vm0, %v234_v22, %v236_v13  ;;  %775 = vst [vmem:[#allocation1 + $0x30] ss:$2 sm:$0xff] %v2307_v11  ;;  %v780_v13 = vld.sshfl [vmem:[#allocation1 + $0x20] sm:$0xff pattern:$0x75316420] }
  0xa4   : > { %262 = vst [vmem:[#allocation2 + $0x2b0] sm:$0xf0] %v248_v24  ;;  %v2378_v26 = vpop.permute.xlu2 %356 }
  0xa5   : > { %263 = vst [vmem:[#allocation2 + $0xd0] sm:$0xf0] %v249_v25  ;;  %602 = vrot.lane.b32.xlu1 %v593_v63, %s2233_s24 }
  0xa7   : > { %v246_v29 = vpop.permute.xlu1 %245 }
  0xa8   : > { %600 = vrot.lane.b32.xlu0 %v592_v3, %s2233_s24 }
  0xaa   : > { %v244_v30 = vpop.permute.xlu0 %243  ;;  %610 = vrot.lane.b32.xlu2 %v597_v6, %s2233_s24  ;;  %v2463_v19 = vld.sshfl [vmem:[#allocation1 + $0x38] sm:$0xff pattern:$0x75316420]  ;;  %v2465_v20 = vld.sshfl [vmem:[#allocation1 + $0x30] sm:$0xff pattern:$0x75316420] }
  0xab   : > { %v253_v31 = vsel %vm247_vm0, %v242_v61, %v244_v30  ;;  %v254_v32 = vsel %vm247_vm0, %v244_v30, %v246_v29  ;;  %v2433_v61 = vld.sshfl [vmem:[#allocation1 + $0x8] sm:$0xff pattern:$0x75316420]  ;;  %837 = vst [vmem:[#allocation1 + $0x31] ss:$2 sm:$0xff] %v2307_v11  ;;  %vm1231_vm0 = vcmask 48128  }
  0xac   : > { %267 = vst [vmem:[#allocation2 + $0xf0] sm:$0xf0] %v253_v31  ;;  %v2390_v33 = vpop.permute.xlu2 %362 }
  0xad   : > { %268 = vst [vmem:[#allocation2 + $0xf8] sm:$0xf0] %v254_v32  ;;  %608 = vrot.lane.b32.xlu1 %v596_v7, %s2233_s24 }
  0xae   : > { %831 = vst [vmem:[#allocation1 + $0x1] ss:$2 sm:$0xff] %v2297_v2 }
  0xaf   : > { %v297_v36 = vpop.permute.xlu1 %296 }
  0xb0   : > { %606 = vrot.lane.b32.xlu0 %v595_v8, %s2233_s24  ;;  %v311_v37 = vsel %vm308_vm1, %v297_v36, %v2364_v9  ;;  %v778_v8 = vld.sshfl [vmem:[#allocation1 + $0x10] sm:$0xff pattern:$0x75316420] }
  0xb1   : > { %325 = vst [vmem:[#allocation2 + $0x130] sm:$0xf] %v311_v37 }
  0xb2   : > { %v295_v40 = vpop.permute.xlu0 %294  ;;  %661 = vrot.lane.b32.xlu2 %v653_v16, %s2234_s25 }
  0xb3   : > { %v309_v41 = vsel %vm308_vm1, %v2359_v4, %v295_v40  ;;  %v310_v42 = vsel %vm308_vm1, %v295_v40, %v297_v36 }
  0xb4   : > { %323 = vst [vmem:[#allocation2 + $0x78] sm:$0xf] %v309_v41  ;;  %v369_v43 = vpop.permute.xlu2 %368 }
  0xb5   : > { %324 = vst [vmem:[#allocation2 + $0x300] sm:$0xf] %v310_v42  ;;  %614 = vrot.lane.b32.xlu1 %v599_v10, %s2233_s24  ;;  %v2449_v10 = vld.sshfl [vmem:[#allocation1 + $0x18] sm:$0xff pattern:$0x75316420] }
  0xb6   : > { %833 = vst [vmem:[#allocation1 + $0x11] ss:$2 sm:$0xff] %v2294_v1 }
  0xb7   : > { %v303_v44 = vpop.permute.xlu1 %302 }
  0xb8   : > { %612 = vrot.lane.b32.xlu0 %v598_v12, %s2233_s24  ;;  %v314_v45 = vsel %vm308_vm1, %v303_v44, %v2367_v15 }
  0xb9   : > { %328 = vst [vmem:[#allocation2 + $0x2c0] sm:$0xf] %v314_v45 }
  0xba   : > { %v301_v48 = vpop.permute.xlu0 %300  ;;  %667 = vrot.lane.b32.xlu2 %v656_v23, %s2234_s25 }
  0xbb   : > { %v312_v49 = vsel %vm308_vm1, %v2364_v9, %v301_v48  ;;  %v313_v50 = vsel %vm308_vm1, %v301_v48, %v303_v44  ;;  %v781_v9 = vld.sshfl [vmem:[#allocation1 + $0x28] sm:$0xff pattern:$0x75316420]  ;;  %v2507_v44 = vld.sshfl [vmem:[#allocation1 + $0x38] sm:$0xff pattern:$0x75316420] }
  0xbc   : > { %326 = vst [vmem:[#allocation2 + $0xe8] sm:$0xf] %v312_v49  ;;  %v2415_v51 = vpop.permute.xlu2 %419 }
  0xbd   : > { %327 = vst [vmem:[#allocation2 + $0x40] sm:$0xf] %v313_v50  ;;  %665 = vrot.lane.b32.xlu1 %v655_v21, %s2234_s25  ;;  %v840_v30 = vld.sshfl [vmem:[#allocation1 + $0x10] sm:$0xff pattern:$0x75316420] }
  0xbe   : > { %835 = vst [vmem:[#allocation1 + $0x21] ss:$2 sm:$0xff] %v2291_v0  ;;  %v841_v31 = vld.sshfl [vmem:[#allocation1 + $0x18] sm:$0xff pattern:$0x75316420] }
  0xbf   : > { %v355_v54 = vpop.permute.xlu1 %354  ;;  %894 = vst [vmem:[#allocation1 + $0x10] ss:$2 sm:$0xff] %v2294_v1 }
  0xc0   : > { %663 = vrot.lane.b32.xlu0 %v2369_v17, %s2234_s25  ;;  %v371_v55 = vsel %vm370_vm2, %v355_v54, %v2378_v26 }
  0xc1   : > { %385 = vst [vmem:[#allocation2 + $0x78] sm:$0xf0] %v371_v55 }
  0xc2   : > { %v307_v58 = vpop.permute.xlu0 %306  ;;  %673 = vrot.lane.b32.xlu2 %v659_v34, %s2234_s25 }
  0xc3   : > { %v315_v59 = vsel %vm308_vm1, %v2367_v15, %v307_v58  ;;  %vm1784_vm1 = vcmask 277504  }
  0xc4   : > { %329 = vst [vmem:[#allocation2 + $0x2a8] sm:$0xf] %v315_v59  ;;  %v2429_v60 = vpop.permute.xlu2 %425 }
  0xc5   : > { %671 = vrot.lane.b32.xlu1 %v2380_v27, %s2234_s25  ;;  %v2477_v27 = vld.sshfl [vmem:[#allocation1 + $0x8] sm:$0xff pattern:$0x75316420]  ;;  %v2495_v37 = vld.sshfl [vmem:[#allocation1 + $0x20] sm:$0xff pattern:$0x75316420] }
  0xc6   : > { %v2491_v36 = vld.sshfl [vmem:[#allocation1 + $0x28] sm:$0xff pattern:$0x75316420]  ;;  %v2525_v55 = vld.sshfl [vmem:[#allocation1 + $0x10] sm:$0xff pattern:$0x75316420] }
  0xc7   : > { %v361_v63 = vpop.permute.xlu1 %360  ;;  %896 = vst [vmem:[#allocation1 + $0x20] ss:$2 sm:$0xff] %v2291_v0 }
  0xc8   : > { %669 = vrot.lane.b32.xlu0 %v2383_v28, %s2234_s25  ;;  %v374_v3 = vsel %vm370_vm2, %v361_v63, %v2390_v33 }
  0xc9   : > { %388 = vst [vmem:[#allocation2 + $0xe8] sm:$0xf0] %v374_v3 }
  0xca   : > { %v359_v4 = vpop.permute.xlu0 %358  ;;  %725 = vrot.lane.b32.xlu2 %v716_v38, %s2235_s26 }
  0xcb   : > { %v372_v5 = vsel %vm370_vm2, %v2378_v26, %v359_v4  ;;  %v373_v6 = vsel %vm370_vm2, %v359_v4, %v361_v63  ;;  %v838_v26 = vld.sshfl [vmem:[#allocation1] sm:$0xff pattern:$0x75316420] }
  0xcc   : > { %386 = vst [vmem:[#allocation2 + $0x300] sm:$0xf0] %v372_v5  ;;  %v2446_v7 = vpop.permute.xlu2 %477 }
  0xcd   : > { %387 = vst [vmem:[#allocation2 + $0x130] sm:$0xf0] %v373_v6  ;;  %723 = vrot.lane.b32.xlu1 %v715_v39, %s2235_s26 }
  0xce   : > { %892 = vst [vmem:[#allocation1] ss:$2 sm:$0xff] %v2297_v2 }
  0xcf   : > { %v367_v12 = vpop.permute.xlu1 %366 }
  0xd0   : > { %675 = vrot.lane.b32.xlu0 %v2393_v35, %s2234_s25  ;;  %v377_v14 = vsel %vm370_vm2, %v367_v12, %v369_v43  ;;  %v844_v43 = vld.sshfl [vmem:[#allocation1 + $0x30] sm:$0xff pattern:$0x75316420] }
  0xd1   : > { %391 = vst [vmem:[#allocation2 + $0x2a8] sm:$0xf0] %v377_v14 }
  0xd2   : > { %v365_v15 = vpop.permute.xlu0 %364  ;;  %731 = vrot.lane.b32.xlu2 %v719_v52, %s2235_s26  ;;  %898 = vst [vmem:[#allocation1 + $0x30] ss:$2 sm:$0xff] %v2307_v11 }
  0xd3   : > { %v375_v16 = vsel %vm370_vm2, %v2390_v33, %v365_v15  ;;  %v376_v17 = vsel %vm370_vm2, %v365_v15, %v367_v12  ;;  %vm1661_vm2 = vcmask 293888  }
  0xd4   : > { %389 = vst [vmem:[#allocation2 + $0x40] sm:$0xf0] %v375_v16  ;;  %v2460_v18 = vpop.permute.xlu2 %483 }
  0xd5   : > { %390 = vst [vmem:[#allocation2 + $0x2c0] sm:$0xf0] %v376_v17  ;;  %729 = vrot.lane.b32.xlu1 %v718_v47, %s2235_s26  ;;  %v900_v47 = vld.sshfl [vmem:[#allocation1 + $0x8] sm:$0xff pattern:$0x75316420] }
  0xd6   : > { %v899_v48 = vld.sshfl [vmem:[#allocation1] sm:$0xff pattern:$0x75316420] }
  0xd7   : > { %v418_v21 = vpop.permute.xlu1 %417  ;;  %954 = vst [vmem:[#allocation1 + $0x1] ss:$2 sm:$0xff] %v2297_v2 }
  0xd8   : > { %727 = vrot.lane.b32.xlu0 %v2408_v46, %s2235_s26  ;;  %v433_v22 = vsel %vm431_vm3, %v418_v21, %v2415_v51 }
  0xd9   : > { %447 = vst [vmem:[#allocation2 + $0x180] sm:$0xf] %v433_v22  ;;  %v906_v3 = vld.sshfl [vmem:[#allocation1 + $0x38] sm:$0xff pattern:$0x75316420] }
  0xda   : > { %v416_v23 = vpop.permute.xlu0 %415  ;;  %737 = vrot.lane.b32.xlu2 %v722_v56, %s2235_s26  ;;  %v902_v56 = vld.sshfl [vmem:[#allocation1 + $0x18] sm:$0xff pattern:$0x75316420]  ;;  %v905_v4 = vld.sshfl [vmem:[#allocation1 + $0x30] sm:$0xff pattern:$0x75316420] }
  0xdb   : > { %v432_v24 = vsel %vm431_vm3, %v416_v23, %v418_v21  ;;  %956 = vst [vmem:[#allocation1 + $0x11] ss:$2 sm:$0xff] %v2294_v1 }
  0xdc   : > { %446 = vst [vmem:[#allocation2 + $0x170] sm:$0xf] %v432_v24  ;;  %v2474_v25 = vpop.permute.xlu2 %489 }
  0xdd   : > { %735 = vrot.lane.b32.xlu1 %v721_v57, %s2235_s26  ;;  %960 = vst [vmem:[#allocation1 + $0x31] ss:$2 sm:$0xff] %v2307_v11 }
  0xdf   : > { %v424_v28 = vpop.permute.xlu1 %423 }
  0xe0   : > { %733 = vrot.lane.b32.xlu0 %v2418_v53, %s2235_s26  ;;  %v436_v29 = vsel %vm431_vm3, %v424_v28, %v2429_v60  ;;  %s170_s26 = scalar_lea.vmem %s3443_s3, %s2181_s23 }
  0xe1   : > { %450 = vst [vmem:[#allocation2 + $0x250] sm:$0xf] %v436_v29 }
  0xe2   : > { %v422_v32 = vpop.permute.xlu0 %421  ;;  %788 = vrot.lane.b32.xlu2 %v778_v8, %s2236_s27  ;;  %v2552_v8 = vld.sshfl [vmem:[#allocation1] sm:$0xff pattern:$0x75316420]  ;;  %v2559_v12 = vld.sshfl [vmem:[#allocation1 + $0x18] sm:$0xff pattern:$0x75316420] }
  0xe3   : > { %v434_v33 = vsel %vm431_vm3, %v2415_v51, %v422_v32  ;;  %v435_v34 = vsel %vm431_vm3, %v422_v32, %v424_v28 }
  0xe4   : > { %448 = vst [vmem:[#allocation2 + $0x18] sm:$0xf] %v434_v33  ;;  %v2489_v35 = vpop.permute.xlu2 %540 }
  0xe5   : > { %449 = vst [vmem:[#allocation2 + $0x2b8] sm:$0xf] %v435_v34  ;;  %786 = vrot.lane.b32.xlu1 %v2433_v61, %s2236_s27  ;;  %v903_v61 = vld.sshfl [vmem:[#allocation1 + $0x20] sm:$0xff pattern:$0x75316420] }
  0xe7   : > { %v430_v38 = vpop.permute.xlu1 %429 }
  0xe8   : > { %784 = vrot.lane.b32.xlu0 %v2435_v62, %s2236_s27  ;;  %v2535_v62 = vld.sshfl [vmem:[#allocation1 + $0x28] sm:$0xff pattern:$0x75316420] }
  0xe9   : > { %958 = vst [vmem:[#allocation1 + $0x21] ss:$2 sm:$0xff] %v2291_v0 }
  0xea   : > { %v428_v39 = vpop.permute.xlu0 %427  ;;  %794 = vrot.lane.b32.xlu2 %v781_v9, %s2236_s27 }
  0xeb   : > { %v437_v40 = vsel %vm431_vm3, %v2429_v60, %v428_v39  ;;  %v438_v41 = vsel %vm431_vm3, %v428_v39, %v430_v38  ;;  %v2609_v38 = vld [vmem:[%s2288_s17 + $0x18] sm:$0xff]  ;;  %v967_v39 = vld.sshfl [vmem:[#allocation1 + $0x30] sm:$0xff pattern:$0x75316420]  ;;  %vm1914_vm3 = vcmask 1043456  }
  0xec   : > { %451 = vst [vmem:[#allocation2 + $0x28] sm:$0xf] %v437_v40  ;;  %v2504_v42 = vpop.permute.xlu2 %546 }
  0xed   : > { %452 = vst [vmem:[#allocation2 + $0x70] sm:$0xf] %v438_v41  ;;  %792 = vrot.lane.b32.xlu1 %v780_v13, %s2236_s27  ;;  %v2562_v13 = vld [vmem:[%s2288_s17 + $0x8] sm:$0xff] }
  0xef   : > { %v482_v45 = vpop.permute.xlu1 %481 }
  0xf0   : > { %790 = vrot.lane.b32.xlu0 %v2449_v10, %s2236_s27  ;;  %v496_v46 = vsel %vm493_vm4, %v482_v45, %v2460_v18  ;;  %v963_v10 = vld.sshfl [vmem:[#allocation1 + $0x10] sm:$0xff pattern:$0x75316420]  ;;  %v966_v33 = vld.sshfl [vmem:[#allocation1 + $0x28] sm:$0xff pattern:$0x75316420] }
  0xf1   : > { %510 = vst [vmem:[#allocation2 + $0x18] sm:$0xf0] %v496_v46  ;;  %v965_v34 = vld.sshfl [vmem:[#allocation1 + $0x20] sm:$0xff pattern:$0x75316420] }
  0xf2   : > { %v480_v49 = vpop.permute.xlu0 %479  ;;  %846 = vrot.lane.b32.xlu2 %v838_v26, %s2237_s28  ;;  %1017 = vst [vmem:[#allocation1 + $0x10] ss:$2 sm:$0xff] %v2562_v13 }
  0xf3   : > { %v494_v50 = vsel %vm493_vm4, %v2446_v7, %v480_v49  ;;  %v495_v51 = vsel %vm493_vm4, %v480_v49, %v482_v45  ;;  %v2550_v7 = vld.sshfl [vmem:[#allocation1 + $0x8] sm:$0xff pattern:$0x75316420] }
  0xf4   : > { %508 = vst [vmem:[#allocation2 + $0x170] sm:$0xf0] %v494_v50  ;;  %v553_v52 = vpop.permute.xlu2 %552 }
  0xf5   : > { %509 = vst [vmem:[#allocation2 + $0x180] sm:$0xf0] %v495_v51  ;;  %798 = vrot.lane.b32.xlu1 %v2463_v19, %s2236_s27 }
  0xf6   : > { %1015 = vst [vmem:[#allocation1] ss:$2 sm:$0xff] %v2297_v2 }
  0xf7   : > { %v488_v53 = vpop.permute.xlu1 %487 }
  0xf8   : > { %796 = vrot.lane.b32.xlu0 %v2465_v20, %s2236_s27  ;;  %v499_v54 = vsel %vm493_vm4, %v488_v53, %v2474_v25 }
  0xf9   : > { %513 = vst [vmem:[#allocation2 + $0x28] sm:$0xf0] %v499_v54  ;;  %v2575_v19 = vld.sshfl [vmem:[#allocation1 + $0x10] sm:$0xff pattern:$0x75316420] }
  0xfa   : > { %v486_v57 = vpop.permute.xlu0 %485  ;;  %852 = vrot.lane.b32.xlu2 %v841_v31, %s2237_s28  ;;  %v2578_v21 = vld.sshfl [vmem:[#allocation1 + $0x18] sm:$0xff pattern:$0x75316420] }
  0xfb   : > { %v497_v58 = vsel %vm493_vm4, %v2460_v18, %v486_v57  ;;  %v498_v59 = vsel %vm493_vm4, %v486_v57, %v488_v53  ;;  %1079 = vst [vmem:[#allocation1 + $0x11] ss:$2 sm:$0xff] %v2562_v13 }
  0xfc   : > { %511 = vst [vmem:[#allocation2 + $0x2b8] sm:$0xf0] %v497_v58  ;;  %v2532_v60 = vpop.permute.xlu2 %604 }
  0xfd   : > { %512 = vst [vmem:[#allocation2 + $0x250] sm:$0xf0] %v498_v59  ;;  %850 = vrot.lane.b32.xlu1 %v840_v30, %s2237_s28  ;;  %v2612_v41 = vld.sshfl [vmem:[#allocation1 + $0x8] sm:$0xff pattern:$0x75316420] }
  0xff   : > { %v539_v63 = vpop.permute.xlu1 %538 }
 0x100   : > { %848 = vrot.lane.b32.xlu0 %v2477_v27, %s2237_s28  ;;  %v555_v1 = vsel %vm554_vm5, %v539_v63, %v2489_v35 }
 0x101   : > { %569 = vst [vmem:[#allocation2 + $0x230] sm:$0xf] %v555_v1 }
 0x102   : > { %v492_v5 = vpop.permute.xlu0 %491  ;;  %858 = vrot.lane.b32.xlu2 %v844_v43, %s2237_s28  ;;  %v2592_v28 = vld.sshfl [vmem:[#allocation1 + $0x10] sm:$0xff pattern:$0x75316420]  ;;  %v2594_v29 = vld.sshfl [vmem:[#allocation1 + $0x18] sm:$0xff pattern:$0x75316420] }
 0x103   : > { %v500_v6 = vsel %vm493_vm4, %v2474_v25, %v492_v5  ;;  %1140 = vst [vmem:[#allocation1 + $0x10] ss:$2 sm:$0xff] %v2562_v13  ;;  %vm1723_vm4 = vcmask 285696  }
 0x104   : > { %514 = vst [vmem:[#allocation2 + $0x70] sm:$0xf0] %v500_v6  ;;  %v2546_v0 = vpop.permute.xlu2 %610 }
 0x105   : > { %856 = vrot.lane.b32.xlu1 %v2491_v36, %s2237_s28  ;;  %v968_v36 = vld.sshfl [vmem:[#allocation1 + $0x38] sm:$0xff pattern:$0x75316420] }
 0x106   : > { %1021 = vst [vmem:[#allocation1 + $0x30] ss:$2 sm:$0xff] %v2609_v38 }
 0x107   : > { %v545_v9 = vpop.permute.xlu1 %544 }
 0x108   : > { %854 = vrot.lane.b32.xlu0 %v2495_v37, %s2237_s28  ;;  %v558_v11 = vsel %vm554_vm5, %v545_v9, %v2504_v42  ;;  %v2606_v37 = vld [vmem:[%s2288_s17 + $0x10] sm:$0xff] }
 0x109   : > { %572 = vst [vmem:[#allocation2 + $0x1b8] sm:$0xf] %v558_v11 }
 0x10a   : > { %v543_v14 = vpop.permute.xlu0 %542  ;;  %909 = vrot.lane.b32.xlu2 %v900_v47, %s2238_s29  ;;  %1019 = vst [vmem:[#allocation1 + $0x20] ss:$2 sm:$0xff] %v2606_v37  ;;  %v2620_v45 = vld.sshfl [vmem:[#allocation1 + $0x10] sm:$0xff pattern:$0x75316420] }
 0x10b   : > { %v556_v2 = vsel %vm554_vm5, %v2489_v35, %v543_v14  ;;  %v557_v15 = vsel %vm554_vm5, %v543_v14, %v545_v9  ;;  %v2624_v47 = vld.sshfl [vmem:[#allocation1 + $0x18] sm:$0xff pattern:$0x75316420] }
 0x10c   : > { %570 = vst [vmem:[#allocation2 + $0xb0] sm:$0xf] %v556_v2  ;;  %v2569_v16 = vpop.permute.xlu2 %661 }
 0x10d   : > { %571 = vst [vmem:[#allocation2 + $0x100] sm:$0xf] %v557_v15  ;;  %907 = vrot.lane.b32.xlu1 %v899_v48, %s2238_s29  ;;  %v1022_v48 = vld.sshfl [vmem:[#allocation1] sm:$0xff pattern:$0x75316420] }
 0x10e   : > { %1202 = vst [vmem:[#allocation1 + $0x11] ss:$2 sm:$0xff] %v2562_v13  ;;  %v2643_v57 = vld.sshfl [vmem:[#allocation1 + $0x38] sm:$0xff pattern:$0x75316420] }
 0x10f   : > { %v551_v17 = vpop.permute.xlu1 %550 }
 0x110   : > { %860 = vrot.lane.b32.xlu0 %v2507_v44, %s2237_s28  ;;  %v561_v18 = vsel %vm554_vm5, %v551_v17, %v553_v52  ;;  %v1068_v44 = vld [vmem:[%s2288_s17] sm:$0xff] }
 0x111   : > { %575 = vst [vmem:[#allocation2 + $0x240] sm:$0xf] %v561_v18  ;;  %v2631_v50 = vld.sshfl [vmem:[#allocation1 + $0x28] sm:$0xff pattern:$0x75316420] }
 0x112   : > { %v549_v20 = vpop.permute.xlu0 %548  ;;  %915 = vrot.lane.b32.xlu2 %v903_v61, %s2238_s29  ;;  %1077 = vst [vmem:[#allocation1 + $0x1] ss:$2 sm:$0xff] %v1068_v44  ;;  %v2633_v51 = vld.sshfl [vmem:[#allocation1 + $0x20] sm:$0xff pattern:$0x75316420] }
 0x113   : > { %v559_v22 = vsel %vm554_vm5, %v2504_v42, %v549_v20  ;;  %v560_v23 = vsel %vm554_vm5, %v549_v20, %v551_v17  ;;  %1081 = vst [vmem:[#allocation1 + $0x21] ss:$2 sm:$0xff] %v2606_v37  ;;  %v2696_v20 = vld [vmem:[%s2288_s17 + $0x4] sm:$0xff] }
 0x114   : > { %573 = vst [vmem:[#allocation2 + $0x228] sm:$0xf] %v559_v22  ;;  %v2584_v24 = vpop.permute.xlu2 %667 }
 0x115   : > { %574 = vst [vmem:[#allocation2 + $0x260] sm:$0xf] %v560_v23  ;;  %913 = vrot.lane.b32.xlu1 %v902_v56, %s2238_s29  ;;  %v1028_v56 = vld.sshfl [vmem:[#allocation1 + $0x30] sm:$0xff pattern:$0x75316420] }
 0x116   : > { %1083 = vst [vmem:[#allocation1 + $0x31] ss:$2 sm:$0xff] %v2609_v38  ;;  %v2650_v61 = vld.sshfl [vmem:[#allocation1 + $0x10] sm:$0xff pattern:$0x75316420] }
 0x117   : > { %v603_v25 = vpop.permute.xlu1 %602  ;;  %v2659_v1 = vld.sshfl [vmem:[#allocation1 + $0x18] sm:$0xff pattern:$0x75316420] }
 0x118   : > { %911 = vrot.lane.b32.xlu0 %v2525_v55, %s2238_s29  ;;  %v618_v26 = vsel %vm616_vm6, %v603_v25, %v2532_v60 }
 0x119   : > { %632 = vst [vmem:[#allocation2 + $0xb0] sm:$0xf0] %v618_v26  ;;  %v2645_v58 = vld.sshfl [vmem:[#allocation1 + $0x8] sm:$0xff pattern:$0x75316420] }
 0x11a   : > { %v601_v27 = vpop.permute.xlu0 %600  ;;  %921 = vrot.lane.b32.xlu2 %v906_v3, %s2238_s29  ;;  %v2647_v59 = vld.sshfl [vmem:[#allocation1] sm:$0xff pattern:$0x75316420]  ;;  %v2688_v15 = vld.sshfl [vmem:[#allocation1 + $0x28] sm:$0xff pattern:$0x75316420] }
 0x11b   : > { %v617_v30 = vsel %vm616_vm6, %v601_v27, %v603_v25  ;;  %1138 = vst [vmem:[#allocation1] ss:$2 sm:$0xff] %v1068_v44 }
 0x11c   : > { %631 = vst [vmem:[#allocation2 + $0x230] sm:$0xf0] %v617_v30  ;;  %v2598_v31 = vpop.permute.xlu2 %673 }
 0x11d   : > { %919 = vrot.lane.b32.xlu1 %v905_v4, %s2238_s29  ;;  %v2702_v22 = vld.sshfl [vmem:[#allocation1 + $0x38] sm:$0xff pattern:$0x75316420] }
 0x11f   : > { %v609_v32 = vpop.permute.xlu1 %608 }
 0x120   : > { %917 = vrot.lane.b32.xlu0 %v2535_v62, %s2238_s29  ;;  %v621_v35 = vsel %vm616_vm6, %v609_v32, %v2546_v0  ;;  %v2653_v62 = vld [vmem:[%s2288_s17 + $0xc] sm:$0xff] }
 0x121   : > { %635 = vst [vmem:[#allocation2 + $0x228] sm:$0xf0] %v621_v35 }
 0x122   : > { %v607_v40 = vpop.permute.xlu0 %606  ;;  %973 = vrot.lane.b32.xlu2 %v963_v10, %s2239_s30  ;;  %1263 = vst [vmem:[#allocation1 + $0x10] ss:$2 sm:$0xff] %v2653_v62 }
 0x123   : > { %v619_v42 = vsel %vm616_vm6, %v2532_v60, %v607_v40  ;;  %v620_v43 = vsel %vm616_vm6, %v607_v40, %v609_v32 }
 0x124   : > { %633 = vst [vmem:[#allocation2 + $0x100] sm:$0xf0] %v619_v42  ;;  %v2622_v46 = vpop.permute.xlu2 %725 }
 0x125   : > { %634 = vst [vmem:[#allocation2 + $0x1b8] sm:$0xf0] %v620_v43  ;;  %971 = vrot.lane.b32.xlu1 %v2550_v7, %s2239_s30  ;;  %v2669_v7 = vld.sshfl [vmem:[#allocation1 + $0x8] sm:$0xff pattern:$0x75316420] }
 0x127   : > { %v615_v49 = vpop.permute.xlu1 %614 }
 0x128   : > { %969 = vrot.lane.b32.xlu0 %v2552_v8, %s2239_s30  ;;  %v2671_v8 = vld.sshfl [vmem:[#allocation1] sm:$0xff pattern:$0x75316420] }
 0x129   : > { %1200 = vst [vmem:[#allocation1 + $0x1] ss:$2 sm:$0xff] %v1068_v44  ;;  %v2676_v10 = vld.sshfl [vmem:[#allocation1 + $0x10] sm:$0xff pattern:$0x75316420] }
 0x12a   : > { %v613_v52 = vpop.permute.xlu0 %612  ;;  %979 = vrot.lane.b32.xlu2 %v966_v33, %s2239_s30 }
 0x12b   : > { %v622_v53 = vsel %vm616_vm6, %v2546_v0, %v613_v52  ;;  %v623_v54 = vsel %vm616_vm6, %v613_v52, %v615_v49  ;;  %vm1538_vm6 = vcmask 367616  }
 0x12c   : > { %636 = vst [vmem:[#allocation2 + $0x260] sm:$0xf0] %v622_v53  ;;  %v2640_v55 = vpop.permute.xlu2 %731 }
 0x12d   : > { %637 = vst [vmem:[#allocation2 + $0x240] sm:$0xf0] %v623_v54  ;;  %977 = vrot.lane.b32.xlu1 %v965_v34, %s2239_s30 }
 0x12f   : > { %v666_v60 = vpop.permute.xlu1 %665 }
 0x130   : > { %975 = vrot.lane.b32.xlu0 %v2559_v12, %s2239_s30  ;;  %v680_v63 = vsel %vm677_vm7, %v666_v60, %v2584_v24  ;;  %v2680_v12 = vld.sshfl [vmem:[#allocation1 + $0x18] sm:$0xff pattern:$0x75316420]  ;;  %v2693_v18 = vld.sshfl [vmem:[#allocation1] sm:$0xff pattern:$0x75316420] }
 0x131   : > { %694 = vst [vmem:[#allocation2 + $0xa0] sm:$0xf] %v680_v63  ;;  %v2704_v23 = vld.sshfl [vmem:[#allocation1 + $0x8] sm:$0xff pattern:$0x75316420] }
 0x132   : > { %v664_v3 = vpop.permute.xlu0 %663  ;;  %1030 = vrot.lane.b32.xlu2 %v1022_v48, %s2240_s4  ;;  %1325 = vst [vmem:[#allocation1 + $0x11] ss:$2 sm:$0xff] %v2653_v62  ;;  %v2755_v48 = vld [vmem:[%s2288_s17 + $0x14] sm:$0xff] }
 0x133   : > { %v678_v4 = vsel %vm677_vm7, %v2569_v16, %v664_v3  ;;  %v679_v5 = vsel %vm677_vm7, %v664_v3, %v666_v60  ;;  %v1088_v16 = vld.sshfl [vmem:[#allocation1 + $0x20] sm:$0xff pattern:$0x75316420]  ;;  %1261 = vst [vmem:[#allocation1] ss:$2 sm:$0xff] %v2696_v20 }
 0x134   : > { %692 = vst [vmem:[#allocation2 + $0x138] sm:$0xf] %v678_v4  ;;  %v2666_v6 = vpop.permute.xlu2 %737 }
 0x135   : > { %693 = vst [vmem:[#allocation2 + $0x160] sm:$0xf] %v679_v5  ;;  %983 = vrot.lane.b32.xlu1 %v968_v36, %s2239_s30 }
 0x136   : > { %1142 = vst [vmem:[#allocation1 + $0x20] ss:$2 sm:$0xff] %v2606_v37 }
 0x137   : > { %v672_v0 = vpop.permute.xlu1 %671 }
 0x138   : > { %981 = vrot.lane.b32.xlu0 %v967_v39, %s2239_s30  ;;  %v683_v9 = vsel %vm677_vm7, %v672_v0, %v2598_v31 }
 0x139   : > { %697 = vst [vmem:[#allocation2 + $0x1c0] sm:$0xf] %v683_v9  ;;  %v2710_v25 = vld.sshfl [vmem:[#allocation1 + $0x10] sm:$0xff pattern:$0x75316420] }
 0x13a   : > { %v670_v11 = vpop.permute.xlu0 %669  ;;  %1036 = vrot.lane.b32.xlu2 %v2578_v21, %s2240_s4  ;;  %v2714_v27 = vld.sshfl [vmem:[#allocation1 + $0x18] sm:$0xff pattern:$0x75316420]  ;;  %v2736_v40 = vld.sshfl [vmem:[#allocation1] sm:$0xff pattern:$0x75316420] }
 0x13b   : > { %v681_v13 = vsel %vm677_vm7, %v2584_v24, %v670_v11  ;;  %v682_v14 = vsel %vm677_vm7, %v670_v11, %v672_v0  ;;  %1386 = vst [vmem:[#allocation1 + $0x10] ss:$2 sm:$0xff] %v2653_v62 }
 0x13c   : > { %695 = vst [vmem:[#allocation2 + $0x2e8] sm:$0xf] %v681_v13  ;;  %v2686_v2 = vpop.permute.xlu2 %788 }
 0x13d   : > { %696 = vst [vmem:[#allocation2 + $0x1b0] sm:$0xf] %v682_v14  ;;  %1034 = vrot.lane.b32.xlu1 %v2575_v19, %s2240_s4  ;;  %v2706_v19 = vld.sshfl [vmem:[#allocation1 + $0x30] sm:$0xff pattern:$0x75316420] }
 0x13e   : > { %1144 = vst [vmem:[#allocation1 + $0x30] ss:$2 sm:$0xff] %v2609_v38  ;;  %v2728_v34 = vld.sshfl [vmem:[#allocation1 + $0x20] sm:$0xff pattern:$0x75316420] }
 0x13f   : > { %v724_v17 = vpop.permute.xlu1 %723 }
 0x140   : > { %1032 = vrot.lane.b32.xlu0 %v2612_v41, %s2240_s4  ;;  %v740_v21 = vsel %vm739_vm8, %v724_v17, %v2622_v46  ;;  %v2738_v41 = vld.sshfl [vmem:[#allocation1 + $0x8] sm:$0xff pattern:$0x75316420] }
 0x141   : > { %754 = vst [vmem:[#allocation2 + $0x138] sm:$0xf0] %v740_v21 }
 0x142   : > { %v676_v24 = vpop.permute.xlu0 %675  ;;  %1042 = vrot.lane.b32.xlu2 %v1028_v56, %s2240_s4  ;;  %v2742_v43 = vld.sshfl [vmem:[#allocation1 + $0x10] sm:$0xff pattern:$0x75316420]  ;;  %1323 = vst [vmem:[#allocation1 + $0x1] ss:$2 sm:$0xff] %v2696_v20 }
 0x143   : > { %v684_v26 = vsel %vm677_vm7, %v2598_v31, %v676_v24  ;;  %v2726_v31 = vld.sshfl [vmem:[#allocation1 + $0x28] sm:$0xff pattern:$0x75316420]  ;;  %vm1600_vm7 = vcmask 359424  }
 0x144   : > { %698 = vst [vmem:[#allocation2 + $0x88] sm:$0xf] %v684_v26  ;;  %v2717_v30 = vpop.permute.xlu2 %794 }
 0x145   : > { %1040 = vrot.lane.b32.xlu1 %v2631_v50, %s2240_s4  ;;  %1204 = vst [vmem:[#allocation1 + $0x21] ss:$2 sm:$0xff] %v2606_v37  ;;  %v2746_v37 = vld.sshfl [vmem:[#allocation1 + $0x18] sm:$0xff pattern:$0x75316420] }
 0x146   : > { %1448 = vst [vmem:[#allocation1 + $0x11] ss:$2 sm:$0xff] %v2653_v62  ;;  %v2770_v56 = vld.sshfl [vmem:[#allocation1 + $0x38] sm:$0xff pattern:$0x75316420] }
 0x147   : > { %v730_v32 = vpop.permute.xlu1 %729 }
 0x148   : > { %1038 = vrot.lane.b32.xlu0 %v2633_v51, %s2240_s4  ;;  %v743_v33 = vsel %vm739_vm8, %v730_v32, %v2640_v55 }
 0x149   : > { %757 = vst [vmem:[#allocation2 + $0x2e8] sm:$0xf0] %v743_v33  ;;  %v2786_v63 = vld.sshfl [vmem:[#allocation1 + $0x8] sm:$0xff pattern:$0x75316420] }
 0x14a   : > { %v728_v35 = vpop.permute.xlu0 %727  ;;  %1094 = vrot.lane.b32.xlu2 %v2645_v58, %s2241_s5 }
 0x14b   : > { %v741_v36 = vsel %vm739_vm8, %v2622_v46, %v728_v35  ;;  %v742_v39 = vsel %vm739_vm8, %v728_v35, %v730_v32 }
 0x14c   : > { %755 = vst [vmem:[#allocation2 + $0x160] sm:$0xf0] %v741_v36  ;;  %v2740_v42 = vpop.permute.xlu2 %846  ;;  %v2757_v49 = vld.sshfl [vmem:[#allocation1 + $0x28] sm:$0xff pattern:$0x75316420] }
 0x14d   : > { %756 = vst [vmem:[#allocation2 + $0xa0] sm:$0xf0] %v742_v39  ;;  %1092 = vrot.lane.b32.xlu1 %v2647_v59, %s2241_s5  ;;  %v2760_v51 = vld.sshfl [vmem:[#allocation1 + $0x20] sm:$0xff pattern:$0x75316420] }
 0x14e   : > { %1265 = vst [vmem:[#allocation1 + $0x20] ss:$2 sm:$0xff] %v2755_v48  ;;  %v2774_v58 = vld.sshfl [vmem:[#allocation1 + $0x10] sm:$0xff pattern:$0x75316420] }
 0x14f   : > { %v736_v44 = vpop.permute.xlu1 %735 }
 0x150   : > { %1044 = vrot.lane.b32.xlu0 %v2643_v57, %s2240_s4  ;;  %v746_v46 = vsel %vm739_vm8, %v736_v44, %v2666_v6  ;;  %v2772_v57 = vld.sshfl [vmem:[#allocation1 + $0x30] sm:$0xff pattern:$0x75316420] }
 0x151   : > { %760 = vst [vmem:[#allocation2 + $0x88] sm:$0xf0] %v746_v46 }
 0x152   : > { %v734_v50 = vpop.permute.xlu0 %733  ;;  %1100 = vrot.lane.b32.xlu2 %v1088_v16, %s2241_s5  ;;  %1206 = vst [vmem:[#allocation1 + $0x31] ss:$2 sm:$0xff] %v2609_v38 }
 0x153   : > { %v744_v52 = vsel %vm739_vm8, %v2640_v55, %v734_v50  ;;  %v745_v53 = vsel %vm739_vm8, %v734_v50, %v736_v44  ;;  %v2776_v55 = vld.sshfl [vmem:[#allocation1 + $0x18] sm:$0xff pattern:$0x75316420]  ;;  %vm1477_vm8 = vcmask 375808  }
 0x154   : > { %758 = vst [vmem:[#allocation2 + $0x1b0] sm:$0xf0] %v744_v52  ;;  %v2766_v54 = vpop.permute.xlu2 %852  ;;  %v2870_v52 = vld [vmem:[%s2288_s17 + $0x1c] sm:$0xff]  ;;  %s2251_s17 = smov 54  }
 0x155   : > { %759 = vst [vmem:[#allocation2 + $0x1c0] sm:$0xf0] %v745_v53  ;;  %1098 = vrot.lane.b32.xlu1 %v2594_v29, %s2241_s5  ;;  %v2784_v29 = vld.sshfl [vmem:[#allocation1] sm:$0xff pattern:$0x75316420] }
 0x156   : > { %1509 = vst [vmem:[#allocation1 + $0x10] ss:$2 sm:$0xff] %v2653_v62  ;;  %v2790_v4 = vld.sshfl [vmem:[#allocation1 + $0x20] sm:$0xff pattern:$0x75316420] }
 0x157   : > { %v787_v59 = vpop.permute.xlu1 %786  ;;  %v2792_v38 = vld.sshfl [vmem:[#allocation1 + $0x28] sm:$0xff pattern:$0x75316420]  ;;  %1384 = vst [vmem:[#allocation1] ss:$2 sm:$0xff] %v2696_v20 }
 0x158   : > { %1096 = vrot.lane.b32.xlu0 %v2592_v28, %s2241_s5  ;;  %v802_v60 = vsel %vm800_vm9, %v787_v59, %v2686_v2  ;;  %3444 = vst [vmem:[#allocation3_spill] sm:$0xff] %v2792_v38 }
 0x159   : > { %816 = vst [vmem:[#allocation2 + $0x210] sm:$0xf] %v802_v60 }
 0x15a   : > { %v785_v3 = vpop.permute.xlu0 %784  ;;  %1106 = vrot.lane.b32.xlu2 %v2702_v22, %s2241_s5  ;;  %1327 = vst [vmem:[#allocation1 + $0x21] ss:$2 sm:$0xff] %v2755_v48 }
 0x15b   : > { %v801_v28 = vsel %vm800_vm9, %v785_v3, %v787_v59  ;;  %v1213_v59 = vld.sshfl [vmem:[#allocation1 + $0x30] sm:$0xff pattern:$0x75316420] }
 0x15c   : > { %815 = vst [vmem:[#allocation2 + $0x190] sm:$0xf] %v801_v28  ;;  %v2796_v5 = vpop.permute.xlu2 %858 }
 0x15d   : > { %1104 = vrot.lane.b32.xlu1 %v2706_v19, %s2241_s5  ;;  %v2801_v0 = vld.sshfl [vmem:[#allocation1 + $0x10] sm:$0xff pattern:$0x75316420]  ;;  %v2803_v9 = vld.sshfl [vmem:[#allocation1 + $0x18] sm:$0xff pattern:$0x75316420] }
 0x15e   : > { %1571 = vst [vmem:[#allocation1 + $0x11] ss:$2 sm:$0xff] %v2653_v62  ;;  %v2822_v22 = vld.sshfl [vmem:[#allocation1] sm:$0xff pattern:$0x75316420] }
 0x15f   : > { %v793_v6 = vpop.permute.xlu1 %792 }
 0x160   : > { %1102 = vrot.lane.b32.xlu0 %v2688_v15, %s2241_s5  ;;  %v805_v11 = vsel %vm800_vm9, %v793_v6, %v2717_v30 }
 0x161   : > { %819 = vst [vmem:[#allocation2 + $0x220] sm:$0xf] %v805_v11  ;;  %v2812_v14 = vld.sshfl [vmem:[#allocation1 + $0x20] sm:$0xff pattern:$0x75316420] }
 0x162   : > { %v791_v13 = vpop.permute.xlu0 %790  ;;  %1157 = vrot.lane.b32.xlu2 %v2620_v45, %s2242_s6  ;;  %v2814_v16 = vld.sshfl [vmem:[#allocation1 + $0x28] sm:$0xff pattern:$0x75316420] }
 0x163   : > { %3445 = vst [vmem:[#allocation4_spill] sm:$0xff] %v2814_v16  ;;  %v803_v17 = vsel %vm800_vm9, %v2686_v2, %v791_v13  ;;  %v804_v15 = vsel %vm800_vm9, %v791_v13, %v793_v6  ;;  %v2826_v45 = vld.sshfl [vmem:[#allocation1 + $0x8] sm:$0xff pattern:$0x75316420] }
 0x164   : > { %1388 = vst [vmem:[#allocation1 + $0x20] ss:$2 sm:$0xff] %v2755_v48  ;;  %v2820_v21 = vpop.permute.xlu2 %909 }
 0x165   : > { %817 = vst [vmem:[#allocation2 + $0x80] sm:$0xf] %v803_v17  ;;  %1155 = vrot.lane.b32.xlu1 %v2669_v7, %s2242_s6  ;;  %v2829_v24 = vld.sshfl [vmem:[#allocation1 + $0x10] sm:$0xff pattern:$0x75316420] }
 0x166   : > { %818 = vst [vmem:[#allocation2 + $0x198] sm:$0xf] %v804_v15  ;;  %v2831_v2 = vld.sshfl [vmem:[#allocation1 + $0x18] sm:$0xff pattern:$0x75316420] }
 0x167   : > { %1446 = vst [vmem:[#allocation1 + $0x1] ss:$2 sm:$0xff] %v2696_v20  ;;  %v799_v19 = vpop.permute.xlu1 %798 }
 0x168   : > { %1153 = vrot.lane.b32.xlu0 %v2671_v8, %s2242_s6  ;;  %1632 = vst [vmem:[#allocation1 + $0x10] ss:$2 sm:$0xff] %v2653_v62 }
 0x16a   : > { %v797_v26 = vpop.permute.xlu0 %796  ;;  %1163 = vrot.lane.b32.xlu2 %v2726_v31, %s2242_s6 }
 0x16b   : > { %v2838_v32 = vld.sshfl [vmem:[#allocation1 + $0x20] sm:$0xff pattern:$0x75316420]  ;;  %v2840_v7 = vld.sshfl [vmem:[#allocation1 + $0x28] sm:$0xff pattern:$0x75316420]  ;;  %v806_v33 = vsel %vm800_vm9, %v2717_v30, %v797_v26  ;;  %v807_v35 = vsel %vm800_vm9, %v797_v26, %v799_v19 }
 0x16c   : > { %3446 = vst [vmem:[#allocation5_spill] sm:$0xff] %v2840_v7  ;;  %v2846_v36 = vpop.permute.xlu2 %915  ;;  %vm1415_vm9 = vcmask 441344  }
 0x16d   : > { %1450 = vst [vmem:[#allocation1 + $0x21] ss:$2 sm:$0xff] %v2755_v48  ;;  %1161 = vrot.lane.b32.xlu1 %v2728_v34, %s2242_s6 }
 0x16e   : > { %820 = vst [vmem:[#allocation2 + $0x258] sm:$0xf] %v806_v33  ;;  %v2888_v6 = vld.sshfl [vmem:[#allocation1] sm:$0xff pattern:$0x75316420] }
 0x16f   : > { %821 = vst [vmem:[#allocation2 + $0x1d0] sm:$0xf] %v807_v35  ;;  %v851_v8 = vpop.permute.xlu1 %850  ;;  %v2850_v31 = vld.sshfl [vmem:[#allocation1 + $0x10] sm:$0xff pattern:$0x75316420] }
 0x170   : > { %v2852_v39 = vld.sshfl [vmem:[#allocation1 + $0x18] sm:$0xff pattern:$0x75316420]  ;;  %1159 = vrot.lane.b32.xlu0 %v2624_v47, %s2242_s6  ;;  %v865_v30 = vsel %vm862_vm10, %v851_v8, %v2766_v54  ;;  %v2900_v15 = vld.sshfl [vmem:[#allocation1 + $0x8] sm:$0xff pattern:$0x75316420] }
 0x171   : > { %1694 = vst [vmem:[#allocation1 + $0x11] ss:$2 sm:$0xff] %v2653_v62 }
 0x172   : > { %879 = vst [vmem:[#allocation2 + $0x80] sm:$0xf0] %v865_v30  ;;  %v849_v44 = vpop.permute.xlu0 %848  ;;  %1215 = vrot.lane.b32.xlu2 %v2693_v18, %s2243_s7  ;;  %v2876_v18 = vld.sshfl [vmem:[#allocation1 + $0x38] sm:$0xff pattern:$0x75316420] }
 0x173   : > { %v863_v50 = vsel %vm862_vm10, %v2740_v42, %v849_v44  ;;  %v864_v47 = vsel %vm862_vm10, %v849_v44, %v851_v8  ;;  %1267 = vst [vmem:[#allocation1 + $0x30] ss:$2 sm:$0xff] %v2870_v52 }
 0x174   : > { %v2861_v34 = vld.sshfl [vmem:[#allocation1 + $0x20] sm:$0xff pattern:$0x75316420]  ;;  %v2863_v46 = vld.sshfl [vmem:[#allocation1 + $0x28] sm:$0xff pattern:$0x75316420]  ;;  %v2872_v53 = vpop.permute.xlu2 %921 }
 0x175   : > { %1511 = vst [vmem:[#allocation1 + $0x20] ss:$2 sm:$0xff] %v2755_v48  ;;  %1167 = vrot.lane.b32.xlu1 %v2770_v56, %s2242_s6 }
 0x176   : > { %877 = vst [vmem:[#allocation2 + $0x190] sm:$0xf0] %v863_v50 }
 0x177   : > { %878 = vst [vmem:[#allocation2 + $0x210] sm:$0xf0] %v864_v47  ;;  %v857_v60 = vpop.permute.xlu1 %856 }
 0x178   : > { %v2879_v42 = vld.sshfl [vmem:[#allocation1 + $0x10] sm:$0xff pattern:$0x75316420]  ;;  %v2881_v3 = vld.sshfl [vmem:[#allocation1 + $0x18] sm:$0xff pattern:$0x75316420]  ;;  %1165 = vrot.lane.b32.xlu0 %v2772_v57, %s2242_s6  ;;  %v868_v28 = vsel %vm862_vm10, %v857_v60, %v2796_v5 }
 0x179   : > { %1755 = vst [vmem:[#allocation1 + $0x10] ss:$2 sm:$0xff] %v2653_v62 }
 0x17a   : > { %882 = vst [vmem:[#allocation2 + $0x258] sm:$0xf0] %v868_v28  ;;  %v855_v56 = vpop.permute.xlu0 %854  ;;  %1221 = vrot.lane.b32.xlu2 %v2659_v1, %s2243_s7  ;;  %v2906_v1 = vld.sshfl [vmem:[#allocation1 + $0x30] sm:$0xff pattern:$0x75316420] }
 0x17b   : > { %v866_v17 = vsel %vm862_vm10, %v2766_v54, %v855_v56  ;;  %v867_v57 = vsel %vm862_vm10, %v855_v56, %v857_v60  ;;  %v2908_v19 = vld.sshfl [vmem:[#allocation1 + $0x38] sm:$0xff pattern:$0x75316420]  ;;  %1507 = vst [vmem:[#allocation1] ss:$2 sm:$0xff] %v2696_v20 }
 0x17c   : > { %v2892_v11 = vld.sshfl [vmem:[#allocation1 + $0x20] sm:$0xff pattern:$0x75316420]  ;;  %v2894_v13 = vld.sshfl [vmem:[#allocation1 + $0x28] sm:$0xff pattern:$0x75316420]  ;;  %v2902_v62 = vpop.permute.xlu2 %973 }
 0x17d   : > { %1573 = vst [vmem:[#allocation1 + $0x21] ss:$2 sm:$0xff] %v2755_v48  ;;  %1219 = vrot.lane.b32.xlu1 %v2650_v61, %s2243_s7 }
 0x17e   : > { %880 = vst [vmem:[#allocation2 + $0x198] sm:$0xf0] %v866_v17 }
 0x17f   : > { %881 = vst [vmem:[#allocation2 + $0x220] sm:$0xf0] %v867_v57  ;;  %v908_v54 = vpop.permute.xlu1 %907 }
 0x180   : > { %1329 = vst [vmem:[#allocation1 + $0x31] ss:$2 sm:$0xff] %v2870_v52  ;;  %1217 = vrot.lane.b32.xlu0 %v2704_v23, %s2243_s7  ;;  %v924_v26 = vsel %vm923_vm11, %v908_v54, %v2820_v21 }
 0x181   : > { %938 = vst [vmem:[#allocation2 + $0x288] sm:$0xf] %v924_v26 }
 0x182   : > { %v861_v33 = vpop.permute.xlu0 %860  ;;  %1227 = vrot.lane.b32.xlu2 %v1213_v59, %s2243_s7  ;;  %v2928_v23 = vld.sshfl [vmem:[#allocation1] sm:$0xff pattern:$0x75316420]  ;;  %v2930_v44 = vld.sshfl [vmem:[#allocation1 + $0x8] sm:$0xff pattern:$0x75316420] }
 0x183   : > { %v869_v8 = vsel %vm862_vm10, %v2796_v5, %v861_v33  ;;  %v1762_v5 = vld.sshfl [vmem:[#allocation1 + $0x10] sm:$0xff pattern:$0x75316420]  ;;  %1569 = vst [vmem:[#allocation1 + $0x1] ss:$2 sm:$0xff] %v2696_v20  ;;  %vm1292_vm10 = vcmask 457728  }
 0x184   : > { %v2916_v35 = vld.sshfl [vmem:[#allocation1 + $0x20] sm:$0xff pattern:$0x75316420]  ;;  %v2918_v61 = vld.sshfl [vmem:[#allocation1 + $0x28] sm:$0xff pattern:$0x75316420]  ;;  %v2924_v30 = vpop.permute.xlu2 %979 }
 0x185   : > { %1634 = vst [vmem:[#allocation1 + $0x20] ss:$2 sm:$0xff] %v2755_v48  ;;  %1225 = vrot.lane.b32.xlu1 %v2757_v49, %s2243_s7 }
 0x186   : > { %883 = vst [vmem:[#allocation2 + $0x1d0] sm:$0xf0] %v869_v8 }
 0x187   : > { %v2932_v50 = vld.sshfl [vmem:[#allocation1 + $0x30] sm:$0xff pattern:$0x75316420]  ;;  %v2934_v47 = vld.sshfl [vmem:[#allocation1 + $0x38] sm:$0xff pattern:$0x75316420]  ;;  %v914_v59 = vpop.permute.xlu1 %913 }
 0x188   : > { %3447 = vst [vmem:[#allocation6_spill] sm:$0xff] %v2934_v47  ;;  %1223 = vrot.lane.b32.xlu0 %v2760_v51, %s2243_s7  ;;  %v927_v60 = vsel %vm923_vm11, %v914_v59, %v2846_v36 }
 0x189   : > { %1390 = vst [vmem:[#allocation1 + $0x30] ss:$2 sm:$0xff] %v2870_v52 }
 0x18a   : > { %941 = vst [vmem:[#allocation2 + $0x290] sm:$0xf] %v927_v60  ;;  %v912_v56 = vpop.permute.xlu0 %911  ;;  %1772 = vrot.lane.b32.xlu2 %v1762_v5, %s2244_s8  ;;  %v2960_v33 = vld.sshfl [vmem:[#allocation1] sm:$0xff pattern:$0x75316420] }
 0x18b   : > { %v925_v17 = vsel %vm923_vm11, %v2820_v21, %v912_v56  ;;  %v926_v51 = vsel %vm923_vm11, %v912_v56, %v914_v59  ;;  %v2964_v21 = vld.sshfl [vmem:[#allocation1 + $0x8] sm:$0xff pattern:$0x75316420]  ;;  %v1763_v56 = vld.sshfl [vmem:[#allocation1 + $0x18] sm:$0xff pattern:$0x75316420] }
 0x18c   : > { %v2942_v49 = vld.sshfl [vmem:[#allocation1 + $0x20] sm:$0xff pattern:$0x75316420]  ;;  %v2944_v28 = vld.sshfl [vmem:[#allocation1 + $0x28] sm:$0xff pattern:$0x75316420]  ;;  %v2951_v57 = vpop.permute.xlu2 %1030 }
 0x18d   : > { %1696 = vst [vmem:[#allocation1 + $0x21] ss:$2 sm:$0xff] %v2755_v48  ;;  %1276 = vrot.lane.b32.xlu1 %v2736_v40, %s2245_s9 }
 0x18e   : > { %939 = vst [vmem:[#allocation2 + $0x108] sm:$0xf] %v925_v17 }
 0x18f   : > { %940 = vst [vmem:[#allocation2 + $0xc0] sm:$0xf] %v926_v51  ;;  %v920_v8 = vpop.permute.xlu1 %919 }
 0x190   : > { %v2955_v54 = vld.sshfl [vmem:[#allocation1 + $0x30] sm:$0xff pattern:$0x75316420]  ;;  %v2957_v26 = vld.sshfl [vmem:[#allocation1 + $0x38] sm:$0xff pattern:$0x75316420]  ;;  %1229 = vrot.lane.b32.xlu0 %v2876_v18, %s2243_s7  ;;  %v930_v59 = vsel %vm923_vm11, %v920_v8, %v2872_v53 }
 0x191   : > { %1452 = vst [vmem:[#allocation1 + $0x31] ss:$2 sm:$0xff] %v2870_v52 }
 0x192   : > { %1630 = vst [vmem:[#allocation1] ss:$2 sm:$0xff] %v2696_v20  ;;  %v918_v40 = vpop.permute.xlu0 %917  ;;  %1651 = vrot.lane.b32.xlu2 %v2852_v39, %s2246_s10 }
 0x193   : > { %v928_v5 = vsel %vm923_vm11, %v2846_v36, %v918_v40  ;;  %v929_v60 = vsel %vm923_vm11, %v918_v40, %v920_v8  ;;  %944 = vst [vmem:[#allocation2 + $0xe0] sm:$0xf] %v930_v59  ;;  %vm1354_vm11 = vcmask 449536  }
 0x194   : > { %942 = vst [vmem:[#allocation2 + $0x308] sm:$0xf] %v928_v5  ;;  %v2974_v18 = vpop.permute.xlu2 %1036  ;;  %v2978_v53 = vld.sshfl [vmem:[#allocation1 + $0x20] sm:$0xff pattern:$0x75316420] }
 0x195   : > { %943 = vst [vmem:[#allocation2] sm:$0xf] %v929_v60  ;;  %1649 = vrot.lane.b32.xlu1 %v2850_v31, %s2246_s10  ;;  %v2984_v51 = vld.sshfl [vmem:[#allocation1 + $0x28] sm:$0xff pattern:$0x75316420] }
 0x196   : > { %1757 = vst [vmem:[#allocation1 + $0x20] ss:$2 sm:$0xff] %v2755_v48 }
 0x197   : > { %v972_v36 = vpop.permute.xlu1 %971 }
 0x198   : > { %v2980_v17 = vld.sshfl [vmem:[#allocation1 + $0x30] sm:$0xff pattern:$0x75316420]  ;;  %v2982_v39 = vld.sshfl [vmem:[#allocation1 + $0x38] sm:$0xff pattern:$0x75316420]  ;;  %1774 = vrot.lane.b32.xlu0 %v1763_v56, %s2244_s8  ;;  %v987_v31 = vsel %vm985_vm12, %v972_v36, %v2902_v62 }
 0x199   : > { %1513 = vst [vmem:[#allocation1 + $0x30] ss:$2 sm:$0xff] %v2870_v52  ;;  %v2987_v8 = vld.sshfl [vmem:[#allocation1] sm:$0xff pattern:$0x75316420] }
 0x19a   : > { %v1638_v59 = vld.sshfl [vmem:[#allocation1 + $0x8] sm:$0xff pattern:$0x75316420]  ;;  %1001 = vst [vmem:[#allocation2 + $0x108] sm:$0xf0] %v987_v31  ;;  %v970_v40 = vpop.permute.xlu0 %969 }
 0x19b   : > { %1692 = vst [vmem:[#allocation1 + $0x1] ss:$2 sm:$0xff] %v2696_v20  ;;  %v986_v5 = vsel %vm985_vm12, %v970_v40, %v972_v36 }
 0x19c   : > { %1000 = vst [vmem:[#allocation2 + $0x288] sm:$0xf0] %v986_v5  ;;  %v2995_v60 = vpop.permute.xlu2 %1042 }
 0x19d   : > { %1713 = vrot.lane.b32.xlu1 %v2881_v3, %s2247_s11 }
 0x19f   : > { %v978_v31 = vpop.permute.xlu1 %977 }
 0x1a0   : > { %v2999_v38 = vld.sshfl [vmem:[#allocation1 + $0x30] sm:$0xff pattern:$0x75316420]  ;;  %v3001_v56 = vld.sshfl [vmem:[#allocation1 + $0x38] sm:$0xff pattern:$0x75316420]  ;;  %1711 = vrot.lane.b32.xlu0 %v2879_v42, %s2247_s11  ;;  %v990_v48 = vsel %vm985_vm12, %v978_v31, %v2924_v30 }
 0x1a1   : > { %1575 = vst [vmem:[#allocation1 + $0x31] ss:$2 sm:$0xff] %v2870_v52 }
 0x1a2   : > { %v3008_v36 = vld.sshfl [vmem:[#allocation1] sm:$0xff pattern:$0x75316420]  ;;  %v1700_v40 = vld.sshfl [vmem:[#allocation1 + $0x8] sm:$0xff pattern:$0x75316420]  ;;  %v976_v5 = vpop.permute.xlu0 %975 }
 0x1a3   : > { %1753 = vst [vmem:[#allocation1] ss:$2 sm:$0xff] %v2696_v20  ;;  %v988_v3 = vsel %vm985_vm12, %v2902_v62, %v976_v5  ;;  %v989_v16 = vsel %vm985_vm12, %v976_v5, %v978_v31 }
 0x1a4   : > { %1004 = vst [vmem:[#allocation2 + $0x308] sm:$0xf0] %v990_v48  ;;  %v3014_v47 = vpop.permute.xlu2 %1094 }
 0x1a5   : > { %1002 = vst [vmem:[#allocation2 + $0xc0] sm:$0xf0] %v988_v3  ;;  %1528 = vrot.lane.b32.xlu1 %v2803_v9, %s2248_s14 }
 0x1a6   : > { %1003 = vst [vmem:[#allocation2 + $0x290] sm:$0xf0] %v989_v16 }
 0x1a7   : > { %v984_v20 = vpop.permute.xlu1 %983 }
 0x1a8   : > { %v3018_v42 = vld.sshfl [vmem:[#allocation1 + $0x30] sm:$0xff pattern:$0x75316420]  ;;  %v3020_v7 = vld.sshfl [vmem:[#allocation1 + $0x38] sm:$0xff pattern:$0x75316420]  ;;  %1526 = vrot.lane.b32.xlu0 %v2801_v0, %s2248_s14 }
 0x1a9   : > { %1636 = vst [vmem:[#allocation1 + $0x30] ss:$2 sm:$0xff] %v2870_v52 }
 0x1aa   : > { %v1761_v62 = vld.sshfl [vmem:[#allocation1 + $0x8] sm:$0xff pattern:$0x75316420]  ;;  %v982_v31 = vpop.permute.xlu0 %981 }
 0x1ab   : > { %1770 = vrot.lane.b32.xlu2 %v1761_v62, %s2244_s8  ;;  %v991_v16 = vsel %vm985_vm12, %v2924_v30, %v982_v31  ;;  %v992_v48 = vsel %vm985_vm12, %v982_v31, %v984_v20  ;;  %v1764_v20 = vld.sshfl [vmem:[#allocation1 + $0x20] sm:$0xff pattern:$0x75316420] }
 0x1ac   : > { %1005 = vst [vmem:[#allocation2] sm:$0xf0] %v991_v16  ;;  %v3029_v9 = vpop.permute.xlu2 %1100 }
 0x1ad   : > { %1006 = vst [vmem:[#allocation2 + $0xe0] sm:$0xf0] %v992_v48  ;;  %1647 = vrot.lane.b32.xlu1 %v1638_v59, %s2246_s10 }
 0x1af   : > { %v1035_v0 = vpop.permute.xlu1 %1034 }
 0x1b0   : > { %v3032_v5 = vld.sshfl [vmem:[#allocation1 + $0x30] sm:$0xff pattern:$0x75316420]  ;;  %v3034_v3 = vld.sshfl [vmem:[#allocation1 + $0x38] sm:$0xff pattern:$0x75316420]  ;;  %1590 = vrot.lane.b32.xlu0 %v2831_v2, %s2249_s15  ;;  %v1049_v30 = vsel %vm1046_vm13, %v1035_v0, %v2974_v18 }
 0x1b1   : > { %1698 = vst [vmem:[#allocation1 + $0x31] ss:$2 sm:$0xff] %v2870_v52  ;;  %v1760_v2 = vld.sshfl [vmem:[#allocation1] sm:$0xff pattern:$0x75316420] }
 0x1b2   : > { %1063 = vst [vmem:[#allocation2 + $0x2e0] sm:$0xf] %v1049_v30  ;;  %v1033_v59 = vpop.permute.xlu0 %1032 }
 0x1b3   : > { %1588 = vrot.lane.b32.xlu2 %v2829_v24, %s2249_s15  ;;  %v1047_v62 = vsel %vm1046_vm13, %v2951_v57, %v1033_v59  ;;  %v1048_v31 = vsel %vm1046_vm13, %v1033_v59, %v1035_v0 }
 0x1b4   : > { %1061 = vst [vmem:[#allocation2 + $0x98] sm:$0xf] %v1047_v62  ;;  %v1107_v16 = vpop.permute.xlu2 %1106 }
 0x1b5   : > { %1062 = vst [vmem:[#allocation2 + $0x1f8] sm:$0xf] %v1048_v31  ;;  %1776 = vrot.lane.b32.xlu1 %v1764_v20, %s2244_s8 }
 0x1b7   : > { %v1041_v48 = vpop.permute.xlu1 %1040 }
 0x1b8   : > { %1768 = vrot.lane.b32.xlu0 %v1760_v2, %s2244_s8  ;;  %v1052_v30 = vsel %vm1046_vm13, %v1041_v48, %v2995_v60  ;;  %v3064_v31 = vld.sshfl [vmem:[#allocation1 + $0x38] sm:$0xff pattern:$0x75316420] }
 0x1b9   : > { %1066 = vst [vmem:[#allocation2 + $0x8] sm:$0xf] %v1052_v30 }
 0x1ba   : > { %v1039_v24 = vpop.permute.xlu0 %1038 }
 0x1bb   : > { %1709 = vrot.lane.b32.xlu2 %v1700_v40, %s2247_s11  ;;  %v1050_v57 = vsel %vm1046_vm13, %v2974_v18, %v1039_v24  ;;  %v1051_v0 = vsel %vm1046_vm13, %v1039_v24, %v1041_v48  ;;  %v3060_v18 = vld.sshfl [vmem:[#allocation1 + $0x30] sm:$0xff pattern:$0x75316420] }
 0x1bc   : > { %1064 = vst [vmem:[#allocation2 + $0x200] sm:$0xf] %v1050_v57  ;;  %v1158_v59 = vpop.permute.xlu2 %1157 }
 0x1bd   : > { %1065 = vst [vmem:[#allocation2 + $0x2f0] sm:$0xf] %v1051_v0  ;;  %1465 = vrot.lane.b32.xlu1 %v2774_v58, %s2250_s16 }
 0x1be   : > { %1759 = vst [vmem:[#allocation1 + $0x30] ss:$2 sm:$0xff] %v2870_v52 }
 0x1bf   : > { %v1093_v20 = vpop.permute.xlu1 %1092 }
 0x1c0   : > { %1405 = vrot.lane.b32.xlu0 %v2746_v37, %s2251_s17  ;;  %v1109_v40 = vsel %vm1108_vm14, %v1093_v20, %v3014_v47 }
 0x1c1   : > { %1123 = vst [vmem:[#allocation2 + $0x98] sm:$0xf0] %v1109_v40 }
 0x1c2   : > { %v1045_v62 = vpop.permute.xlu0 %1044 }
 0x1c3   : > { %1403 = vrot.lane.b32.xlu2 %v2742_v43, %s2251_s17  ;;  %v1053_v58 = vsel %vm1046_vm13, %v2995_v60, %v1045_v62 }
 0x1c4   : > { %1067 = vst [vmem:[#allocation2 + $0x268] sm:$0xf] %v1053_v58  ;;  %v1164_v2 = vpop.permute.xlu2 %1163 }
 0x1c5   : > { %1586 = vrot.lane.b32.xlu1 %v2964_v21, %s2249_s15  ;;  %v1767_v62 = vld.sshfl [vmem:[#allocation1 + $0x38] sm:$0xff pattern:$0x75316420] }
 0x1c7   : > { %v1099_v37 = vpop.permute.xlu1 %1098 }
 0x1c8   : > { %1524 = vrot.lane.b32.xlu0 %v2930_v44, %s2248_s14  ;;  %v1112_v43 = vsel %vm1108_vm14, %v1099_v37, %v3029_v9 }
 0x1c9   : > { %1126 = vst [vmem:[#allocation2 + $0x200] sm:$0xf0] %v1112_v43 }
 0x1ca   : > { %v1097_v48 = vpop.permute.xlu0 %1096 }
 0x1cb   : > { %1467 = vrot.lane.b32.xlu2 %v2776_v55, %s2250_s16  ;;  %v1110_v52 = vsel %vm1108_vm14, %v3014_v47, %v1097_v48  ;;  %v1111_v60 = vsel %vm1108_vm14, %v1097_v48, %v1099_v37 }
 0x1cc   : > { %1124 = vst [vmem:[#allocation2 + $0x1f8] sm:$0xf0] %v1110_v52  ;;  %v1216_v30 = vpop.permute.xlu2 %1215 }
 0x1cd   : > { %1125 = vst [vmem:[#allocation2 + $0x2e0] sm:$0xf0] %v1111_v60  ;;  %1707 = vrot.lane.b32.xlu1 %v3008_v36, %s2247_s11 }
 0x1cf   : > { %v1105_v44 = vpop.permute.xlu1 %1104 }
 0x1d0   : > { %1653 = vrot.lane.b32.xlu0 %v2942_v49, %s2246_s10  ;;  %v1115_v21 = vsel %vm1108_vm14, %v1105_v44, %v1107_v16 }
 0x1d1   : > { %1129 = vst [vmem:[#allocation2 + $0x268] sm:$0xf0] %v1115_v21 }
 0x1d2   : > { %v1103_v55 = vpop.permute.xlu0 %1102 }
 0x1d3   : > { %1645 = vrot.lane.b32.xlu2 %v2987_v8, %s2246_s10  ;;  %v1113_v47 = vsel %vm1108_vm14, %v3029_v9, %v1103_v55  ;;  %v1114_v24 = vsel %vm1108_vm14, %v1103_v55, %v1105_v44  ;;  %v1766_v9 = vld.sshfl [vmem:[#allocation1 + $0x30] sm:$0xff pattern:$0x75316420] }
 0x1d4   : > { %1127 = vst [vmem:[#allocation2 + $0x2f0] sm:$0xf0] %v1113_v47  ;;  %v1222_v57 = vpop.permute.xlu2 %1221 }
 0x1d5   : > { %1128 = vst [vmem:[#allocation2 + $0x8] sm:$0xf0] %v1114_v24  ;;  %1282 = vrot.lane.b32.xlu1 %v2680_v12, %s2245_s9 }
 0x1d7   : > { %v1156_v49 = vpop.permute.xlu1 %1155 }
 0x1d8   : > { %1280 = vrot.lane.b32.xlu0 %v2676_v10, %s2245_s9  ;;  %v1171_v36 = vsel %vm1169_vm15, %v1156_v49, %v1158_v59 }
 0x1d9   : > { %1185 = vst [vmem:[#allocation2 + $0x148] sm:$0xf] %v1171_v36 }
 0x1da   : > { %v1154_v8 = vpop.permute.xlu0 %1153 }
 0x1db   : > { %1715 = vrot.lane.b32.xlu2 %v2978_v53, %s2247_s11  ;;  %v1170_v16 = vsel %vm1169_vm15, %v1154_v8, %v1156_v49 }
 0x1dc   : > { %1184 = vst [vmem:[#allocation2 + $0x2c8] sm:$0xf] %v1170_v16  ;;  %v1228_v40 = vpop.permute.xlu2 %1227 }
 0x1dd   : > { %1780 = vrot.lane.b32.xlu1 %v1766_v9, %s2244_s8 }
 0x1df   : > { %v1162_v12 = vpop.permute.xlu1 %1161 }
 0x1e0   : > { %1344 = vrot.lane.b32.xlu0 %v2714_v27, %s2252_s18  ;;  %v1174_v10 = vsel %vm1169_vm15, %v1162_v12, %v1164_v2 }
 0x1e1   : > { %1188 = vst [vmem:[#allocation2 + $0x158] sm:$0xf] %v1174_v10 }
 0x1e2   : > { %v1160_v53 = vpop.permute.xlu0 %1159 }
 0x1e3   : > { %1342 = vrot.lane.b32.xlu2 %v2710_v25, %s2252_s18  ;;  %v1172_v0 = vsel %vm1169_vm15, %v1158_v59, %v1160_v53  ;;  %v1173_v20 = vsel %vm1169_vm15, %v1160_v53, %v1162_v12 }
 0x1e4   : > { %1186 = vst [vmem:[#allocation2 + $0x68] sm:$0xf] %v1172_v0  ;;  %v1773_v37 = vpop.permute.xlu2 %1772 }
 0x1e5   : > { %1187 = vst [vmem:[#allocation2 + $0x188] sm:$0xf] %v1173_v20  ;;  %1463 = vrot.lane.b32.xlu1 %v2900_v15, %s2250_s16 }
 0x1e7   : > { %v1168_v58 = vpop.permute.xlu1 %1167 }
 0x1e8   : > { %1401 = vrot.lane.b32.xlu0 %v2826_v45, %s2251_s17 }
 0x1ea   : > { %v1166_v27 = vpop.permute.xlu0 %1165 }
 0x1eb   : > { %1782 = vrot.lane.b32.xlu2 %v1767_v62, %s2244_s8  ;;  %v1175_v25 = vsel %vm1169_vm15, %v1164_v2, %v1166_v27  ;;  %v1176_v59 = vsel %vm1169_vm15, %v1166_v27, %v1168_v58 }
 0x1ec   : > { %1189 = vst [vmem:[#allocation2 + $0x1a0] sm:$0xf] %v1175_v25 }
 0x1ed   : > { %1190 = vst [vmem:[#allocation2 + $0x90] sm:$0xf] %v1176_v59  ;;  %1584 = vrot.lane.b32.xlu1 %v2960_v33, %s2249_s15 }
 0x1ef   : > { %v1220_v15 = vpop.permute.xlu1 %1219 }
 0x1f0   : > { %1530 = vrot.lane.b32.xlu0 %v2892_v11, %s2248_s14  ;;  %v1234_v45 = vsel %vm1231_vm0, %v1220_v15, %v1222_v57 }
 0x1f1   : > { %1248 = vst [vmem:[#allocation2 + $0x68] sm:$0xf0] %v1234_v45 }
 0x1f2   : > { %v1218_v2 = vpop.permute.xlu0 %1217 }
 0x1f3   : > { %1522 = vrot.lane.b32.xlu2 %v2928_v23, %s2248_s14  ;;  %v1232_v43 = vsel %vm1231_vm0, %v1216_v30, %v1218_v2  ;;  %v1233_v48 = vsel %vm1231_vm0, %v1218_v2, %v1220_v15  ;;  %v3129_v23 = vpop.permute.xlu2 %1651  ;;  %v1765_v30 = vld.sshfl [vmem:[#allocation1 + $0x28] sm:$0xff pattern:$0x75316420] }
 0x1f4   : > { %1246 = vst [vmem:[#allocation2 + $0x2c8] sm:$0xf0] %v1232_v43 }
 0x1f5   : > { %1247 = vst [vmem:[#allocation2 + $0x148] sm:$0xf0] %v1233_v48  ;;  %1659 = vrot.lane.b32.xlu1 %v3034_v3, %s2246_s10 }
 0x1f7   : > { %v1226_v33 = vpop.permute.xlu1 %1225 }
 0x1f8   : > { %1657 = vrot.lane.b32.xlu0 %v3032_v5, %s2246_s10  ;;  %v1237_v11 = vsel %vm1231_vm0, %v1226_v33, %v1228_v40 }
 0x1f9   : > { %1251 = vst [vmem:[#allocation2 + $0x1a0] sm:$0xf0] %v1237_v11 }
 0x1fa   : > { %v1224_v52 = vpop.permute.xlu0 %1223 }
 0x1fb   : > { %1592 = vrot.lane.b32.xlu2 %v2916_v35, %s2249_s15  ;;  %v1235_v60 = vsel %vm1231_vm0, %v1222_v57, %v1224_v52  ;;  %v1236_v44 = vsel %vm1231_vm0, %v1224_v52, %v1226_v33  ;;  %v3449_v52 = vld [vmem:[#allocation6_spill] sm:$0xff] }
 0x1fc   : > { %1249 = vst [vmem:[#allocation2 + $0x188] sm:$0xf0] %v1235_v60 }
 0x1fd   : > { %1250 = vst [vmem:[#allocation2 + $0x158] sm:$0xf0] %v1236_v44  ;;  %1278 = vrot.lane.b32.xlu1 %v2738_v41, %s2245_s9 }
 0x1ff   : > { %v3135_v3 = vpop.permute.xlu1 %1276 }
 0x200   : > { %1721 = vrot.lane.b32.xlu0 %v3064_v31, %s2247_s11 }
 0x202   : > { %v1230_v35 = vpop.permute.xlu0 %1229 }
 0x203   : > { %1719 = vrot.lane.b32.xlu2 %v3060_v18, %s2247_s11  ;;  %v1238_v5 = vsel %vm1231_vm0, %v1228_v40, %v1230_v35 }
 0x204   : > { %1252 = vst [vmem:[#allocation2 + $0x90] sm:$0xf0] %v1238_v5 }
 0x205   : > { %v3142_v21 = vpop.permute.xlu2 %1770  ;;  %1407 = vrot.lane.b32.xlu1 %v2838_v32, %s2251_s17 }
 0x206   : > { %v1786_v55 = vsel %vm1784_vm1, %v3142_v21, %v1773_v37 }
 0x207   : > { %1800 = vst [vmem:[#allocation2 + $0x140] sm:$0xf] %v1786_v55  ;;  %v1650_v41 = vpop.permute.xlu1 %1649 }
 0x208   : > { %1399 = vrot.lane.b32.xlu0 %v2822_v22, %s2251_s17  ;;  %v1664_v18 = vsel %vm1661_vm2, %v1650_v41, %v3129_v23 }
 0x209   : > { %1678 = vst [vmem:[#allocation2 + $0x120] sm:$0xf] %v1664_v18 }
 0x20a   : > { %v1775_v31 = vpop.permute.xlu0 %1774 }
 0x20b   : > { %1340 = vrot.lane.b32.xlu2 %v2786_v63, %s2252_s18  ;;  %v1787_v47 = vsel %vm1784_vm1, %v1773_v37, %v1775_v31 }
 0x20c   : > { %1801 = vst [vmem:[#allocation2 + $0x128] sm:$0xf] %v1787_v47 }
 0x20d   : > { %v3155_v24 = vpop.permute.xlu2 %1588  ;;  %1778 = vrot.lane.b32.xlu1 %v1765_v30, %s2244_s8 }
 0x20e   : > { %v1899_v32 = vld [vmem:[#allocation2 + $0x140] sm:$0xf] }
 0x20f   : > { %2166 = vmatpush.msk.msra.mxu1 %vm1914_vm3, %v1899_v32  ;;  %v3159_v22 = vpop.permute.xlu1 %1713 }
 0x210   : > { %1469 = vrot.lane.b32.xlu0 %v2861_v34, %s2250_s16 }
 0x212   : > { %v1712_v63 = vpop.permute.xlu0 %1711 }
 0x213   : > { %1461 = vrot.lane.b32.xlu2 %v2888_v6, %s2250_s16  ;;  %v1726_v49 = vsel %vm1723_vm4, %v1712_v63, %v3159_v22  ;;  %v1900_v36 = vld [vmem:[#allocation2 + $0x128] sm:$0xf] }
 0x214   : > { %1740 = vst [vmem:[#allocation2 + $0x120] sm:$0xf0] %v1726_v49  ;;  %2168 = vmatpush.msk.msra.mxu2 %vm1914_vm3, %v1900_v36 }
 0x215   : > { %v3167_v8 = vpop.permute.xlu2 %1709  ;;  %1596 = vrot.lane.b32.xlu1 %v3018_v42, %s2249_s15 }
 0x216   : > { %v1725_v9 = vsel %vm1723_vm4, %v3167_v8, %v1712_v63 }
 0x217   : > { %1739 = vst [vmem:[#allocation2 + $0x50] sm:$0xf0] %v1725_v9  ;;  %v3174_v34 = vpop.permute.xlu1 %1528  ;;  %v1858_v9 = vld [vmem:[#allocation2 + $0x2e0] sm:$0xff] }
 0x218   : > { %1536 = vrot.lane.b32.xlu0 %v3001_v56, %s2248_s14 }
 0x21a   : > { %v1527_v6 = vpop.permute.xlu0 %1526 }
 0x21b   : > { %1534 = vrot.lane.b32.xlu2 %v2999_v38, %s2248_s14  ;;  %v1541_v16 = vsel %vm1538_vm6, %v1527_v6, %v3174_v34  ;;  %v1893_v57 = vld [vmem:[#allocation2 + $0x120] sm:$0xff] }
 0x21c   : > { %1555 = vst [vmem:[#allocation2 + $0xd8] sm:$0xf] %v1541_v16  ;;  %1979 = vmatpush.msra.mxu2 %v1893_v57  ;;  %v1851_v57 = vld [vmem:[#allocation2 + $0xc0] sm:$0xff] }
 0x21d   : > { %v3182_v12 = vpop.permute.xlu2 %1403  ;;  %1338 = vrot.lane.b32.xlu1 %v2784_v29, %s2252_s18 }
 0x21f   : > { %v1648_v42 = vpop.permute.xlu1 %1647 }
 0x220   : > { %1284 = vrot.lane.b32.xlu0 %v2790_v4, %s2245_s9  ;;  %v1663_v56 = vsel %vm1661_vm2, %v1648_v42, %v1650_v41  ;;  %v3451_v41 = vld [vmem:[#allocation3_spill] sm:$0xff] }
 0x221   : > { %1677 = vst [vmem:[#allocation2 + $0x50] sm:$0xf] %v1663_v56 }
 0x222   : > { %v3191_v38 = vpop.permute.xlu0 %1590 }
 0x223   : > { %1598 = vrot.lane.b32.xlu2 %v3020_v7, %s2249_s15  ;;  %v1603_v10 = vsel %vm1600_vm7, %v3155_v24, %v3191_v38 }
 0x224   : > { %1617 = vst [vmem:[#allocation2 + $0xd8] sm:$0xf0] %v1603_v10 }
 0x225   : > { %v3196_v53 = vpop.permute.xlu2 %1467  ;;  %1717 = vrot.lane.b32.xlu1 %v2984_v51, %s2247_s11 }
 0x227   : > { %v3200_v29 = vpop.permute.xlu1 %1776 }
 0x228   : > { %1655 = vrot.lane.b32.xlu0 %v2944_v28, %s2246_s10  ;;  %v1788_v4 = vsel %vm1784_vm1, %v1775_v31, %v3200_v29  ;;  %v1892_v7 = vld [vmem:[#allocation2 + $0x50] sm:$0xff] }
 0x229   : > { %1802 = vst [vmem:[#allocation2 + $0x60] sm:$0xf] %v1788_v4  ;;  %1959 = vmatpush.msra.mxu1 %v1892_v7  ;;  %v1837_v7 = vld [vmem:[#allocation2 + $0xa0] sm:$0xff] }
 0x22a   : > { %v1769_v0 = vpop.permute.xlu0 %1768 }
 0x22b   : > { %1346 = vrot.lane.b32.xlu2 %v2812_v14, %s2252_s18  ;;  %v1785_v20 = vsel %vm1784_vm1, %v1769_v0, %v3142_v21  ;;  %v1886_v40 = vld [vmem:[#allocation2 + $0xd8] sm:$0xff]  ;;  %v1830_v0 = vld [vmem:[#allocation2 + $0x100] sm:$0xff] }
 0x22c   : > { %1799 = vst [vmem:[#allocation2 + $0x278] sm:$0xf] %v1785_v20  ;;  %1980 = vmatpush.msra.mxu2 %v1886_v40  ;;  %v3450_v21 = vld [vmem:[#allocation4_spill] sm:$0xff] }
 0x22d   : > { %v1646_v51 = vpop.permute.xlu2 %1645  ;;  %1473 = vrot.lane.b32.xlu1 %v2980_v17, %s2250_s16 }
 0x22e   : > { %v1662_v62 = vsel %vm1661_vm2, %v1646_v51, %v1648_v42  ;;  %v1823_v51 = vld [vmem:[#allocation2 + $0x18] sm:$0xff] }
 0x22f   : > { %1676 = vst [vmem:[#allocation2 + $0x178] sm:$0xf] %v1662_v62  ;;  %v3213_v28 = vpop.permute.xlu1 %1465 }
 0x230   : > { %1413 = vrot.lane.b32.xlu0 %v2957_v26, %s2251_s17  ;;  %v1480_v14 = vsel %vm1477_vm8, %v3213_v28, %v3196_v53  ;;  %v1901_v58 = vld [vmem:[#allocation2 + $0x60] sm:$0xf] }
 0x231   : > { %1494 = vst [vmem:[#allocation2 + $0x110] sm:$0xf0] %v1480_v14  ;;  %2170 = vmatpush.msk.msra.mxu3 %vm1914_vm3, %v1901_v58 }
 0x232   : > { %v3223_v17 = vpop.permute.xlu0 %1405 }
 0x233   : > { %1411 = vrot.lane.b32.xlu2 %v2955_v54, %s2251_s17  ;;  %v1418_v27 = vsel %vm1415_vm9, %v3182_v12, %v3223_v17  ;;  %v1898_v25 = vld [vmem:[#allocation2 + $0x278] sm:$0xf] }
 0x234   : > { %1432 = vst [vmem:[#allocation2 + $0x110] sm:$0xf] %v1418_v27  ;;  %2164 = vmatpush.msk.msra.mxu0 %vm1914_vm3, %v1898_v25  ;;  %v1809_v25 = vld [vmem:[#allocation2 + $0x10] sm:$0xff] }
 0x235   : > { %v3228_v26 = vpop.permute.xlu2 %1715  ;;  %1594 = vrot.lane.b32.xlu1 %v2918_v61, %s2249_s15 }
 0x236   : > { %v1727_v59 = vsel %vm1723_vm4, %v3159_v22, %v3228_v26 }
 0x237   : > { %1741 = vst [vmem:[#allocation2 + $0xc8] sm:$0xf0] %v1727_v59  ;;  %v3236_v54 = vpop.permute.xlu1 %1586 }
 0x238   : > { %1532 = vrot.lane.b32.xlu0 %v2894_v13, %s2248_s14  ;;  %v1602_v15 = vsel %vm1600_vm7, %v3236_v54, %v3155_v24 }
 0x239   : > { %1616 = vst [vmem:[#allocation2 + $0x1d8] sm:$0xf0] %v1602_v15 }
 0x23a   : > { %v1525_v37 = vpop.permute.xlu0 %1524 }
 0x23b   : > { %1475 = vrot.lane.b32.xlu2 %v2982_v39, %s2250_s16  ;;  %v1540_v45 = vsel %vm1538_vm6, %v1525_v37, %v1527_v6  ;;  %v1879_v2 = vld [vmem:[#allocation2 + $0x110] sm:$0xff] }
 0x23c   : > { %1554 = vst [vmem:[#allocation2 + $0x1d8] sm:$0xf] %v1540_v45  ;;  %1981 = vmatpush.msra.mxu2 %v1879_v2 }
 0x23d   : > { %v3246_v43 = vpop.permute.xlu2 %1342  ;;  %1350 = vrot.lane.b32.xlu1 %v2932_v50, %s2252_s18  ;;  %v3448_v50 = vld [vmem:[#allocation5_spill] sm:$0xff] }
 0x23f   : > { %v1708_v13 = vpop.permute.xlu1 %1707 }
 0x240   : > { %1290 = vrot.lane.b32.xlu0 %v2908_v19, %s2245_s9  ;;  %v1724_v61 = vsel %vm1723_vm4, %v1708_v13, %v3167_v8  ;;  %v1865_v8 = vld [vmem:[#allocation2 + $0x68] sm:$0xff] }
 0x241   : > { %1738 = vst [vmem:[#allocation2 + $0x178] sm:$0xf0] %v1724_v61 }
 0x242   : > { %v3256_v39 = vpop.permute.xlu0 %1653 }
 0x243   : > { %1288 = vrot.lane.b32.xlu2 %v2906_v1, %s2245_s9  ;;  %v1665_v48 = vsel %vm1661_vm2, %v3129_v23, %v3256_v39  ;;  %v1885_v33 = vld [vmem:[#allocation2 + $0x1d8] sm:$0xff] }
 0x244   : > { %1679 = vst [vmem:[#allocation2 + $0xc8] sm:$0xf] %v1665_v48  ;;  %1960 = vmatpush.msra.mxu1 %v1885_v33 }
 0x245   : > { %v1783_v11 = vpop.permute.xlu2 %1782  ;;  %1471 = vrot.lane.b32.xlu1 %v2863_v46, %s2250_s16 }
 0x247   : > { %v3263_v19 = vpop.permute.xlu1 %1282 }
 0x248   : > { %1409 = vrot.lane.b32.xlu0 %v3448_v50, %s2251_s17  ;;  %v1891_v1 = vld [vmem:[#allocation2 + $0x178] sm:$0xff]  ;;  %v1864_v50 = vld [vmem:[#allocation2 + $0x148] sm:$0xff] }
 0x249   : > { %1939 = vmatpush.msra.mxu0 %v1891_v1 }
 0x24a   : > { %v3269_v60 = vpop.permute.xlu0 %1280 }
 0x24b   : > { %1352 = vrot.lane.b32.xlu2 %v3449_v52, %s2252_s18  ;;  %v1295_v23 = vsel %vm1292_vm10, %v3269_v60, %v3263_v19  ;;  %v1894_v44 = vld [vmem:[#allocation2 + $0xc8] sm:$0xff]  ;;  %v1857_v52 = vld [vmem:[#allocation2 + $0x1f8] sm:$0xff] }
 0x24c   : > { %1309 = vst [vmem:[#allocation2 + $0xb8] sm:$0xf] %v1295_v23  ;;  %1999 = vmatpush.msra.mxu3 %v1894_v44  ;;  %v1850_v23 = vld [vmem:[#allocation2 + $0x108] sm:$0xff] }
 0x24d   : > { %v1523_v35 = vpop.permute.xlu2 %1522 }
 0x24e   : > { %v1539_v46 = vsel %vm1538_vm6, %v1523_v35, %v1525_v37  ;;  %v1843_v35 = vld [vmem:[#allocation2 + $0x210] sm:$0xff] }
 0x24f   : > { %1553 = vst [vmem:[#allocation2 + $0x1e0] sm:$0xf] %v1539_v46  ;;  %v3275_v5 = vpop.permute.xlu1 %1780 }
 0x250   : > { %1348 = vrot.lane.b32.xlu0 %v3450_v21, %s2252_s18  ;;  %v1791_v55 = vsel %vm1784_vm1, %v3275_v5, %v1783_v11 }
 0x251   : > { %1805 = vst [vmem:[#allocation2 + $0x218] sm:$0xf] %v1791_v55 }
 0x252   : > { %v3283_v18 = vpop.permute.xlu0 %1344 }
 0x253   : > { %1286 = vrot.lane.b32.xlu2 %v3451_v41, %s2245_s9  ;;  %v1357_v31 = vsel %vm1354_vm11, %v3246_v43, %v3283_v18  ;;  %v1836_v41 = vld [vmem:[#allocation2 + $0x160] sm:$0xff] }
 0x254   : > { %1371 = vst [vmem:[#allocation2 + $0xb8] sm:$0xf0] %v1357_v31 }
 0x255   : > { %v3288_v30 = vpop.permute.xlu2 %1592 }
 0x256   : > { %v1604_v47 = vsel %vm1600_vm7, %v3191_v38, %v3288_v30  ;;  %v1844_v38 = vld [vmem:[#allocation2 + $0x80] sm:$0xff] }
 0x257   : > { %1618 = vst [vmem:[#allocation2 + $0x298] sm:$0xf0] %v1604_v47  ;;  %v1464_v24 = vpop.permute.xlu1 %1463 }
 0x258   : > { %v1479_v32 = vsel %vm1477_vm8, %v1464_v24, %v3213_v28  ;;  %v1816_v28 = vld [vmem:[#allocation2 + $0x130] sm:$0xff]  ;;  %v1904_v59 = vld [vmem:[#allocation2 + $0x218] sm:$0xf] }
 0x259   : > { %1493 = vst [vmem:[#allocation2 + $0x2a0] sm:$0xf0] %v1479_v32  ;;  %v1815_v32 = vld [vmem:[#allocation2 + $0x300] sm:$0xff] }
 0x25a   : > { %v3295_v22 = vpop.permute.xlu0 %1401 }
 0x25b   : > { %v1417_v63 = vsel %vm1415_vm9, %v3295_v22, %v3182_v12  ;;  %v1872_v49 = vld [vmem:[#allocation2 + $0xb8] sm:$0xff] }
 0x25c   : > { %1431 = vst [vmem:[#allocation2 + $0x2a0] sm:$0xf] %v1417_v63  ;;  %1982 = vmatpush.msra.mxu2 %v1872_v49 }
 0x25d   : > { %v3300_v36 = vpop.permute.xlu2 %1719 }
 0x25e   : > { %1983 = vmatpush.msra.mxu2 %v1865_v8  ;;  %v1808_v8 = vld [vmem:[#allocation2 + $0xd0] sm:$0xff] }
 0x25f   : > { %v1585_v6 = vpop.permute.xlu1 %1584 }
 0x260   : > { %1984 = vmatpush.msra.mxu2 %v1858_v9  ;;  %v1601_v16 = vsel %vm1600_vm7, %v1585_v6, %v3236_v54 }
 0x261   : > { %1615 = vst [vmem:[#allocation2 + $0x1e0] sm:$0xf0] %v1601_v16 }
 0x262   : > { %1985 = vmatpush.msra.mxu2 %v1851_v57  ;;  %v3304_v42 = vpop.permute.xlu0 %1530 }
 0x263   : > { %v1542_v12 = vsel %vm1538_vm6, %v3174_v34, %v3304_v42  ;;  %v1878_v56 = vld [vmem:[#allocation2 + $0x2a0] sm:$0xff] }
 0x264   : > { %1556 = vst [vmem:[#allocation2 + $0x298] sm:$0xf] %v1542_v12  ;;  %1961 = vmatpush.msra.mxu1 %v1878_v56  ;;  %1986 = vmatpush.msra.mxu2 %v1844_v38 }
 0x265   : > { %v3309_v10 = vpop.permute.xlu2 %1340 }
 0x266   : > { %v1356_v4 = vsel %vm1354_vm11, %v3309_v10, %v3246_v43  ;;  %1987 = vmatpush.msra.mxu2 %v1837_v7 }
 0x267   : > { %1370 = vst [vmem:[#allocation2 + $0x208] sm:$0xf0] %v1356_v4  ;;  %v1660_v20 = vpop.permute.xlu1 %1659 }
 0x268   : > { %1988 = vmatpush.msra.mxu2 %v1830_v0  ;;  %v1884_v40 = vld [vmem:[#allocation2 + $0x1e0] sm:$0xff] }
 0x269   : > { %1940 = vmatpush.msra.mxu0 %v1884_v40  ;;  %v1863_v40 = vld [vmem:[#allocation2 + $0x2c8] sm:$0xff] }
 0x26a   : > { %1989 = vmatpush.msra.mxu2 %v1823_v51  ;;  %v3314_v34 = vpop.permute.xlu0 %1657 }
 0x26b   : > { %v1668_v62 = vsel %vm1661_vm2, %v3314_v34, %v1660_v20  ;;  %v1887_v14 = vld [vmem:[#allocation2 + $0x298] sm:$0xff] }
 0x26c   : > { %1682 = vst [vmem:[#allocation2 + $0x270] sm:$0xf] %v1668_v62  ;;  %1990 = vmatpush.msra.mxu2 %v1816_v28  ;;  %2000 = vmatpush.msra.mxu3 %v1887_v14  ;;  %v1849_v14 = vld [vmem:[#allocation2 + $0x288] sm:$0xff] }
 0x26d   : > { %v1462_v58 = vpop.permute.xlu2 %1461 }
 0x26e   : > { %v1478_v27 = vsel %vm1477_vm8, %v1462_v58, %v1464_v24  ;;  %1991 = vmatpush.msra.mxu2 %v1809_v25  ;;  %v1822_v24 = vld [vmem:[#allocation2 + $0x180] sm:$0xff]  ;;  %v1852_v25 = vld [vmem:[#allocation2 + $0x290] sm:$0xff] }
 0x26f   : > { %1492 = vst [vmem:[#allocation2 + $0x280] sm:$0xf0] %v1478_v27  ;;  %v1279_v54 = vpop.permute.xlu1 %1278  ;;  %v1859_v58 = vld [vmem:[#allocation2 + $0x200] sm:$0xff] }
 0x270   : > { %2176 = vmatpush.msk.msrb.mxu2 %vm1914_vm3, %v1904_v59  ;;  %v1293_v15 = vsel %vm1292_vm10, %v3135_v3, %v1279_v54  ;;  %v1294_v37 = vsel %vm1292_vm10, %v1279_v54, %v3269_v60  ;;  %v1835_v54 = vld [vmem:[#allocation2 + $0x138] sm:$0xff] }
 0x271   : > { %1307 = vst [vmem:[#allocation2 + $0x118] sm:$0xf] %v1293_v15 }
 0x272   : > { %1308 = vst [vmem:[#allocation2 + $0x208] sm:$0xf] %v1294_v37  ;;  %v1722_v45 = vpop.permute.xlu0 %1721  ;;  %v1845_v37 = vld [vmem:[#allocation2 + $0x198] sm:$0xff] }
 0x273   : > { %v1730_v2 = vsel %vm1723_vm4, %v3300_v36, %v1722_v45 }
 0x274   : > { %1744 = vst [vmem:[#allocation2 + $0x270] sm:$0xf0] %v1730_v2 }
 0x275   : > { %v3326_v43 = vpop.permute.xlu2 %1534 }
 0x277   : > { %v3328_v13 = vpop.permute.xlu1 %1407 }
 0x278   : > { %v1419_v61 = vsel %vm1415_vm9, %v3223_v17, %v3328_v13 }
 0x279   : > { %1433 = vst [vmem:[#allocation2 + $0x58] sm:$0xf] %v1419_v61  ;;  %v1871_v3 = vld [vmem:[#allocation2 + $0x208] sm:$0xff]  ;;  %v1828_v61 = vld [vmem:[#allocation2 + $0x230] sm:$0xff] }
 0x27a   : > { %v1400_v48 = vpop.permute.xlu0 %1399  ;;  %1962 = vmatpush.msra.mxu1 %v1871_v3  ;;  %v1838_v3 = vld [vmem:[#allocation2 + $0x2e8] sm:$0xff] }
 0x27b   : > { %v1416_v33 = vsel %vm1415_vm9, %v1400_v48, %v3295_v22  ;;  %v1897_v11 = vld [vmem:[#allocation2 + $0x270] sm:$0xff] }
 0x27c   : > { %1430 = vst [vmem:[#allocation2 + $0x280] sm:$0xf] %v1416_v33  ;;  %2059 = vmatpush.msrb.mxu2 %v1897_v11  ;;  %1963 = vmatpush.msra.mxu1 %v1864_v50  ;;  %v1821_v48 = vld [vmem:[#allocation2 + $0x170] sm:$0xff]  ;;  %v1831_v33 = vld [vmem:[#allocation2 + $0x1b8] sm:$0xff] }
 0x27d   : > { %v1599_v1 = vpop.permute.xlu2 %1598 }
 0x27e   : > { %1964 = vmatpush.msra.mxu1 %v1857_v52  ;;  %v1814_v52 = vld [vmem:[#allocation2 + $0x78] sm:$0xff] }
 0x27f   : > { %v1779_v60 = vpop.permute.xlu1 %1778 }
 0x280   : > { %v1789_v17 = vsel %vm1784_vm1, %v3200_v29, %v1779_v60  ;;  %v1790_v44 = vsel %vm1784_vm1, %v1779_v60, %v3275_v5  ;;  %1965 = vmatpush.msra.mxu1 %v1850_v23  ;;  %v1829_v5 = vld [vmem:[#allocation2 + $0xb0] sm:$0xff]  ;;  %v1824_v60 = vld [vmem:[#allocation2 + $0x2b8] sm:$0xff] }
 0x281   : > { %1803 = vst [vmem:[#allocation2 + $0x1a8] sm:$0xf] %v1789_v17  ;;  %v1807_v17 = vld [vmem:[#allocation2 + $0x2b0] sm:$0xff] }
 0x282   : > { %1804 = vst [vmem:[#allocation2 + $0x168] sm:$0xf] %v1790_v44  ;;  %v3339_v46 = vpop.permute.xlu0 %1469  ;;  %1966 = vmatpush.msra.mxu1 %v1843_v35 }
 0x283   : > { %v1481_v21 = vsel %vm1477_vm8, %v3196_v53, %v3339_v46  ;;  %v1877_v55 = vld [vmem:[#allocation2 + $0x280] sm:$0xff] }
 0x284   : > { %1495 = vst [vmem:[#allocation2 + $0x58] sm:$0xf0] %v1481_v21  ;;  %1941 = vmatpush.msra.mxu0 %v1877_v55  ;;  %1967 = vmatpush.msra.mxu1 %v1836_v41  ;;  %v1817_v21 = vld [vmem:[#allocation2 + $0xe8] sm:$0xff] }
 0x285   : > { %v3344_v31 = vpop.permute.xlu2 %1346 }
 0x286   : > { %v1358_v29 = vsel %vm1354_vm11, %v3283_v18, %v3344_v31  ;;  %1968 = vmatpush.msra.mxu1 %v1829_v5 }
 0x287   : > { %1372 = vst [vmem:[#allocation2 + $0x238] sm:$0xf0] %v1358_v29  ;;  %v3349_v47 = vpop.permute.xlu1 %1596 }
 0x288   : > { %v1607_v53 = vsel %vm1600_vm7, %v3349_v47, %v1599_v1  ;;  %1969 = vmatpush.msra.mxu1 %v1822_v24  ;;  %v1902_v41 = vld [vmem:[#allocation2 + $0x1a8] sm:$0xf] }
 0x289   : > { %1621 = vst [vmem:[#allocation2 + $0x38] sm:$0xf0] %v1607_v53  ;;  %v1903_v9 = vld [vmem:[#allocation2 + $0x168] sm:$0xf]  ;;  %v3398_v53 = vld [vmem:[%s3441_s1] sm:$0xf] }
 0x28a   : > { %v1537_v22 = vpop.permute.xlu0 %1536  ;;  %1970 = vmatpush.msra.mxu1 %v1815_v32  ;;  %2169 = vmatmul.msk.f32.vlgmr.msra.gmra.mxu2 %vm554_vm5, %v3398_v53 }
 0x28b   : > { %v1545_v63 = vsel %vm1538_vm6, %v3326_v43, %v1537_v22  ;;  %v1880_v49 = vld [vmem:[#allocation2 + $0x58] sm:$0xff] }
 0x28c   : > { %1559 = vst [vmem:[#allocation2 + $0x38] sm:$0xf] %v1545_v63  ;;  %2001 = vmatpush.msra.mxu3 %v1880_v49  ;;  %1971 = vmatpush.msra.mxu1 %v1808_v8 }
 0x28d   : > { %v3355_v18 = vpop.permute.xlu2 %1411  ;;  %2167 = vmatmul.msk.f32.vlgmr.msra.gmra.mxu1 %vm554_vm5, %v3398_v53 }
 0x28e   : > { %2174 = vmatpush.msk.msrb.mxu1 %vm1914_vm3, %v1903_v9 }
 0x28f   : > { %v1339_v6 = vpop.permute.xlu1 %1338 }
 0x290   : > { %v1355_v16 = vsel %vm1354_vm11, %v1339_v6, %v3309_v10 }
 0x291   : > { %1369 = vst [vmem:[#allocation2 + $0x118] sm:$0xf0] %v1355_v16 }
 0x292   : > { %v3360_v57 = vpop.permute.xlu0 %1284 }
 0x293   : > { %v1296_v12 = vsel %vm1292_vm10, %v3263_v19, %v3360_v57  ;;  %v1890_v56 = vld [vmem:[#allocation2 + $0x38] sm:$0xff] }
 0x294   : > { %1310 = vst [vmem:[#allocation2 + $0x238] sm:$0xf] %v1296_v12  ;;  %2060 = vmatpush.msrb.mxu2 %v1890_v56 }
 0x295   : > { %v1476_v38 = vpop.permute.xlu2 %1475 }
 0x297   : > { %v1718_v4 = vpop.permute.xlu1 %1717 }
 0x298   : > { %v1728_v7 = vsel %vm1723_vm4, %v3228_v26, %v1718_v4  ;;  %v1729_v0 = vsel %vm1723_vm4, %v1718_v4, %v3300_v36  ;;  %v1870_v20 = vld [vmem:[#allocation2 + $0x118] sm:$0xff]  ;;  %v1866_v36 = vld [vmem:[#allocation2 + $0x188] sm:$0xff] }
 0x299   : > { %1742 = vst [vmem:[#allocation2 + $0x1e8] sm:$0xf0] %v1728_v7  ;;  %1942 = vmatpush.msra.mxu0 %v1870_v20  ;;  %v1856_v26 = vld [vmem:[#allocation2 + $0x98] sm:$0xff]  ;;  %v1862_v4 = vld [vmem:[#allocation2 + $0x268] sm:$0xff]  ;;  %v1855_v7 = vld [vmem:[#allocation2 + $0xe0] sm:$0xff] }
 0x29a   : > { %1743 = vst [vmem:[#allocation2 + $0x2f8] sm:$0xf0] %v1729_v0  ;;  %v1656_v10 = vpop.permute.xlu0 %1655  ;;  %v2253_v0 = vmov 0  }
 0x29b   : > { %v1666_v19 = vsel %vm1661_vm2, %v3256_v39, %v1656_v10  ;;  %v1667_v51 = vsel %vm1661_vm2, %v1656_v10, %v3314_v34  ;;  %v1873_v62 = vld [vmem:[#allocation2 + $0x238] sm:$0xff]  ;;  %1943 = vmatpush.msra.mxu0 %v1863_v40  ;;  %v1842_v34 = vld [vmem:[#allocation2 + $0x190] sm:$0xff]  ;;  %2217 = vset.pattern.permute.xlu1 %v2253_v0 }
 0x29c   : > { %1680 = vst [vmem:[#allocation2 + $0x1e8] sm:$0xf] %v1666_v19  ;;  %2002 = vmatpush.msra.mxu3 %v1873_v62  ;;  %2218 = vset.pattern.permute.xlu0 %v2253_v0  ;;  %v1848_v40 = vld [vmem:[#allocation2 + $0x1d0] sm:$0xff]  ;;  %v1834_v62 = vld [vmem:[#allocation2 + $0x240] sm:$0xff] }
 0x29d   : > { %v3373_v28 = vpop.permute.xlu2 %1288  ;;  %1681 = vst [vmem:[#allocation2 + $0x2f8] sm:$0xf] %v1667_v51  ;;  %1944 = vmatpush.msra.mxu0 %v1856_v26  ;;  %v1841_v51 = vld [vmem:[#allocation2 + $0x88] sm:$0xff] }
 0x29e   : > { %2003 = vmatpush.msra.mxu3 %v1866_v36  ;;  %v1820_v36 = vld [vmem:[#allocation2 + $0x2a8] sm:$0xff] }
 0x29f   : > { %v3375_v27 = vpop.permute.xlu1 %1473  ;;  %1945 = vmatpush.msra.mxu0 %v1849_v14  ;;  %v1867_v14 = vld [vmem:[#allocation2 + $0x158] sm:$0xff] }
 0x2a0   : > { %2004 = vmatpush.msra.mxu3 %v1859_v58  ;;  %v1484_v39 = vsel %vm1477_vm8, %v3375_v27, %v1476_v38  ;;  %v1869_v38 = vld [vmem:[#allocation2 + $0x90] sm:$0xff]  ;;  %v1813_v58 = vld [vmem:[#allocation2 + $0xf8] sm:$0xff] }
 0x2a1   : > { %1498 = vst [vmem:[#allocation2 + $0x2d8] sm:$0xf0] %v1484_v39  ;;  %1946 = vmatpush.msra.mxu0 %v1842_v34  ;;  %v1860_v39 = vld [vmem:[#allocation2 + $0x2f0] sm:$0xff]  ;;  %v1861_v34 = vld [vmem:[#allocation2 + $0x8] sm:$0xff] }
 0x2a2   : > { %2005 = vmatpush.msra.mxu3 %v1852_v25  ;;  %v1414_v59 = vpop.permute.xlu0 %1413  ;;  %v1853_v25 = vld [vmem:[#allocation2 + $0x308] sm:$0xff] }
 0x2a3   : > { %v1422_v15 = vsel %vm1415_vm9, %v3355_v18, %v1414_v59  ;;  %1947 = vmatpush.msra.mxu0 %v1835_v54  ;;  %v1854_v59 = vld [vmem:[#allocation2] sm:$0xff] }
 0x2a4   : > { %1436 = vst [vmem:[#allocation2 + $0x2d8] sm:$0xf] %v1422_v15  ;;  %2006 = vmatpush.msra.mxu3 %v1845_v37  ;;  %v1896_v2 = vld [vmem:[#allocation2 + $0x2f8] sm:$0xff]  ;;  %v1846_v54 = vld [vmem:[#allocation2 + $0x220] sm:$0xff]  ;;  %v1839_v37 = vld [vmem:[#allocation2 + $0x1b0] sm:$0xff] }
 0x2a5   : > { %v1353_v45 = vpop.permute.xlu2 %1352  ;;  %2039 = vmatpush.msrb.mxu1 %v1896_v2  ;;  %1948 = vmatpush.msra.mxu0 %v1828_v61  ;;  %v1847_v15 = vld [vmem:[#allocation2 + $0x258] sm:$0xff]  ;;  %v1832_v2 = vld [vmem:[#allocation2 + $0x228] sm:$0xff]  ;;  %v1833_v61 = vld [vmem:[#allocation2 + $0x260] sm:$0xff] }
 0x2a6   : > { %2007 = vmatpush.msra.mxu3 %v1838_v3  ;;  %v1825_v3 = vld [vmem:[#allocation2 + $0x250] sm:$0xff] }
 0x2a7   : > { %v1595_v11 = vpop.permute.xlu1 %1594  ;;  %1949 = vmatpush.msra.mxu0 %v1821_v48  ;;  %v1826_v48 = vld [vmem:[#allocation2 + $0x28] sm:$0xff] }
 0x2a8   : > { %2008 = vmatpush.msra.mxu3 %v1831_v33  ;;  %v1605_v50 = vsel %vm1600_vm7, %v3288_v30, %v1595_v11  ;;  %v1606_v1 = vsel %vm1600_vm7, %v1595_v11, %v3349_v47  ;;  %v1810_v47 = vld [vmem:[#allocation2 + $0x48] sm:$0xff]  ;;  %v1818_v33 = vld [vmem:[#allocation2 + $0x40] sm:$0xff] }
 0x2a9   : > { %1619 = vst [vmem:[#allocation2 + $0x20] sm:$0xf0] %v1605_v50  ;;  %1950 = vmatpush.msra.mxu0 %v1814_v52  ;;  %v1819_v11 = vld [vmem:[#allocation2 + $0x2c0] sm:$0xff]  ;;  %v1811_v50 = vld [vmem:[#allocation2 + $0x30] sm:$0xff] }
 0x2aa   : > { %1620 = vst [vmem:[#allocation2 + $0xa8] sm:$0xf0] %v1606_v1  ;;  %2009 = vmatpush.msra.mxu3 %v1824_v60  ;;  %v1533_v23 = vpop.permute.xlu0 %1532  ;;  %v1812_v1 = vld [vmem:[#allocation2 + $0xf0] sm:$0xff] }
 0x2ab   : > { %v1543_v44 = vsel %vm1538_vm6, %v3304_v42, %v1533_v23  ;;  %v1544_v35 = vsel %vm1538_vm6, %v1533_v23, %v3326_v43  ;;  %v1883_v55 = vld [vmem:[#allocation2 + $0x2d8] sm:$0xff]  ;;  %1951 = vmatpush.msra.mxu0 %v1807_v17  ;;  %v1895_v42 = vld [vmem:[#allocation2 + $0x1e8] sm:$0xff] }
 0x2ac   : > { %1557 = vst [vmem:[#allocation2 + $0x20] sm:$0xf] %v1543_v44  ;;  %2010 = vmatpush.msra.mxu3 %v1817_v21  ;;  %2061 = vmatpush.msrb.mxu2 %v1883_v55 }
 0x2ad   : > { %v1287_v30 = vpop.permute.xlu2 %1286  ;;  %1558 = vst [vmem:[#allocation2 + $0xa8] sm:$0xf] %v1544_v35  ;;  %2172 = vmatpush.msk.msrb.mxu0 %vm1914_vm3, %v1902_v41 }
 0x2ae   : > { %v1297_v29 = vsel %vm1292_vm10, %v3360_v57, %v1287_v30  ;;  %v1298_v5 = vsel %vm1292_vm10, %v1287_v30, %v3373_v28  ;;  %2011 = vmatpush.msra.mxu3 %v1810_v47  ;;  %2165 = vmatmul.msk.f32.vlgmr.msra.gmra.mxu0 %vm554_vm5, %v3398_v53 }
 0x2af   : > { %1311 = vst [vmem:[#allocation2 + $0x150] sm:$0xf] %v1297_v29  ;;  %2019 = vmatpush.msrb.mxu0 %v1895_v42  ;;  %v1351_v43 = vpop.permute.xlu1 %1350  ;;  %2171 = vmatmul.msk.f32.vlgmr.msra.gmra.mxu3 %vm554_vm5, %v3398_v53 }
 0x2b0   : > { %1312 = vst [vmem:[#allocation2 + $0x248] sm:$0xf] %v1298_v5  ;;  %v1361_v24 = vsel %vm1354_vm11, %v1351_v43, %v1353_v45  ;;  %v1840_v45 = vld [vmem:[#allocation2 + $0x1c0] sm:$0xff] }
 0x2b1   : > { %1375 = vst [vmem:[#allocation2 + $0x2d0] sm:$0xf0] %v1361_v24 }
 0x2b2   : > { %v1291_v32 = vpop.permute.xlu0 %1290 }
 0x2b3   : > { %v1299_v22 = vsel %vm1292_vm10, %v3373_v28, %v1291_v32  ;;  %v1888_v63 = vld [vmem:[#allocation2 + $0x20] sm:$0xff]  ;;  %v1827_v28 = vld [vmem:[#allocation2 + $0x70] sm:$0xff] }
 0x2b4   : > { %1313 = vst [vmem:[#allocation2 + $0x2d0] sm:$0xf] %v1299_v22  ;;  %2020 = vmatpush.msrb.mxu0 %v1888_v63  ;;  %v1889_v49 = vld [vmem:[#allocation2 + $0xa8] sm:$0xff] }
 0x2b5   : > { %2040 = vmatpush.msrb.mxu1 %v1889_v49 }
 0x2b7   : > { %v1472_v8 = vpop.permute.xlu1 %1471 }
 0x2b8   : > { %v1482_v9 = vsel %vm1477_vm8, %v3339_v46, %v1472_v8  ;;  %v1483_v6 = vsel %vm1477_vm8, %v1472_v8, %v3375_v27  ;;  %v1905_v46 = vld [vmem:[%s3442_s2] sm:$0xf]  ;;  %v1868_v27 = vld [vmem:[#allocation2 + $0x1a0] sm:$0xff] }
 0x2b9   : > { %1496 = vst [vmem:[#allocation2 + $0x1f0] sm:$0xf0] %v1482_v9  ;;  %1908 = vperm.xlu1 %2217, %v1905_v46  }
 0x2ba   : > { %1497 = vst [vmem:[#allocation2 + $0x1c8] sm:$0xf0] %v1483_v6  ;;  %v1410_v16 = vpop.permute.xlu0 %1409 }
 0x2bb   : > { %v1420_v57 = vsel %vm1415_vm9, %v3328_v13, %v1410_v16  ;;  %v1421_v12 = vsel %vm1415_vm9, %v1410_v16, %v3355_v18  ;;  %v1876_v56 = vld [vmem:[#allocation2 + $0x2d0] sm:$0xff] }
 0x2bc   : > { %1434 = vst [vmem:[#allocation2 + $0x1f0] sm:$0xf] %v1420_v57  ;;  %2062 = vmatpush.msrb.mxu2 %v1876_v56 }
 0x2bd   : > { %1435 = vst [vmem:[#allocation2 + $0x1c8] sm:$0xf] %v1421_v12 }
 0x2be   : > { %2063 = vmatpush.msrb.mxu2 %v1869_v38 }
 0x2c0   : > { %2064 = vmatpush.msrb.mxu2 %v1862_v4 }
 0x2c2   : > { %2065 = vmatpush.msrb.mxu2 %v1855_v7  ;;  %v1349_v13 = vpop.permute.xlu0 %1348 }
 0x2c3   : > { %v1359_v18 = vsel %vm1354_vm11, %v3344_v31, %v1349_v13  ;;  %v1360_v20 = vsel %vm1354_vm11, %v1349_v13, %v1351_v43  ;;  %v1881_v10 = vld [vmem:[#allocation2 + $0x1f0] sm:$0xff] }
 0x2c4   : > { %1373 = vst [vmem:[#allocation2 + $0x150] sm:$0xf0] %v1359_v18  ;;  %2021 = vmatpush.msrb.mxu0 %v1881_v10  ;;  %v1882_v19 = vld [vmem:[#allocation2 + $0x1c8] sm:$0xff]  ;;  %2066 = vmatpush.msrb.mxu2 %v1848_v40 }
 0x2c5   : > { %1374 = vst [vmem:[#allocation2 + $0x248] sm:$0xf0] %v1360_v20  ;;  %2041 = vmatpush.msrb.mxu1 %v1882_v19 }
 0x2c6   : > { %2067 = vmatpush.msrb.mxu2 %v1841_v51 }
 0x2c8   : > { %2068 = vmatpush.msrb.mxu2 %v1834_v62 }
 0x2ca   : > { %2069 = vmatpush.msrb.mxu2 %v1827_v28 }
 0x2cb   : > { %v1874_v26 = vld [vmem:[#allocation2 + $0x150] sm:$0xff] }
 0x2cc   : > { %2022 = vmatpush.msrb.mxu0 %v1874_v26  ;;  %v1875_v31 = vld [vmem:[#allocation2 + $0x248] sm:$0xff]  ;;  %2070 = vmatpush.msrb.mxu2 %v1820_v36 }
 0x2cd   : > { %2042 = vmatpush.msrb.mxu1 %v1875_v31 }
 0x2ce   : > { %2023 = vmatpush.msrb.mxu0 %v1867_v14  ;;  %2071 = vmatpush.msrb.mxu2 %v1813_v58 }
 0x2cf   : > { %2043 = vmatpush.msrb.mxu1 %v1868_v27  ;;  %2177 = vmatmul.msk.f32.vlgmr.msrb.gmra.mxu2 %vm554_vm5, %v3398_v53 }
 0x2d0   : > { %2024 = vmatpush.msrb.mxu0 %v1860_v39 }
 0x2d1   : > { %2044 = vmatpush.msrb.mxu1 %v1861_v34 }
 0x2d2   : > { %2025 = vmatpush.msrb.mxu0 %v1853_v25 }
 0x2d3   : > { %2045 = vmatpush.msrb.mxu1 %v1854_v59 }
 0x2d4   : > { %2026 = vmatpush.msrb.mxu0 %v1846_v54 }
 0x2d5   : > { %2046 = vmatpush.msrb.mxu1 %v1847_v15 }
 0x2d6   : > { %2027 = vmatpush.msrb.mxu0 %v1839_v37 }
 0x2d7   : > { %2047 = vmatpush.msrb.mxu1 %v1840_v45 }
 0x2d8   : > { %2028 = vmatpush.msrb.mxu0 %v1832_v2 }
 0x2d9   : > { %2048 = vmatpush.msrb.mxu1 %v1833_v61 }
 0x2da   : > { %2029 = vmatpush.msrb.mxu0 %v1825_v3 }
 0x2db   : > { %2049 = vmatpush.msrb.mxu1 %v1826_v48 }
 0x2dc   : > { %2030 = vmatpush.msrb.mxu0 %v1818_v33 }
 0x2dd   : > { %2050 = vmatpush.msrb.mxu1 %v1819_v11 }
 0x2de   : > { %2031 = vmatpush.msrb.mxu0 %v1811_v50 }
 0x2df   : > { %2051 = vmatpush.msrb.mxu1 %v1812_v1  ;;  %2173 = vmatmul.msk.f32.vlgmr.msrb.gmra.mxu0 %vm554_vm5, %v3398_v53 }
 0x2e0   : > { %2175 = vmatmul.msk.f32.vlgmr.msrb.gmra.mxu1 %vm554_vm5, %v3398_v53 }
 0x30a   : > { %v1973_v52 = vpop.f32.mrf.mxu1 }
 0x30d   : > { %v1993_v35 = vpop.f32.mrf.mxu2 }
 0x32b   : > { %v1909_v60 = vpop.permute.xlu1 %1908  ;;  %v1953_v23 = vpop.f32.mrf.mxu0 }
 0x32c   : > { %v1954_v17 = vadd.f32 %v1953_v23, %v1909_v60  ;;  %v1974_v44 = vadd.f32 %v1973_v52, %v1909_v60  ;;  %v1994_v55 = vadd.f32 %v1993_v35, %v1909_v60 }
 0x32e   : > { %v2076_v41 = vmax.f32 %v1954_v17, 0.0  ;;  %v2077_v29 = vmax.f32 %v1974_v44, 0.0  ;;  %v2078_v5 = vmax.f32 %v1994_v55, 0.0 }
 0x330   : > { %v2089_v42 = vrot.slane %v2077_v29, 4 }
 0x332   : > { %v2013_v21 = vpop.f32.mrf.mxu3  ;;  %v2092_v24 = vsel %vm1914_vm3, %v2076_v41, %v2089_v42 }
 0x333   : > { %v2014_v30 = vadd.f32 %v2013_v21, %v1909_v60  ;;  %2098 = vst [vmem:[%s170_s26] sm:$0xff] %v2092_v24 }
 0x335   : > { %v2079_v47 = vmax.f32 %v2014_v30, 0.0 }
 0x337   : > { %v2090_v43 = vrot.slane %v2079_v47, 4 }
 0x339   : > { %v2093_v53 = vsel %vm1914_vm3, %v2078_v5, %v2090_v43 }
 0x33a   : > { %2099 = vst [vmem:[%s170_s26 + $0x8] sm:$0xff] %v2093_v53 }
 0x352   : > { %v2073_v32 = vpop.f32.mrf.mxu2 }
 0x353   : > { %v2074_v22 = vadd.f32 %v2073_v32, %v1909_v60 }
 0x355   : > { %v2082_v63 = vmax.f32 %v2074_v22, 0.0 }
 0x357   : > { %2101 = vst [vmem:[%s170_s26 + $0x18] sm:$0xf] %v2082_v63 }
 0x35c   : > { %v2033_v49 = vpop.f32.mrf.mxu0 }
 0x35d   : > { %v2053_v8 = vpop.f32.mrf.mxu1  ;;  %v2034_v9 = vadd.f32 %v2033_v49, %v1909_v60 }
 0x35e   : > { %v2054_v6 = vadd.f32 %v2053_v8, %v1909_v60 }
 0x35f   : > { %v2080_v57 = vmax.f32 %v2034_v9, 0.0 }
 0x360   : > { %v2081_v16 = vmax.f32 %v2054_v6, 0.0 }
 0x362   : > { %v2091_v12 = vrot.slane %v2081_v16, 4 }
 0x364   : > { %v2094_v56 = vsel %vm1914_vm3, %v2080_v57, %v2091_v12 }
 0x365   : > { %2100 = vst [vmem:[%s170_s26 + $0x10] sm:$0xff] %v2094_v56 }
 0x366 PF: > { %s13_s12 = sadd.s32 1, %s2225_s12  }
 0x367   : > { %p10_p4 = scmp.ge.s32.totalorder %s13_s12, 4  }
 0x369   :  { %12 = sbr.rel (!%p10_p4) target bundleno = 1 (0x1), region = 156 }

// kernel: up_forward.4
= control target key start
LH: loop header
LB: loop body
LE: loop exit
PB: predicated region body
PF: predicated region fallthrough
CT: control target
= control target key end

     0   :  { %s4157_s15 = smov 0   ;;  %s6385_s0 = inlined_call_operand.vmem [shape: f32[2,4,1200], index: 0, kind: input, shape index: {}]   ;;  %s6386_s1 = inlined_call_operand.vmem [shape: f32[2,4,1200], index: 1, kind: input, shape index: {}]   ;;  %s6387_s2 = inlined_call_operand.vmem [shape: f32[4,216], index: 2, kind: input, shape index: {}]   ;;  %s6388_s3 = inlined_call_operand.vmem [shape: f32[4,1], index: 3, kind: input, shape index: {}]   ;;  %s6389_s4 = inlined_call_operand.vmem [shape: f32[2,4,896], index: 4, kind: output, shape index: {}]  }
   0x1 LB: > { %s4041_s16 = sadd.s32 4294967295, %s4103_s15   ;;  %p4045_p0 = scmp.ge.s32.totalorder %s4103_s15, 1  ;;  %s4103_s15 = sphi %s4157_s15, %s14_s15  }
   0x2   : > { %p172_p1 = scmp.lt.s32.totalorder %s4103_s15, 3 }
   0x4   : > { %p173_p2 = pnand %p4045_p0, %p172_p1 }
   0x6   : > { %176 = sbr.rel (%p173_p2) target bundleno = 1428 (0x594), region = 36 }
   0xb   : > { %p203_p3 = scmp.lt.s32.totalorder %s4041_s16, 1  ;;  %s4105_s24 = smov 127   ;;  %vm330_vm0 = vcmask 1039360   ;;  %vm452_vm1 = vcmask 1031168   ;;  %vm574_vm2 = vcmask 965632   ;;  %vm696_vm3 = vcmask 957440  }
   0xc   : > { %s4106_s25 = smov 126   ;;  %s4107_s26 = smov 118   ;;  %vm818_vm4 = vcmask 949248   ;;  %vm940_vm5 = vcmask 883712   ;;  %vm1062_vm6 = vcmask 875520   ;;  %vm1184_vm7 = vcmask 867328  }
   0xd   : > { %s6397_s16 = smov (!%p203_p3, %s4041_s16), 1  ;;  %s4108_s27 = smov 117   ;;  %vm1306_vm8 = vcmask 228352   ;;  %vm1428_vm9 = vcmask 220160   ;;  %vm1550_vm10 = vcmask 211968   ;;  %vm1672_vm11 = vcmask 146432  }
   0xe   : > { %s4058_s17 = smul.u32 40, %s6397_s16  ;;  %s4109_s28 = smov 116   ;;  %vm1794_vm12 = vcmask 138240   ;;  %vm1916_vm13 = vcmask 130048   ;;  %vm2038_vm14 = vcmask 64512   ;;  %vm2160_vm15 = vcmask 56320  }
   0xf   : > { %s4110_s29 = smov 108   ;;  %s4111_s30 = smov 107  }
  0x10   : > { %s4171_s20 = scalar_lea.vmem %s6385_s0, %s4058_s17  ;;  %s4188_s23 = scalar_lea.vmem %s6386_s1, %s4058_s17 }
  0x11   : > { %v4174_v0 = vld [vmem:[%s4171_s20 + $0x10] sm:$0xff]  ;;  %v4177_v1 = vld [vmem:[%s4171_s20 + $0x8] sm:$0xff]  ;;  %v4181_v2 = vld [vmem:[%s4171_s20] sm:$0xff]  ;;  %s4112_s5 = smov 106   ;;  %s4113_s6 = smov 28  }
  0x12   : > { %230 = vst [vmem:[#allocation1 + $0x20] ss:$2 sm:$0xff] %v4174_v0  ;;  %v221_v3 = vld [vmem:[%s4171_s20 + $0x18] sm:$0xf]  ;;  %v4192_v4 = vld [vmem:[%s4188_s23 + $0x10] sm:$0xff]  ;;  %v4196_v8 = vld [vmem:[%s4188_s23 + $0x8] sm:$0xff] }
  0x13   : > { %228 = vst [vmem:[#allocation1 + $0x10] ss:$2 sm:$0xff] %v4177_v1  ;;  %v4200_v12 = vld [vmem:[%s4188_s23] sm:$0xff]  ;;  %v257_v20 = vld [vmem:[%s4188_s23 + $0x18] sm:$0xf]  ;;  %s4114_s7 = smov 27  }
  0x14   : > { %226 = vst [vmem:[#allocation1] ss:$2 sm:$0xff] %v4181_v2  ;;  %v4214_v27 = vld [vmem:[%s4171_s20 + $0x18] sm:$0xff]  ;;  %s4115_s8 = smov 26   ;;  %s4116_s9 = smov 18  }
  0x15   : > { %232 = vst [vmem:[#allocation1 + $0x30] ss:$2 sm:$0xff] %v221_v3  ;;  %v4222_v33 = vld [vmem:[%s4188_s23 + $0x18] sm:$0xff]  ;;  %s4117_s10 = smov 17   ;;  %s4118_s11 = smov 16  }
  0x16   : > { %s4119_s12 = smov 8   ;;  %s4120_s13 = smov 7  }
  0x17   : > { %s4121_s14 = smov 6   ;;  %s4122_s17 = smov 56  }
  0x18   : > { %s4123_s18 = smov 55   ;;  %s4124_s19 = smov 54  }
  0x19   : > { %v237_v5 = vld.sshfl [vmem:[#allocation1 + $0x20] sm:$0xff pattern:$0x75316420]  ;;  %v238_v6 = vld.sshfl [vmem:[#allocation1 + $0x28] sm:$0xff pattern:$0x75316420] }
  0x1a   : > { %267 = vst [vmem:[#allocation1 + $0x21] ss:$2 sm:$0xff] %v4192_v4  ;;  %v235_v7 = vld.sshfl [vmem:[#allocation1 + $0x10] sm:$0xff pattern:$0x75316420]  ;;  %s4125_s21 = smov 46  }
  0x1b   : > { %251 = vst [vmem:[#allocation2 + $0x450] sm:$0xf] %v237_v5  ;;  %v236_v9 = vld.sshfl [vmem:[#allocation1 + $0x18] sm:$0xff pattern:$0x75316420]  ;;  %s4126_s22 = smov 34  }
  0x1c   : > { %252 = vst [vmem:[#allocation2 + $0x328] sm:$0xf] %v238_v6  ;;  %v233_v10 = vld.sshfl [vmem:[#allocation1] sm:$0xff pattern:$0x75316420] }
  0x1d   : > { %265 = vst [vmem:[#allocation1 + $0x11] ss:$2 sm:$0xff] %v4196_v8  ;;  %v234_v11 = vld.sshfl [vmem:[#allocation1 + $0x8] sm:$0xff pattern:$0x75316420] }
  0x1e   : > { %249 = vst [vmem:[#allocation2 + $0x4d8] sm:$0xf] %v235_v7  ;;  %v239_v21 = vld.sshfl [vmem:[#allocation1 + $0x30] sm:$0xff pattern:$0x75316420] }
  0x1f   : > { %250 = vst [vmem:[#allocation2 + $0x18] sm:$0xf] %v236_v9 }
  0x20   : > { %263 = vst [vmem:[#allocation1 + $0x1] ss:$2 sm:$0xff] %v4200_v12 }
  0x21   : > { %v274_v13 = vld.sshfl [vmem:[#allocation1 + $0x20] sm:$0xff pattern:$0x75316420]  ;;  %v275_v14 = vld.sshfl [vmem:[#allocation1 + $0x28] sm:$0xff pattern:$0x75316420] }
  0x22   : > { %303 = vst [vmem:[#allocation1 + $0x20] ss:$2 sm:$0xff] %v4174_v0 }
  0x23   : > { %288 = vst [vmem:[#allocation2 + $0x450] sm:$0xf0] %v274_v13 }
  0x24   : > { %289 = vst [vmem:[#allocation2 + $0x328] sm:$0xf0] %v275_v14  ;;  %v272_v15 = vld.sshfl [vmem:[#allocation1 + $0x10] sm:$0xff pattern:$0x75316420] }
  0x25   : > { %v273_v16 = vld.sshfl [vmem:[#allocation1 + $0x18] sm:$0xff pattern:$0x75316420]  ;;  %286 = vst [vmem:[#allocation2 + $0x4d8] sm:$0xf0] %v272_v15 }
  0x26   : > { %301 = vst [vmem:[#allocation1 + $0x10] ss:$2 sm:$0xff] %v4177_v1 }
  0x27   : > { %287 = vst [vmem:[#allocation2 + $0x18] sm:$0xf0] %v273_v16  ;;  %v270_v17 = vld.sshfl [vmem:[#allocation1] sm:$0xff pattern:$0x75316420] }
  0x28   : > { %v271_v18 = vld.sshfl [vmem:[#allocation1 + $0x8] sm:$0xff pattern:$0x75316420]  ;;  %247 = vst [vmem:[#allocation2 + $0x2b0] sm:$0xf] %v233_v10 }
  0x29   : > { %v310_v19 = vld.sshfl [vmem:[#allocation1 + $0x20] sm:$0xff pattern:$0x75316420]  ;;  %299 = vst [vmem:[#allocation1] ss:$2 sm:$0xff] %v4181_v2 }
  0x2a   : > { %322 = vrot.lane.b32.xlu2 %v310_v19, %s4105_s24  ;;  %248 = vst [vmem:[#allocation2 + $0x3b0] sm:$0xf] %v234_v11  ;;  %v311_v23 = vld.sshfl [vmem:[#allocation1 + $0x28] sm:$0xff pattern:$0x75316420] }
  0x2b   : > { %284 = vst [vmem:[#allocation2 + $0x2b0] sm:$0xf0] %v270_v17 }
  0x2c   : > { %285 = vst [vmem:[#allocation2 + $0x3b0] sm:$0xf0] %v271_v18 }
  0x2d   : > { %v308_v22 = vld.sshfl [vmem:[#allocation1 + $0x10] sm:$0xff pattern:$0x75316420]  ;;  %269 = vst [vmem:[#allocation1 + $0x31] ss:$2 sm:$0xff] %v257_v20 }
  0x2e   : > { %318 = vrot.lane.b32.xlu1 %v308_v22, %s4105_s24  ;;  %253 = vst [vmem:[#allocation2 + $0x440] sm:$0xf] %v239_v21  ;;  %v309_v26 = vld.sshfl [vmem:[#allocation1 + $0x18] sm:$0xff pattern:$0x75316420] }
  0x2f   : > { %363 = vst [vmem:[#allocation1 + $0x11] ss:$2 sm:$0xff] %v4196_v8 }
  0x30   : > { %v306_v24 = vld.sshfl [vmem:[#allocation1] sm:$0xff pattern:$0x75316420]  ;;  %v307_v25 = vld.sshfl [vmem:[#allocation1 + $0x8] sm:$0xff pattern:$0x75316420] }
  0x31   : > { %314 = vrot.lane.b32.xlu0 %v306_v24, %s4105_s24  ;;  %361 = vst [vmem:[#allocation1 + $0x1] ss:$2 sm:$0xff] %v4200_v12 }
  0x32   : > { %324 = vrot.lane.b32.xlu2 %v311_v23, %s4105_s24  ;;  %365 = vst [vmem:[#allocation1 + $0x21] ss:$2 sm:$0xff] %v4192_v4 }
  0x34   : > { %v276_v28 = vld.sshfl [vmem:[#allocation1 + $0x30] sm:$0xff pattern:$0x75316420] }
  0x35   : > { %305 = vst [vmem:[#allocation1 + $0x30] ss:$2 sm:$0xff] %v4214_v27 }
  0x36   : > { %320 = vrot.lane.b32.xlu1 %v309_v26, %s4105_s24  ;;  %290 = vst [vmem:[#allocation2 + $0x440] sm:$0xf0] %v276_v28  ;;  %v370_v30 = vld.sshfl [vmem:[#allocation1 + $0x10] sm:$0xff pattern:$0x75316420] }
  0x37   : > { %v371_v32 = vld.sshfl [vmem:[#allocation1 + $0x18] sm:$0xff pattern:$0x75316420] }
  0x38   : > { %v368_v29 = vld.sshfl [vmem:[#allocation1] sm:$0xff pattern:$0x75316420]  ;;  %v369_v31 = vld.sshfl [vmem:[#allocation1 + $0x8] sm:$0xff pattern:$0x75316420] }
  0x39   : > { %316 = vrot.lane.b32.xlu0 %v307_v25, %s4105_s24  ;;  %421 = vst [vmem:[#allocation1] ss:$2 sm:$0xff] %v4181_v2  ;;  %v373_v34 = vld.sshfl [vmem:[#allocation1 + $0x28] sm:$0xff pattern:$0x75316420] }
  0x3a   : > { %376 = vrot.lane.b32.xlu2 %v368_v29, %s4105_s24  ;;  %423 = vst [vmem:[#allocation1 + $0x10] ss:$2 sm:$0xff] %v4177_v1  ;;  %v372_v37 = vld.sshfl [vmem:[#allocation1 + $0x20] sm:$0xff pattern:$0x75316420] }
  0x3b   : > { %425 = vst [vmem:[#allocation1 + $0x20] ss:$2 sm:$0xff] %v4174_v0 }
  0x3c   : > { %v313_v35 = vld.sshfl [vmem:[#allocation1 + $0x38] sm:$0xff pattern:$0x75316420]  ;;  %v312_v36 = vld.sshfl [vmem:[#allocation1 + $0x30] sm:$0xff pattern:$0x75316420] }
  0x3d   : > { %367 = vst [vmem:[#allocation1 + $0x31] ss:$2 sm:$0xff] %v4222_v33 }
  0x3e   : > { %328 = vrot.lane.b32.xlu1 %v313_v35, %s4105_s24 }
  0x40   : > { %v429_v40 = vld.sshfl [vmem:[#allocation1 + $0x8] sm:$0xff pattern:$0x75316420]  ;;  %v428_v41 = vld.sshfl [vmem:[#allocation1] sm:$0xff pattern:$0x75316420] }
  0x41   : > { %326 = vrot.lane.b32.xlu0 %v312_v36, %s4105_s24  ;;  %v430_v38 = vld.sshfl [vmem:[#allocation1 + $0x10] sm:$0xff pattern:$0x75316420]  ;;  %v431_v39 = vld.sshfl [vmem:[#allocation1 + $0x18] sm:$0xff pattern:$0x75316420] }
  0x42   : > { %382 = vrot.lane.b32.xlu2 %v371_v32, %s4105_s24  ;;  %485 = vst [vmem:[#allocation1 + $0x11] ss:$2 sm:$0xff] %v4196_v8  ;;  %v432_v44 = vld.sshfl [vmem:[#allocation1 + $0x20] sm:$0xff pattern:$0x75316420] }
  0x43   : > { %v433_v45 = vld.sshfl [vmem:[#allocation1 + $0x28] sm:$0xff pattern:$0x75316420]  ;;  %483 = vst [vmem:[#allocation1 + $0x1] ss:$2 sm:$0xff] %v4200_v12 }
  0x44   : > { %v374_v42 = vld.sshfl [vmem:[#allocation1 + $0x30] sm:$0xff pattern:$0x75316420]  ;;  %v375_v43 = vld.sshfl [vmem:[#allocation1 + $0x38] sm:$0xff pattern:$0x75316420] }
  0x45   : > { %427 = vst [vmem:[#allocation1 + $0x30] ss:$2 sm:$0xff] %v4214_v27 }
  0x46   : > { %380 = vrot.lane.b32.xlu1 %v370_v30, %s4105_s24  ;;  %487 = vst [vmem:[#allocation1 + $0x21] ss:$2 sm:$0xff] %v4192_v4 }
  0x49   : > { %378 = vrot.lane.b32.xlu0 %v369_v31, %s4105_s24  ;;  %v492_v52 = vld.sshfl [vmem:[#allocation1 + $0x10] sm:$0xff pattern:$0x75316420]  ;;  %v493_v53 = vld.sshfl [vmem:[#allocation1 + $0x18] sm:$0xff pattern:$0x75316420] }
  0x4a   : > { %388 = vrot.lane.b32.xlu2 %v374_v42, %s4105_s24  ;;  %v491_v48 = vld.sshfl [vmem:[#allocation1 + $0x8] sm:$0xff pattern:$0x75316420]  ;;  %v490_v49 = vld.sshfl [vmem:[#allocation1] sm:$0xff pattern:$0x75316420] }
  0x4b   : > { %543 = vst [vmem:[#allocation1] ss:$2 sm:$0xff] %v4181_v2 }
  0x4c   : > { %v435_v46 = vld.sshfl [vmem:[#allocation1 + $0x38] sm:$0xff pattern:$0x75316420]  ;;  %v434_v47 = vld.sshfl [vmem:[#allocation1 + $0x30] sm:$0xff pattern:$0x75316420] }
  0x4d   : > { %489 = vst [vmem:[#allocation1 + $0x31] ss:$2 sm:$0xff] %v4222_v33  ;;  %v495_v50 = vld.sshfl [vmem:[#allocation1 + $0x28] sm:$0xff pattern:$0x75316420] }
  0x4e   : > { %386 = vrot.lane.b32.xlu1 %v373_v34, %s4105_s24  ;;  %v494_v51 = vld.sshfl [vmem:[#allocation1 + $0x20] sm:$0xff pattern:$0x75316420]  ;;  %545 = vst [vmem:[#allocation1 + $0x10] ss:$2 sm:$0xff] %v4177_v1 }
  0x4f   : > { %547 = vst [vmem:[#allocation1 + $0x20] ss:$2 sm:$0xff] %v4174_v0 }
  0x51   : > { %384 = vrot.lane.b32.xlu0 %v372_v37, %s4105_s24 }
  0x52   : > { %438 = vrot.lane.b32.xlu2 %v429_v40, %s4106_s25  ;;  %v550_v56 = vld.sshfl [vmem:[#allocation1] sm:$0xff pattern:$0x75316420]  ;;  %v551_v57 = vld.sshfl [vmem:[#allocation1 + $0x8] sm:$0xff pattern:$0x75316420] }
  0x53   : > { %605 = vst [vmem:[#allocation1 + $0x1] ss:$2 sm:$0xff] %v4200_v12 }
  0x54   : > { %v497_v54 = vld.sshfl [vmem:[#allocation1 + $0x38] sm:$0xff pattern:$0x75316420]  ;;  %v496_v55 = vld.sshfl [vmem:[#allocation1 + $0x30] sm:$0xff pattern:$0x75316420] }
  0x55   : > { %549 = vst [vmem:[#allocation1 + $0x30] ss:$2 sm:$0xff] %v4214_v27  ;;  %v552_v58 = vld.sshfl [vmem:[#allocation1 + $0x10] sm:$0xff pattern:$0x75316420] }
  0x56   : > { %436 = vrot.lane.b32.xlu1 %v428_v41, %s4106_s25  ;;  %v553_v59 = vld.sshfl [vmem:[#allocation1 + $0x18] sm:$0xff pattern:$0x75316420]  ;;  %v555_v60 = vld.sshfl [vmem:[#allocation1 + $0x28] sm:$0xff pattern:$0x75316420] }
  0x57   : > { %607 = vst [vmem:[#allocation1 + $0x11] ss:$2 sm:$0xff] %v4196_v8  ;;  %v554_v61 = vld.sshfl [vmem:[#allocation1 + $0x20] sm:$0xff pattern:$0x75316420] }
  0x58   : > { %609 = vst [vmem:[#allocation1 + $0x21] ss:$2 sm:$0xff] %v4192_v4 }
  0x59   : > { %390 = vrot.lane.b32.xlu0 %v375_v43, %s4105_s24  ;;  %s4127_s24 = smov 45  }
  0x5a   : > { %444 = vrot.lane.b32.xlu2 %v432_v44, %s4106_s25  ;;  %v613_v3 = vld.sshfl [vmem:[#allocation1 + $0x8] sm:$0xff pattern:$0x75316420]  ;;  %v612_v5 = vld.sshfl [vmem:[#allocation1] sm:$0xff pattern:$0x75316420] }
  0x5b   : > { %665 = vst [vmem:[#allocation1] ss:$2 sm:$0xff] %v4181_v2 }
  0x5c   : > { %v556_v62 = vld.sshfl [vmem:[#allocation1 + $0x30] sm:$0xff pattern:$0x75316420]  ;;  %v557_v63 = vld.sshfl [vmem:[#allocation1 + $0x38] sm:$0xff pattern:$0x75316420] }
  0x5d   : > { %611 = vst [vmem:[#allocation1 + $0x31] ss:$2 sm:$0xff] %v4222_v33 }
  0x5e   : > { %442 = vrot.lane.b32.xlu1 %v431_v39, %s4106_s25  ;;  %v614_v6 = vld.sshfl [vmem:[#allocation1 + $0x10] sm:$0xff pattern:$0x75316420]  ;;  %v615_v7 = vld.sshfl [vmem:[#allocation1 + $0x18] sm:$0xff pattern:$0x75316420] }
  0x5f   : > { %667 = vst [vmem:[#allocation1 + $0x10] ss:$2 sm:$0xff] %v4177_v1  ;;  %v616_v9 = vld.sshfl [vmem:[#allocation1 + $0x20] sm:$0xff pattern:$0x75316420] }
  0x60   : > { %v617_v10 = vld.sshfl [vmem:[#allocation1 + $0x28] sm:$0xff pattern:$0x75316420] }
  0x61   : > { %440 = vrot.lane.b32.xlu0 %v430_v38, %s4106_s25  ;;  %669 = vst [vmem:[#allocation1 + $0x20] ss:$2 sm:$0xff] %v4174_v0 }
  0x62   : > { %450 = vrot.lane.b32.xlu2 %v435_v46, %s4106_s25  ;;  %v673_v17 = vld.sshfl [vmem:[#allocation1 + $0x8] sm:$0xff pattern:$0x75316420]  ;;  %v672_v18 = vld.sshfl [vmem:[#allocation1] sm:$0xff pattern:$0x75316420] }
  0x63   : > { %727 = vst [vmem:[#allocation1 + $0x1] ss:$2 sm:$0xff] %v4200_v12 }
  0x64   : > { %v619_v13 = vld.sshfl [vmem:[#allocation1 + $0x38] sm:$0xff pattern:$0x75316420]  ;;  %v618_v14 = vld.sshfl [vmem:[#allocation1 + $0x30] sm:$0xff pattern:$0x75316420] }
  0x65   : > { %671 = vst [vmem:[#allocation1 + $0x30] ss:$2 sm:$0xff] %v4214_v27 }
  0x66   : > { %448 = vrot.lane.b32.xlu1 %v434_v47, %s4106_s25  ;;  %v674_v20 = vld.sshfl [vmem:[#allocation1 + $0x10] sm:$0xff pattern:$0x75316420]  ;;  %v675_v23 = vld.sshfl [vmem:[#allocation1 + $0x18] sm:$0xff pattern:$0x75316420] }
  0x67   : > { %729 = vst [vmem:[#allocation1 + $0x11] ss:$2 sm:$0xff] %v4196_v8 }
  0x68   : > { %v677_v21 = vld.sshfl [vmem:[#allocation1 + $0x28] sm:$0xff pattern:$0x75316420]  ;;  %v676_v22 = vld.sshfl [vmem:[#allocation1 + $0x20] sm:$0xff pattern:$0x75316420] }
  0x69   : > { %446 = vrot.lane.b32.xlu0 %v433_v45, %s4106_s25  ;;  %731 = vst [vmem:[#allocation1 + $0x21] ss:$2 sm:$0xff] %v4192_v4 }
  0x6a   : > { %502 = vrot.lane.b32.xlu2 %v492_v52, %s4106_s25  ;;  %v734_v31 = vld.sshfl [vmem:[#allocation1] sm:$0xff pattern:$0x75316420]  ;;  %v4296_v32 = vld.sshfl [vmem:[#allocation1 + $0x8] sm:$0xff pattern:$0x75316420] }
  0x6b   : > { %787 = vst [vmem:[#allocation1] ss:$2 sm:$0xff] %v4181_v2 }
  0x6c   : > { %v679_v25 = vld.sshfl [vmem:[#allocation1 + $0x38] sm:$0xff pattern:$0x75316420]  ;;  %v678_v26 = vld.sshfl [vmem:[#allocation1 + $0x30] sm:$0xff pattern:$0x75316420] }
  0x6d   : > { %733 = vst [vmem:[#allocation1 + $0x31] ss:$2 sm:$0xff] %v4222_v33 }
  0x6e   : > { %500 = vrot.lane.b32.xlu1 %v491_v48, %s4106_s25  ;;  %v736_v37 = vld.sshfl [vmem:[#allocation1 + $0x10] sm:$0xff pattern:$0x75316420]  ;;  %v737_v39 = vld.sshfl [vmem:[#allocation1 + $0x18] sm:$0xff pattern:$0x75316420] }
  0x6f   : > { %789 = vst [vmem:[#allocation1 + $0x10] ss:$2 sm:$0xff] %v4177_v1 }
  0x70   : > { %v4308_v43 = vld.sshfl [vmem:[#allocation1 + $0x28] sm:$0xff pattern:$0x75316420]  ;;  %v4311_v44 = vld.sshfl [vmem:[#allocation1 + $0x20] sm:$0xff pattern:$0x75316420] }
  0x71   : > { %498 = vrot.lane.b32.xlu0 %v490_v49, %s4106_s25  ;;  %791 = vst [vmem:[#allocation1 + $0x20] ss:$2 sm:$0xff] %v4174_v0 }
  0x72   : > { %508 = vrot.lane.b32.xlu2 %v495_v50, %s4106_s25 }
  0x74   : > { %v740_v50 = vld.sshfl [vmem:[#allocation1 + $0x30] sm:$0xff pattern:$0x75316420] }
  0x76   : > { %506 = vrot.lane.b32.xlu1 %v494_v51, %s4106_s25  ;;  %v4321_v51 = vld.sshfl [vmem:[#allocation1 + $0x38] sm:$0xff pattern:$0x75316420] }
  0x77   : > { %793 = vst [vmem:[#allocation1 + $0x30] ss:$2 sm:$0xff] %v4214_v27 }
  0x79   : > { %504 = vrot.lane.b32.xlu0 %v493_v53, %s4106_s25 }
  0x7a   : > { %558 = vrot.lane.b32.xlu2 %v550_v56, %s4107_s26 }
  0x7e   : > { %512 = vrot.lane.b32.xlu1 %v497_v54, %s4106_s25  ;;  %v795_v54 = vld.sshfl [vmem:[#allocation1 + $0x8] sm:$0xff pattern:$0x75316420] }
  0x81   : > { %510 = vrot.lane.b32.xlu0 %v496_v55, %s4106_s25  ;;  %v794_v55 = vld.sshfl [vmem:[#allocation1] sm:$0xff pattern:$0x75316420]  ;;  %s4128_s25 = smov 35  }
  0x82   : > { %564 = vrot.lane.b32.xlu2 %v553_v59, %s4107_s26  ;;  %849 = vst [vmem:[#allocation1 + $0x1] ss:$2 sm:$0xff] %v4200_v12 }
  0x84   : > { %v323_v11 = vpop.permute.xlu2 %322 }
  0x86   : > { %562 = vrot.lane.b32.xlu1 %v552_v58, %s4107_s26 }
  0x89   : > { %560 = vrot.lane.b32.xlu0 %v551_v57, %s4107_s26 }
  0x8a   : > { %570 = vrot.lane.b32.xlu2 %v556_v62, %s4107_s26  ;;  %v4336_v62 = vld.sshfl [vmem:[#allocation1 + $0x10] sm:$0xff pattern:$0x75316420] }
  0x8c   : > { %v325_v15 = vpop.permute.xlu2 %324 }
  0x8d   : > { %v335_v16 = vsel %vm330_vm0, %v323_v11, %v325_v15 }
  0x8e   : > { %568 = vrot.lane.b32.xlu1 %v555_v60, %s4107_s26  ;;  %349 = vst [vmem:[#allocation2 + $0x318] sm:$0xf] %v335_v16 }
  0x91   : > { %566 = vrot.lane.b32.xlu0 %v554_v61, %s4107_s26 }
  0x92   : > { %622 = vrot.lane.b32.xlu2 %v613_v3, %s4107_s26 }
  0x94   : > { %v4280_v19 = vpop.permute.xlu2 %376 }
  0x96   : > { %620 = vrot.lane.b32.xlu1 %v612_v5, %s4107_s26 }
  0x99   : > { %572 = vrot.lane.b32.xlu0 %v557_v63, %s4107_s26  ;;  %v797_v63 = vld.sshfl [vmem:[#allocation1 + $0x18] sm:$0xff pattern:$0x75316420] }
  0x9a   : > { %628 = vrot.lane.b32.xlu2 %v616_v9, %s4107_s26  ;;  %851 = vst [vmem:[#allocation1 + $0x11] ss:$2 sm:$0xff] %v4196_v8  ;;  %v798_v9 = vld.sshfl [vmem:[#allocation1 + $0x20] sm:$0xff pattern:$0x75316420] }
  0x9c   : > { %v4287_v24 = vpop.permute.xlu2 %382 }
  0x9e   : > { %626 = vrot.lane.b32.xlu1 %v615_v7, %s4107_s26 }
  0xa0   : > { %v319_v28 = vpop.permute.xlu1 %318 }
  0xa1   : > { %624 = vrot.lane.b32.xlu0 %v614_v6, %s4107_s26 }
  0xa2   : > { %634 = vrot.lane.b32.xlu2 %v619_v13, %s4107_s26 }
  0xa3   : > { %v315_v29 = vpop.permute.xlu0 %314 }
  0xa4   : > { %v4293_v30 = vpop.permute.xlu2 %388 }
  0xa6   : > { %632 = vrot.lane.b32.xlu1 %v618_v14, %s4107_s26  ;;  %v801_v14 = vld.sshfl [vmem:[#allocation1 + $0x38] sm:$0xff pattern:$0x75316420] }
  0xa8   : > { %v321_v34 = vpop.permute.xlu1 %320 }
  0xa9   : > { %630 = vrot.lane.b32.xlu0 %v617_v10, %s4107_s26  ;;  %v333_v35 = vsel %vm330_vm0, %v319_v28, %v321_v34  ;;  %v334_v36 = vsel %vm330_vm0, %v321_v34, %v323_v11  ;;  %v4346_v10 = vld.sshfl [vmem:[#allocation1 + $0x28] sm:$0xff pattern:$0x75316420]  ;;  %s4129_s26 = smov 36  }
  0xaa   : > { %347 = vst [vmem:[#allocation2 + $0x510] sm:$0xf] %v333_v35  ;;  %684 = vrot.lane.b32.xlu2 %v674_v20, %s4108_s27  ;;  %v4363_v20 = vld.sshfl [vmem:[#allocation1] sm:$0xff pattern:$0x75316420] }
  0xab   : > { %348 = vst [vmem:[#allocation2 + $0x490] sm:$0xf] %v334_v36  ;;  %v317_v38 = vpop.permute.xlu0 %316 }
  0xac   : > { %v331_v40 = vsel %vm330_vm0, %v315_v29, %v317_v38  ;;  %v332_v41 = vsel %vm330_vm0, %v317_v38, %v319_v28  ;;  %v4305_v42 = vpop.permute.xlu2 %438  ;;  %853 = vst [vmem:[#allocation1 + $0x21] ss:$2 sm:$0xff] %v4192_v4  ;;  %v858_v28 = vld.sshfl [vmem:[#allocation1 + $0x10] sm:$0xff pattern:$0x75316420] }
  0xad   : > { %345 = vst [vmem:[#allocation2 + $0x378] sm:$0xf] %v331_v40 }
  0xae   : > { %346 = vst [vmem:[#allocation2 + $0x108] sm:$0xf] %v332_v41  ;;  %682 = vrot.lane.b32.xlu1 %v673_v17, %s4108_s27 }
  0xb0   : > { %v329_v45 = vpop.permute.xlu1 %328 }
  0xb1   : > { %680 = vrot.lane.b32.xlu0 %v672_v18, %s4108_s27 }
  0xb2   : > { %690 = vrot.lane.b32.xlu2 %v677_v21, %s4108_s27 }
  0xb3   : > { %v327_v46 = vpop.permute.xlu0 %326  ;;  %v861_v29 = vld.sshfl [vmem:[#allocation1 + $0x28] sm:$0xff pattern:$0x75316420] }
  0xb4   : > { %v336_v47 = vsel %vm330_vm0, %v325_v15, %v327_v46  ;;  %v337_v48 = vsel %vm330_vm0, %v327_v46, %v329_v45  ;;  %v4318_v49 = vpop.permute.xlu2 %444  ;;  %v800_v15 = vld.sshfl [vmem:[#allocation1 + $0x30] sm:$0xff pattern:$0x75316420] }
  0xb5   : > { %350 = vst [vmem:[#allocation2 + $0x548] sm:$0xf] %v336_v47 }
  0xb6   : > { %351 = vst [vmem:[#allocation2 + $0x500] sm:$0xf] %v337_v48  ;;  %688 = vrot.lane.b32.xlu1 %v676_v22, %s4108_s27 }
  0xb7   : > { %855 = vst [vmem:[#allocation1 + $0x31] ss:$2 sm:$0xff] %v4222_v33 }
  0xb8   : > { %v381_v52 = vpop.permute.xlu1 %380 }
  0xb9   : > { %686 = vrot.lane.b32.xlu0 %v675_v23, %s4108_s27  ;;  %v394_v53 = vsel %vm330_vm0, %v381_v52, %v4287_v24 }
  0xba   : > { %408 = vst [vmem:[#allocation2 + $0x510] sm:$0xf0] %v394_v53  ;;  %742 = vrot.lane.b32.xlu2 %v734_v31, %s4108_s27 }
  0xbb   : > { %v379_v56 = vpop.permute.xlu0 %378 }
  0xbc   : > { %v392_v57 = vsel %vm330_vm0, %v4280_v19, %v379_v56  ;;  %v393_v58 = vsel %vm330_vm0, %v379_v56, %v381_v52  ;;  %v451_v59 = vpop.permute.xlu2 %450  ;;  %v4361_v19 = vld.sshfl [vmem:[#allocation1 + $0x8] sm:$0xff pattern:$0x75316420] }
  0xbd   : > { %406 = vst [vmem:[#allocation2 + $0x378] sm:$0xf0] %v392_v57 }
  0xbe   : > { %407 = vst [vmem:[#allocation2 + $0x108] sm:$0xf0] %v393_v58  ;;  %694 = vrot.lane.b32.xlu1 %v679_v25, %s4108_s27  ;;  %v4391_v40 = vld.sshfl [vmem:[#allocation1 + $0x30] sm:$0xff pattern:$0x75316420] }
  0xbf   : > { %909 = vst [vmem:[#allocation1] ss:$2 sm:$0xff] %v4181_v2 }
  0xc0   : > { %v387_v60 = vpop.permute.xlu1 %386 }
  0xc1   : > { %692 = vrot.lane.b32.xlu0 %v678_v26, %s4108_s27  ;;  %v397_v61 = vsel %vm330_vm0, %v387_v60, %v4293_v30 }
  0xc2   : > { %411 = vst [vmem:[#allocation2 + $0x548] sm:$0xf0] %v397_v61  ;;  %748 = vrot.lane.b32.xlu2 %v737_v39, %s4108_s27  ;;  %v863_v39 = vld.sshfl [vmem:[#allocation1 + $0x38] sm:$0xff pattern:$0x75316420] }
  0xc3   : > { %v385_v3 = vpop.permute.xlu0 %384  ;;  %915 = vst [vmem:[#allocation1 + $0x30] ss:$2 sm:$0xff] %v4214_v27 }
  0xc4   : > { %v395_v5 = vsel %vm330_vm0, %v4287_v24, %v385_v3  ;;  %v396_v6 = vsel %vm330_vm0, %v385_v3, %v387_v60  ;;  %v4343_v7 = vpop.permute.xlu2 %502 }
  0xc5   : > { %409 = vst [vmem:[#allocation2 + $0x490] sm:$0xf0] %v395_v5 }
  0xc6   : > { %410 = vst [vmem:[#allocation2 + $0x318] sm:$0xf0] %v396_v6  ;;  %746 = vrot.lane.b32.xlu1 %v736_v37, %s4108_s27  ;;  %v916_v46 = vld.sshfl [vmem:[#allocation1] sm:$0xff pattern:$0x75316420] }
  0xc7   : > { %v4403_v47 = vld.sshfl [vmem:[#allocation1 + $0x8] sm:$0xff pattern:$0x75316420] }
  0xc8   : > { %v437_v11 = vpop.permute.xlu1 %436  ;;  %971 = vst [vmem:[#allocation1 + $0x1] ss:$2 sm:$0xff] %v4200_v12 }
  0xc9   : > { %744 = vrot.lane.b32.xlu0 %v4296_v32, %s4108_s27  ;;  %v453_v13 = vsel %vm452_vm1, %v437_v11, %v4305_v42  ;;  %v860_v32 = vld.sshfl [vmem:[#allocation1 + $0x20] sm:$0xff pattern:$0x75316420] }
  0xca   : > { %467 = vst [vmem:[#allocation2 + $0x58] sm:$0xf] %v453_v13  ;;  %754 = vrot.lane.b32.xlu2 %v740_v50, %s4108_s27 }
  0xcb   : > { %v391_v16 = vpop.permute.xlu0 %390  ;;  %913 = vst [vmem:[#allocation1 + $0x20] ss:$2 sm:$0xff] %v4174_v0 }
  0xcc   : > { %v398_v17 = vsel %vm330_vm0, %v4293_v30, %v391_v16  ;;  %v4357_v18 = vpop.permute.xlu2 %508  ;;  %v4377_v30 = vld.sshfl [vmem:[#allocation1 + $0x18] sm:$0xff pattern:$0x75316420]  ;;  %vm2282_vm0 = vcmask 48128  }
  0xcd   : > { %412 = vst [vmem:[#allocation2 + $0x500] sm:$0xf0] %v398_v17 }
  0xce   : > { %752 = vrot.lane.b32.xlu1 %v4308_v43, %s4108_s27  ;;  %911 = vst [vmem:[#allocation1 + $0x10] ss:$2 sm:$0xff] %v4177_v1 }
  0xcf   : > { %v979_v5 = vld.sshfl [vmem:[#allocation1 + $0x8] sm:$0xff pattern:$0x75316420]  ;;  %v978_v6 = vld.sshfl [vmem:[#allocation1] sm:$0xff pattern:$0x75316420] }
  0xd0   : > { %v443_v21 = vpop.permute.xlu1 %442  ;;  %1031 = vst [vmem:[#allocation1] ss:$2 sm:$0xff] %v4181_v2 }
  0xd1   : > { %750 = vrot.lane.b32.xlu0 %v4311_v44, %s4108_s27  ;;  %v456_v22 = vsel %vm452_vm1, %v443_v21, %v4318_v49 }
  0xd2   : > { %470 = vst [vmem:[#allocation2 + $0x590] sm:$0xf] %v456_v22  ;;  %804 = vrot.lane.b32.xlu2 %v795_v54, %s4109_s28  ;;  %v4417_v56 = vld.sshfl [vmem:[#allocation1 + $0x28] sm:$0xff pattern:$0x75316420] }
  0xd3   : > { %v441_v23 = vpop.permute.xlu0 %440  ;;  %v4421_v57 = vld.sshfl [vmem:[#allocation1 + $0x20] sm:$0xff pattern:$0x75316420] }
  0xd4   : > { %v454_v24 = vsel %vm452_vm1, %v4305_v42, %v441_v23  ;;  %v455_v25 = vsel %vm452_vm1, %v441_v23, %v443_v21  ;;  %v4374_v26 = vpop.permute.xlu2 %558  ;;  %975 = vst [vmem:[#allocation1 + $0x21] ss:$2 sm:$0xff] %v4192_v4  ;;  %v4433_v4 = vld.sshfl [vmem:[#allocation1 + $0x38] sm:$0xff pattern:$0x75316420] }
  0xd5   : > { %468 = vst [vmem:[#allocation2 + $0x2b8] sm:$0xf] %v454_v24  ;;  %v918_v50 = vld.sshfl [vmem:[#allocation1 + $0x10] sm:$0xff pattern:$0x75316420] }
  0xd6   : > { %469 = vst [vmem:[#allocation2 + $0x580] sm:$0xf] %v455_v25  ;;  %802 = vrot.lane.b32.xlu1 %v794_v55, %s4109_s28 }
  0xd8   : > { %v449_v31 = vpop.permute.xlu1 %448 }
  0xd9   : > { %756 = vrot.lane.b32.xlu0 %v4321_v51, %s4108_s27  ;;  %v459_v34 = vsel %vm452_vm1, %v449_v31, %v451_v59  ;;  %v919_v51 = vld.sshfl [vmem:[#allocation1 + $0x18] sm:$0xff pattern:$0x75316420]  ;;  %s4130_s27 = smov 44  }
  0xda   : > { %473 = vst [vmem:[#allocation2 + $0x330] sm:$0xf] %v459_v34  ;;  %810 = vrot.lane.b32.xlu2 %v798_v9, %s4109_s28 }
  0xdb   : > { %v447_v35 = vpop.permute.xlu0 %446  ;;  %973 = vst [vmem:[#allocation1 + $0x11] ss:$2 sm:$0xff] %v4196_v8  ;;  %v983_v21 = vld.sshfl [vmem:[#allocation1 + $0x28] sm:$0xff pattern:$0x75316420] }
  0xdc   : > { %v457_v36 = vsel %vm452_vm1, %v4318_v49, %v447_v35  ;;  %v458_v37 = vsel %vm452_vm1, %v447_v35, %v449_v31  ;;  %v4388_v38 = vpop.permute.xlu2 %564 }
  0xdd   : > { %471 = vst [vmem:[#allocation2 + $0x540] sm:$0xf] %v457_v36 }
  0xde   : > { %472 = vst [vmem:[#allocation2 + $0x3c0] sm:$0xf] %v458_v37  ;;  %808 = vrot.lane.b32.xlu1 %v797_v63, %s4109_s28 }
  0xe0   : > { %v501_v41 = vpop.permute.xlu1 %500 }
  0xe1   : > { %806 = vrot.lane.b32.xlu0 %v4336_v62, %s4109_s28  ;;  %v515_v42 = vsel %vm452_vm1, %v501_v41, %v4343_v7  ;;  %v922_v62 = vld.sshfl [vmem:[#allocation1 + $0x30] sm:$0xff pattern:$0x75316420] }
  0xe2   : > { %529 = vst [vmem:[#allocation2 + $0x2b8] sm:$0xf0] %v515_v42  ;;  %816 = vrot.lane.b32.xlu2 %v801_v14, %s4109_s28  ;;  %v981_v2 = vld.sshfl [vmem:[#allocation1 + $0x18] sm:$0xff pattern:$0x75316420] }
  0xe3   : > { %v499_v43 = vpop.permute.xlu0 %498  ;;  %977 = vst [vmem:[#allocation1 + $0x31] ss:$2 sm:$0xff] %v4222_v33 }
  0xe4   : > { %v514_v44 = vsel %vm452_vm1, %v499_v43, %v501_v41  ;;  %v4400_v45 = vpop.permute.xlu2 %570 }
  0xe5   : > { %528 = vst [vmem:[#allocation2 + $0x58] sm:$0xf0] %v514_v44 }
  0xe6   : > { %814 = vrot.lane.b32.xlu1 %v800_v15, %s4109_s28  ;;  %v980_v15 = vld.sshfl [vmem:[#allocation1 + $0x10] sm:$0xff pattern:$0x75316420] }
  0xe7   : > { %1033 = vst [vmem:[#allocation1 + $0x10] ss:$2 sm:$0xff] %v4177_v1 }
  0xe8   : > { %v507_v48 = vpop.permute.xlu1 %506 }
  0xe9   : > { %812 = vrot.lane.b32.xlu0 %v4346_v10, %s4109_s28  ;;  %v518_v49 = vsel %vm452_vm1, %v507_v48, %v4357_v18 }
  0xea   : > { %532 = vst [vmem:[#allocation2 + $0x540] sm:$0xf0] %v518_v49  ;;  %868 = vrot.lane.b32.xlu2 %v858_v28, %s4109_s28  ;;  %v985_v23 = vld.sshfl [vmem:[#allocation1 + $0x38] sm:$0xff pattern:$0x75316420] }
  0xeb   : > { %v505_v52 = vpop.permute.xlu0 %504  ;;  %v984_v24 = vld.sshfl [vmem:[#allocation1 + $0x30] sm:$0xff pattern:$0x75316420] }
  0xec   : > { %v516_v53 = vsel %vm452_vm1, %v4343_v7, %v505_v52  ;;  %v517_v54 = vsel %vm452_vm1, %v505_v52, %v507_v48  ;;  %v4415_v55 = vpop.permute.xlu2 %622  ;;  %1037 = vst [vmem:[#allocation1 + $0x30] ss:$2 sm:$0xff] %v4214_v27 }
  0xed   : > { %530 = vst [vmem:[#allocation2 + $0x580] sm:$0xf0] %v516_v53  ;;  %v4514_v53 = vld [vmem:[%s4188_s23 + $0x10] sm:$0xff] }
  0xee   : > { %531 = vst [vmem:[#allocation2 + $0x590] sm:$0xf0] %v517_v54  ;;  %866 = vrot.lane.b32.xlu1 %v4361_v19, %s4109_s28 }
  0xf0   : > { %v513_v58 = vpop.permute.xlu1 %512 }
  0xf1   : > { %864 = vrot.lane.b32.xlu0 %v4363_v20, %s4109_s28  ;;  %v982_v20 = vld.sshfl [vmem:[#allocation1 + $0x20] sm:$0xff pattern:$0x75316420] }
  0xf2   : > { %874 = vrot.lane.b32.xlu2 %v861_v29, %s4109_s28  ;;  %1035 = vst [vmem:[#allocation1 + $0x20] ss:$2 sm:$0xff] %v4174_v0  ;;  %v1039_v0 = vld.sshfl [vmem:[#allocation1 + $0x8] sm:$0xff pattern:$0x75316420] }
  0xf3   : > { %v511_v8 = vpop.permute.xlu0 %510  ;;  %v1038_v29 = vld.sshfl [vmem:[#allocation1] sm:$0xff pattern:$0x75316420]  ;;  %v4493_v41 = vld.sshfl [vmem:[#allocation1 + $0x38] sm:$0xff pattern:$0x75316420] }
  0xf4   : > { %v519_v59 = vsel %vm452_vm1, %v4357_v18, %v511_v8  ;;  %v520_v60 = vsel %vm452_vm1, %v511_v8, %v513_v58  ;;  %v4430_v61 = vpop.permute.xlu2 %628  ;;  %1093 = vst [vmem:[#allocation1 + $0x1] ss:$2 sm:$0xff] %v4200_v12  ;;  %v4495_v42 = vld.sshfl [vmem:[#allocation1 + $0x30] sm:$0xff pattern:$0x75316420]  ;;  %vm2404_vm1 = vcmask 457728  }
  0xf5   : > { %533 = vst [vmem:[#allocation2 + $0x3c0] sm:$0xf0] %v519_v59  ;;  %v4526_v59 = vld [vmem:[%s4171_s20] sm:$0xff] }
  0xf6   : > { %534 = vst [vmem:[#allocation2 + $0x330] sm:$0xf0] %v520_v60  ;;  %872 = vrot.lane.b32.xlu1 %v860_v32, %s4109_s28 }
  0xf7   : > { %1099 = vst [vmem:[#allocation1 + $0x31] ss:$2 sm:$0xff] %v4222_v33 }
  0xf8   : > { %v563_v63 = vpop.permute.xlu1 %562 }
  0xf9   : > { %870 = vrot.lane.b32.xlu0 %v4377_v30, %s4109_s28  ;;  %v577_v3 = vsel %vm574_vm2, %v563_v63, %v4388_v38  ;;  %v1043_v52 = vld.sshfl [vmem:[#allocation1 + $0x28] sm:$0xff pattern:$0x75316420]  ;;  %v1042_v54 = vld.sshfl [vmem:[#allocation1 + $0x20] sm:$0xff pattern:$0x75316420] }
  0xfa   : > { %591 = vst [vmem:[#allocation2 + $0x188] sm:$0xf] %v577_v3  ;;  %924 = vrot.lane.b32.xlu2 %v916_v46, %s4110_s29  ;;  %v4502_v46 = vld [vmem:[%s4188_s23 + $0x8] sm:$0xff] }
  0xfb   : > { %v561_v7 = vpop.permute.xlu0 %560  ;;  %1097 = vst [vmem:[#allocation1 + $0x21] ss:$2 sm:$0xff] %v4514_v53  ;;  %v1100_v60 = vld.sshfl [vmem:[#allocation1] sm:$0xff pattern:$0x75316420] }
  0xfc   : > { %v575_v9 = vsel %vm574_vm2, %v4374_v26, %v561_v7  ;;  %v576_v10 = vsel %vm574_vm2, %v561_v7, %v563_v63  ;;  %v635_v11 = vpop.permute.xlu2 %634 }
  0xfd   : > { %589 = vst [vmem:[#allocation2 + $0x100] sm:$0xf] %v575_v9 }
  0xfe   : > { %590 = vst [vmem:[#allocation2 + $0x8] sm:$0xf] %v576_v10  ;;  %878 = vrot.lane.b32.xlu1 %v863_v39, %s4109_s28  ;;  %v4540_v10 = vld [vmem:[%s4171_s20 + $0x8] sm:$0xff] }
 0x100   : > { %v569_v13 = vpop.permute.xlu1 %568 }
 0x101   : > { %876 = vrot.lane.b32.xlu0 %v4391_v40, %s4109_s28  ;;  %v580_v14 = vsel %vm574_vm2, %v569_v13, %v4400_v45 }
 0x102   : > { %594 = vst [vmem:[#allocation2 + $0x388] sm:$0xf] %v580_v14  ;;  %930 = vrot.lane.b32.xlu2 %v919_v51, %s4110_s29 }
 0x103   : > { %v567_v16 = vpop.permute.xlu0 %566 }
 0x104   : > { %v578_v17 = vsel %vm574_vm2, %v4388_v38, %v567_v16  ;;  %v579_v18 = vsel %vm574_vm2, %v567_v16, %v569_v13  ;;  %v4455_v19 = vpop.permute.xlu2 %684  ;;  %v1105_v13 = vld.sshfl [vmem:[#allocation1 + $0x28] sm:$0xff pattern:$0x75316420] }
 0x105   : > { %592 = vst [vmem:[#allocation2 + $0x248] sm:$0xf] %v578_v17 }
 0x106   : > { %593 = vst [vmem:[#allocation2 + $0xc8] sm:$0xf] %v579_v18  ;;  %928 = vrot.lane.b32.xlu1 %v918_v50, %s4110_s29 }
 0x108   : > { %v621_v22 = vpop.permute.xlu1 %620 }
 0x109   : > { %926 = vrot.lane.b32.xlu0 %v4403_v47, %s4110_s29  ;;  %v636_v1 = vsel %vm574_vm2, %v621_v22, %v4415_v55  ;;  %v1041_v47 = vld.sshfl [vmem:[#allocation1 + $0x18] sm:$0xff pattern:$0x75316420]  ;;  %v1106_v22 = vld.sshfl [vmem:[#allocation1 + $0x30] sm:$0xff pattern:$0x75316420] }
 0x10a   : > { %650 = vst [vmem:[#allocation2 + $0x100] sm:$0xf0] %v636_v1  ;;  %936 = vrot.lane.b32.xlu2 %v922_v62, %s4110_s29  ;;  %v1107_v1 = vld.sshfl [vmem:[#allocation1 + $0x38] sm:$0xff pattern:$0x75316420] }
 0x10b   : > { %v573_v25 = vpop.permute.xlu0 %572 }
 0x10c   : > { %v581_v26 = vsel %vm574_vm2, %v4400_v45, %v573_v25  ;;  %v4467_v28 = vpop.permute.xlu2 %690  ;;  %v1040_v45 = vld.sshfl [vmem:[#allocation1 + $0x10] sm:$0xff pattern:$0x75316420] }
 0x10d   : > { %595 = vst [vmem:[#allocation2 + $0x520] sm:$0xf] %v581_v26 }
 0x10e   : > { %934 = vrot.lane.b32.xlu1 %v4417_v56, %s4110_s29  ;;  %1095 = vst [vmem:[#allocation1 + $0x11] ss:$2 sm:$0xff] %v4502_v46 }
 0x110   : > { %v627_v30 = vpop.permute.xlu1 %626 }
 0x111   : > { %932 = vrot.lane.b32.xlu0 %v4421_v57, %s4110_s29  ;;  %v639_v27 = vsel %vm574_vm2, %v627_v30, %v4430_v61 }
 0x112   : > { %653 = vst [vmem:[#allocation2 + $0x248] sm:$0xf0] %v639_v27  ;;  %988 = vrot.lane.b32.xlu2 %v979_v5, %s4110_s29 }
 0x113   : > { %v625_v31 = vpop.permute.xlu0 %624 }
 0x114   : > { %v637_v32 = vsel %vm574_vm2, %v4415_v55, %v625_v31  ;;  %v638_v34 = vsel %vm574_vm2, %v625_v31, %v627_v30  ;;  %v4480_v35 = vpop.permute.xlu2 %742  ;;  %v4580_v31 = vld [vmem:[%s4188_s23] sm:$0xff] }
 0x115   : > { %651 = vst [vmem:[#allocation2 + $0x8] sm:$0xf0] %v637_v32  ;;  %v1103_v9 = vld.sshfl [vmem:[#allocation1 + $0x18] sm:$0xff pattern:$0x75316420] }
 0x116   : > { %652 = vst [vmem:[#allocation2 + $0x188] sm:$0xf0] %v638_v34  ;;  %986 = vrot.lane.b32.xlu1 %v978_v6, %s4110_s29  ;;  %v1102_v6 = vld.sshfl [vmem:[#allocation1 + $0x10] sm:$0xff pattern:$0x75316420] }
 0x117   : > { %1155 = vst [vmem:[#allocation1 + $0x10] ss:$2 sm:$0xff] %v4540_v10 }
 0x118   : > { %v633_v12 = vpop.permute.xlu1 %632 }
 0x119   : > { %938 = vrot.lane.b32.xlu0 %v4433_v4, %s4110_s29  ;;  %v642_v36 = vsel %vm574_vm2, %v633_v12, %v635_v11  ;;  %v4543_v11 = vld [vmem:[%s4171_s20 + $0x10] sm:$0xff] }
 0x11a   : > { %656 = vst [vmem:[#allocation2 + $0x520] sm:$0xf0] %v642_v36  ;;  %994 = vrot.lane.b32.xlu2 %v982_v20, %s4110_s29  ;;  %v4560_v20 = vld [vmem:[%s4171_s20 + $0x18] sm:$0xff] }
 0x11b   : > { %v631_v37 = vpop.permute.xlu0 %630  ;;  %1159 = vst [vmem:[#allocation1 + $0x30] ss:$2 sm:$0xff] %v4560_v20 }
 0x11c   : > { %v640_v38 = vsel %vm574_vm2, %v4430_v61, %v631_v37  ;;  %v641_v39 = vsel %vm574_vm2, %v631_v37, %v633_v12  ;;  %v4490_v40 = vpop.permute.xlu2 %748  ;;  %v1101_v61 = vld.sshfl [vmem:[#allocation1 + $0x8] sm:$0xff pattern:$0x75316420]  ;;  %vm2526_vm2 = vcmask 449536  }
 0x11d   : > { %654 = vst [vmem:[#allocation2 + $0xc8] sm:$0xf0] %v640_v38 }
 0x11e   : > { %655 = vst [vmem:[#allocation2 + $0x388] sm:$0xf0] %v641_v39  ;;  %992 = vrot.lane.b32.xlu1 %v981_v2, %s4110_s29  ;;  %v4568_v26 = vld.sshfl [vmem:[#allocation1 + $0x10] sm:$0xff pattern:$0x75316420] }
 0x11f   : > { %1153 = vst [vmem:[#allocation1] ss:$2 sm:$0xff] %v4526_v59 }
 0x120   : > { %v683_v43 = vpop.permute.xlu1 %682 }
 0x121   : > { %990 = vrot.lane.b32.xlu0 %v980_v15, %s4110_s29  ;;  %v698_v44 = vsel %vm696_vm3, %v683_v43, %v4455_v19  ;;  %v1104_v15 = vld.sshfl [vmem:[#allocation1 + $0x20] sm:$0xff pattern:$0x75316420] }
 0x122   : > { %712 = vst [vmem:[#allocation2 + $0x5e0] sm:$0xf] %v698_v44  ;;  %1000 = vrot.lane.b32.xlu2 %v985_v23, %s4110_s29 }
 0x123   : > { %v681_v48 = vpop.permute.xlu0 %680  ;;  %1157 = vst [vmem:[#allocation1 + $0x20] ss:$2 sm:$0xff] %v4543_v11 }
 0x124   : > { %v697_v49 = vsel %vm696_vm3, %v681_v48, %v683_v43  ;;  %v4507_v50 = vpop.permute.xlu2 %754 }
 0x125   : > { %711 = vst [vmem:[#allocation2 + $0x3a8] sm:$0xf] %v697_v49 }
 0x126   : > { %998 = vrot.lane.b32.xlu1 %v984_v24, %s4110_s29  ;;  %v1161_v34 = vld.sshfl [vmem:[#allocation1 + $0x8] sm:$0xff pattern:$0x75316420] }
 0x128   : > { %v689_v33 = vpop.permute.xlu1 %688 }
 0x129   : > { %996 = vrot.lane.b32.xlu0 %v983_v21, %s4110_s29  ;;  %v701_v51 = vsel %vm696_vm3, %v689_v33, %v4467_v28 }
 0x12a   : > { %715 = vst [vmem:[#allocation2 + $0x98] sm:$0xf] %v701_v51  ;;  %1050 = vrot.lane.b32.xlu2 %v1040_v45, %s4111_s30  ;;  %v1167_v51 = vld.sshfl [vmem:[#allocation1 + $0x38] sm:$0xff pattern:$0x75316420] }
 0x12b   : > { %v687_v55 = vpop.permute.xlu0 %686 }
 0x12c   : > { %v699_v56 = vsel %vm696_vm3, %v4455_v19, %v687_v55  ;;  %v700_v57 = vsel %vm696_vm3, %v687_v55, %v689_v33  ;;  %v4521_v58 = vpop.permute.xlu2 %804 }
 0x12d   : > { %713 = vst [vmem:[#allocation2 + $0x488] sm:$0xf] %v699_v56 }
 0x12e   : > { %714 = vst [vmem:[#allocation2 + $0x4d0] sm:$0xf] %v700_v57  ;;  %1048 = vrot.lane.b32.xlu1 %v1039_v0, %s4111_s30  ;;  %v1163_v0 = vld.sshfl [vmem:[#allocation1 + $0x18] sm:$0xff pattern:$0x75316420] }
 0x12f   : > { %1217 = vst [vmem:[#allocation1 + $0x11] ss:$2 sm:$0xff] %v4502_v46 }
 0x130   : > { %v695_v8 = vpop.permute.xlu1 %694 }
 0x131   : > { %1046 = vrot.lane.b32.xlu0 %v1038_v29, %s4111_s30  ;;  %v4572_v29 = vld.sshfl [vmem:[#allocation1 + $0x28] sm:$0xff pattern:$0x75316420] }
 0x132   : > { %1056 = vrot.lane.b32.xlu2 %v1043_v52, %s4111_s30  ;;  %v4609_v52 = vld [vmem:[%s4188_s23 + $0x18] sm:$0xff] }
 0x133   : > { %v693_v62 = vpop.permute.xlu0 %692 }
 0x134   : > { %v702_v4 = vsel %vm696_vm3, %v4467_v28, %v693_v62  ;;  %v703_v63 = vsel %vm696_vm3, %v693_v62, %v695_v8  ;;  %v4533_v3 = vpop.permute.xlu2 %810  ;;  %v1164_v28 = vld.sshfl [vmem:[#allocation1 + $0x20] sm:$0xff pattern:$0x75316420] }
 0x135   : > { %716 = vst [vmem:[#allocation2 + $0xb0] sm:$0xf] %v702_v4 }
 0x136   : > { %717 = vst [vmem:[#allocation2 + $0x2a0] sm:$0xf] %v703_v63  ;;  %1054 = vrot.lane.b32.xlu1 %v1042_v54, %s4111_s30  ;;  %v1224_v45 = vld.sshfl [vmem:[#allocation1 + $0x10] sm:$0xff pattern:$0x75316420] }
 0x137   : > { %1219 = vst [vmem:[#allocation1 + $0x21] ss:$2 sm:$0xff] %v4514_v53  ;;  %v4602_v48 = vld.sshfl [vmem:[#allocation1 + $0x18] sm:$0xff pattern:$0x75316420] }
 0x138   : > { %v747_v5 = vpop.permute.xlu1 %746  ;;  %1277 = vst [vmem:[#allocation1 + $0x10] ss:$2 sm:$0xff] %v4540_v10  ;;  %v1166_v54 = vld.sshfl [vmem:[#allocation1 + $0x30] sm:$0xff pattern:$0x75316420] }
 0x139   : > { %1052 = vrot.lane.b32.xlu0 %v1041_v47, %s4111_s30  ;;  %v760_v7 = vsel %vm696_vm3, %v747_v5, %v4490_v40  ;;  %1221 = vst [vmem:[#allocation1 + $0x31] ss:$2 sm:$0xff] %v4609_v52 }
 0x13a   : > { %774 = vst [vmem:[#allocation2 + $0x488] sm:$0xf0] %v760_v7  ;;  %1108 = vrot.lane.b32.xlu2 %v1100_v60, %s4111_s30 }
 0x13b   : > { %v745_v14 = vpop.permute.xlu0 %744 }
 0x13c   : > { %v758_v2 = vsel %vm696_vm3, %v4480_v35, %v745_v14  ;;  %v759_v16 = vsel %vm696_vm3, %v745_v14, %v747_v5  ;;  %v4550_v17 = vpop.permute.xlu2 %816  ;;  %v1160_v35 = vld.sshfl [vmem:[#allocation1] sm:$0xff pattern:$0x75316420] }
 0x13d   : > { %772 = vst [vmem:[#allocation2 + $0x3a8] sm:$0xf0] %v758_v2 }
 0x13e   : > { %773 = vst [vmem:[#allocation2 + $0x5e0] sm:$0xf0] %v759_v16  ;;  %1060 = vrot.lane.b32.xlu1 %v4493_v41, %s4111_s30  ;;  %v1227_v47 = vld.sshfl [vmem:[#allocation1 + $0x28] sm:$0xff pattern:$0x75316420] }
 0x13f   : > { %1215 = vst [vmem:[#allocation1 + $0x1] ss:$2 sm:$0xff] %v4580_v31  ;;  %v1285_v14 = vld.sshfl [vmem:[#allocation1 + $0x18] sm:$0xff pattern:$0x75316420] }
 0x140   : > { %v753_v18 = vpop.permute.xlu1 %752  ;;  %v1229_v62 = vld.sshfl [vmem:[#allocation1 + $0x38] sm:$0xff pattern:$0x75316420]  ;;  %v1228_v4 = vld.sshfl [vmem:[#allocation1 + $0x30] sm:$0xff pattern:$0x75316420] }
 0x141   : > { %1058 = vrot.lane.b32.xlu0 %v4495_v42, %s4111_s30  ;;  %v763_v19 = vsel %vm696_vm3, %v753_v18, %v4507_v50  ;;  %1281 = vst [vmem:[#allocation1 + $0x30] ss:$2 sm:$0xff] %v4560_v20 }
 0x142   : > { %777 = vst [vmem:[#allocation2 + $0xb0] sm:$0xf0] %v763_v19  ;;  %1114 = vrot.lane.b32.xlu2 %v1103_v9, %s4111_s30 }
 0x143   : > { %v751_v21 = vpop.permute.xlu0 %750 }
 0x144   : > { %v761_v23 = vsel %vm696_vm3, %v4490_v40, %v751_v21  ;;  %v762_v24 = vsel %vm696_vm3, %v751_v21, %v753_v18  ;;  %v4566_v25 = vpop.permute.xlu2 %868 }
 0x145   : > { %775 = vst [vmem:[#allocation2 + $0x4d0] sm:$0xf0] %v761_v23 }
 0x146   : > { %776 = vst [vmem:[#allocation2 + $0x98] sm:$0xf0] %v762_v24  ;;  %1112 = vrot.lane.b32.xlu1 %v1102_v6, %s4111_s30  ;;  %v1223_v40 = vld.sshfl [vmem:[#allocation1 + $0x8] sm:$0xff pattern:$0x75316420] }
 0x147   : > { %v4593_v41 = vld.sshfl [vmem:[#allocation1] sm:$0xff pattern:$0x75316420] }
 0x148   : > { %v803_v30 = vpop.permute.xlu1 %802  ;;  %1275 = vst [vmem:[#allocation1] ss:$2 sm:$0xff] %v4526_v59 }
 0x149   : > { %1110 = vrot.lane.b32.xlu0 %v1101_v61, %s4111_s30  ;;  %v819_v27 = vsel %vm818_vm4, %v803_v30, %v4521_v58 }
 0x14a   : > { %833 = vst [vmem:[#allocation2 + $0x570] sm:$0xf] %v819_v27  ;;  %1120 = vrot.lane.b32.xlu2 %v1106_v22, %s4111_s30 }
 0x14b   : > { %v757_v32 = vpop.permute.xlu0 %756 }
 0x14c   : > { %v764_v12 = vsel %vm696_vm3, %v4507_v50, %v757_v32  ;;  %v4585_v36 = vpop.permute.xlu2 %874  ;;  %v1226_v50 = vld.sshfl [vmem:[#allocation1 + $0x20] sm:$0xff pattern:$0x75316420]  ;;  %vm2648_vm3 = vcmask 441344  }
 0x14d   : > { %778 = vst [vmem:[#allocation2 + $0x2a0] sm:$0xf0] %v764_v12 }
 0x14e   : > { %1118 = vrot.lane.b32.xlu1 %v1105_v13, %s4111_s30  ;;  %1279 = vst [vmem:[#allocation1 + $0x20] ss:$2 sm:$0xff] %v4543_v11  ;;  %v1284_v13 = vld.sshfl [vmem:[#allocation1 + $0x10] sm:$0xff pattern:$0x75316420] }
 0x14f   : > { %v1282_v5 = vld.sshfl [vmem:[#allocation1] sm:$0xff pattern:$0x75316420]  ;;  %v4630_v6 = vld.sshfl [vmem:[#allocation1 + $0x8] sm:$0xff pattern:$0x75316420] }
 0x150   : > { %v809_v37 = vpop.permute.xlu1 %808  ;;  %1337 = vst [vmem:[#allocation1 + $0x1] ss:$2 sm:$0xff] %v4580_v31 }
 0x151   : > { %1116 = vrot.lane.b32.xlu0 %v1104_v15, %s4111_s30  ;;  %v822_v38 = vsel %vm818_vm4, %v809_v37, %v4533_v3  ;;  %1339 = vst [vmem:[#allocation1 + $0x11] ss:$2 sm:$0xff] %v4502_v46 }
 0x152   : > { %836 = vst [vmem:[#allocation2 + $0x4c8] sm:$0xf] %v822_v38  ;;  %1170 = vrot.lane.b32.xlu2 %v1161_v34, %s4112_s5 }
 0x153   : > { %v807_v39 = vpop.permute.xlu0 %806 }
 0x154   : > { %v820_v42 = vsel %vm818_vm4, %v4521_v58, %v807_v39  ;;  %v821_v43 = vsel %vm818_vm4, %v807_v39, %v809_v37  ;;  %v4598_v44 = vpop.permute.xlu2 %924 }
 0x155   : > { %834 = vst [vmem:[#allocation2 + $0x598] sm:$0xf] %v820_v42  ;;  %v4644_v18 = vld.sshfl [vmem:[#allocation1 + $0x28] sm:$0xff pattern:$0x75316420] }
 0x156   : > { %835 = vst [vmem:[#allocation2 + $0x5a8] sm:$0xf] %v821_v43  ;;  %1168 = vrot.lane.b32.xlu1 %v1160_v35, %s4112_s5  ;;  %v4647_v19 = vld.sshfl [vmem:[#allocation1 + $0x20] sm:$0xff pattern:$0x75316420] }
 0x157   : > { %1341 = vst [vmem:[#allocation1 + $0x21] ss:$2 sm:$0xff] %v4514_v53  ;;  %v1344_v30 = vld.sshfl [vmem:[#allocation1] sm:$0xff pattern:$0x75316420] }
 0x158   : > { %v815_v49 = vpop.permute.xlu1 %814  ;;  %v4675_v37 = vld.sshfl [vmem:[#allocation1 + $0x10] sm:$0xff pattern:$0x75316420]  ;;  %v1347_v38 = vld.sshfl [vmem:[#allocation1 + $0x18] sm:$0xff pattern:$0x75316420] }
 0x159   : > { %1122 = vrot.lane.b32.xlu0 %v1107_v1, %s4111_s30  ;;  %v825_v33 = vsel %vm818_vm4, %v815_v49, %v4550_v17  ;;  %1399 = vst [vmem:[#allocation1 + $0x10] ss:$2 sm:$0xff] %v4540_v10  ;;  %s4059_s30 = smul.u32 28, %s6397_s16 }
 0x15a   : > { %839 = vst [vmem:[#allocation2 + $0xa8] sm:$0xf] %v825_v33  ;;  %1176 = vrot.lane.b32.xlu2 %v1164_v28, %s4112_s5 }
 0x15b   : > { %v813_v55 = vpop.permute.xlu0 %812 }
 0x15c   : > { %v823_v56 = vsel %vm818_vm4, %v4533_v3, %v813_v55  ;;  %v824_v57 = vsel %vm818_vm4, %v813_v55, %v815_v49  ;;  %v4617_v58 = vpop.permute.xlu2 %930 }
 0x15d   : > { %837 = vst [vmem:[#allocation2 + $0x1f0] sm:$0xf] %v823_v56 }
 0x15e   : > { %838 = vst [vmem:[#allocation2 + $0x2e8] sm:$0xf] %v824_v57  ;;  %1174 = vrot.lane.b32.xlu1 %v1163_v0, %s4112_s5  ;;  %v1348_v43 = vld.sshfl [vmem:[#allocation1 + $0x20] sm:$0xff pattern:$0x75316420] }
 0x160   : > { %v867_v8 = vpop.permute.xlu1 %866 }
 0x161   : > { %1172 = vrot.lane.b32.xlu0 %v4568_v26, %s4112_s5  ;;  %v881_v60 = vsel %vm818_vm4, %v867_v8, %v4566_v25  ;;  %v4659_v26 = vld.sshfl [vmem:[#allocation1 + $0x38] sm:$0xff pattern:$0x75316420] }
 0x162   : > { %895 = vst [vmem:[#allocation2 + $0x598] sm:$0xf0] %v881_v60  ;;  %1182 = vrot.lane.b32.xlu2 %v1167_v51, %s4112_s5 }
 0x163   : > { %v865_v61 = vpop.permute.xlu0 %864 }
 0x164   : > { %v880_v63 = vsel %vm818_vm4, %v865_v61, %v867_v8  ;;  %v4626_v3 = vpop.permute.xlu2 %936 }
 0x165   : > { %894 = vst [vmem:[#allocation2 + $0x570] sm:$0xf0] %v880_v63  ;;  %v4716_v63 = vld.sshfl [vmem:[#allocation1 + $0x18] sm:$0xff pattern:$0x75316420] }
 0x166   : > { %1180 = vrot.lane.b32.xlu1 %v1166_v54, %s4112_s5 }
 0x168   : > { %v873_v7 = vpop.permute.xlu1 %872 }
 0x169   : > { %1178 = vrot.lane.b32.xlu0 %v4572_v29, %s4112_s5  ;;  %v884_v9 = vsel %vm818_vm4, %v873_v7, %v4585_v36  ;;  %v1345_v29 = vld.sshfl [vmem:[#allocation1 + $0x8] sm:$0xff pattern:$0x75316420] }
 0x16a   : > { %898 = vst [vmem:[#allocation2 + $0x1f0] sm:$0xf0] %v884_v9  ;;  %1234 = vrot.lane.b32.xlu2 %v1224_v45, %s4112_s5 }
 0x16b   : > { %v871_v15 = vpop.permute.xlu0 %870  ;;  %1397 = vst [vmem:[#allocation1] ss:$2 sm:$0xff] %v4526_v59 }
 0x16c   : > { %v882_v2 = vsel %vm818_vm4, %v4566_v25, %v871_v15  ;;  %v883_v16 = vsel %vm818_vm4, %v871_v15, %v873_v7  ;;  %v4642_v17 = vpop.permute.xlu2 %988  ;;  %v1288_v25 = vld.sshfl [vmem:[#allocation1 + $0x30] sm:$0xff pattern:$0x75316420] }
 0x16d   : > { %896 = vst [vmem:[#allocation2 + $0x5a8] sm:$0xf0] %v882_v2 }
 0x16e   : > { %897 = vst [vmem:[#allocation2 + $0x4c8] sm:$0xf0] %v883_v16  ;;  %1232 = vrot.lane.b32.xlu1 %v1223_v40, %s4112_s5 }
 0x16f   : > { %1343 = vst [vmem:[#allocation1 + $0x31] ss:$2 sm:$0xff] %v4609_v52 }
 0x170   : > { %v879_v21 = vpop.permute.xlu1 %878 }
 0x171   : > { %1230 = vrot.lane.b32.xlu0 %v4593_v41, %s4112_s5 }
 0x172   : > { %1240 = vrot.lane.b32.xlu2 %v1227_v47, %s4112_s5  ;;  %v4700_v54 = vld.sshfl [vmem:[#allocation1 + $0x8] sm:$0xff pattern:$0x75316420]  ;;  %v4702_v55 = vld.sshfl [vmem:[#allocation1] sm:$0xff pattern:$0x75316420] }
 0x173   : > { %v877_v22 = vpop.permute.xlu0 %876  ;;  %1459 = vst [vmem:[#allocation1 + $0x1] ss:$2 sm:$0xff] %v4580_v31 }
 0x174   : > { %v885_v1 = vsel %vm818_vm4, %v4585_v36, %v877_v22  ;;  %v886_v23 = vsel %vm818_vm4, %v877_v22, %v879_v21  ;;  %v4656_v24 = vpop.permute.xlu2 %994  ;;  %vm2770_vm4 = vcmask 375808  }
 0x175   : > { %899 = vst [vmem:[#allocation2 + $0x2e8] sm:$0xf0] %v885_v1 }
 0x176   : > { %900 = vst [vmem:[#allocation2 + $0xa8] sm:$0xf0] %v886_v23  ;;  %1238 = vrot.lane.b32.xlu1 %v1226_v50, %s4112_s5  ;;  %v1350_v49 = vld.sshfl [vmem:[#allocation1 + $0x30] sm:$0xff pattern:$0x75316420] }
 0x178   : > { %v929_v28 = vpop.permute.xlu1 %928 }
 0x179   : > { %1236 = vrot.lane.b32.xlu0 %v4602_v48, %s4112_s5  ;;  %v943_v0 = vsel %vm940_vm5, %v929_v28, %v4617_v58  ;;  %v1351_v48 = vld.sshfl [vmem:[#allocation1 + $0x38] sm:$0xff pattern:$0x75316420] }
 0x17a   : > { %957 = vst [vmem:[#allocation2 + $0x478] sm:$0xf] %v943_v0  ;;  %1290 = vrot.lane.b32.xlu2 %v1282_v5, %s4113_s6  ;;  %v1466_v22 = vld.sshfl [vmem:[#allocation1] sm:$0xff pattern:$0x75316420] }
 0x17b   : > { %v927_v27 = vpop.permute.xlu0 %926  ;;  %1403 = vst [vmem:[#allocation1 + $0x30] ss:$2 sm:$0xff] %v4560_v20  ;;  %v4740_v1 = vld.sshfl [vmem:[#allocation1 + $0x8] sm:$0xff pattern:$0x75316420] }
 0x17c   : > { %v941_v32 = vsel %vm940_vm5, %v4598_v44, %v927_v27  ;;  %v942_v34 = vsel %vm940_vm5, %v927_v27, %v929_v28  ;;  %v1001_v35 = vpop.permute.xlu2 %1000  ;;  %v4685_v44 = vld.sshfl [vmem:[#allocation1 + $0x28] sm:$0xff pattern:$0x75316420]  ;;  %1519 = vst [vmem:[#allocation1] ss:$2 sm:$0xff] %v4526_v59 }
 0x17d   : > { %955 = vst [vmem:[#allocation2 + $0x5b8] sm:$0xf] %v941_v32 }
 0x17e   : > { %956 = vst [vmem:[#allocation2 + $0xa0] sm:$0xf] %v942_v34  ;;  %1244 = vrot.lane.b32.xlu1 %v1229_v62, %s4112_s5  ;;  %v1406_v62 = vld.sshfl [vmem:[#allocation1 + $0x10] sm:$0xff pattern:$0x75316420] }
 0x17f   : > { %1401 = vst [vmem:[#allocation1 + $0x20] ss:$2 sm:$0xff] %v4543_v11 }
 0x180   : > { %v935_v12 = vpop.permute.xlu1 %934  ;;  %1461 = vst [vmem:[#allocation1 + $0x11] ss:$2 sm:$0xff] %v4502_v46 }
 0x181   : > { %1242 = vrot.lane.b32.xlu0 %v1228_v4, %s4112_s5  ;;  %v946_v36 = vsel %vm940_vm5, %v935_v12, %v4626_v3 }
 0x182   : > { %960 = vst [vmem:[#allocation2 + $0x3d0] sm:$0xf] %v946_v36  ;;  %1296 = vrot.lane.b32.xlu2 %v1285_v14, %s4113_s6  ;;  %v1411_v15 = vld.sshfl [vmem:[#allocation1 + $0x38] sm:$0xff pattern:$0x75316420] }
 0x183   : > { %v933_v39 = vpop.permute.xlu0 %932  ;;  %v1410_v2 = vld.sshfl [vmem:[#allocation1 + $0x30] sm:$0xff pattern:$0x75316420] }
 0x184   : > { %v944_v40 = vsel %vm940_vm5, %v4617_v58, %v933_v39  ;;  %v945_v41 = vsel %vm940_vm5, %v933_v39, %v935_v12  ;;  %v4682_v42 = vpop.permute.xlu2 %1050  ;;  %1465 = vst [vmem:[#allocation1 + $0x31] ss:$2 sm:$0xff] %v4609_v52 }
 0x185   : > { %958 = vst [vmem:[#allocation2 + $0x110] sm:$0xf] %v944_v40 }
 0x186   : > { %959 = vst [vmem:[#allocation2 + $0x3d8] sm:$0xf] %v945_v41  ;;  %1294 = vrot.lane.b32.xlu1 %v1284_v13, %s4113_s6  ;;  %v1409_v4 = vld.sshfl [vmem:[#allocation1 + $0x28] sm:$0xff pattern:$0x75316420] }
 0x187   : > { %v1408_v5 = vld.sshfl [vmem:[#allocation1 + $0x20] sm:$0xff pattern:$0x75316420] }
 0x188   : > { %v987_v45 = vpop.permute.xlu1 %986  ;;  %1463 = vst [vmem:[#allocation1 + $0x21] ss:$2 sm:$0xff] %v4514_v53 }
 0x189   : > { %1292 = vrot.lane.b32.xlu0 %v4630_v6, %s4113_s6  ;;  %v1002_v47 = vsel %vm940_vm5, %v987_v45, %v4642_v17 }
 0x18a   : > { %1016 = vst [vmem:[#allocation2 + $0x5b8] sm:$0xf0] %v1002_v47  ;;  %1302 = vrot.lane.b32.xlu2 %v1288_v25, %s4113_s6  ;;  %v1468_v25 = vld.sshfl [vmem:[#allocation1 + $0x10] sm:$0xff pattern:$0x75316420] }
 0x18b   : > { %v939_v50 = vpop.permute.xlu0 %938  ;;  %v4770_v39 = vld.sshfl [vmem:[#allocation1 + $0x38] sm:$0xff pattern:$0x75316420] }
 0x18c   : > { %v947_v33 = vsel %vm940_vm5, %v4626_v3, %v939_v50  ;;  %v4696_v51 = vpop.permute.xlu2 %1056 }
 0x18d   : > { %961 = vst [vmem:[#allocation2 + $0x4a8] sm:$0xf] %v947_v33 }
 0x18e   : > { %1300 = vrot.lane.b32.xlu1 %v4644_v18, %s4113_s6 }
 0x18f   : > { %v4754_v27 = vld.sshfl [vmem:[#allocation1 + $0x28] sm:$0xff pattern:$0x75316420]  ;;  %v4758_v32 = vld.sshfl [vmem:[#allocation1 + $0x20] sm:$0xff pattern:$0x75316420] }
 0x190   : > { %v993_v56 = vpop.permute.xlu1 %992  ;;  %1523 = vst [vmem:[#allocation1 + $0x20] ss:$2 sm:$0xff] %v4543_v11 }
 0x191   : > { %1298 = vrot.lane.b32.xlu0 %v4647_v19, %s4113_s6  ;;  %v1005_v57 = vsel %vm940_vm5, %v993_v56, %v4656_v24 }
 0x192   : > { %1019 = vst [vmem:[#allocation2 + $0x110] sm:$0xf0] %v1005_v57  ;;  %1354 = vrot.lane.b32.xlu2 %v1345_v29, %s4113_s6 }
 0x193   : > { %v991_v58 = vpop.permute.xlu0 %990 }
 0x194   : > { %v1003_v8 = vsel %vm940_vm5, %v4642_v17, %v991_v58  ;;  %v1004_v60 = vsel %vm940_vm5, %v991_v58, %v993_v56  ;;  %v4713_v61 = vpop.permute.xlu2 %1108 }
 0x195   : > { %1017 = vst [vmem:[#allocation2 + $0xa0] sm:$0xf0] %v1003_v8 }
 0x196   : > { %1018 = vst [vmem:[#allocation2 + $0x478] sm:$0xf0] %v1004_v60  ;;  %1352 = vrot.lane.b32.xlu1 %v1344_v30, %s4113_s6 }
 0x197   : > { %v1530_v58 = vld.sshfl [vmem:[#allocation1 + $0x20] sm:$0xff pattern:$0x75316420]  ;;  %v4796_v8 = vld.sshfl [vmem:[#allocation1 + $0x28] sm:$0xff pattern:$0x75316420] }
 0x198   : > { %v999_v3 = vpop.permute.xlu1 %998  ;;  %1585 = vst [vmem:[#allocation1 + $0x21] ss:$2 sm:$0xff] %v4514_v53 }
 0x199   : > { %1304 = vrot.lane.b32.xlu0 %v4659_v26, %s4113_s6  ;;  %v1008_v6 = vsel %vm940_vm5, %v999_v3, %v1001_v35  ;;  %v1469_v26 = vld.sshfl [vmem:[#allocation1 + $0x18] sm:$0xff pattern:$0x75316420] }
 0x19a   : > { %1022 = vst [vmem:[#allocation2 + $0x4a8] sm:$0xf0] %v1008_v6  ;;  %1360 = vrot.lane.b32.xlu2 %v1348_v43, %s4113_s6  ;;  %v1526_v43 = vld.sshfl [vmem:[#allocation1] sm:$0xff pattern:$0x75316420] }
 0x19b   : > { %v997_v7 = vpop.permute.xlu0 %996  ;;  %1521 = vst [vmem:[#allocation1 + $0x10] ss:$2 sm:$0xff] %v4540_v10 }
 0x19c   : > { %v1006_v9 = vsel %vm940_vm5, %v4656_v24, %v997_v7  ;;  %v1007_v13 = vsel %vm940_vm5, %v997_v7, %v999_v3  ;;  %v4727_v14 = vpop.permute.xlu2 %1114  ;;  %vm3380_vm5 = vcmask 277504  }
 0x19d   : > { %1020 = vst [vmem:[#allocation2 + $0x3d8] sm:$0xf0] %v1006_v9 }
 0x19e   : > { %1021 = vst [vmem:[#allocation2 + $0x3d0] sm:$0xf0] %v1007_v13  ;;  %1358 = vrot.lane.b32.xlu1 %v1347_v38, %s4113_s6  ;;  %v1472_v38 = vld.sshfl [vmem:[#allocation1 + $0x30] sm:$0xff pattern:$0x75316420] }
 0x19f   : > { %1525 = vst [vmem:[#allocation1 + $0x30] ss:$2 sm:$0xff] %v4560_v20 }
 0x1a0   : > { %v1049_v16 = vpop.permute.xlu1 %1048 }
 0x1a1   : > { %1356 = vrot.lane.b32.xlu0 %v4675_v37, %s4113_s6  ;;  %v1064_v17 = vsel %vm1062_vm6, %v1049_v16, %v4682_v42 }
 0x1a2   : > { %1078 = vst [vmem:[#allocation2 + $0x130] sm:$0xf] %v1064_v17  ;;  %1366 = vrot.lane.b32.xlu2 %v1351_v48, %s4113_s6  ;;  %v4786_v33 = vld.sshfl [vmem:[#allocation1 + $0x10] sm:$0xff pattern:$0x75316420] }
 0x1a3   : > { %v1047_v18 = vpop.permute.xlu0 %1046 }
 0x1a4   : > { %v1063_v19 = vsel %vm1062_vm6, %v1047_v18, %v1049_v16  ;;  %v4737_v21 = vpop.permute.xlu2 %1120  ;;  %v1593_v18 = vld.sshfl [vmem:[#allocation1 + $0x28] sm:$0xff pattern:$0x75316420] }
 0x1a5   : > { %1077 = vst [vmem:[#allocation2 + $0x320] sm:$0xf] %v1063_v19 }
 0x1a6   : > { %1364 = vrot.lane.b32.xlu1 %v1350_v49, %s4113_s6 }
 0x1a8   : > { %v1055_v23 = vpop.permute.xlu1 %1054 }
 0x1a9   : > { %1362 = vrot.lane.b32.xlu0 %v4685_v44, %s4113_s6  ;;  %v1067_v24 = vsel %vm1062_vm6, %v1055_v23, %v4696_v51 }
 0x1aa   : > { %1081 = vst [vmem:[#allocation2 + $0x2f0] sm:$0xf] %v1067_v24  ;;  %1416 = vrot.lane.b32.xlu2 %v1406_v62, %s4114_s7  ;;  %v1533_v62 = vld.sshfl [vmem:[#allocation1 + $0x38] sm:$0xff pattern:$0x75316420] }
 0x1ab   : > { %v1053_v28 = vpop.permute.xlu0 %1052 }
 0x1ac   : > { %v1065_v0 = vsel %vm1062_vm6, %v4682_v42, %v1053_v28  ;;  %v1066_v29 = vsel %vm1062_vm6, %v1053_v28, %v1055_v23  ;;  %v4752_v30 = vpop.permute.xlu2 %1170  ;;  %v1527_v42 = vld.sshfl [vmem:[#allocation1 + $0x8] sm:$0xff pattern:$0x75316420] }
 0x1ad   : > { %1079 = vst [vmem:[#allocation2 + $0x4e0] sm:$0xf] %v1065_v0 }
 0x1ae   : > { %1080 = vst [vmem:[#allocation2 + $0x88] sm:$0xf] %v1066_v29  ;;  %1414 = vrot.lane.b32.xlu1 %v4700_v54, %s4114_s7 }
 0x1af   : > { %1581 = vst [vmem:[#allocation1 + $0x1] ss:$2 sm:$0xff] %v4580_v31 }
 0x1b0   : > { %v1061_v34 = vpop.permute.xlu1 %1060 }
 0x1b1   : > { %1412 = vrot.lane.b32.xlu0 %v4702_v55, %s4114_s7 }
 0x1b2   : > { %1422 = vrot.lane.b32.xlu2 %v1409_v4, %s4114_s7  ;;  %v1532_v4 = vld.sshfl [vmem:[#allocation1 + $0x30] sm:$0xff pattern:$0x75316420] }
 0x1b3   : > { %v1059_v35 = vpop.permute.xlu0 %1058  ;;  %1587 = vst [vmem:[#allocation1 + $0x31] ss:$2 sm:$0xff] %v4609_v52 }
 0x1b4   : > { %v1068_v12 = vsel %vm1062_vm6, %v4696_v51, %v1059_v35  ;;  %v1069_v36 = vsel %vm1062_vm6, %v1059_v35, %v1061_v34  ;;  %v4767_v37 = vpop.permute.xlu2 %1176  ;;  %v1529_v51 = vld.sshfl [vmem:[#allocation1 + $0x18] sm:$0xff pattern:$0x75316420] }
 0x1b5   : > { %1082 = vst [vmem:[#allocation2 + $0x260] sm:$0xf] %v1068_v12 }
 0x1b6   : > { %1083 = vst [vmem:[#allocation2 + $0x558] sm:$0xf] %v1069_v36  ;;  %1420 = vrot.lane.b32.xlu1 %v1408_v5, %s4114_s7  ;;  %v4811_v6 = vld.sshfl [vmem:[#allocation1 + $0x8] sm:$0xff pattern:$0x75316420] }
 0x1b7   : > { %1583 = vst [vmem:[#allocation1 + $0x11] ss:$2 sm:$0xff] %v4502_v46  ;;  %v4813_v7 = vld.sshfl [vmem:[#allocation1] sm:$0xff pattern:$0x75316420] }
 0x1b8   : > { %v1113_v40 = vpop.permute.xlu1 %1112  ;;  %1641 = vst [vmem:[#allocation1] ss:$2 sm:$0xff] %v4526_v59 }
 0x1b9   : > { %1418 = vrot.lane.b32.xlu0 %v4716_v63, %s4114_s7  ;;  %v1126_v41 = vsel %vm1062_vm6, %v1113_v40, %v4727_v14 }
 0x1ba   : > { %1140 = vst [vmem:[#allocation2 + $0x4e0] sm:$0xf0] %v1126_v41  ;;  %1474 = vrot.lane.b32.xlu2 %v1466_v22, %s4114_s7  ;;  %v1592_v22 = vld.sshfl [vmem:[#allocation1 + $0x20] sm:$0xff pattern:$0x75316420] }
 0x1bb   : > { %v1111_v44 = vpop.permute.xlu0 %1110  ;;  %1645 = vst [vmem:[#allocation1 + $0x20] ss:$2 sm:$0xff] %v4543_v11  ;;  %v1595_v28 = vld.sshfl [vmem:[#allocation1 + $0x38] sm:$0xff pattern:$0x75316420] }
 0x1bc   : > { %v1124_v45 = vsel %vm1062_vm6, %v4713_v61, %v1111_v44  ;;  %v1125_v47 = vsel %vm1062_vm6, %v1111_v44, %v1113_v40  ;;  %v1183_v48 = vpop.permute.xlu2 %1182  ;;  %v4841_v0 = vld.sshfl [vmem:[#allocation1 + $0x30] sm:$0xff pattern:$0x75316420] }
 0x1bd   : > { %1138 = vst [vmem:[#allocation2 + $0x320] sm:$0xf0] %v1124_v45 }
 0x1be   : > { %1139 = vst [vmem:[#allocation2 + $0x130] sm:$0xf0] %v1125_v47  ;;  %1426 = vrot.lane.b32.xlu1 %v1411_v15, %s4114_s7  ;;  %v1590_v17 = vld.sshfl [vmem:[#allocation1 + $0x10] sm:$0xff pattern:$0x75316420] }
 0x1bf   : > { %v4827_v19 = vld.sshfl [vmem:[#allocation1 + $0x18] sm:$0xff pattern:$0x75316420]  ;;  %1647 = vst [vmem:[#allocation1 + $0x30] ss:$2 sm:$0xff] %v4560_v20 }
 0x1c0   : > { %v1119_v49 = vpop.permute.xlu1 %1118  ;;  %1643 = vst [vmem:[#allocation1 + $0x10] ss:$2 sm:$0xff] %v4540_v10  ;;  %v1648_v35 = vld.sshfl [vmem:[#allocation1] sm:$0xff pattern:$0x75316420] }
 0x1c1   : > { %1424 = vrot.lane.b32.xlu0 %v1410_v2, %s4114_s7  ;;  %v1129_v50 = vsel %vm1062_vm6, %v1119_v49, %v4737_v21  ;;  %v4853_v12 = vld.sshfl [vmem:[#allocation1 + $0x8] sm:$0xff pattern:$0x75316420] }
 0x1c2   : > { %1143 = vst [vmem:[#allocation2 + $0x260] sm:$0xf0] %v1129_v50  ;;  %1480 = vrot.lane.b32.xlu2 %v1469_v26, %s4114_s7  ;;  %v4867_v44 = vld.sshfl [vmem:[#allocation1 + $0x28] sm:$0xff pattern:$0x75316420] }
 0x1c3   : > { %v1117_v54 = vpop.permute.xlu0 %1116  ;;  %1703 = vst [vmem:[#allocation1 + $0x1] ss:$2 sm:$0xff] %v4580_v31  ;;  %v4871_v45 = vld.sshfl [vmem:[#allocation1 + $0x20] sm:$0xff pattern:$0x75316420] }
 0x1c4   : > { %v1127_v55 = vsel %vm1062_vm6, %v4727_v14, %v1117_v54  ;;  %v1128_v56 = vsel %vm1062_vm6, %v1117_v54, %v1119_v49  ;;  %v4793_v57 = vpop.permute.xlu2 %1234  ;;  %1707 = vst [vmem:[#allocation1 + $0x21] ss:$2 sm:$0xff] %v4514_v53 }
 0x1c5   : > { %1141 = vst [vmem:[#allocation2 + $0x88] sm:$0xf0] %v1127_v55 }
 0x1c6   : > { %1142 = vst [vmem:[#allocation2 + $0x2f0] sm:$0xf0] %v1128_v56  ;;  %1478 = vrot.lane.b32.xlu1 %v1468_v25, %s4114_s7  ;;  %v4883_v53 = vld.sshfl [vmem:[#allocation1 + $0x38] sm:$0xff pattern:$0x75316420] }
 0x1c8   : > { %v1169_v60 = vpop.permute.xlu1 %1168 }
 0x1c9   : > { %1476 = vrot.lane.b32.xlu0 %v4740_v1, %s4114_s7  ;;  %v1185_v61 = vsel %vm1184_vm7, %v1169_v60, %v4752_v30 }
 0x1ca   : > { %1199 = vst [vmem:[#allocation2 + $0x4f0] sm:$0xf] %v1185_v61  ;;  %1486 = vrot.lane.b32.xlu2 %v1472_v38, %s4114_s7  ;;  %v1650_v38 = vld.sshfl [vmem:[#allocation1 + $0x10] sm:$0xff pattern:$0x75316420] }
 0x1cb   : > { %v1123_v63 = vpop.permute.xlu0 %1122  ;;  %v1711_v55 = vld.sshfl [vmem:[#allocation1 + $0x8] sm:$0xff pattern:$0x75316420]  ;;  %v1710_v56 = vld.sshfl [vmem:[#allocation1] sm:$0xff pattern:$0x75316420] }
 0x1cc   : > { %v1130_v3 = vsel %vm1062_vm6, %v4737_v21, %v1123_v63  ;;  %v4807_v5 = vpop.permute.xlu2 %1240  ;;  %1763 = vst [vmem:[#allocation1] ss:$2 sm:$0xff] %v4526_v59  ;;  %vm3258_vm6 = vcmask 285696  }
 0x1cd   : > { %1144 = vst [vmem:[#allocation2 + $0x558] sm:$0xf0] %v1130_v3 }
 0x1ce   : > { %1484 = vrot.lane.b32.xlu1 %v4754_v27, %s4114_s7 }
 0x1d0   : > { %v1175_v9 = vpop.permute.xlu1 %1174 }
 0x1d1   : > { %1482 = vrot.lane.b32.xlu0 %v4758_v32, %s4114_s7  ;;  %v1188_v13 = vsel %vm1184_vm7, %v1175_v9, %v4767_v37 }
 0x1d2   : > { %1202 = vst [vmem:[#allocation2 + $0xe8] sm:$0xf] %v1188_v13  ;;  %1536 = vrot.lane.b32.xlu2 %v1527_v42, %s4115_s8 }
 0x1d3   : > { %v1173_v14 = vpop.permute.xlu0 %1172 }
 0x1d4   : > { %v1186_v15 = vsel %vm1184_vm7, %v4752_v30, %v1173_v14  ;;  %v1187_v2 = vsel %vm1184_vm7, %v1173_v14, %v1175_v9  ;;  %v4824_v16 = vpop.permute.xlu2 %1290  ;;  %v1715_v9 = vld.sshfl [vmem:[#allocation1 + $0x28] sm:$0xff pattern:$0x75316420] }
 0x1d5   : > { %1200 = vst [vmem:[#allocation2 + $0x2e0] sm:$0xf] %v1186_v15 }
 0x1d6   : > { %1201 = vst [vmem:[#allocation2 + $0x368] sm:$0xf] %v1187_v2  ;;  %1534 = vrot.lane.b32.xlu1 %v1526_v43, %s4115_s8 }
 0x1d8   : > { %v1181_v21 = vpop.permute.xlu1 %1180 }
 0x1d9   : > { %1488 = vrot.lane.b32.xlu0 %v4770_v39, %s4114_s7  ;;  %v1191_v1 = vsel %vm1184_vm7, %v1181_v21, %v1183_v48  ;;  %v1651_v39 = vld.sshfl [vmem:[#allocation1 + $0x18] sm:$0xff pattern:$0x75316420]  ;;  %s6373_s7 = scalar_lea.vmem %s6389_s4, %s4059_s30 }
 0x1da   : > { %1205 = vst [vmem:[#allocation2 + $0x1b8] sm:$0xf] %v1191_v1  ;;  %1542 = vrot.lane.b32.xlu2 %v1530_v58, %s4115_s8 }
 0x1db   : > { %v1179_v23 = vpop.permute.xlu0 %1178  ;;  %1705 = vst [vmem:[#allocation1 + $0x11] ss:$2 sm:$0xff] %v4502_v46 }
 0x1dc   : > { %v1189_v24 = vsel %vm1184_vm7, %v4767_v37, %v1179_v23  ;;  %v1190_v25 = vsel %vm1184_vm7, %v1179_v23, %v1181_v21  ;;  %v4838_v26 = vpop.permute.xlu2 %1296 }
 0x1dd   : > { %1203 = vst [vmem:[#allocation2 + $0x300] sm:$0xf] %v1189_v24 }
 0x1de   : > { %1204 = vst [vmem:[#allocation2 + $0xd8] sm:$0xf] %v1190_v25  ;;  %1540 = vrot.lane.b32.xlu1 %v1529_v51, %s4115_s8 }
 0x1e0   : > { %v1233_v29 = vpop.permute.xlu1 %1232 }
 0x1e1   : > { %1538 = vrot.lane.b32.xlu0 %v4786_v33, %s4115_s8  ;;  %v1247_v30 = vsel %vm1184_vm7, %v1233_v29, %v4793_v57  ;;  %v1654_v33 = vld.sshfl [vmem:[#allocation1 + $0x30] sm:$0xff pattern:$0x75316420] }
 0x1e2   : > { %1261 = vst [vmem:[#allocation2 + $0x2e0] sm:$0xf0] %v1247_v30  ;;  %1548 = vrot.lane.b32.xlu2 %v1533_v62, %s4115_s8  ;;  %v1713_v59 = vld.sshfl [vmem:[#allocation1 + $0x18] sm:$0xff pattern:$0x75316420] }
 0x1e3   : > { %v1231_v27 = vpop.permute.xlu0 %1230  ;;  %1709 = vst [vmem:[#allocation1 + $0x31] ss:$2 sm:$0xff] %v4609_v52 }
 0x1e4   : > { %v1246_v32 = vsel %vm1184_vm7, %v1231_v27, %v1233_v29  ;;  %v4850_v34 = vpop.permute.xlu2 %1302 }
 0x1e5   : > { %1260 = vst [vmem:[#allocation2 + $0x4f0] sm:$0xf0] %v1246_v32 }
 0x1e6   : > { %1546 = vrot.lane.b32.xlu1 %v1532_v4, %s4115_s8  ;;  %v1712_v4 = vld.sshfl [vmem:[#allocation1 + $0x10] sm:$0xff pattern:$0x75316420] }
 0x1e7   : > { %1765 = vst [vmem:[#allocation1 + $0x10] ss:$2 sm:$0xff] %v4540_v10 }
 0x1e8   : > { %v1239_v36 = vpop.permute.xlu1 %1238 }
 0x1e9   : > { %1544 = vrot.lane.b32.xlu0 %v4796_v8, %s4115_s8  ;;  %v1250_v37 = vsel %vm1184_vm7, %v1239_v36, %v4807_v5 }
 0x1ea   : > { %1264 = vst [vmem:[#allocation2 + $0x300] sm:$0xf0] %v1250_v37  ;;  %1600 = vrot.lane.b32.xlu2 %v1590_v17, %s4115_s8  ;;  %v1717_v14 = vld.sshfl [vmem:[#allocation1 + $0x38] sm:$0xff pattern:$0x75316420] }
 0x1eb   : > { %v1237_v40 = vpop.permute.xlu0 %1236  ;;  %v1716_v15 = vld.sshfl [vmem:[#allocation1 + $0x30] sm:$0xff pattern:$0x75316420] }
 0x1ec   : > { %v1248_v41 = vsel %vm1184_vm7, %v4793_v57, %v1237_v40  ;;  %v1249_v42 = vsel %vm1184_vm7, %v1237_v40, %v1239_v36  ;;  %v4865_v43 = vpop.permute.xlu2 %1354  ;;  %1769 = vst [vmem:[#allocation1 + $0x30] ss:$2 sm:$0xff] %v4560_v20 }
 0x1ed   : > { %1262 = vst [vmem:[#allocation2 + $0x368] sm:$0xf0] %v1248_v41  ;;  %v4964_v41 = vld [vmem:[%s4188_s23 + $0x10] sm:$0xff] }
 0x1ee   : > { %1263 = vst [vmem:[#allocation2 + $0xe8] sm:$0xf0] %v1249_v42  ;;  %1598 = vrot.lane.b32.xlu1 %v4811_v6, %s4115_s8 }
 0x1f0   : > { %v1245_v47 = vpop.permute.xlu1 %1244 }
 0x1f1   : > { %1596 = vrot.lane.b32.xlu0 %v4813_v7, %s4115_s8  ;;  %v1714_v7 = vld.sshfl [vmem:[#allocation1 + $0x20] sm:$0xff pattern:$0x75316420] }
 0x1f2   : > { %1606 = vrot.lane.b32.xlu2 %v1593_v18, %s4115_s8  ;;  %1767 = vst [vmem:[#allocation1 + $0x20] ss:$2 sm:$0xff] %v4543_v11  ;;  %v1771_v11 = vld.sshfl [vmem:[#allocation1 + $0x8] sm:$0xff pattern:$0x75316420] }
 0x1f3   : > { %v1243_v46 = vpop.permute.xlu0 %1242  ;;  %v1770_v18 = vld.sshfl [vmem:[#allocation1] sm:$0xff pattern:$0x75316420]  ;;  %v4943_v29 = vld.sshfl [vmem:[#allocation1 + $0x38] sm:$0xff pattern:$0x75316420] }
 0x1f4   : > { %v1251_v48 = vsel %vm1184_vm7, %v4807_v5, %v1243_v46  ;;  %v1252_v49 = vsel %vm1184_vm7, %v1243_v46, %v1245_v47  ;;  %v4880_v50 = vpop.permute.xlu2 %1360  ;;  %1825 = vst [vmem:[#allocation1 + $0x1] ss:$2 sm:$0xff] %v4580_v31  ;;  %v4945_v30 = vld.sshfl [vmem:[#allocation1 + $0x30] sm:$0xff pattern:$0x75316420]  ;;  %vm3136_vm7 = vcmask 293888  }
 0x1f5   : > { %1265 = vst [vmem:[#allocation2 + $0xd8] sm:$0xf0] %v1251_v48  ;;  %v4976_v48 = vld [vmem:[%s4171_s20] sm:$0xff] }
 0x1f6   : > { %1266 = vst [vmem:[#allocation2 + $0x1b8] sm:$0xf0] %v1252_v49  ;;  %1604 = vrot.lane.b32.xlu1 %v1592_v22, %s4115_s8 }
 0x1f7   : > { %1831 = vst [vmem:[#allocation1 + $0x31] ss:$2 sm:$0xff] %v4609_v52 }
 0x1f8   : > { %v1295_v51 = vpop.permute.xlu1 %1294 }
 0x1f9   : > { %1602 = vrot.lane.b32.xlu0 %v4827_v19, %s4115_s8  ;;  %v1309_v54 = vsel %vm1306_vm8, %v1295_v51, %v4838_v26  ;;  %v1775_v40 = vld.sshfl [vmem:[#allocation1 + $0x28] sm:$0xff pattern:$0x75316420]  ;;  %v1774_v42 = vld.sshfl [vmem:[#allocation1 + $0x20] sm:$0xff pattern:$0x75316420] }
 0x1fa   : > { %1323 = vst [vmem:[#allocation2 + $0x430] sm:$0xf] %v1309_v54  ;;  %1656 = vrot.lane.b32.xlu2 %v1648_v35, %s4116_s9  ;;  %v4952_v35 = vld [vmem:[%s4188_s23 + $0x8] sm:$0xff] }
 0x1fb   : > { %v1293_v57 = vpop.permute.xlu0 %1292  ;;  %1829 = vst [vmem:[#allocation1 + $0x21] ss:$2 sm:$0xff] %v4964_v41  ;;  %v1832_v49 = vld.sshfl [vmem:[#allocation1] sm:$0xff pattern:$0x75316420] }
 0x1fc   : > { %v1307_v58 = vsel %vm1306_vm8, %v4824_v16, %v1293_v57  ;;  %v1308_v8 = vsel %vm1306_vm8, %v1293_v57, %v1295_v51  ;;  %v1367_v60 = vpop.permute.xlu2 %1366 }
 0x1fd   : > { %1321 = vst [vmem:[#allocation2 + $0x5c8] sm:$0xf] %v1307_v58 }
 0x1fe   : > { %1322 = vst [vmem:[#allocation2 + $0x258] sm:$0xf] %v1308_v8  ;;  %1610 = vrot.lane.b32.xlu1 %v1595_v28, %s4115_s8  ;;  %v4990_v8 = vld [vmem:[%s4171_s20 + $0x8] sm:$0xff] }
 0x200   : > { %v1301_v61 = vpop.permute.xlu1 %1300 }
 0x201   : > { %1608 = vrot.lane.b32.xlu0 %v4841_v0, %s4115_s8  ;;  %v1312_v62 = vsel %vm1306_vm8, %v1301_v61, %v4850_v34 }
 0x202   : > { %1326 = vst [vmem:[#allocation2 + $0x1f8] sm:$0xf] %v1312_v62  ;;  %1662 = vrot.lane.b32.xlu2 %v1651_v39, %s4116_s9 }
 0x203   : > { %v1299_v63 = vpop.permute.xlu0 %1298 }
 0x204   : > { %v1310_v3 = vsel %vm1306_vm8, %v4838_v26, %v1299_v63  ;;  %v1311_v5 = vsel %vm1306_vm8, %v1299_v63, %v1301_v61  ;;  %v4905_v6 = vpop.permute.xlu2 %1416  ;;  %v1837_v61 = vld.sshfl [vmem:[#allocation1 + $0x28] sm:$0xff pattern:$0x75316420] }
 0x205   : > { %1324 = vst [vmem:[#allocation2 + $0x480] sm:$0xf] %v1310_v3 }
 0x206   : > { %1325 = vst [vmem:[#allocation2 + $0x90] sm:$0xf] %v1311_v5  ;;  %1660 = vrot.lane.b32.xlu1 %v1650_v38, %s4116_s9 }
 0x208   : > { %v1353_v13 = vpop.permute.xlu1 %1352 }
 0x209   : > { %1658 = vrot.lane.b32.xlu0 %v4853_v12, %s4116_s9  ;;  %v1368_v10 = vsel %vm1306_vm8, %v1353_v13, %v4865_v43  ;;  %v1773_v12 = vld.sshfl [vmem:[#allocation1 + $0x18] sm:$0xff pattern:$0x75316420]  ;;  %v1838_v13 = vld.sshfl [vmem:[#allocation1 + $0x30] sm:$0xff pattern:$0x75316420] }
 0x20a   : > { %1382 = vst [vmem:[#allocation2 + $0x5c8] sm:$0xf0] %v1368_v10  ;;  %1668 = vrot.lane.b32.xlu2 %v1654_v33, %s4116_s9  ;;  %v1839_v10 = vld.sshfl [vmem:[#allocation1 + $0x38] sm:$0xff pattern:$0x75316420] }
 0x20b   : > { %v1305_v2 = vpop.permute.xlu0 %1304 }
 0x20c   : > { %v1313_v16 = vsel %vm1306_vm8, %v4850_v34, %v1305_v2  ;;  %v4917_v17 = vpop.permute.xlu2 %1422  ;;  %v1772_v34 = vld.sshfl [vmem:[#allocation1 + $0x10] sm:$0xff pattern:$0x75316420] }
 0x20d   : > { %1327 = vst [vmem:[#allocation2 + $0x578] sm:$0xf] %v1313_v16 }
 0x20e   : > { %1666 = vrot.lane.b32.xlu1 %v4867_v44, %s4116_s9  ;;  %1827 = vst [vmem:[#allocation1 + $0x11] ss:$2 sm:$0xff] %v4952_v35 }
 0x210   : > { %v1359_v19 = vpop.permute.xlu1 %1358 }
 0x211   : > { %1664 = vrot.lane.b32.xlu0 %v4871_v45, %s4116_s9  ;;  %v1371_v20 = vsel %vm1306_vm8, %v1359_v19, %v4880_v50 }
 0x212   : > { %1385 = vst [vmem:[#allocation2 + $0x480] sm:$0xf0] %v1371_v20  ;;  %1720 = vrot.lane.b32.xlu2 %v1711_v55, %s4116_s9 }
 0x213   : > { %v1357_v21 = vpop.permute.xlu0 %1356 }
 0x214   : > { %v1369_v22 = vsel %vm1306_vm8, %v4865_v43, %v1357_v21  ;;  %v1370_v1 = vsel %vm1306_vm8, %v1357_v21, %v1359_v19  ;;  %v4930_v23 = vpop.permute.xlu2 %1474  ;;  %v5030_v21 = vld [vmem:[%s4188_s23] sm:$0xff] }
 0x215   : > { %1383 = vst [vmem:[#allocation2 + $0x258] sm:$0xf0] %v1369_v22  ;;  %v1835_v58 = vld.sshfl [vmem:[#allocation1 + $0x18] sm:$0xff pattern:$0x75316420] }
 0x216   : > { %1384 = vst [vmem:[#allocation2 + $0x430] sm:$0xf0] %v1370_v1  ;;  %1718 = vrot.lane.b32.xlu1 %v1710_v56, %s4116_s9  ;;  %v1834_v56 = vld.sshfl [vmem:[#allocation1 + $0x10] sm:$0xff pattern:$0x75316420] }
 0x217   : > { %1887 = vst [vmem:[#allocation1 + $0x10] ss:$2 sm:$0xff] %v4990_v8 }
 0x218   : > { %v1365_v31 = vpop.permute.xlu1 %1364 }
 0x219   : > { %1670 = vrot.lane.b32.xlu0 %v4883_v53, %s4116_s9  ;;  %v1374_v24 = vsel %vm1306_vm8, %v1365_v31, %v1367_v60  ;;  %v4993_v60 = vld [vmem:[%s4171_s20 + $0x10] sm:$0xff] }
 0x21a   : > { %1388 = vst [vmem:[#allocation2 + $0x578] sm:$0xf0] %v1374_v24  ;;  %1726 = vrot.lane.b32.xlu2 %v1714_v7, %s4116_s9  ;;  %v5010_v7 = vld [vmem:[%s4171_s20 + $0x18] sm:$0xff] }
 0x21b   : > { %v1363_v25 = vpop.permute.xlu0 %1362  ;;  %1891 = vst [vmem:[#allocation1 + $0x30] ss:$2 sm:$0xff] %v5010_v7 }
 0x21c   : > { %v1372_v26 = vsel %vm1306_vm8, %v4880_v50, %v1363_v25  ;;  %v1373_v28 = vsel %vm1306_vm8, %v1363_v25, %v1365_v31  ;;  %v4940_v0 = vpop.permute.xlu2 %1480  ;;  %v1833_v50 = vld.sshfl [vmem:[#allocation1 + $0x8] sm:$0xff pattern:$0x75316420]  ;;  %vm3014_vm8 = vcmask 359424  }
 0x21d   : > { %1386 = vst [vmem:[#allocation2 + $0x90] sm:$0xf0] %v1372_v26 }
 0x21e   : > { %1387 = vst [vmem:[#allocation2 + $0x1f8] sm:$0xf0] %v1373_v28  ;;  %1724 = vrot.lane.b32.xlu1 %v1713_v59, %s4116_s9  ;;  %v5018_v16 = vld.sshfl [vmem:[#allocation1 + $0x10] sm:$0xff pattern:$0x75316420] }
 0x21f   : > { %1885 = vst [vmem:[#allocation1] ss:$2 sm:$0xff] %v4976_v48 }
 0x220   : > { %v1415_v27 = vpop.permute.xlu1 %1414 }
 0x221   : > { %1722 = vrot.lane.b32.xlu0 %v1712_v4, %s4116_s9  ;;  %v1430_v32 = vsel %vm1428_vm9, %v1415_v27, %v4905_v6  ;;  %v1836_v4 = vld.sshfl [vmem:[#allocation1 + $0x20] sm:$0xff pattern:$0x75316420] }
 0x222   : > { %1444 = vst [vmem:[#allocation2 + $0x4b0] sm:$0xf] %v1430_v32  ;;  %1732 = vrot.lane.b32.xlu2 %v1717_v14, %s4116_s9 }
 0x223   : > { %v1413_v36 = vpop.permute.xlu0 %1412  ;;  %1889 = vst [vmem:[#allocation1 + $0x20] ss:$2 sm:$0xff] %v4993_v60 }
 0x224   : > { %v1429_v37 = vsel %vm1428_vm9, %v1413_v36, %v1415_v27  ;;  %v4957_v38 = vpop.permute.xlu2 %1486 }
 0x225   : > { %1443 = vst [vmem:[#allocation2 + $0x120] sm:$0xf] %v1429_v37 }
 0x226   : > { %1730 = vrot.lane.b32.xlu1 %v1716_v15, %s4116_s9  ;;  %v1893_v1 = vld.sshfl [vmem:[#allocation1 + $0x8] sm:$0xff pattern:$0x75316420] }
 0x228   : > { %v1421_v52 = vpop.permute.xlu1 %1420 }
 0x229   : > { %1728 = vrot.lane.b32.xlu0 %v1715_v9, %s4116_s9  ;;  %v1433_v39 = vsel %vm1428_vm9, %v1421_v52, %v4917_v17 }
 0x22a   : > { %1447 = vst [vmem:[#allocation2 + $0x250] sm:$0xf] %v1433_v39  ;;  %1782 = vrot.lane.b32.xlu2 %v1772_v34, %s4117_s10  ;;  %v1899_v39 = vld.sshfl [vmem:[#allocation1 + $0x38] sm:$0xff pattern:$0x75316420] }
 0x22b   : > { %v1419_v43 = vpop.permute.xlu0 %1418 }
 0x22c   : > { %v1431_v44 = vsel %vm1428_vm9, %v4905_v6, %v1419_v43  ;;  %v1432_v45 = vsel %vm1428_vm9, %v1419_v43, %v1421_v52  ;;  %v4971_v47 = vpop.permute.xlu2 %1536 }
 0x22d   : > { %1445 = vst [vmem:[#allocation2 + $0x308] sm:$0xf] %v1431_v44 }
 0x22e   : > { %1446 = vst [vmem:[#allocation2 + $0x1e0] sm:$0xf] %v1432_v45  ;;  %1780 = vrot.lane.b32.xlu1 %v1771_v11, %s4117_s10  ;;  %v1895_v11 = vld.sshfl [vmem:[#allocation1 + $0x18] sm:$0xff pattern:$0x75316420] }
 0x22f   : > { %1949 = vst [vmem:[#allocation1 + $0x11] ss:$2 sm:$0xff] %v4952_v35 }
 0x230   : > { %v1427_v46 = vpop.permute.xlu1 %1426 }
 0x231   : > { %1778 = vrot.lane.b32.xlu0 %v1770_v18, %s4117_s10  ;;  %v5022_v18 = vld.sshfl [vmem:[#allocation1 + $0x28] sm:$0xff pattern:$0x75316420] }
 0x232   : > { %1788 = vrot.lane.b32.xlu2 %v1775_v40, %s4117_s10  ;;  %v5059_v40 = vld [vmem:[%s4188_s23 + $0x18] sm:$0xff] }
 0x233   : > { %v1425_v33 = vpop.permute.xlu0 %1424 }
 0x234   : > { %v1434_v53 = vsel %vm1428_vm9, %v4917_v17, %v1425_v33  ;;  %v1435_v51 = vsel %vm1428_vm9, %v1425_v33, %v1427_v46  ;;  %v4983_v54 = vpop.permute.xlu2 %1542  ;;  %v1896_v17 = vld.sshfl [vmem:[#allocation1 + $0x20] sm:$0xff pattern:$0x75316420] }
 0x235   : > { %1448 = vst [vmem:[#allocation2 + $0xe0] sm:$0xf] %v1434_v53 }
 0x236   : > { %1449 = vst [vmem:[#allocation2 + $0x10] sm:$0xf] %v1435_v51  ;;  %1786 = vrot.lane.b32.xlu1 %v1774_v42, %s4117_s10  ;;  %v1956_v34 = vld.sshfl [vmem:[#allocation1 + $0x10] sm:$0xff pattern:$0x75316420] }
 0x237   : > { %1951 = vst [vmem:[#allocation1 + $0x21] ss:$2 sm:$0xff] %v4964_v41  ;;  %v5052_v36 = vld.sshfl [vmem:[#allocation1 + $0x18] sm:$0xff pattern:$0x75316420] }
 0x238   : > { %v1479_v55 = vpop.permute.xlu1 %1478  ;;  %2009 = vst [vmem:[#allocation1 + $0x10] ss:$2 sm:$0xff] %v4990_v8  ;;  %v1898_v42 = vld.sshfl [vmem:[#allocation1 + $0x30] sm:$0xff pattern:$0x75316420] }
 0x239   : > { %1784 = vrot.lane.b32.xlu0 %v1773_v12, %s4117_s10  ;;  %v1492_v57 = vsel %vm1428_vm9, %v1479_v55, %v4940_v0  ;;  %1953 = vst [vmem:[#allocation1 + $0x31] ss:$2 sm:$0xff] %v5059_v40 }
 0x23a   : > { %1506 = vst [vmem:[#allocation2 + $0x308] sm:$0xf0] %v1492_v57  ;;  %1840 = vrot.lane.b32.xlu2 %v1832_v49, %s4117_s10 }
 0x23b   : > { %v1477_v62 = vpop.permute.xlu0 %1476 }
 0x23c   : > { %v1490_v59 = vsel %vm1428_vm9, %v4930_v23, %v1477_v62  ;;  %v1491_v63 = vsel %vm1428_vm9, %v1477_v62, %v1479_v55  ;;  %v5000_v3 = vpop.permute.xlu2 %1548  ;;  %v1892_v23 = vld.sshfl [vmem:[#allocation1] sm:$0xff pattern:$0x75316420] }
 0x23d   : > { %1504 = vst [vmem:[#allocation2 + $0x120] sm:$0xf0] %v1490_v59 }
 0x23e   : > { %1505 = vst [vmem:[#allocation2 + $0x4b0] sm:$0xf0] %v1491_v63  ;;  %1792 = vrot.lane.b32.xlu1 %v4943_v29, %s4117_s10  ;;  %v1959_v12 = vld.sshfl [vmem:[#allocation1 + $0x28] sm:$0xff pattern:$0x75316420] }
 0x23f   : > { %1947 = vst [vmem:[#allocation1 + $0x1] ss:$2 sm:$0xff] %v5030_v21  ;;  %v2017_v62 = vld.sshfl [vmem:[#allocation1 + $0x18] sm:$0xff pattern:$0x75316420] }
 0x240   : > { %v1485_v5 = vpop.permute.xlu1 %1484  ;;  %v1961_v33 = vld.sshfl [vmem:[#allocation1 + $0x38] sm:$0xff pattern:$0x75316420]  ;;  %v1960_v53 = vld.sshfl [vmem:[#allocation1 + $0x30] sm:$0xff pattern:$0x75316420] }
 0x241   : > { %1790 = vrot.lane.b32.xlu0 %v4945_v30, %s4117_s10  ;;  %v1495_v6 = vsel %vm1428_vm9, %v1485_v5, %v4957_v38  ;;  %2013 = vst [vmem:[#allocation1 + $0x30] ss:$2 sm:$0xff] %v5010_v7 }
 0x242   : > { %1509 = vst [vmem:[#allocation2 + $0xe0] sm:$0xf0] %v1495_v6  ;;  %1846 = vrot.lane.b32.xlu2 %v1835_v58, %s4117_s10 }
 0x243   : > { %v1483_v9 = vpop.permute.xlu0 %1482 }
 0x244   : > { %v1493_v14 = vsel %vm1428_vm9, %v4940_v0, %v1483_v9  ;;  %v1494_v15 = vsel %vm1428_vm9, %v1483_v9, %v1485_v5  ;;  %v5016_v2 = vpop.permute.xlu2 %1600 }
 0x245   : > { %1507 = vst [vmem:[#allocation2 + $0x1e0] sm:$0xf0] %v1493_v14 }
 0x246   : > { %1508 = vst [vmem:[#allocation2 + $0x250] sm:$0xf0] %v1494_v15  ;;  %1844 = vrot.lane.b32.xlu1 %v1834_v56, %s4117_s10  ;;  %v1955_v0 = vld.sshfl [vmem:[#allocation1 + $0x8] sm:$0xff pattern:$0x75316420] }
 0x247   : > { %v5043_v29 = vld.sshfl [vmem:[#allocation1] sm:$0xff pattern:$0x75316420] }
 0x248   : > { %v1535_v19 = vpop.permute.xlu1 %1534  ;;  %2007 = vst [vmem:[#allocation1] ss:$2 sm:$0xff] %v4976_v48 }
 0x249   : > { %1842 = vrot.lane.b32.xlu0 %v1833_v50, %s4117_s10  ;;  %v1551_v20 = vsel %vm1550_vm10, %v1535_v19, %v4971_v47 }
 0x24a   : > { %1565 = vst [vmem:[#allocation2 + $0x190] sm:$0xf] %v1551_v20  ;;  %1852 = vrot.lane.b32.xlu2 %v1838_v13, %s4117_s10 }
 0x24b   : > { %v1489_v22 = vpop.permute.xlu0 %1488 }
 0x24c   : > { %v1496_v31 = vsel %vm1428_vm9, %v4957_v38, %v1489_v22  ;;  %v5035_v24 = vpop.permute.xlu2 %1606  ;;  %v1958_v38 = vld.sshfl [vmem:[#allocation1 + $0x20] sm:$0xff pattern:$0x75316420]  ;;  %vm2892_vm9 = vcmask 367616  }
 0x24d   : > { %1510 = vst [vmem:[#allocation2 + $0x10] sm:$0xf0] %v1496_v31 }
 0x24e   : > { %1850 = vrot.lane.b32.xlu1 %v1837_v61, %s4117_s10  ;;  %2011 = vst [vmem:[#allocation1 + $0x20] ss:$2 sm:$0xff] %v4993_v60  ;;  %v2016_v61 = vld.sshfl [vmem:[#allocation1 + $0x10] sm:$0xff pattern:$0x75316420] }
 0x24f   : > { %v2014_v55 = vld.sshfl [vmem:[#allocation1] sm:$0xff pattern:$0x75316420]  ;;  %v5080_v56 = vld.sshfl [vmem:[#allocation1 + $0x8] sm:$0xff pattern:$0x75316420] }
 0x250   : > { %v1541_v25 = vpop.permute.xlu1 %1540  ;;  %2069 = vst [vmem:[#allocation1 + $0x1] ss:$2 sm:$0xff] %v5030_v21 }
 0x251   : > { %1848 = vrot.lane.b32.xlu0 %v1836_v4, %s4117_s10  ;;  %v1554_v26 = vsel %vm1550_vm10, %v1541_v25, %v4983_v54  ;;  %2071 = vst [vmem:[#allocation1 + $0x11] ss:$2 sm:$0xff] %v4952_v35 }
 0x252   : > { %1568 = vst [vmem:[#allocation2 + $0x5c0] sm:$0xf] %v1554_v26  ;;  %1902 = vrot.lane.b32.xlu2 %v1893_v1, %s4118_s11 }
 0x253   : > { %v1539_v28 = vpop.permute.xlu0 %1538 }
 0x254   : > { %v1552_v30 = vsel %vm1550_vm10, %v4971_v47, %v1539_v28  ;;  %v1553_v27 = vsel %vm1550_vm10, %v1539_v28, %v1541_v25  ;;  %v5048_v32 = vpop.permute.xlu2 %1656 }
 0x255   : > { %1566 = vst [vmem:[#allocation2 + $0x60] sm:$0xf] %v1552_v30  ;;  %v5094_v5 = vld.sshfl [vmem:[#allocation1 + $0x28] sm:$0xff pattern:$0x75316420] }
 0x256   : > { %1567 = vst [vmem:[#allocation2 + $0x410] sm:$0xf] %v1553_v27  ;;  %1900 = vrot.lane.b32.xlu1 %v1892_v23, %s4118_s11  ;;  %v5097_v6 = vld.sshfl [vmem:[#allocation1 + $0x20] sm:$0xff pattern:$0x75316420] }
 0x257   : > { %2073 = vst [vmem:[#allocation1 + $0x21] ss:$2 sm:$0xff] %v4964_v41  ;;  %v2076_v19 = vld.sshfl [vmem:[#allocation1] sm:$0xff pattern:$0x75316420] }
 0x258   : > { %v1547_v37 = vpop.permute.xlu1 %1546  ;;  %v5125_v25 = vld.sshfl [vmem:[#allocation1 + $0x10] sm:$0xff pattern:$0x75316420]  ;;  %v2079_v26 = vld.sshfl [vmem:[#allocation1 + $0x18] sm:$0xff pattern:$0x75316420] }
 0x259   : > { %1854 = vrot.lane.b32.xlu0 %v1839_v10, %s4117_s10  ;;  %v1557_v52 = vsel %vm1550_vm10, %v1547_v37, %v5000_v3  ;;  %2131 = vst [vmem:[#allocation1 + $0x10] ss:$2 sm:$0xff] %v4990_v8 }
 0x25a   : > { %1571 = vst [vmem:[#allocation2 + $0x40] sm:$0xf] %v1557_v52  ;;  %1908 = vrot.lane.b32.xlu2 %v1896_v17, %s4118_s11 }
 0x25b   : > { %v1545_v43 = vpop.permute.xlu0 %1544 }
 0x25c   : > { %v1555_v44 = vsel %vm1550_vm10, %v4983_v54, %v1545_v43  ;;  %v1556_v45 = vsel %vm1550_vm10, %v1545_v43, %v1547_v37  ;;  %v5067_v47 = vpop.permute.xlu2 %1662 }
 0x25d   : > { %1569 = vst [vmem:[#allocation2 + $0x338] sm:$0xf] %v1555_v44 }
 0x25e   : > { %1570 = vst [vmem:[#allocation2 + $0x358] sm:$0xf] %v1556_v45  ;;  %1906 = vrot.lane.b32.xlu1 %v1895_v11, %s4118_s11  ;;  %v2080_v27 = vld.sshfl [vmem:[#allocation1 + $0x20] sm:$0xff pattern:$0x75316420] }
 0x260   : > { %v1599_v46 = vpop.permute.xlu1 %1598 }
 0x261   : > { %1904 = vrot.lane.b32.xlu0 %v5018_v16, %s4118_s11  ;;  %v1613_v49 = vsel %vm1550_vm10, %v1599_v46, %v5016_v2  ;;  %v5109_v16 = vld.sshfl [vmem:[#allocation1 + $0x38] sm:$0xff pattern:$0x75316420] }
 0x262   : > { %1627 = vst [vmem:[#allocation2 + $0x60] sm:$0xf0] %v1613_v49  ;;  %1914 = vrot.lane.b32.xlu2 %v1899_v39, %s4118_s11 }
 0x263   : > { %v1597_v50 = vpop.permute.xlu0 %1596 }
 0x264   : > { %v1612_v51 = vsel %vm1550_vm10, %v1597_v50, %v1599_v46  ;;  %v5076_v54 = vpop.permute.xlu2 %1668 }
 0x265   : > { %1626 = vst [vmem:[#allocation2 + $0x190] sm:$0xf0] %v1612_v51  ;;  %v5166_v51 = vld.sshfl [vmem:[#allocation1 + $0x18] sm:$0xff pattern:$0x75316420] }
 0x266   : > { %1912 = vrot.lane.b32.xlu1 %v1898_v42, %s4118_s11 }
 0x268   : > { %v1605_v57 = vpop.permute.xlu1 %1604 }
 0x269   : > { %1910 = vrot.lane.b32.xlu0 %v5022_v18, %s4118_s11  ;;  %v1616_v58 = vsel %vm1550_vm10, %v1605_v57, %v5035_v24  ;;  %v2077_v18 = vld.sshfl [vmem:[#allocation1 + $0x8] sm:$0xff pattern:$0x75316420] }
 0x26a   : > { %1630 = vst [vmem:[#allocation2 + $0x338] sm:$0xf0] %v1616_v58  ;;  %1966 = vrot.lane.b32.xlu2 %v1956_v34, %s4118_s11 }
 0x26b   : > { %v1603_v4 = vpop.permute.xlu0 %1602  ;;  %2129 = vst [vmem:[#allocation1] ss:$2 sm:$0xff] %v4976_v48 }
 0x26c   : > { %v1614_v59 = vsel %vm1550_vm10, %v5016_v2, %v1603_v4  ;;  %v1615_v63 = vsel %vm1550_vm10, %v1603_v4, %v1605_v57  ;;  %v5092_v3 = vpop.permute.xlu2 %1720  ;;  %v2020_v2 = vld.sshfl [vmem:[#allocation1 + $0x30] sm:$0xff pattern:$0x75316420] }
 0x26d   : > { %1628 = vst [vmem:[#allocation2 + $0x410] sm:$0xf0] %v1614_v59 }
 0x26e   : > { %1629 = vst [vmem:[#allocation2 + $0x5c0] sm:$0xf0] %v1615_v63  ;;  %1964 = vrot.lane.b32.xlu1 %v1955_v0, %s4118_s11 }
 0x26f   : > { %2075 = vst [vmem:[#allocation1 + $0x31] ss:$2 sm:$0xff] %v5059_v40 }
 0x270   : > { %v1611_v9 = vpop.permute.xlu1 %1610 }
 0x271   : > { %1962 = vrot.lane.b32.xlu0 %v5043_v29, %s4118_s11 }
 0x272   : > { %1972 = vrot.lane.b32.xlu2 %v1959_v12, %s4118_s11  ;;  %v5150_v42 = vld.sshfl [vmem:[#allocation1 + $0x8] sm:$0xff pattern:$0x75316420]  ;;  %v5152_v43 = vld.sshfl [vmem:[#allocation1] sm:$0xff pattern:$0x75316420] }
 0x273   : > { %v1609_v13 = vpop.permute.xlu0 %1608  ;;  %2191 = vst [vmem:[#allocation1 + $0x1] ss:$2 sm:$0xff] %v5030_v21 }
 0x274   : > { %v1617_v10 = vsel %vm1550_vm10, %v5035_v24, %v1609_v13  ;;  %v1618_v14 = vsel %vm1550_vm10, %v1609_v13, %v1611_v9  ;;  %v5106_v15 = vpop.permute.xlu2 %1726  ;;  %vm3664_vm10 = vcmask 719872  }
 0x275   : > { %1631 = vst [vmem:[#allocation2 + $0x358] sm:$0xf0] %v1617_v10 }
 0x276   : > { %1632 = vst [vmem:[#allocation2 + $0x40] sm:$0xf0] %v1618_v14  ;;  %1970 = vrot.lane.b32.xlu1 %v1958_v38, %s4118_s11  ;;  %v2082_v37 = vld.sshfl [vmem:[#allocation1 + $0x30] sm:$0xff pattern:$0x75316420] }
 0x278   : > { %v1661_v17 = vpop.permute.xlu1 %1660 }
 0x279   : > { %1968 = vrot.lane.b32.xlu0 %v5052_v36, %s4118_s11  ;;  %v1675_v11 = vsel %vm1672_vm11, %v1661_v17, %v5067_v47  ;;  %v2083_v36 = vld.sshfl [vmem:[#allocation1 + $0x38] sm:$0xff pattern:$0x75316420] }
 0x27a   : > { %1689 = vst [vmem:[#allocation2 + $0x398] sm:$0xf] %v1675_v11  ;;  %2022 = vrot.lane.b32.xlu2 %v2014_v55, %s4119_s12  ;;  %v2198_v13 = vld.sshfl [vmem:[#allocation1] sm:$0xff pattern:$0x75316420] }
 0x27b   : > { %v1659_v20 = vpop.permute.xlu0 %1658  ;;  %2135 = vst [vmem:[#allocation1 + $0x30] ss:$2 sm:$0xff] %v5010_v7  ;;  %v5190_v10 = vld.sshfl [vmem:[#allocation1 + $0x8] sm:$0xff pattern:$0x75316420] }
 0x27c   : > { %v1673_v22 = vsel %vm1672_vm11, %v5048_v32, %v1659_v20  ;;  %v1674_v1 = vsel %vm1672_vm11, %v1659_v20, %v1661_v17  ;;  %v1733_v23 = vpop.permute.xlu2 %1732  ;;  %v5135_v32 = vld.sshfl [vmem:[#allocation1 + $0x28] sm:$0xff pattern:$0x75316420]  ;;  %2251 = vst [vmem:[#allocation1] ss:$2 sm:$0xff] %v4976_v48 }
 0x27d   : > { %1687 = vst [vmem:[#allocation2 + $0x528] sm:$0xf] %v1673_v22 }
 0x27e   : > { %1688 = vst [vmem:[#allocation2 + $0x1e8] sm:$0xf] %v1674_v1  ;;  %1976 = vrot.lane.b32.xlu1 %v1961_v33, %s4118_s11  ;;  %v2138_v33 = vld.sshfl [vmem:[#allocation1 + $0x10] sm:$0xff pattern:$0x75316420] }
 0x27f   : > { %2133 = vst [vmem:[#allocation1 + $0x20] ss:$2 sm:$0xff] %v4993_v60 }
 0x280   : > { %v1667_v31 = vpop.permute.xlu1 %1666  ;;  %2193 = vst [vmem:[#allocation1 + $0x11] ss:$2 sm:$0xff] %v4952_v35 }
 0x281   : > { %1974 = vrot.lane.b32.xlu0 %v1960_v53, %s4118_s11  ;;  %v1678_v24 = vsel %vm1672_vm11, %v1667_v31, %v5076_v54 }
 0x282   : > { %1692 = vst [vmem:[#allocation2 + $0x1c8] sm:$0xf] %v1678_v24  ;;  %2028 = vrot.lane.b32.xlu2 %v2017_v62, %s4119_s12  ;;  %v2143_v4 = vld.sshfl [vmem:[#allocation1 + $0x38] sm:$0xff pattern:$0x75316420] }
 0x283   : > { %v1665_v28 = vpop.permute.xlu0 %1664  ;;  %v2142_v59 = vld.sshfl [vmem:[#allocation1 + $0x30] sm:$0xff pattern:$0x75316420] }
 0x284   : > { %v1676_v0 = vsel %vm1672_vm11, %v5067_v47, %v1665_v28  ;;  %v1677_v29 = vsel %vm1672_vm11, %v1665_v28, %v1667_v31  ;;  %v5132_v30 = vpop.permute.xlu2 %1782  ;;  %2197 = vst [vmem:[#allocation1 + $0x31] ss:$2 sm:$0xff] %v5059_v40  ;;  %v2259_v28 = vld.sshfl [vmem:[#allocation1 + $0x8] sm:$0xff pattern:$0x75316420] }
 0x285   : > { %1690 = vst [vmem:[#allocation2 + $0x458] sm:$0xf] %v1676_v0  ;;  %v2258_v0 = vld.sshfl [vmem:[#allocation1] sm:$0xff pattern:$0x75316420] }
 0x286   : > { %1691 = vst [vmem:[#allocation2 + $0x2c0] sm:$0xf] %v1677_v29  ;;  %2026 = vrot.lane.b32.xlu1 %v2016_v61, %s4119_s12  ;;  %v2141_v53 = vld.sshfl [vmem:[#allocation1 + $0x28] sm:$0xff pattern:$0x75316420] }
 0x287   : > { %v2140_v55 = vld.sshfl [vmem:[#allocation1 + $0x20] sm:$0xff pattern:$0x75316420]  ;;  %2313 = vst [vmem:[#allocation1 + $0x1] ss:$2 sm:$0xff] %v5030_v21 }
 0x288   : > { %v1719_v34 = vpop.permute.xlu1 %1718  ;;  %2195 = vst [vmem:[#allocation1 + $0x21] ss:$2 sm:$0xff] %v4964_v41 }
 0x289   : > { %2024 = vrot.lane.b32.xlu0 %v5080_v56, %s4119_s12  ;;  %v1734_v12 = vsel %vm1672_vm11, %v1719_v34, %v5092_v3 }
 0x28a   : > { %1748 = vst [vmem:[#allocation2 + $0x528] sm:$0xf0] %v1734_v12  ;;  %2034 = vrot.lane.b32.xlu2 %v2020_v2, %s4119_s12  ;;  %v2200_v2 = vld.sshfl [vmem:[#allocation1 + $0x10] sm:$0xff pattern:$0x75316420] }
 0x28b   : > { %v1671_v38 = vpop.permute.xlu0 %1670  ;;  %v2204_v24 = vld.sshfl [vmem:[#allocation1 + $0x30] sm:$0xff pattern:$0x75316420] }
 0x28c   : > { %v1679_v52 = vsel %vm1672_vm11, %v5076_v54, %v1671_v38  ;;  %v5146_v39 = vpop.permute.xlu2 %1788 }
 0x28d   : > { %1693 = vst [vmem:[#allocation2 + $0x4e8] sm:$0xf] %v1679_v52 }
 0x28e   : > { %2032 = vrot.lane.b32.xlu1 %v5094_v5, %s4119_s12 }
 0x28f   : > { %v2202_v20 = vld.sshfl [vmem:[#allocation1 + $0x20] sm:$0xff pattern:$0x75316420] }
 0x290   : > { %v1725_v44 = vpop.permute.xlu1 %1724 }
 0x291   : > { %2030 = vrot.lane.b32.xlu0 %v5097_v6, %s4119_s12  ;;  %v1737_v45 = vsel %vm1672_vm11, %v1725_v44, %v5106_v15 }
 0x292   : > { %1751 = vst [vmem:[#allocation2 + $0x458] sm:$0xf0] %v1737_v45  ;;  %2086 = vrot.lane.b32.xlu2 %v2077_v18, %s4119_s12 }
 0x293   : > { %v1723_v47 = vpop.permute.xlu0 %1722 }
 0x294   : > { %v1735_v46 = vsel %vm1672_vm11, %v5092_v3, %v1723_v47  ;;  %v1736_v49 = vsel %vm1672_vm11, %v1723_v47, %v1725_v44  ;;  %v5163_v50 = vpop.permute.xlu2 %1840 }
 0x295   : > { %1749 = vst [vmem:[#allocation2 + $0x1e8] sm:$0xf0] %v1735_v46 }
 0x296   : > { %1750 = vst [vmem:[#allocation2 + $0x398] sm:$0xf0] %v1736_v49  ;;  %2084 = vrot.lane.b32.xlu1 %v2076_v19, %s4119_s12  ;;  %v5204_v19 = vld.sshfl [vmem:[#allocation1 + $0x28] sm:$0xff pattern:$0x75316420] }
 0x297   : > { %2255 = vst [vmem:[#allocation1 + $0x20] ss:$2 sm:$0xff] %v4993_v60  ;;  %v2205_v60 = vld.sshfl [vmem:[#allocation1 + $0x38] sm:$0xff pattern:$0x75316420] }
 0x298   : > { %v1731_v54 = vpop.permute.xlu1 %1730  ;;  %2257 = vst [vmem:[#allocation1 + $0x30] ss:$2 sm:$0xff] %v5010_v7 }
 0x299   : > { %2036 = vrot.lane.b32.xlu0 %v5109_v16, %s4119_s12  ;;  %v1740_v56 = vsel %vm1672_vm11, %v1731_v54, %v1733_v23  ;;  %v2201_v16 = vld.sshfl [vmem:[#allocation1 + $0x18] sm:$0xff pattern:$0x75316420] }
 0x29a   : > { %1754 = vst [vmem:[#allocation2 + $0x4e8] sm:$0xf0] %v1740_v56  ;;  %2092 = vrot.lane.b32.xlu2 %v2080_v27, %s4119_s12  ;;  %v2321_v56 = vld.sshfl [vmem:[#allocation1 + $0x8] sm:$0xff pattern:$0x75316420] }
 0x29b   : > { %v1729_v57 = vpop.permute.xlu0 %1728  ;;  %2253 = vst [vmem:[#allocation1 + $0x10] ss:$2 sm:$0xff] %v4990_v8 }
 0x29c   : > { %v1738_v58 = vsel %vm1672_vm11, %v5106_v15, %v1729_v57  ;;  %v1739_v61 = vsel %vm1672_vm11, %v1729_v57, %v1731_v54  ;;  %v5177_v62 = vpop.permute.xlu2 %1846  ;;  %v5266_v57 = vld [vmem:[%s4171_s20 + $0x4] sm:$0xff]  ;;  %vm3963_vm11 = vcmask 1043456  }
 0x29d   : > { %1752 = vst [vmem:[#allocation2 + $0x2c0] sm:$0xf0] %v1738_v58  ;;  %v2320_v58 = vld.sshfl [vmem:[#allocation1] sm:$0xff pattern:$0x75316420] }
 0x29e   : > { %1753 = vst [vmem:[#allocation2 + $0x1c8] sm:$0xf0] %v1739_v61  ;;  %2090 = vrot.lane.b32.xlu1 %v2079_v26, %s4119_s12 }
 0x29f   : > { %v2265_v44 = vld.sshfl [vmem:[#allocation1 + $0x38] sm:$0xff pattern:$0x75316420]  ;;  %v2264_v45 = vld.sshfl [vmem:[#allocation1 + $0x30] sm:$0xff pattern:$0x75316420] }
 0x2a0   : > { %v1781_v63 = vpop.permute.xlu1 %1780  ;;  %2319 = vst [vmem:[#allocation1 + $0x31] ss:$2 sm:$0xff] %v5059_v40 }
 0x2a1   : > { %2088 = vrot.lane.b32.xlu0 %v5125_v25, %s4119_s12  ;;  %v1796_v3 = vsel %vm1794_vm12, %v1781_v63, %v5132_v30  ;;  %2373 = vst [vmem:[#allocation1] ss:$2 sm:$0xff] %v5266_v57 }
 0x2a2   : > { %1810 = vst [vmem:[#allocation2 + $0x498] sm:$0xf] %v1796_v3  ;;  %2098 = vrot.lane.b32.xlu2 %v2083_v36, %s4119_s12  ;;  %v2260_v12 = vld.sshfl [vmem:[#allocation1 + $0x10] sm:$0xff pattern:$0x75316420] }
 0x2a3   : > { %v1779_v5 = vpop.permute.xlu0 %1778  ;;  %v2261_v21 = vld.sshfl [vmem:[#allocation1 + $0x18] sm:$0xff pattern:$0x75316420] }
 0x2a4   : > { %v1795_v6 = vsel %vm1794_vm12, %v1779_v5, %v1781_v63  ;;  %v5187_v9 = vpop.permute.xlu2 %1852  ;;  %2315 = vst [vmem:[#allocation1 + $0x11] ss:$2 sm:$0xff] %v4952_v35 }
 0x2a5   : > { %1809 = vst [vmem:[#allocation2 + $0xf0] sm:$0xf] %v1795_v6  ;;  %v5280_v6 = vld [vmem:[%s4171_s20 + $0xc] sm:$0xff] }
 0x2a6   : > { %2096 = vrot.lane.b32.xlu1 %v2082_v37, %s4119_s12 }
 0x2a8   : > { %v1787_v14 = vpop.permute.xlu1 %1786 }
 0x2a9   : > { %2094 = vrot.lane.b32.xlu0 %v5135_v32, %s4119_s12  ;;  %v1799_v15 = vsel %vm1794_vm12, %v1787_v14, %v5146_v39 }
 0x2aa   : > { %1813 = vst [vmem:[#allocation2 + $0x20] sm:$0xf] %v1799_v15  ;;  %2148 = vrot.lane.b32.xlu2 %v2138_v33, %s4120_s13 }
 0x2ab   : > { %v1785_v17 = vpop.permute.xlu0 %1784  ;;  %v2322_v5 = vld.sshfl [vmem:[#allocation1 + $0x10] sm:$0xff pattern:$0x75316420] }
 0x2ac   : > { %v1797_v11 = vsel %vm1794_vm12, %v5132_v30, %v1785_v17  ;;  %v1798_v48 = vsel %vm1794_vm12, %v1785_v17, %v1787_v14  ;;  %v5202_v18 = vpop.permute.xlu2 %1902 }
 0x2ad   : > { %1811 = vst [vmem:[#allocation2 + $0x460] sm:$0xf] %v1797_v11  ;;  %v5292_v11 = vld [vmem:[%s4171_s20 + $0x14] sm:$0xff] }
 0x2ae   : > { %1812 = vst [vmem:[#allocation2 + $0x270] sm:$0xf] %v1798_v48  ;;  %2146 = vrot.lane.b32.xlu1 %v5150_v42, %s4120_s13  ;;  %v2263_v42 = vld.sshfl [vmem:[#allocation1 + $0x28] sm:$0xff pattern:$0x75316420]  ;;  %v5295_v48 = vld [vmem:[%s4171_s20 + $0x1c] sm:$0xff] }
 0x2b0   : > { %v1793_v22 = vpop.permute.xlu1 %1792 }
 0x2b1   : > { %2144 = vrot.lane.b32.xlu0 %v5152_v43, %s4120_s13 }
 0x2b2   : > { %2154 = vrot.lane.b32.xlu2 %v2141_v53, %s4120_s13 }
 0x2b3   : > { %v1791_v8 = vpop.permute.xlu0 %1790 }
 0x2b4   : > { %v1800_v1 = vsel %vm1794_vm12, %v5146_v39, %v1791_v8  ;;  %v1801_v23 = vsel %vm1794_vm12, %v1791_v8, %v1793_v22  ;;  %v5215_v31 = vpop.permute.xlu2 %1908  ;;  %v2262_v39 = vld.sshfl [vmem:[#allocation1 + $0x20] sm:$0xff pattern:$0x75316420] }
 0x2b5   : > { %1814 = vst [vmem:[#allocation2 + $0x50] sm:$0xf] %v1800_v1 }
 0x2b6   : > { %1815 = vst [vmem:[#allocation2 + $0x3f8] sm:$0xf] %v1801_v23  ;;  %2152 = vrot.lane.b32.xlu1 %v2140_v55, %s4120_s13 }
 0x2b7   : > { %2317 = vst [vmem:[#allocation1 + $0x21] ss:$2 sm:$0xff] %v4964_v41 }
 0x2b8   : > { %v1845_v25 = vpop.permute.xlu1 %1844 }
 0x2b9   : > { %2150 = vrot.lane.b32.xlu0 %v5166_v51, %s4120_s13  ;;  %v1858_v26 = vsel %vm1794_vm12, %v1845_v25, %v5177_v62 }
 0x2ba   : > { %1872 = vst [vmem:[#allocation2 + $0x460] sm:$0xf0] %v1858_v26  ;;  %2206 = vrot.lane.b32.xlu2 %v2198_v13, %s4120_s13 }
 0x2bb   : > { %v1843_v29 = vpop.permute.xlu0 %1842 }
 0x2bc   : > { %v1856_v30 = vsel %vm1794_vm12, %v5163_v50, %v1843_v29  ;;  %v1857_v7 = vsel %vm1794_vm12, %v1843_v29, %v1845_v25  ;;  %v1915_v27 = vpop.permute.xlu2 %1914 }
 0x2bd   : > { %1870 = vst [vmem:[#allocation2 + $0xf0] sm:$0xf0] %v1856_v30 }
 0x2be   : > { %1871 = vst [vmem:[#allocation2 + $0x498] sm:$0xf0] %v1857_v7  ;;  %2158 = vrot.lane.b32.xlu1 %v2143_v4, %s4120_s13  ;;  %v2324_v17 = vld.sshfl [vmem:[#allocation1 + $0x20] sm:$0xff pattern:$0x75316420] }
 0x2c0   : > { %v1851_v32 = vpop.permute.xlu1 %1850 }
 0x2c1   : > { %2156 = vrot.lane.b32.xlu0 %v2142_v59, %s4120_s13  ;;  %v1861_v34 = vsel %vm1794_vm12, %v1851_v32, %v5187_v9 }
 0x2c2   : > { %1875 = vst [vmem:[#allocation2 + $0x50] sm:$0xf0] %v1861_v34  ;;  %2212 = vrot.lane.b32.xlu2 %v2201_v16, %s4120_s13  ;;  %v5325_v34 = vld [vmem:[%s4188_s23 + $0x14] sm:$0xff] }
 0x2c3   : > { %v1849_v36 = vpop.permute.xlu0 %1848 }
 0x2c4   : > { %v1859_v37 = vsel %vm1794_vm12, %v5177_v62, %v1849_v36  ;;  %v1860_v38 = vsel %vm1794_vm12, %v1849_v36, %v1851_v32  ;;  %v5237_v52 = vpop.permute.xlu2 %1966  ;;  %v5322_v32 = vld [vmem:[%s4188_s23 + $0xc] sm:$0xff] }
 0x2c5   : > { %1873 = vst [vmem:[#allocation2 + $0x270] sm:$0xf0] %v1859_v37 }
 0x2c6   : > { %1874 = vst [vmem:[#allocation2 + $0x20] sm:$0xf0] %v1860_v38  ;;  %2210 = vrot.lane.b32.xlu1 %v2200_v2, %s4120_s13  ;;  %v2325_v2 = vld.sshfl [vmem:[#allocation1 + $0x28] sm:$0xff pattern:$0x75316420] }
 0x2c7   : > { %2377 = vst [vmem:[#allocation1 + $0x20] ss:$2 sm:$0xff] %v5292_v11 }
 0x2c8   : > { %v1901_v43 = vpop.permute.xlu1 %1900 }
 0x2c9   : > { %2208 = vrot.lane.b32.xlu0 %v5190_v10, %s4120_s13  ;;  %v1917_v35 = vsel %vm1916_vm13, %v1901_v43, %v5202_v18 }
 0x2ca   : > { %1931 = vst [vmem:[#allocation2 + $0x5d0] sm:$0xf] %v1917_v35  ;;  %2218 = vrot.lane.b32.xlu2 %v2204_v24, %s4120_s13  ;;  %v2380_v24 = vld.sshfl [vmem:[#allocation1] sm:$0xff pattern:$0x75316420] }
 0x2cb   : > { %v1855_v47 = vpop.permute.xlu0 %1854 }
 0x2cc   : > { %v1862_v46 = vsel %vm1794_vm12, %v5187_v9, %v1855_v47  ;;  %v5249_v49 = vpop.permute.xlu2 %1972  ;;  %v2323_v9 = vld.sshfl [vmem:[#allocation1 + $0x18] sm:$0xff pattern:$0x75316420] }
 0x2cd   : > { %1876 = vst [vmem:[#allocation2 + $0x3f8] sm:$0xf0] %v1862_v46 }
 0x2ce   : > { %2216 = vrot.lane.b32.xlu1 %v5204_v19, %s4120_s13  ;;  %2375 = vst [vmem:[#allocation1 + $0x10] ss:$2 sm:$0xff] %v5280_v6  ;;  %v2384_v36 = vld.sshfl [vmem:[#allocation1 + $0x20] sm:$0xff pattern:$0x75316420] }
 0x2d0   : > { %v1907_v41 = vpop.permute.xlu1 %1906 }
 0x2d1   : > { %2214 = vrot.lane.b32.xlu0 %v2202_v20, %s4120_s13  ;;  %v1920_v50 = vsel %vm1916_vm13, %v1907_v41, %v5215_v31  ;;  %v2326_v20 = vld.sshfl [vmem:[#allocation1 + $0x30] sm:$0xff pattern:$0x75316420] }
 0x2d2   : > { %1934 = vst [vmem:[#allocation2 + $0x170] sm:$0xf] %v1920_v50  ;;  %2268 = vrot.lane.b32.xlu2 %v2259_v28, %s4121_s14 }
 0x2d3   : > { %v1905_v40 = vpop.permute.xlu0 %1904 }
 0x2d4   : > { %v1918_v33 = vsel %vm1916_vm13, %v5202_v18, %v1905_v40  ;;  %v1919_v53 = vsel %vm1916_vm13, %v1905_v40, %v1907_v41  ;;  %v5260_v51 = vpop.permute.xlu2 %2022  ;;  %v2327_v18 = vld.sshfl [vmem:[#allocation1 + $0x38] sm:$0xff pattern:$0x75316420] }
 0x2d5   : > { %1932 = vst [vmem:[#allocation2 + $0x5d8] sm:$0xf] %v1918_v33  ;;  %v2382_v30 = vld.sshfl [vmem:[#allocation1 + $0x10] sm:$0xff pattern:$0x75316420] }
 0x2d6   : > { %1933 = vst [vmem:[#allocation2 + $0x158] sm:$0xf] %v1919_v53  ;;  %2266 = vrot.lane.b32.xlu1 %v2258_v0, %s4121_s14 }
 0x2d7   : > { %2379 = vst [vmem:[#allocation1 + $0x30] ss:$2 sm:$0xff] %v5295_v48 }
 0x2d8   : > { %v1913_v54 = vpop.permute.xlu1 %1912 }
 0x2d9   : > { %2220 = vrot.lane.b32.xlu0 %v2205_v60, %s4120_s13  ;;  %v1923_v55 = vsel %vm1916_vm13, %v1913_v54, %v1915_v27  ;;  %v2381_v60 = vld.sshfl [vmem:[#allocation1 + $0x8] sm:$0xff pattern:$0x75316420]  ;;  %v2383_v27 = vld.sshfl [vmem:[#allocation1 + $0x18] sm:$0xff pattern:$0x75316420] }
 0x2da   : > { %1937 = vst [vmem:[#allocation2 + $0xd0] sm:$0xf] %v1923_v55  ;;  %2274 = vrot.lane.b32.xlu2 %v2262_v39, %s4121_s14 }
 0x2db   : > { %v1911_v61 = vpop.permute.xlu0 %1910  ;;  %2437 = vst [vmem:[#allocation1 + $0x11] ss:$2 sm:$0xff] %v5322_v32 }
 0x2dc   : > { %v1921_v62 = vsel %vm1916_vm13, %v5215_v31, %v1911_v61  ;;  %v1922_v4 = vsel %vm1916_vm13, %v1911_v61, %v1913_v54  ;;  %v5273_v59 = vpop.permute.xlu2 %2028  ;;  %v5308_v31 = vld [vmem:[%s4188_s23 + $0x4] sm:$0xff] }
 0x2dd   : > { %1935 = vst [vmem:[#allocation2 + $0x530] sm:$0xf] %v1921_v62 }
 0x2de   : > { %1936 = vst [vmem:[#allocation2 + $0x1d8] sm:$0xf] %v1922_v4  ;;  %2272 = vrot.lane.b32.xlu1 %v2261_v21, %s4121_s14  ;;  %v2386_v47 = vld.sshfl [vmem:[#allocation1 + $0x30] sm:$0xff pattern:$0x75316420] }
 0x2df   : > { %2435 = vst [vmem:[#allocation1 + $0x1] ss:$2 sm:$0xff] %v5308_v31  ;;  %v2387_v46 = vld.sshfl [vmem:[#allocation1 + $0x38] sm:$0xff pattern:$0x75316420] }
 0x2e0   : > { %v1965_v63 = vpop.permute.xlu1 %1964 }
 0x2e1   : > { %2270 = vrot.lane.b32.xlu0 %v2260_v12, %s4121_s14  ;;  %v1979_v3 = vsel %vm1916_vm13, %v1965_v63, %v5237_v52  ;;  %v2385_v12 = vld.sshfl [vmem:[#allocation1 + $0x28] sm:$0xff pattern:$0x75316420] }
 0x2e2   : > { %1993 = vst [vmem:[#allocation2 + $0x5d8] sm:$0xf0] %v1979_v3  ;;  %2280 = vrot.lane.b32.xlu2 %v2265_v44, %s4121_s14  ;;  %v5341_v44 = vld [vmem:[%s4188_s23 + $0x1c] sm:$0xff]  ;;  %v5350_v40 = vld.sshfl [vmem:[#allocation1 + $0x10] sm:$0xff pattern:$0x75316420] }
 0x2e3   : > { %v1963_v13 = vpop.permute.xlu0 %1962  ;;  %2439 = vst [vmem:[#allocation1 + $0x21] ss:$2 sm:$0xff] %v5325_v34  ;;  %v5353_v33 = vld.sshfl [vmem:[#allocation1 + $0x18] sm:$0xff pattern:$0x75316420] }
 0x2e4   : > { %v1978_v10 = vsel %vm1916_vm13, %v1963_v13, %v1965_v63  ;;  %v5285_v14 = vpop.permute.xlu2 %2034  ;;  %2441 = vst [vmem:[#allocation1 + $0x31] ss:$2 sm:$0xff] %v5341_v44 }
 0x2e5   : > { %1992 = vst [vmem:[#allocation2 + $0x5d0] sm:$0xf0] %v1978_v10 }
 0x2e6   : > { %2278 = vrot.lane.b32.xlu1 %v2264_v45, %s4121_s14  ;;  %v2443_v39 = vld.sshfl [vmem:[#allocation1 + $0x8] sm:$0xff pattern:$0x75316420]  ;;  %2497 = vst [vmem:[#allocation1 + $0x10] ss:$2 sm:$0xff] %v5280_v6 }
 0x2e8   : > { %v1971_v15 = vpop.permute.xlu1 %1970 }
 0x2e9   : > { %2276 = vrot.lane.b32.xlu0 %v2263_v42, %s4121_s14  ;;  %v1982_v16 = vsel %vm1916_vm13, %v1971_v15, %v5249_v49  ;;  %v2442_v42 = vld.sshfl [vmem:[#allocation1] sm:$0xff pattern:$0x75316420] }
 0x2ea   : > { %1996 = vst [vmem:[#allocation2 + $0x530] sm:$0xf0] %v1982_v16  ;;  %2332 = vrot.lane.b32.xlu2 %v2322_v5, %s4121_s14  ;;  %v2446_v55 = vld.sshfl [vmem:[#allocation1 + $0x20] sm:$0xff pattern:$0x75316420]  ;;  %v3555_v16 = vld [vmem:[#allocation2 + $0xf0] sm:$0xff] }
 0x2eb   : > { %v1969_v19 = vpop.permute.xlu0 %1968  ;;  %2495 = vst [vmem:[#allocation1] ss:$2 sm:$0xff] %v5266_v57  ;;  %v5366_v62 = vld.sshfl [vmem:[#allocation1 + $0x38] sm:$0xff pattern:$0x75316420] }
 0x2ec   : > { %v1980_v22 = vsel %vm1916_vm13, %v5237_v52, %v1969_v19  ;;  %v1981_v8 = vsel %vm1916_vm13, %v1969_v19, %v1971_v15  ;;  %v5302_v1 = vpop.permute.xlu2 %2086  ;;  %v5369_v4 = vld.sshfl [vmem:[#allocation1 + $0x30] sm:$0xff pattern:$0x75316420]  ;;  %v3562_v5 = vld [vmem:[#allocation2 + $0x5d0] sm:$0xff] }
 0x2ed   : > { %1994 = vst [vmem:[#allocation2 + $0x158] sm:$0xf0] %v1980_v22  ;;  %v3541_v19 = vld [vmem:[#allocation2 + $0x190] sm:$0xff]  ;;  %v5391_v22 = vld.sshfl [vmem:[#allocation1 + $0x10] sm:$0xff pattern:$0x75316420] }
 0x2ee   : > { %1995 = vst [vmem:[#allocation2 + $0x170] sm:$0xf0] %v1981_v8  ;;  %2330 = vrot.lane.b32.xlu1 %v2321_v56, %s4121_s14  ;;  %v5360_v56 = vld.sshfl [vmem:[#allocation1 + $0x28] sm:$0xff pattern:$0x75316420] }
 0x2ef   : > { %2499 = vst [vmem:[#allocation1 + $0x20] ss:$2 sm:$0xff] %v5292_v11 }
 0x2f0   : > { %v1977_v23 = vpop.permute.xlu1 %1976  ;;  %2501 = vst [vmem:[#allocation1 + $0x30] ss:$2 sm:$0xff] %v5295_v48 }
 0x2f1   : > { %2328 = vrot.lane.b32.xlu0 %v2320_v58, %s4121_s14 }
 0x2f2   : > { %2338 = vrot.lane.b32.xlu2 %v2325_v2, %s4121_s14  ;;  %v5377_v13 = vld.sshfl [vmem:[#allocation1 + $0x8] sm:$0xff pattern:$0x75316420]  ;;  %v5379_v10 = vld.sshfl [vmem:[#allocation1] sm:$0xff pattern:$0x75316420] }
 0x2f3   : > { %v1975_v25 = vpop.permute.xlu0 %1974  ;;  %2557 = vst [vmem:[#allocation1 + $0x1] ss:$2 sm:$0xff] %v5308_v31 }
 0x2f4   : > { %v1983_v26 = vsel %vm1916_vm13, %v5249_v49, %v1975_v25  ;;  %v1984_v28 = vsel %vm1916_vm13, %v1975_v25, %v1977_v23  ;;  %v5315_v0 = vpop.permute.xlu2 %2092 }
 0x2f5   : > { %1997 = vst [vmem:[#allocation2 + $0x1d8] sm:$0xf0] %v1983_v26 }
 0x2f6   : > { %1998 = vst [vmem:[#allocation2 + $0xd0] sm:$0xf0] %v1984_v28  ;;  %2336 = vrot.lane.b32.xlu1 %v2324_v17, %s4121_s14  ;;  %v3548_v17 = vld [vmem:[#allocation2 + $0x528] sm:$0xff]  ;;  %v5393_v8 = vld.sshfl [vmem:[#allocation1 + $0x28] sm:$0xff pattern:$0x75316420] }
 0x2f8   : > { %v2027_v29 = vpop.permute.xlu1 %2026 }
 0x2f9   : > { %2334 = vrot.lane.b32.xlu0 %v2323_v9, %s4121_s14  ;;  %v2041_v7 = vsel %vm2038_vm14, %v2027_v29, %v5273_v59 }
 0x2fa   : > { %2055 = vst [vmem:[#allocation2 + $0x128] sm:$0xf] %v2041_v7  ;;  %2388 = vrot.lane.b32.xlu2 %v2380_v24, %s4122_s17  ;;  %v3534_v24 = vld [vmem:[#allocation2 + $0x120] sm:$0xff]  ;;  %v3563_v7 = vld [vmem:[#allocation2 + $0x5d8] sm:$0xff] }
 0x2fb   : > { %v2025_v21 = vpop.permute.xlu0 %2024 }
 0x2fc   : > { %v2039_v37 = vsel %vm2038_vm14, %v5260_v51, %v2025_v21  ;;  %v2040_v38 = vsel %vm2038_vm14, %v2025_v21, %v2027_v29  ;;  %v5332_v52 = vpop.permute.xlu2 %2098  ;;  %v3556_v21 = vld [vmem:[#allocation2 + $0x498] sm:$0xff] }
 0x2fd   : > { %2053 = vst [vmem:[#allocation2 + $0x78] sm:$0xf] %v2039_v37 }
 0x2fe   : > { %2054 = vst [vmem:[#allocation2 + $0x220] sm:$0xf] %v2040_v38  ;;  %2342 = vrot.lane.b32.xlu1 %v2327_v18, %s4121_s14  ;;  %v3513_v38 = vld [vmem:[#allocation2 + $0x320] sm:$0xff] }
 0x300   : > { %v2033_v43 = vpop.permute.xlu1 %2032 }
 0x301   : > { %2340 = vrot.lane.b32.xlu0 %v2326_v20, %s4121_s14  ;;  %v2044_v35 = vsel %vm2038_vm14, %v2033_v43, %v5285_v14 }
 0x302   : > { %2058 = vst [vmem:[#allocation2 + $0x420] sm:$0xf] %v2044_v35  ;;  %2394 = vrot.lane.b32.xlu2 %v2383_v27, %s4122_s17  ;;  %v3520_v27 = vld [vmem:[#allocation2 + $0x4f0] sm:$0xff]  ;;  %v3542_v35 = vld [vmem:[#allocation2 + $0x60] sm:$0xff] }
 0x303   : > { %v2031_v45 = vpop.permute.xlu0 %2030 }
 0x304   : > { %v2042_v49 = vsel %vm2038_vm14, %v5273_v59, %v2031_v45  ;;  %v2043_v41 = vsel %vm2038_vm14, %v2031_v45, %v2033_v43  ;;  %v5347_v50 = vpop.permute.xlu2 %2148 }
 0x305   : > { %2056 = vst [vmem:[#allocation2 + $0x240] sm:$0xf] %v2042_v49  ;;  %v5425_v49 = vld.sshfl [vmem:[#allocation1] sm:$0xff pattern:$0x75316420] }
 0x306   : > { %2057 = vst [vmem:[#allocation2 + $0x518] sm:$0xf] %v2043_v41  ;;  %2392 = vrot.lane.b32.xlu1 %v2382_v30, %s4122_s17  ;;  %v3527_v30 = vld [vmem:[#allocation2 + $0x5c8] sm:$0xff]  ;;  %v5427_v41 = vld.sshfl [vmem:[#allocation1 + $0x8] sm:$0xff pattern:$0x75316420] }
 0x307   : > { %2617 = vst [vmem:[#allocation1] ss:$2 sm:$0xff] %v5266_v57 }
 0x308   : > { %v2085_v53 = vpop.permute.xlu1 %2084 }
 0x309   : > { %2390 = vrot.lane.b32.xlu0 %v2381_v60, %s4122_s17  ;;  %v2100_v51 = vsel %vm2038_vm14, %v2085_v53, %v5302_v1  ;;  %v5398_v60 = vld.sshfl [vmem:[#allocation1 + $0x18] sm:$0xff pattern:$0x75316420] }
 0x30a   : > { %2114 = vst [vmem:[#allocation2 + $0x78] sm:$0xf0] %v2100_v51  ;;  %2400 = vrot.lane.b32.xlu2 %v2386_v47, %s4122_s17  ;;  %v3535_v47 = vld [vmem:[#allocation2 + $0x4b0] sm:$0xff] }
 0x30b   : > { %v2037_v54 = vpop.permute.xlu0 %2036  ;;  %2559 = vst [vmem:[#allocation1 + $0x11] ss:$2 sm:$0xff] %v5322_v32 }
 0x30c   : > { %v2045_v58 = vsel %vm2038_vm14, %v5285_v14, %v2037_v54  ;;  %v5364_v61 = vpop.permute.xlu2 %2154 }
 0x30d   : > { %2059 = vst [vmem:[#allocation2 + $0x438] sm:$0xf] %v2045_v58 }
 0x30e   : > { %2398 = vrot.lane.b32.xlu1 %v2385_v12, %s4122_s17  ;;  %v5411_v12 = vld.sshfl [vmem:[#allocation1 + $0x30] sm:$0xff pattern:$0x75316420] }
 0x310   : > { %v2091_v59 = vpop.permute.xlu1 %2090 }
 0x311   : > { %2396 = vrot.lane.b32.xlu0 %v2384_v36, %s4122_s17  ;;  %v2103_v63 = vsel %vm2038_vm14, %v2091_v59, %v5315_v0  ;;  %v3569_v3 = vld [vmem:[#allocation2 + $0x78] sm:$0xff] }
 0x312   : > { %2117 = vst [vmem:[#allocation2 + $0x240] sm:$0xf0] %v2103_v63  ;;  %3667 = vmatpush.msra.mxu0 %v3569_v3  ;;  %2452 = vrot.lane.b32.xlu2 %v2443_v39, %s4122_s17  ;;  %v5430_v51 = vld.sshfl [vmem:[#allocation1 + $0x10] sm:$0xff pattern:$0x75316420]  ;;  %v3514_v3 = vld [vmem:[#allocation2 + $0x130] sm:$0xff] }
 0x313   : > { %v2089_v9 = vpop.permute.xlu0 %2088  ;;  %v5436_v58 = vld.sshfl [vmem:[#allocation1 + $0x18] sm:$0xff pattern:$0x75316420] }
 0x314   : > { %v2101_v14 = vsel %vm2038_vm14, %v5302_v1, %v2089_v9  ;;  %v2102_v15 = vsel %vm2038_vm14, %v2089_v9, %v2091_v59  ;;  %3668 = vmatpush.msra.mxu0 %v3562_v5  ;;  %v5384_v2 = vpop.permute.xlu2 %2206  ;;  %v5396_v1 = vld.sshfl [vmem:[#allocation1 + $0x20] sm:$0xff pattern:$0x75316420]  ;;  %2619 = vst [vmem:[#allocation1 + $0x10] ss:$2 sm:$0xff] %v5280_v6 }
 0x315   : > { %2115 = vst [vmem:[#allocation2 + $0x220] sm:$0xf0] %v2101_v14  ;;  %v3478_v59 = vld [vmem:[#allocation2 + $0x58] sm:$0xff]  ;;  %v3464_v14 = vld [vmem:[#allocation2 + $0x2b0] sm:$0xff] }
 0x316   : > { %2116 = vst [vmem:[#allocation2 + $0x128] sm:$0xf0] %v2102_v15  ;;  %3669 = vmatpush.msra.mxu0 %v3555_v16  ;;  %2450 = vrot.lane.b32.xlu1 %v2442_v42, %s4122_s17  ;;  %v3506_v42 = vld [vmem:[#allocation2 + $0x5b8] sm:$0xff]  ;;  %v3507_v15 = vld [vmem:[#allocation2 + $0xa0] sm:$0xff] }
 0x317   : > { %2561 = vst [vmem:[#allocation1 + $0x21] ss:$2 sm:$0xff] %v5325_v34  ;;  %v3471_v9 = vld [vmem:[#allocation2 + $0x378] sm:$0xff] }
 0x318   : > { %3670 = vmatpush.msra.mxu0 %v3548_v17  ;;  %v2097_v18 = vpop.permute.xlu1 %2096  ;;  %v3500_v17 = vld [vmem:[#allocation2 + $0x598] sm:$0xff] }
 0x319   : > { %2402 = vrot.lane.b32.xlu0 %v2387_v46, %s4122_s17  ;;  %v2106_v20 = vsel %vm2038_vm14, %v2097_v18, %v5332_v52  ;;  %v3549_v52 = vld [vmem:[#allocation2 + $0x1e8] sm:$0xff]  ;;  %v3499_v46 = vld [vmem:[#allocation2 + $0x570] sm:$0xff] }
 0x31a   : > { %2120 = vst [vmem:[#allocation2 + $0x438] sm:$0xf0] %v2106_v20  ;;  %3671 = vmatpush.msra.mxu0 %v3541_v19  ;;  %2458 = vrot.lane.b32.xlu2 %v2446_v55, %s4122_s17  ;;  %v3485_v55 = vld [vmem:[#allocation2 + $0x100] sm:$0xff] }
 0x31b   : > { %v2095_v23 = vpop.permute.xlu0 %2094  ;;  %v3493_v19 = vld [vmem:[#allocation2 + $0x5e0] sm:$0xff] }
 0x31c   : > { %v2104_v25 = vsel %vm2038_vm14, %v5315_v0, %v2095_v23  ;;  %v2105_v26 = vsel %vm2038_vm14, %v2095_v23, %v2097_v18  ;;  %v3570_v28 = vld [vmem:[#allocation2 + $0x220] sm:$0xff]  ;;  %3672 = vmatpush.msra.mxu0 %v3534_v24  ;;  %v5404_v29 = vpop.permute.xlu2 %2212  ;;  %v5409_v0 = vld.sshfl [vmem:[#allocation1 + $0x38] sm:$0xff pattern:$0x75316420] }
 0x31d   : > { %2118 = vst [vmem:[#allocation2 + $0x518] sm:$0xf0] %v2104_v25  ;;  %3707 = vmatpush.msra.mxu2 %v3570_v28  ;;  %v3572_v20 = vld [vmem:[#allocation2 + $0x240] sm:$0xff]  ;;  %v5461_v23 = vld.sshfl [vmem:[#allocation1 + $0x10] sm:$0xff pattern:$0x75316420] }
 0x31e   : > { %2119 = vst [vmem:[#allocation2 + $0x420] sm:$0xf0] %v2105_v26  ;;  %3673 = vmatpush.msra.mxu0 %v3527_v30  ;;  %2456 = vrot.lane.b32.xlu1 %v5353_v33, %s4122_s17  ;;  %v3528_v33 = vld [vmem:[#allocation2 + $0x258] sm:$0xff]  ;;  %v5448_v16 = vld.sshfl [vmem:[#allocation1 + $0x28] sm:$0xff pattern:$0x75316420] }
 0x31f   : > { %3708 = vmatpush.msra.mxu2 %v3563_v7  ;;  %2563 = vst [vmem:[#allocation1 + $0x31] ss:$2 sm:$0xff] %v5341_v44  ;;  %v3565_v25 = vld [vmem:[#allocation2 + $0x170] sm:$0xff]  ;;  %v3486_v30 = vld [vmem:[#allocation2 + $0x8] sm:$0xff] }
 0x320   : > { %3674 = vmatpush.msra.mxu0 %v3520_v27  ;;  %v2147_v36 = vpop.permute.xlu1 %2146  ;;  %v5463_v26 = vld.sshfl [vmem:[#allocation1 + $0x18] sm:$0xff pattern:$0x75316420] }
 0x321   : > { %3709 = vmatpush.msra.mxu2 %v3556_v21  ;;  %2454 = vrot.lane.b32.xlu0 %v5350_v40, %s4122_s17  ;;  %v2162_v37 = vsel %vm2160_vm15, %v2147_v36, %v5347_v50  ;;  %v3492_v40 = vld [vmem:[#allocation2 + $0x3a8] sm:$0xff]  ;;  %2681 = vst [vmem:[#allocation1 + $0x11] ss:$2 sm:$0xff] %v5322_v32  ;;  %v3479_v21 = vld [vmem:[#allocation2 + $0x2b8] sm:$0xff] }
 0x322   : > { %2176 = vst [vmem:[#allocation2 + $0x200] sm:$0xf] %v2162_v37  ;;  %3675 = vmatpush.msra.mxu0 %v3513_v38  ;;  %2464 = vrot.lane.b32.xlu2 %v5366_v62, %s4122_s17  ;;  %v3521_v62 = vld [vmem:[#allocation2 + $0x2e0] sm:$0xff]  ;;  %v3472_v37 = vld [vmem:[#allocation2 + $0x108] sm:$0xff] }
 0x323   : > { %3710 = vmatpush.msra.mxu2 %v3549_v52  ;;  %v2145_v39 = vpop.permute.xlu0 %2144 }
 0x324   : > { %v2161_v43 = vsel %vm2160_vm15, %v2145_v39, %v2147_v36  ;;  %3676 = vmatpush.msra.mxu0 %v3506_v42  ;;  %v5421_v45 = vpop.permute.xlu2 %2218  ;;  %v3551_v36 = vld [vmem:[#allocation2 + $0x458] sm:$0xff]  ;;  %v3544_v39 = vld [vmem:[#allocation2 + $0x5c0] sm:$0xff] }
 0x325   : > { %2175 = vst [vmem:[#allocation2 + $0x408] sm:$0xf] %v2161_v43  ;;  %3711 = vmatpush.msra.mxu2 %v3542_v35 }
 0x326   : > { %3677 = vmatpush.msra.mxu0 %v3499_v46  ;;  %2462 = vrot.lane.b32.xlu1 %v5369_v4, %s4122_s17  ;;  %v5472_v27 = vld.sshfl [vmem:[#allocation1 + $0x30] sm:$0xff pattern:$0x75316420] }
 0x327   : > { %3712 = vmatpush.msra.mxu2 %v3535_v47 }
 0x328   : > { %3678 = vmatpush.msra.mxu0 %v3492_v40  ;;  %v2153_v53 = vpop.permute.xlu1 %2152  ;;  %v5487_v35 = vld.sshfl [vmem:[#allocation1 + $0x10] sm:$0xff pattern:$0x75316420] }
 0x329   : > { %3713 = vmatpush.msra.mxu2 %v3528_v33  ;;  %2460 = vrot.lane.b32.xlu0 %v5360_v56, %s4122_s17  ;;  %v2165_v54 = vsel %vm2160_vm15, %v2153_v53, %v5364_v61  ;;  %v5496_v33 = vld.sshfl [vmem:[#allocation1 + $0x18] sm:$0xff pattern:$0x75316420] }
 0x32a   : > { %2179 = vst [vmem:[#allocation2 + $0x210] sm:$0xf] %v2165_v54  ;;  %3679 = vmatpush.msra.mxu0 %v3485_v55  ;;  %2514 = vrot.lane.b32.xlu2 %v5391_v22, %s4123_s18  ;;  %v5455_v22 = vld.sshfl [vmem:[#allocation1 + $0x8] sm:$0xff pattern:$0x75316420]  ;;  %v3516_v55 = vld [vmem:[#allocation2 + $0x88] sm:$0xff] }
 0x32b   : > { %3714 = vmatpush.msra.mxu2 %v3521_v62  ;;  %v2151_v4 = vpop.permute.xlu0 %2150  ;;  %2741 = vst [vmem:[#allocation1 + $0x10] ss:$2 sm:$0xff] %v5280_v6 }
 0x32c   : > { %v2163_v56 = vsel %vm2160_vm15, %v5347_v50, %v2151_v4  ;;  %v2164_v63 = vsel %vm2160_vm15, %v2151_v4, %v2153_v53  ;;  %3680 = vmatpush.msra.mxu0 %v3478_v59  ;;  %v5444_v5 = vpop.permute.xlu2 %2268  ;;  %v5450_v50 = vld.sshfl [vmem:[#allocation1 + $0x20] sm:$0xff pattern:$0x75316420]  ;;  %v3523_v53 = vld [vmem:[#allocation2 + $0xe8] sm:$0xff] }
 0x32d   : > { %2177 = vst [vmem:[#allocation2 + $0x4a0] sm:$0xf] %v2163_v56  ;;  %3715 = vmatpush.msra.mxu2 %v3514_v3  ;;  %v3502_v3 = vld [vmem:[#allocation2 + $0x4c8] sm:$0xff] }
 0x32e   : > { %2178 = vst [vmem:[#allocation2 + $0x5b0] sm:$0xf] %v2164_v63  ;;  %3681 = vmatpush.msra.mxu0 %v3471_v9  ;;  %2512 = vrot.lane.b32.xlu1 %v5377_v13, %s4123_s18  ;;  %v5459_v13 = vld.sshfl [vmem:[#allocation1] sm:$0xff pattern:$0x75316420]  ;;  %v3495_v9 = vld [vmem:[#allocation2 + $0x4d0] sm:$0xff] }
 0x32f   : > { %3716 = vmatpush.msra.mxu2 %v3507_v15  ;;  %2621 = vst [vmem:[#allocation1 + $0x20] ss:$2 sm:$0xff] %v5292_v11 }
 0x330   : > { %v2159_v18 = vpop.permute.xlu1 %2158  ;;  %3682 = vmatpush.msra.mxu0 %v3464_v14  ;;  %2679 = vst [vmem:[#allocation1 + $0x1] ss:$2 sm:$0xff] %v5308_v31 }
 0x331   : > { %3717 = vmatpush.msra.mxu2 %v3500_v17  ;;  %2510 = vrot.lane.b32.xlu0 %v5379_v10, %s4123_s18 }
 0x332   : > { %3787 = vmatpush.msrb.mxu0 %v3572_v20  ;;  %2520 = vrot.lane.b32.xlu2 %v5393_v8, %s4123_s18  ;;  %v3558_v8 = vld [vmem:[#allocation2 + $0x270] sm:$0xff] }
 0x333   : > { %3718 = vmatpush.msra.mxu2 %v3493_v19  ;;  %v2157_v24 = vpop.permute.xlu0 %2156  ;;  %v5527_v14 = vld.sshfl [vmem:[#allocation1 + $0x18] sm:$0xff pattern:$0x75316420] }
 0x334   : > { %v2166_v10 = vsel %vm2160_vm15, %v5364_v61, %v2157_v24  ;;  %v2167_v28 = vsel %vm2160_vm15, %v2157_v24, %v2159_v18  ;;  %3788 = vmatpush.msrb.mxu0 %v3565_v25  ;;  %v5469_v7 = vpop.permute.xlu2 %2274  ;;  %v5476_v61 = vld.sshfl [vmem:[#allocation1 + $0x38] sm:$0xff pattern:$0x75316420] }
 0x335   : > { %2180 = vst [vmem:[#allocation2 + $0x360] sm:$0xf] %v2166_v10  ;;  %3719 = vmatpush.msra.mxu2 %v3486_v30  ;;  %v3481_v18 = vld [vmem:[#allocation2 + $0x590] sm:$0xff] }
 0x336   : > { %2181 = vst [vmem:[#allocation2 + $0x290] sm:$0xf] %v2167_v28  ;;  %3789 = vmatpush.msrb.mxu0 %v3558_v8  ;;  %2518 = vrot.lane.b32.xlu1 %v5396_v1, %s4123_s18  ;;  %v3537_v1 = vld [vmem:[#allocation2 + $0x1e0] sm:$0xff]  ;;  %v5517_v63 = vld.sshfl [vmem:[#allocation1 + $0x20] sm:$0xff pattern:$0x75316420] }
 0x337   : > { %3720 = vmatpush.msra.mxu2 %v3479_v21  ;;  %2623 = vst [vmem:[#allocation1 + $0x30] ss:$2 sm:$0xff] %v5295_v48  ;;  %v5485_v42 = vld.sshfl [vmem:[#allocation1 + $0x8] sm:$0xff pattern:$0x75316420]  ;;  %v3474_v30 = vld [vmem:[#allocation2 + $0x490] sm:$0xff] }
 0x338   : > { %3790 = vmatpush.msrb.mxu0 %v3551_v36  ;;  %v2211_v38 = vpop.permute.xlu1 %2210  ;;  %v5489_v47 = vld.sshfl [vmem:[#allocation1] sm:$0xff pattern:$0x75316420] }
 0x339   : > { %3721 = vmatpush.msra.mxu2 %v3472_v37  ;;  %2516 = vrot.lane.b32.xlu0 %v5398_v60, %s4123_s18  ;;  %v2224_v52 = vsel %vm2160_vm15, %v2211_v38, %v5404_v29  ;;  %2739 = vst [vmem:[#allocation1] ss:$2 sm:$0xff] %v5266_v57  ;;  %v3509_v57 = vld [vmem:[#allocation2 + $0x110] sm:$0xff] }
 0x33a   : > { %2238 = vst [vmem:[#allocation2 + $0x4a0] sm:$0xf0] %v2224_v52  ;;  %3791 = vmatpush.msrb.mxu0 %v3544_v39  ;;  %2572 = vrot.lane.b32.xlu2 %v5425_v49, %s4123_s18  ;;  %v3530_v49 = vld [vmem:[#allocation2 + $0x480] sm:$0xff] }
 0x33b   : > { %v2209_v43 = vpop.permute.xlu0 %2208 }
 0x33c   : > { %v2222_v60 = vsel %vm2160_vm15, %v5384_v2, %v2209_v43  ;;  %v2223_v46 = vsel %vm2160_vm15, %v2209_v43, %v2211_v38  ;;  %3792 = vmatpush.msrb.mxu0 %v3537_v1  ;;  %v5494_v40 = vpop.permute.xlu2 %2280  ;;  %v5585_v43 = vld [vmem:[%s4188_s23 + $0x4] sm:$0xff] }
 0x33d   : > { %2236 = vst [vmem:[#allocation2 + $0x408] sm:$0xf0] %v2222_v60 }
 0x33e   : > { %2237 = vst [vmem:[#allocation2 + $0x200] sm:$0xf0] %v2223_v46  ;;  %3793 = vmatpush.msrb.mxu0 %v3530_v49  ;;  %2524 = vrot.lane.b32.xlu1 %v5409_v0, %s4123_s18  ;;  %v5534_v17 = vld.sshfl [vmem:[#allocation1 + $0x38] sm:$0xff pattern:$0x75316420] }
 0x33f   : > { %v5538_v19 = vld.sshfl [vmem:[#allocation1 + $0x30] sm:$0xff pattern:$0x75316420] }
 0x340   : > { %3794 = vmatpush.msrb.mxu0 %v3523_v53  ;;  %v2217_v2 = vpop.permute.xlu1 %2216  ;;  %v5508_v0 = vld.sshfl [vmem:[#allocation1] sm:$0xff pattern:$0x75316420]  ;;  %v5510_v4 = vld.sshfl [vmem:[#allocation1 + $0x8] sm:$0xff pattern:$0x75316420] }
 0x341   : > { %2522 = vrot.lane.b32.xlu0 %v5411_v12, %s4123_s18  ;;  %v2227_v54 = vsel %vm2160_vm15, %v2217_v2, %v5421_v45  ;;  %2801 = vst [vmem:[#allocation1 + $0x1] ss:$2 sm:$0xff] %v5308_v31 }
 0x342   : > { %2241 = vst [vmem:[#allocation2 + $0x360] sm:$0xf0] %v2227_v54  ;;  %3795 = vmatpush.msrb.mxu0 %v3516_v55  ;;  %2578 = vrot.lane.b32.xlu2 %v5436_v58, %s4123_s18  ;;  %v5520_v58 = vld.sshfl [vmem:[#allocation1 + $0x28] sm:$0xff pattern:$0x75316420] }
 0x343   : > { %v2215_v62 = vpop.permute.xlu0 %2214  ;;  %2683 = vst [vmem:[#allocation1 + $0x21] ss:$2 sm:$0xff] %v5325_v34 }
 0x344   : > { %v2225_v59 = vsel %vm2160_vm15, %v5404_v29, %v2215_v62  ;;  %v2226_v12 = vsel %vm2160_vm15, %v2215_v62, %v2217_v2  ;;  %3796 = vmatpush.msrb.mxu0 %v3509_v57  ;;  %v5515_v56 = vpop.permute.xlu2 %2332  ;;  %v5524_v29 = vld.sshfl [vmem:[#allocation1 + $0x10] sm:$0xff pattern:$0x75316420]  ;;  %2685 = vst [vmem:[#allocation1 + $0x31] ss:$2 sm:$0xff] %v5341_v44 }
 0x345   : > { %2239 = vst [vmem:[#allocation2 + $0x5b0] sm:$0xf0] %v2225_v59 }
 0x346   : > { %2240 = vst [vmem:[#allocation2 + $0x210] sm:$0xf0] %v2226_v12  ;;  %3797 = vmatpush.msrb.mxu0 %v3502_v3  ;;  %2576 = vrot.lane.b32.xlu1 %v5430_v51, %s4123_s18  ;;  %v3488_v51 = vld [vmem:[#allocation2 + $0x248] sm:$0xff] }
 0x347   : > { %2803 = vst [vmem:[#allocation1 + $0x11] ss:$2 sm:$0xff] %v5322_v32 }
 0x348   : > { %3798 = vmatpush.msrb.mxu0 %v3495_v9  ;;  %v2267_v31 = vpop.permute.xlu1 %2266  ;;  %v5541_v24 = vld.sshfl [vmem:[#allocation1 + $0x8] sm:$0xff pattern:$0x75316420]  ;;  %v5550_v28 = vld.sshfl [vmem:[#allocation1] sm:$0xff pattern:$0x75316420] }
 0x349   : > { %2574 = vrot.lane.b32.xlu0 %v5427_v41, %s4123_s18  ;;  %v2283_v15 = vsel %vm2282_vm0, %v2267_v31, %v5444_v5  ;;  %v5544_v41 = vld [vmem:[%s4171_s20 + $0x4] sm:$0xff] }
 0x34a   : > { %2297 = vst [vmem:[#allocation2 + $0x418] sm:$0xf] %v2283_v15  ;;  %3799 = vmatpush.msrb.mxu0 %v3488_v51  ;;  %2584 = vrot.lane.b32.xlu2 %v5472_v27, %s4123_s18  ;;  %v5577_v39 = vld.sshfl [vmem:[#allocation1 + $0x20] sm:$0xff pattern:$0x75316420] }
 0x34b   : > { %v2221_v20 = vpop.permute.xlu0 %2220  ;;  %2861 = vst [vmem:[#allocation1] ss:$2 sm:$0xff] %v5544_v41  ;;  %v5606_v2 = vld.sshfl [vmem:[#allocation1 + $0x30] sm:$0xff pattern:$0x75316420] }
 0x34c   : > { %v2228_v25 = vsel %vm2160_vm15, %v5421_v45, %v2221_v20  ;;  %3800 = vmatpush.msrb.mxu0 %v3481_v18  ;;  %v5548_v10 = vpop.permute.xlu2 %2338 }
 0x34d   : > { %2242 = vst [vmem:[#allocation2 + $0x290] sm:$0xf0] %v2228_v25 }
 0x34e   : > { %3801 = vmatpush.msrb.mxu0 %v3474_v30  ;;  %2582 = vrot.lane.b32.xlu1 %v5448_v16, %s4123_s18  ;;  %v5555_v8 = vld.sshfl [vmem:[#allocation1 + $0x10] sm:$0xff pattern:$0x75316420]  ;;  %v5557_v27 = vld.sshfl [vmem:[#allocation1 + $0x18] sm:$0xff pattern:$0x75316420] }
 0x34f   : > { %2863 = vst [vmem:[#allocation1 + $0x10] ss:$2 sm:$0xff] %v5280_v6 }
 0x350   : > { %v2273_v21 = vpop.permute.xlu1 %2272 }
 0x351   : > { %2580 = vrot.lane.b32.xlu0 %v5450_v50, %s4123_s18  ;;  %v2286_v45 = vsel %vm2282_vm0, %v2273_v21, %v5469_v7  ;;  %v5573_v50 = vld.sshfl [vmem:[#allocation1 + $0x28] sm:$0xff pattern:$0x75316420] }
 0x352   : > { %2300 = vst [vmem:[#allocation2 + $0x118] sm:$0xf] %v2286_v45  ;;  %2634 = vrot.lane.b32.xlu2 %v5455_v22, %s4124_s19  ;;  %v5575_v52 = vld.sshfl [vmem:[#allocation1] sm:$0xff pattern:$0x75316420] }
 0x353   : > { %v2271_v16 = vpop.permute.xlu0 %2270  ;;  %2743 = vst [vmem:[#allocation1 + $0x20] ss:$2 sm:$0xff] %v5292_v11  ;;  %v5592_v60 = vld.sshfl [vmem:[#allocation1 + $0x8] sm:$0xff pattern:$0x75316420] }
 0x354   : > { %v2284_v36 = vsel %vm2282_vm0, %v5444_v5, %v2271_v16  ;;  %v2285_v37 = vsel %vm2282_vm0, %v2271_v16, %v2273_v21  ;;  %v5569_v38 = vpop.permute.xlu2 %2388  ;;  %2923 = vst [vmem:[#allocation1 + $0x1] ss:$2 sm:$0xff] %v5585_v43 }
 0x355   : > { %2298 = vst [vmem:[#allocation2 + $0x588] sm:$0xf] %v2284_v36 }
 0x356   : > { %2299 = vst [vmem:[#allocation2 + $0x4c0] sm:$0xf] %v2285_v37  ;;  %2632 = vrot.lane.b32.xlu1 %v5459_v13, %s4124_s19  ;;  %v5579_v22 = vld.sshfl [vmem:[#allocation1 + $0x10] sm:$0xff pattern:$0x75316420] }
 0x357   : > { %v5582_v5 = vld.sshfl [vmem:[#allocation1 + $0x18] sm:$0xff pattern:$0x75316420] }
 0x358   : > { %v2279_v1 = vpop.permute.xlu1 %2278  ;;  %2925 = vst [vmem:[#allocation1 + $0x11] ss:$2 sm:$0xff] %v5322_v32 }
 0x359   : > { %2586 = vrot.lane.b32.xlu0 %v5476_v61, %s4123_s18  ;;  %v2289_v13 = vsel %vm2282_vm0, %v2279_v1, %v5494_v40  ;;  %v5604_v40 = vld.sshfl [vmem:[#allocation1 + $0x38] sm:$0xff pattern:$0x75316420] }
 0x35a   : > { %2303 = vst [vmem:[#allocation2 + $0x278] sm:$0xf] %v2289_v13  ;;  %2640 = vrot.lane.b32.xlu2 %v5517_v63, %s4124_s19  ;;  %v5654_v20 = vld.sshfl [vmem:[#allocation1 + $0x20] sm:$0xff pattern:$0x75316420] }
 0x35b   : > { %v2277_v46 = vpop.permute.xlu0 %2276  ;;  %2745 = vst [vmem:[#allocation1 + $0x30] ss:$2 sm:$0xff] %v5295_v48  ;;  %v5622_v59 = vld.sshfl [vmem:[#allocation1 + $0x8] sm:$0xff pattern:$0x75316420] }
 0x35c   : > { %v2287_v49 = vsel %vm2282_vm0, %v5469_v7, %v2277_v46  ;;  %v2288_v53 = vsel %vm2282_vm0, %v2277_v46, %v2279_v1  ;;  %v5600_v61 = vpop.permute.xlu2 %2394 }
 0x35d   : > { %2301 = vst [vmem:[#allocation2 + $0x3a0] sm:$0xf] %v2287_v49 }
 0x35e   : > { %2302 = vst [vmem:[#allocation2 + $0x5a0] sm:$0xf] %v2288_v53  ;;  %2638 = vrot.lane.b32.xlu1 %v5463_v26, %s4124_s19  ;;  %v5619_v26 = vld.sshfl [vmem:[#allocation1] sm:$0xff pattern:$0x75316420] }
 0x35f   : > { %v5609_v55 = vld.sshfl [vmem:[#allocation1 + $0x10] sm:$0xff pattern:$0x75316420]  ;;  %v5615_v57 = vld.sshfl [vmem:[#allocation1 + $0x18] sm:$0xff pattern:$0x75316420] }
 0x360   : > { %v2331_v54 = vpop.permute.xlu1 %2330  ;;  %2985 = vst [vmem:[#allocation1 + $0x10] ss:$2 sm:$0xff] %v5280_v6 }
 0x361   : > { %2636 = vrot.lane.b32.xlu0 %v5461_v23, %s4124_s19  ;;  %v2345_v7 = vsel %vm2282_vm0, %v2331_v54, %v5515_v56  ;;  %2983 = vst [vmem:[#allocation1] ss:$2 sm:$0xff] %v5544_v41 }
 0x362   : > { %2359 = vst [vmem:[#allocation2 + $0x588] sm:$0xf0] %v2345_v7  ;;  %2646 = vrot.lane.b32.xlu2 %v5534_v17, %s4124_s19  ;;  %v2752_v36 = vld.sshfl [vmem:[#allocation1 + $0x30] sm:$0xff pattern:$0x75316420] }
 0x363   : > { %v2329_v62 = vpop.permute.xlu0 %2328 }
 0x364   : > { %v2344_v12 = vsel %vm2282_vm0, %v2329_v62, %v2331_v54  ;;  %v5625_v63 = vpop.permute.xlu2 %2400 }
 0x365   : > { %2358 = vst [vmem:[#allocation2 + $0x418] sm:$0xf0] %v2344_v12 }
 0x366   : > { %2644 = vrot.lane.b32.xlu1 %v5538_v19, %s4124_s19 }
 0x367   : > { %v5636_v9 = vld.sshfl [vmem:[#allocation1 + $0x10] sm:$0xff pattern:$0x75316420]  ;;  %v5638_v15 = vld.sshfl [vmem:[#allocation1 + $0x18] sm:$0xff pattern:$0x75316420] }
 0x368   : > { %v2337_v23 = vpop.permute.xlu1 %2336  ;;  %v5640_v51 = vld.sshfl [vmem:[#allocation1] sm:$0xff pattern:$0x75316420]  ;;  %3047 = vst [vmem:[#allocation1 + $0x11] ss:$2 sm:$0xff] %v5322_v32 }
 0x369   : > { %2642 = vrot.lane.b32.xlu0 %v5520_v58, %s4124_s19  ;;  %v2348_v3 = vsel %vm2282_vm0, %v2337_v23, %v5548_v10  ;;  %v5648_v19 = vld.sshfl [vmem:[#allocation1 + $0x8] sm:$0xff pattern:$0x75316420] }
 0x36a   : > { %2362 = vst [vmem:[#allocation2 + $0x3a0] sm:$0xf0] %v2348_v3  ;;  %2698 = vrot.lane.b32.xlu2 %v5487_v35, %s4124_s19  ;;  %v5650_v35 = vld.sshfl [vmem:[#allocation1 + $0x28] sm:$0xff pattern:$0x75316420] }
 0x36b   : > { %v2335_v31 = vpop.permute.xlu0 %2334  ;;  %2805 = vst [vmem:[#allocation1 + $0x21] ss:$2 sm:$0xff] %v5325_v34 }
 0x36c   : > { %v2346_v17 = vsel %vm2282_vm0, %v5515_v56, %v2335_v31  ;;  %v2347_v18 = vsel %vm2282_vm0, %v2335_v31, %v2337_v23  ;;  %v5645_v58 = vpop.permute.xlu2 %2452  ;;  %3045 = vst [vmem:[#allocation1 + $0x1] ss:$2 sm:$0xff] %v5585_v43 }
 0x36d   : > { %2360 = vst [vmem:[#allocation2 + $0x4c0] sm:$0xf0] %v2346_v17 }
 0x36e   : > { %2361 = vst [vmem:[#allocation2 + $0x118] sm:$0xf0] %v2347_v18  ;;  %2696 = vrot.lane.b32.xlu1 %v5485_v42, %s4124_s19 }
 0x36f   : > { %v5662_v30 = vld.sshfl [vmem:[#allocation1 + $0x10] sm:$0xff pattern:$0x75316420]  ;;  %v5664_v21 = vld.sshfl [vmem:[#allocation1 + $0x18] sm:$0xff pattern:$0x75316420] }
 0x370   : > { %v2343_v56 = vpop.permute.xlu1 %2342  ;;  %3107 = vst [vmem:[#allocation1 + $0x10] ss:$2 sm:$0xff] %v5280_v6 }
 0x371   : > { %2694 = vrot.lane.b32.xlu0 %v5489_v47, %s4124_s19  ;;  %v5674_v47 = vld.sshfl [vmem:[#allocation1 + $0x38] sm:$0xff pattern:$0x75316420] }
 0x372   : > { %2704 = vrot.lane.b32.xlu2 %v5573_v50, %s4124_s19  ;;  %2807 = vst [vmem:[#allocation1 + $0x31] ss:$2 sm:$0xff] %v5341_v44  ;;  %v2812_v31 = vld.sshfl [vmem:[#allocation1 + $0x20] sm:$0xff pattern:$0x75316420] }
 0x373   : > { %v2341_v25 = vpop.permute.xlu0 %2340  ;;  %v5677_v37 = vld.sshfl [vmem:[#allocation1] sm:$0xff pattern:$0x75316420]  ;;  %v5679_v50 = vld.sshfl [vmem:[#allocation1 + $0x8] sm:$0xff pattern:$0x75316420] }
 0x374   : > { %v2349_v42 = vsel %vm2282_vm0, %v5548_v10, %v2341_v25  ;;  %v2350_v45 = vsel %vm2282_vm0, %v2341_v25, %v2343_v56  ;;  %v5669_v16 = vpop.permute.xlu2 %2458  ;;  %3105 = vst [vmem:[#allocation1] ss:$2 sm:$0xff] %v5544_v41 }
 0x375   : > { %2363 = vst [vmem:[#allocation2 + $0x5a0] sm:$0xf0] %v2349_v42 }
 0x376   : > { %2364 = vst [vmem:[#allocation2 + $0x278] sm:$0xf0] %v2350_v45  ;;  %2702 = vrot.lane.b32.xlu1 %v5577_v39, %s4124_s19 }
 0x377   : > { %v5688_v13 = vld.sshfl [vmem:[#allocation1 + $0x10] sm:$0xff pattern:$0x75316420]  ;;  %v5690_v46 = vld.sshfl [vmem:[#allocation1 + $0x18] sm:$0xff pattern:$0x75316420] }
 0x378   : > { %v2393_v10 = vpop.permute.xlu1 %2392  ;;  %3169 = vst [vmem:[#allocation1 + $0x11] ss:$2 sm:$0xff] %v5322_v32 }
 0x379   : > { %2700 = vrot.lane.b32.xlu0 %v5496_v33, %s4124_s19  ;;  %v2407_v1 = vsel %vm2404_vm1, %v2393_v10, %v5600_v61  ;;  %v2815_v18 = vld.sshfl [vmem:[#allocation1 + $0x38] sm:$0xff pattern:$0x75316420]  ;;  %v5731_v56 = vld.sshfl [vmem:[#allocation1 + $0x30] sm:$0xff pattern:$0x75316420] }
 0x37a   : > { %2421 = vst [vmem:[#allocation2 + $0x2c8] sm:$0xf] %v2407_v1  ;;  %2754 = vrot.lane.b32.xlu2 %v5508_v0, %s4125_s21 }
 0x37b   : > { %v2391_v39 = vpop.permute.xlu0 %2390  ;;  %v5700_v54 = vld.sshfl [vmem:[#allocation1] sm:$0xff pattern:$0x75316420]  ;;  %v5702_v7 = vld.sshfl [vmem:[#allocation1 + $0x8] sm:$0xff pattern:$0x75316420] }
 0x37c   : > { %v2405_v49 = vsel %vm2404_vm1, %v5569_v38, %v2391_v39  ;;  %v2406_v33 = vsel %vm2404_vm1, %v2391_v39, %v2393_v10  ;;  %v5695_v53 = vpop.permute.xlu2 %2464  ;;  %3167 = vst [vmem:[#allocation1 + $0x1] ss:$2 sm:$0xff] %v5585_v43 }
 0x37d   : > { %2419 = vst [vmem:[#allocation2 + $0x168] sm:$0xf] %v2405_v49 }
 0x37e   : > { %2420 = vst [vmem:[#allocation2 + $0x148] sm:$0xf] %v2406_v33  ;;  %2708 = vrot.lane.b32.xlu1 %v5604_v40, %s4124_s19 }
 0x37f   : > { %v5711_v12 = vld.sshfl [vmem:[#allocation1 + $0x10] sm:$0xff pattern:$0x75316420]  ;;  %v5713_v40 = vld.sshfl [vmem:[#allocation1 + $0x18] sm:$0xff pattern:$0x75316420] }
 0x380   : > { %v2399_v0 = vpop.permute.xlu1 %2398  ;;  %3229 = vst [vmem:[#allocation1 + $0x10] ss:$2 sm:$0xff] %v5280_v6 }
 0x381   : > { %2706 = vrot.lane.b32.xlu0 %v5606_v2, %s4124_s19  ;;  %v2410_v38 = vsel %vm2404_vm1, %v2399_v0, %v5625_v63  ;;  %2867 = vst [vmem:[#allocation1 + $0x30] ss:$2 sm:$0xff] %v5295_v48 }
 0x382   : > { %2424 = vst [vmem:[#allocation2 + $0x400] sm:$0xf] %v2410_v38  ;;  %2760 = vrot.lane.b32.xlu2 %v5527_v14, %s4125_s21  ;;  %v5723_v14 = vld.sshfl [vmem:[#allocation1 + $0x28] sm:$0xff pattern:$0x75316420] }
 0x383   : > { %v2397_v62 = vpop.permute.xlu0 %2396  ;;  %2865 = vst [vmem:[#allocation1 + $0x20] ss:$2 sm:$0xff] %v5292_v11  ;;  %v5742_v45 = vld.sshfl [vmem:[#allocation1 + $0x8] sm:$0xff pattern:$0x75316420] }
 0x384   : > { %v2408_v23 = vsel %vm2404_vm1, %v5600_v61, %v2397_v62  ;;  %v2409_v3 = vsel %vm2404_vm1, %v2397_v62, %v2399_v0  ;;  %v5718_v2 = vpop.permute.xlu2 %2514 }
 0x385   : > { %2422 = vst [vmem:[#allocation2 + $0x140] sm:$0xf] %v2408_v23 }
 0x386   : > { %2423 = vst [vmem:[#allocation2 + $0x160] sm:$0xf] %v2409_v3  ;;  %2758 = vrot.lane.b32.xlu1 %v5524_v29, %s4125_s21 }
 0x387   : > { %v5737_v42 = vld.sshfl [vmem:[#allocation1 + $0x10] sm:$0xff pattern:$0x75316420]  ;;  %v5744_v10 = vld.sshfl [vmem:[#allocation1 + $0x18] sm:$0xff pattern:$0x75316420] }
 0x388   : > { %v2451_v17 = vpop.permute.xlu1 %2450  ;;  %3291 = vst [vmem:[#allocation1 + $0x11] ss:$2 sm:$0xff] %v5322_v32 }
 0x389   : > { %2756 = vrot.lane.b32.xlu0 %v5510_v4, %s4125_s21  ;;  %v2466_v61 = vsel %vm2404_vm1, %v2451_v17, %v5645_v58  ;;  %v5740_v4 = vld.sshfl [vmem:[#allocation1] sm:$0xff pattern:$0x75316420] }
 0x38a   : > { %2480 = vst [vmem:[#allocation2 + $0x168] sm:$0xf0] %v2466_v61  ;;  %2766 = vrot.lane.b32.xlu2 %v2752_v36, %s4125_s21  ;;  %v5748_v36 = vld.sshfl [vmem:[#allocation1 + $0x20] sm:$0xff pattern:$0x75316420] }
 0x38b   : > { %v2403_v6 = vpop.permute.xlu0 %2402  ;;  %v5750_v1 = vld.sshfl [vmem:[#allocation1 + $0x28] sm:$0xff pattern:$0x75316420]  ;;  %3227 = vst [vmem:[#allocation1] ss:$2 sm:$0xff] %v5544_v41 }
 0x38c   : > { %v2411_v29 = vsel %vm2404_vm1, %v5625_v63, %v2403_v6  ;;  %v5735_v25 = vpop.permute.xlu2 %2520  ;;  %2927 = vst [vmem:[#allocation1 + $0x21] ss:$2 sm:$0xff] %v5325_v34 }
 0x38d   : > { %2425 = vst [vmem:[#allocation2 + $0x3b8] sm:$0xf] %v2411_v29 }
 0x38e   : > { %2764 = vrot.lane.b32.xlu1 %v5650_v35, %s4125_s21 }
 0x38f   : > { %v5773_v62 = vld.sshfl [vmem:[#allocation1 + $0x10] sm:$0xff pattern:$0x75316420] }
 0x390   : > { %v2457_v63 = vpop.permute.xlu1 %2456 }
 0x391   : > { %2762 = vrot.lane.b32.xlu0 %v5654_v20, %s4125_s21  ;;  %v2469_v39 = vsel %vm2404_vm1, %v2457_v63, %v5669_v16  ;;  %v3342_v20 = vld [vmem:[%s4171_s20 + $0xc] sm:$0xff] }
 0x392   : > { %2483 = vst [vmem:[#allocation2 + $0x140] sm:$0xf0] %v2469_v39  ;;  %2818 = vrot.lane.b32.xlu2 %v5541_v24, %s4125_s21  ;;  %v5785_v3 = vld.sshfl [vmem:[#allocation1 + $0x8] sm:$0xff pattern:$0x75316420] }
 0x393   : > { %v2455_v35 = vpop.permute.xlu0 %2454  ;;  %v5768_v32 = vld.sshfl [vmem:[#allocation1 + $0x20] sm:$0xff pattern:$0x75316420]  ;;  %v5771_v38 = vld.sshfl [vmem:[#allocation1 + $0x28] sm:$0xff pattern:$0x75316420] }
 0x394   : > { %v2467_v49 = vsel %vm2404_vm1, %v5645_v58, %v2455_v35  ;;  %v2468_v33 = vsel %vm2404_vm1, %v2455_v35, %v2457_v63  ;;  %v5764_v0 = vpop.permute.xlu2 %2572  ;;  %2987 = vst [vmem:[#allocation1 + $0x20] ss:$2 sm:$0xff] %v5292_v11  ;;  %v5776_v58 = vld.sshfl [vmem:[#allocation1 + $0x18] sm:$0xff pattern:$0x75316420] }
 0x395   : > { %2481 = vst [vmem:[#allocation2 + $0x148] sm:$0xf0] %v2467_v49  ;;  %v5800_v63 = vld.sshfl [vmem:[#allocation1 + $0x30] sm:$0xff pattern:$0x75316420] }
 0x396   : > { %2482 = vst [vmem:[#allocation2 + $0x2c8] sm:$0xf0] %v2468_v33  ;;  %2816 = vrot.lane.b32.xlu1 %v5550_v28, %s4125_s21  ;;  %v5782_v28 = vld.sshfl [vmem:[#allocation1] sm:$0xff pattern:$0x75316420] }
 0x397   : > { %3351 = vst [vmem:[#allocation1 + $0x10] ss:$2 sm:$0xff] %v3342_v20  ;;  %v5807_v35 = vld.sshfl [vmem:[#allocation1 + $0x38] sm:$0xff pattern:$0x75316420] }
 0x398   : > { %v2463_v24 = vpop.permute.xlu1 %2462  ;;  %3289 = vst [vmem:[#allocation1 + $0x1] ss:$2 sm:$0xff] %v5585_v43 }
 0x399   : > { %2768 = vrot.lane.b32.xlu0 %v5674_v47, %s4125_s21  ;;  %v2472_v23 = vsel %vm2404_vm1, %v2463_v24, %v5695_v53  ;;  %2929 = vst [vmem:[#allocation1 + $0x31] ss:$2 sm:$0xff] %v5341_v44 }
 0x39a   : > { %2486 = vst [vmem:[#allocation2 + $0x3b8] sm:$0xf0] %v2472_v23  ;;  %2824 = vrot.lane.b32.xlu2 %v2812_v31, %s4125_s21 }
 0x39b   : > { %v2461_v17 = vpop.permute.xlu0 %2460  ;;  %v5795_v53 = vld.sshfl [vmem:[#allocation1 + $0x20] sm:$0xff pattern:$0x75316420]  ;;  %v5797_v31 = vld.sshfl [vmem:[#allocation1 + $0x28] sm:$0xff pattern:$0x75316420] }
 0x39c   : > { %v2470_v61 = vsel %vm2404_vm1, %v5669_v16, %v2461_v17  ;;  %v2471_v47 = vsel %vm2404_vm1, %v2461_v17, %v2463_v24  ;;  %v5791_v6 = vpop.permute.xlu2 %2578  ;;  %3049 = vst [vmem:[#allocation1 + $0x21] ss:$2 sm:$0xff] %v5325_v34  ;;  %v3403_v16 = vld [vmem:[%s4188_s23 + $0xc] sm:$0xff] }
 0x39d   : > { %2484 = vst [vmem:[#allocation2 + $0x160] sm:$0xf0] %v2470_v61 }
 0x39e   : > { %2485 = vst [vmem:[#allocation2 + $0x400] sm:$0xf0] %v2471_v47  ;;  %2822 = vrot.lane.b32.xlu1 %v5557_v27, %s4125_s21  ;;  %v3358_v27 = vld.sshfl [vmem:[#allocation1 + $0x10] sm:$0xff pattern:$0x75316420] }
 0x39f   : > { %v5810_v49 = vld.sshfl [vmem:[#allocation1 + $0x18] sm:$0xff pattern:$0x75316420]  ;;  %v5813_v20 = vld.sshfl [vmem:[#allocation1] sm:$0xff pattern:$0x75316420] }
 0x3a0   : > { %v2513_v29 = vpop.permute.xlu1 %2512  ;;  %3413 = vst [vmem:[#allocation1 + $0x11] ss:$2 sm:$0xff] %v3403_v16  ;;  %v5834_v16 = vld.sshfl [vmem:[#allocation1 + $0x38] sm:$0xff pattern:$0x75316420] }
 0x3a1   : > { %2820 = vrot.lane.b32.xlu0 %v5555_v8, %s4125_s21  ;;  %v2528_v39 = vsel %vm2526_vm2, %v2513_v29, %v5718_v2  ;;  %v5818_v8 = vld.sshfl [vmem:[#allocation1 + $0x8] sm:$0xff pattern:$0x75316420]  ;;  %6391 = vst [vmem:[#allocation4_spill] sm:$0xff] %v5834_v16 }
 0x3a2   : > { %2542 = vst [vmem:[#allocation2 + $0x380] sm:$0xf] %v2528_v39  ;;  %2830 = vrot.lane.b32.xlu2 %v2815_v18, %s4125_s21 }
 0x3a3   : > { %v2511_v33 = vpop.permute.xlu0 %2510  ;;  %3349 = vst [vmem:[#allocation1] ss:$2 sm:$0xff] %v5544_v41  ;;  %v5823_v18 = vld.sshfl [vmem:[#allocation1 + $0x20] sm:$0xff pattern:$0x75316420] }
 0x3a4   : > { %v2527_v24 = vsel %vm2526_vm2, %v2511_v33, %v2513_v29  ;;  %v5816_v23 = vpop.permute.xlu2 %2584  ;;  %v5825_v17 = vld.sshfl [vmem:[#allocation1 + $0x28] sm:$0xff pattern:$0x75316420]  ;;  %v5832_v29 = vld.sshfl [vmem:[#allocation1 + $0x30] sm:$0xff pattern:$0x75316420] }
 0x3a5   : > { %2541 = vst [vmem:[#allocation2 + $0x180] sm:$0xf] %v2527_v24 }
 0x3a6   : > { %2828 = vrot.lane.b32.xlu1 %v5731_v56, %s4125_s21  ;;  %3109 = vst [vmem:[#allocation1 + $0x20] ss:$2 sm:$0xff] %v5292_v11 }
 0x3a7   : > { %6390 = vst [vmem:[#allocation3_spill] sm:$0xff] %v5832_v29 }
 0x3a8   : > { %v2519_v61 = vpop.permute.xlu1 %2518  ;;  %2989 = vst [vmem:[#allocation1 + $0x30] ss:$2 sm:$0xff] %v5295_v48 }
 0x3a9   : > { %2826 = vrot.lane.b32.xlu0 %v5723_v14, %s4125_s21  ;;  %v2531_v47 = vsel %vm2526_vm2, %v2519_v61, %v5735_v25 }
 0x3aa   : > { %3368 = vrot.lane.b32.xlu2 %v3358_v27, %s4126_s22  ;;  %2545 = vst [vmem:[#allocation2 + $0x4f8] sm:$0xf] %v2531_v47  ;;  %v3357_v33 = vld.sshfl [vmem:[#allocation1 + $0x8] sm:$0xff pattern:$0x75316420] }
 0x3ab   : > { %v2517_v41 = vpop.permute.xlu0 %2516  ;;  %v5844_v24 = vld.sshfl [vmem:[#allocation1] sm:$0xff pattern:$0x75316420] }
 0x3ac   : > { %v2529_v56 = vsel %vm2526_vm2, %v5718_v2, %v2517_v41  ;;  %v2530_v39 = vsel %vm2526_vm2, %v2517_v41, %v2519_v61  ;;  %v5841_v14 = vpop.permute.xlu2 %2634  ;;  %3411 = vst [vmem:[#allocation1 + $0x1] ss:$2 sm:$0xff] %v5585_v43 }
 0x3ad   : > { %2543 = vst [vmem:[#allocation2 + $0x508] sm:$0xf] %v2529_v56  ;;  %v5846_v29 = vld.sshfl [vmem:[#allocation1 + $0x20] sm:$0xff pattern:$0x75316420] }
 0x3ae   : > { %2544 = vst [vmem:[#allocation2 + $0x348] sm:$0xf] %v2530_v39  ;;  %3366 = vrot.lane.b32.xlu1 %v3357_v33, %s4126_s22  ;;  %v5848_v27 = vld.sshfl [vmem:[#allocation1 + $0x28] sm:$0xff pattern:$0x75316420] }
 0x3af   : > { %3171 = vst [vmem:[#allocation1 + $0x21] ss:$2 sm:$0xff] %v5325_v34  ;;  %v5854_v2 = vld.sshfl [vmem:[#allocation1 + $0x30] sm:$0xff pattern:$0x75316420] }
 0x3b0   : > { %v2525_v47 = vpop.permute.xlu1 %2524  ;;  %v5856_v61 = vld.sshfl [vmem:[#allocation1 + $0x38] sm:$0xff pattern:$0x75316420]  ;;  %v3420_v56 = vld.sshfl [vmem:[#allocation1 + $0x10] sm:$0xff pattern:$0x75316420] }
 0x3b1   : > { %2876 = vrot.lane.b32.xlu0 %v5575_v52, %s4127_s24  ;;  %3051 = vst [vmem:[#allocation1 + $0x31] ss:$2 sm:$0xff] %v5341_v44 }
 0x3b2   : > { %3244 = vrot.lane.b32.xlu2 %v5785_v3, %s4128_s25 }
 0x3b3   : > { %v2523_v41 = vpop.permute.xlu0 %2522  ;;  %v3419_v3 = vld.sshfl [vmem:[#allocation1 + $0x8] sm:$0xff pattern:$0x75316420] }
 0x3b4   : > { %v2532_v34 = vsel %vm2526_vm2, %v5735_v25, %v2523_v41  ;;  %v2533_v39 = vsel %vm2526_vm2, %v2523_v41, %v2525_v47  ;;  %v5864_v52 = vpop.permute.xlu2 %2640 }
 0x3b5   : > { %2546 = vst [vmem:[#allocation2 + $0x4b8] sm:$0xf] %v2532_v34 }
 0x3b6   : > { %2547 = vst [vmem:[#allocation2 + $0x1c0] sm:$0xf] %v2533_v39  ;;  %3430 = vrot.lane.b32.xlu1 %v3420_v56, %s4126_s22  ;;  %v5867_v43 = vld.sshfl [vmem:[#allocation1 + $0x20] sm:$0xff pattern:$0x75316420] }
 0x3b7   : > { %v5869_v33 = vld.sshfl [vmem:[#allocation1 + $0x28] sm:$0xff pattern:$0x75316420] }
 0x3b8   : > { %3231 = vst [vmem:[#allocation1 + $0x20] ss:$2 sm:$0xff] %v5292_v11  ;;  %v2577_v16 = vpop.permute.xlu1 %2576  ;;  %v5875_v47 = vld.sshfl [vmem:[#allocation1 + $0x30] sm:$0xff pattern:$0x75316420] }
 0x3b9   : > { %3428 = vrot.lane.b32.xlu0 %v3419_v3, %s4126_s22  ;;  %v2590_v25 = vsel %vm2526_vm2, %v2577_v16, %v5791_v6  ;;  %v5877_v41 = vld.sshfl [vmem:[#allocation1 + $0x38] sm:$0xff pattern:$0x75316420] }
 0x3ba   : > { %6392 = vst [vmem:[#allocation5_spill] sm:$0xff] %v5877_v41  ;;  %3308 = vrot.lane.b32.xlu2 %v5773_v62, %s4128_s25 }
 0x3bb   : > { %3111 = vst [vmem:[#allocation1 + $0x30] ss:$2 sm:$0xff] %v5295_v48  ;;  %v2575_v56 = vpop.permute.xlu0 %2574 }
 0x3bc   : > { %2604 = vst [vmem:[#allocation2 + $0x508] sm:$0xf0] %v2590_v25  ;;  %v2588_v11 = vsel %vm2526_vm2, %v5764_v0, %v2575_v56  ;;  %v2589_v34 = vsel %vm2526_vm2, %v2575_v56, %v2577_v16  ;;  %v2647_v39 = vpop.permute.xlu2 %2646  ;;  %v3418_v56 = vld.sshfl [vmem:[#allocation1] sm:$0xff pattern:$0x75316420] }
 0x3bd   : > { %2602 = vst [vmem:[#allocation2 + $0x180] sm:$0xf0] %v2588_v11 }
 0x3be   : > { %2603 = vst [vmem:[#allocation2 + $0x380] sm:$0xf0] %v2589_v34  ;;  %3306 = vrot.lane.b32.xlu1 %v5818_v8, %s4128_s25 }
 0x3c0   : > { %v2583_v3 = vpop.permute.xlu1 %2582 }
 0x3c1   : > { %3246 = vrot.lane.b32.xlu0 %v5737_v42, %s4128_s25  ;;  %v2593_v62 = vsel %vm2526_vm2, %v2583_v3, %v5816_v23 }
 0x3c2   : > { %v5891_v41 = vld.sshfl [vmem:[#allocation1 + $0x30] sm:$0xff pattern:$0x75316420]  ;;  %v5893_v25 = vld.sshfl [vmem:[#allocation1 + $0x38] sm:$0xff pattern:$0x75316420]  ;;  %3184 = vrot.lane.b32.xlu2 %v5742_v45, %s4129_s26 }
 0x3c3   : > { %3173 = vst [vmem:[#allocation1 + $0x31] ss:$2 sm:$0xff] %v5341_v44  ;;  %v2581_v0 = vpop.permute.xlu0 %2580 }
 0x3c4   : > { %2607 = vst [vmem:[#allocation2 + $0x4b8] sm:$0xf0] %v2593_v62  ;;  %v2591_v8 = vsel %vm2526_vm2, %v5791_v6, %v2581_v0  ;;  %v2592_v42 = vsel %vm2526_vm2, %v2581_v0, %v2583_v3  ;;  %v5901_v16 = vpop.permute.xlu2 %2698 }
 0x3c5   : > { %2605 = vst [vmem:[#allocation2 + $0x348] sm:$0xf0] %v2591_v8 }
 0x3c6   : > { %2606 = vst [vmem:[#allocation2 + $0x4f8] sm:$0xf0] %v2592_v42  ;;  %3124 = vrot.lane.b32.xlu1 %v5688_v13, %s4129_s26 }
 0x3c8   : > { %v2633_v11 = vpop.permute.xlu1 %2632 }
 0x3c9   : > { %3122 = vrot.lane.b32.xlu0 %v5702_v7, %s4129_s26  ;;  %v2649_v45 = vsel %vm2648_vm3, %v2633_v11, %v5841_v14 }
 0x3ca   : > { %v5909_v34 = vld.sshfl [vmem:[#allocation1 + $0x30] sm:$0xff pattern:$0x75316420]  ;;  %v5911_v6 = vld.sshfl [vmem:[#allocation1 + $0x38] sm:$0xff pattern:$0x75316420]  ;;  %3426 = vrot.lane.b32.xlu2 %v3418_v56, %s4126_s22 }
 0x3cb   : > { %3233 = vst [vmem:[#allocation1 + $0x30] ss:$2 sm:$0xff] %v5295_v48  ;;  %v2587_v3 = vpop.permute.xlu0 %2586  ;;  %v3344_v56 = vld [vmem:[%s4171_s20 + $0x1c] sm:$0xff] }
 0x3cc   : > { %v2594_v13 = vsel %vm2526_vm2, %v5816_v23, %v2587_v3  ;;  %2663 = vst [vmem:[#allocation2 + $0x280] sm:$0xf] %v2649_v45  ;;  %v5917_v62 = vpop.permute.xlu2 %2704 }
 0x3cd   : > { %2608 = vst [vmem:[#allocation2 + $0x1c0] sm:$0xf0] %v2594_v13 }
 0x3ce   : > { %3364 = vrot.lane.b32.xlu1 %v5844_v24, %s4126_s22 }
 0x3d0   : > { %v2639_v7 = vpop.permute.xlu1 %2638 }
 0x3d1   : > { %3186 = vrot.lane.b32.xlu0 %v5711_v12, %s4129_s26  ;;  %v2652_v0 = vsel %vm2648_vm3, %v2639_v7, %v5864_v52 }
 0x3d2   : > { %v5925_v48 = vld.sshfl [vmem:[#allocation1 + $0x30] sm:$0xff pattern:$0x75316420]  ;;  %v5927_v8 = vld.sshfl [vmem:[#allocation1 + $0x38] sm:$0xff pattern:$0x75316420]  ;;  %3062 = vrot.lane.b32.xlu2 %v5679_v50, %s4130_s27 }
 0x3d3   : > { %3295 = vst [vmem:[#allocation1 + $0x31] ss:$2 sm:$0xff] %v5341_v44  ;;  %v2637_v23 = vpop.permute.xlu0 %2636 }
 0x3d4   : > { %v2650_v24 = vsel %vm2648_vm3, %v5841_v14, %v2637_v23  ;;  %v2651_v42 = vsel %vm2648_vm3, %v2637_v23, %v2639_v7  ;;  %2666 = vst [vmem:[#allocation2 + $0x268] sm:$0xf] %v2652_v0  ;;  %v5935_v12 = vpop.permute.xlu2 %2754  ;;  %v3282_v7 = vld [vmem:[%s4188_s23 + $0x14] sm:$0xff] }
 0x3d5   : > { %2664 = vst [vmem:[#allocation2 + $0x350] sm:$0xf] %v2650_v24 }
 0x3d6   : > { %2665 = vst [vmem:[#allocation2 + $0x390] sm:$0xf] %v2651_v42  ;;  %3002 = vrot.lane.b32.xlu1 %v5636_v9, %s4130_s27  ;;  %v3343_v42 = vld [vmem:[%s4171_s20 + $0x14] sm:$0xff] }
 0x3d8   : > { %v2645_v11 = vpop.permute.xlu1 %2644 }
 0x3d9   : > { %3000 = vrot.lane.b32.xlu0 %v5648_v19, %s4130_s27  ;;  %v2655_v44 = vsel %vm2648_vm3, %v2645_v11, %v2647_v39  ;;  %v5956_v19 = vld.sshfl [vmem:[#allocation1 + $0x20] sm:$0xff pattern:$0x75316420]  ;;  %v5958_v39 = vld.sshfl [vmem:[#allocation1 + $0x28] sm:$0xff pattern:$0x75316420] }
 0x3da   : > { %v5943_v50 = vld.sshfl [vmem:[#allocation1 + $0x30] sm:$0xff pattern:$0x75316420]  ;;  %v5945_v14 = vld.sshfl [vmem:[#allocation1 + $0x38] sm:$0xff pattern:$0x75316420]  ;;  %3304 = vrot.lane.b32.xlu2 %v5813_v20, %s4128_s25 }
 0x3db   : > { %3355 = vst [vmem:[#allocation1 + $0x30] ss:$2 sm:$0xff] %v3344_v56  ;;  %v2643_v45 = vpop.permute.xlu0 %2642 }
 0x3dc   : > { %v2653_v9 = vsel %vm2648_vm3, %v5864_v52, %v2643_v45  ;;  %v2654_v3 = vsel %vm2648_vm3, %v2643_v45, %v2645_v11  ;;  %2669 = vst [vmem:[#allocation2 + $0x428] sm:$0xf] %v2655_v44  ;;  %v5952_v13 = vpop.permute.xlu2 %2760 }
 0x3dd   : > { %2667 = vst [vmem:[#allocation2 + $0x30] sm:$0xf] %v2653_v9 }
 0x3de   : > { %2668 = vst [vmem:[#allocation2 + $0x298] sm:$0xf] %v2654_v3  ;;  %3242 = vrot.lane.b32.xlu1 %v5782_v28, %s4128_s25 }
 0x3df   : > { %3293 = vst [vmem:[#allocation1 + $0x21] ss:$2 sm:$0xff] %v3282_v7 }
 0x3e0   : > { %v2697_v20 = vpop.permute.xlu1 %2696 }
 0x3e1   : > { %3064 = vrot.lane.b32.xlu0 %v5662_v30, %s4130_s27  ;;  %v2711_v52 = vsel %vm2648_vm3, %v2697_v20, %v5901_v16 }
 0x3e2   : > { %2725 = vst [vmem:[#allocation2 + $0x350] sm:$0xf0] %v2711_v52  ;;  %2940 = vrot.lane.b32.xlu2 %v5622_v59, %s4127_s24 }
 0x3e3   : > { %v2695_v0 = vpop.permute.xlu0 %2694 }
 0x3e4   : > { %v2710_v28 = vsel %vm2648_vm3, %v2695_v0, %v2697_v20  ;;  %v5968_v23 = vpop.permute.xlu2 %2766 }
 0x3e5   : > { %2724 = vst [vmem:[#allocation2 + $0x280] sm:$0xf0] %v2710_v28 }
 0x3e6   : > { %2880 = vrot.lane.b32.xlu1 %v5579_v22, %s4127_s24  ;;  %v5979_v59 = vld.sshfl [vmem:[#allocation1 + $0x20] sm:$0xff pattern:$0x75316420]  ;;  %v5981_v11 = vld.sshfl [vmem:[#allocation1 + $0x28] sm:$0xff pattern:$0x75316420] }
 0x3e7   : > { %3353 = vst [vmem:[#allocation1 + $0x20] ss:$2 sm:$0xff] %v3343_v42 }
 0x3e8   : > { %v2703_v24 = vpop.permute.xlu1 %2702 }
 0x3e9   : > { %2878 = vrot.lane.b32.xlu0 %v5592_v60, %s4127_s24  ;;  %v2714_v30 = vsel %vm2648_vm3, %v2703_v24, %v5917_v62 }
 0x3ea   : > { %2728 = vst [vmem:[#allocation2 + $0x30] sm:$0xf0] %v2714_v30  ;;  %3182 = vrot.lane.b32.xlu2 %v5740_v4, %s4129_s26 }
 0x3eb   : > { %v2701_v56 = vpop.permute.xlu0 %2700 }
 0x3ec   : > { %v2712_v22 = vsel %vm2648_vm3, %v5901_v16, %v2701_v56  ;;  %v2713_v44 = vsel %vm2648_vm3, %v2701_v56, %v2703_v24  ;;  %v2819_v45 = vpop.permute.xlu2 %2818 }
 0x3ed   : > { %2726 = vst [vmem:[#allocation2 + $0x390] sm:$0xf0] %v2712_v22 }
 0x3ee   : > { %2727 = vst [vmem:[#allocation2 + $0x268] sm:$0xf0] %v2713_v44  ;;  %3120 = vrot.lane.b32.xlu1 %v5700_v54, %s4129_s26  ;;  %v3360_v9 = vld.sshfl [vmem:[#allocation1 + $0x20] sm:$0xff pattern:$0x75316420] }
 0x3ef   : > { %v5992_v3 = vld.sshfl [vmem:[#allocation1 + $0x28] sm:$0xff pattern:$0x75316420] }
 0x3f0   : > { %v2709_v60 = vpop.permute.xlu1 %2708  ;;  %3415 = vst [vmem:[#allocation1 + $0x21] ss:$2 sm:$0xff] %v3282_v7 }
 0x3f1   : > { %2942 = vrot.lane.b32.xlu0 %v5609_v55, %s4127_s24 }
 0x3f2   : > { %2938 = vrot.lane.b32.xlu2 %v5619_v26, %s4127_s24 }
 0x3f3   : > { %v2707_v4 = vpop.permute.xlu0 %2706 }
 0x3f4   : > { %v2715_v16 = vsel %vm2648_vm3, %v5917_v62, %v2707_v4  ;;  %v2716_v20 = vsel %vm2648_vm3, %v2707_v4, %v2709_v60  ;;  %v2825_v52 = vpop.permute.xlu2 %2824  ;;  %v3421_v62 = vld.sshfl [vmem:[#allocation1 + $0x18] sm:$0xff pattern:$0x75316420] }
 0x3f5   : > { %2729 = vst [vmem:[#allocation2 + $0x298] sm:$0xf0] %v2715_v16 }
 0x3f6   : > { %2730 = vst [vmem:[#allocation2 + $0x428] sm:$0xf0] %v2716_v20  ;;  %3060 = vrot.lane.b32.xlu1 %v5677_v37, %s4130_s27 }
 0x3f8   : > { %v2759_v55 = vpop.permute.xlu1 %2758 }
 0x3f9   : > { %2998 = vrot.lane.b32.xlu0 %v5640_v51, %s4130_s27  ;;  %v2773_v26 = vsel %vm2770_vm4, %v2759_v55, %v5952_v13 }
 0x3fa   : > { %2787 = vst [vmem:[#allocation2 + $0x68] sm:$0xf] %v2773_v26  ;;  %3248 = vrot.lane.b32.xlu2 %v5744_v10, %s4128_s25 }
 0x3fb   : > { %v2757_v54 = vpop.permute.xlu0 %2756 }
 0x3fc   : > { %v2771_v7 = vsel %vm2770_vm4, %v5935_v12, %v2757_v54  ;;  %v2772_v0 = vsel %vm2770_vm4, %v2757_v54, %v2759_v55  ;;  %v2831_v37 = vpop.permute.xlu2 %2830  ;;  %v3405_v55 = vld [vmem:[%s4188_s23 + $0x1c] sm:$0xff] }
 0x3fd   : > { %2785 = vst [vmem:[#allocation2 + $0x1a8] sm:$0xf] %v2771_v7 }
 0x3fe   : > { %2786 = vst [vmem:[#allocation2 + $0x228] sm:$0xf] %v2772_v0  ;;  %3432 = vrot.lane.b32.xlu1 %v3421_v62, %s4126_s22 }
 0x400   : > { %v2765_v51 = vpop.permute.xlu1 %2764 }
 0x401   : > { %3370 = vrot.lane.b32.xlu0 %v5810_v49, %s4126_s22  ;;  %v2776_v28 = vsel %vm2770_vm4, %v2765_v51, %v5968_v23 }
 0x402   : > { %2790 = vst [vmem:[#allocation2 + $0x3e8] sm:$0xf] %v2776_v28  ;;  %3188 = vrot.lane.b32.xlu2 %v5713_v40, %s4129_s26 }
 0x403   : > { %v2763_v10 = vpop.permute.xlu0 %2762 }
 0x404   : > { %v2774_v12 = vsel %vm2770_vm4, %v5952_v13, %v2763_v10  ;;  %v2775_v24 = vsel %vm2770_vm4, %v2763_v10, %v2765_v51  ;;  %v6018_v30 = vpop.permute.xlu2 %3368 }
 0x405   : > { %2788 = vst [vmem:[#allocation2 + $0x560] sm:$0xf] %v2774_v12 }
 0x406   : > { %2789 = vst [vmem:[#allocation2 + $0x468] sm:$0xf] %v2775_v24  ;;  %3126 = vrot.lane.b32.xlu1 %v5690_v46, %s4129_s26  ;;  %v3422_v46 = vld.sshfl [vmem:[#allocation1 + $0x20] sm:$0xff pattern:$0x75316420] }
 0x408   : > { %v2817_v49 = vpop.permute.xlu1 %2816 }
 0x409   : > { %3310 = vrot.lane.b32.xlu0 %v5776_v58, %s4128_s25  ;;  %v2832_v42 = vsel %vm2770_vm4, %v2817_v49, %v2819_v45 }
 0x40a   : > { %2846 = vst [vmem:[#allocation2 + $0x1a8] sm:$0xf0] %v2832_v42  ;;  %2882 = vrot.lane.b32.xlu2 %v5582_v5, %s4127_s24 }
 0x40b   : > { %v2769_v40 = vpop.permute.xlu0 %2768 }
 0x40c   : > { %v2777_v13 = vsel %vm2770_vm4, %v5968_v23, %v2769_v40  ;;  %v6029_v56 = vpop.permute.xlu2 %3244 }
 0x40d   : > { %2791 = vst [vmem:[#allocation2 + $0x208] sm:$0xf] %v2777_v13 }
 0x40e   : > { %3066 = vrot.lane.b32.xlu1 %v5664_v21, %s4130_s27 }
 0x410   : > { %v2823_v22 = vpop.permute.xlu1 %2822 }
 0x411   : > { %3004 = vrot.lane.b32.xlu0 %v5638_v15, %s4130_s27  ;;  %v2835_v58 = vsel %vm2770_vm4, %v2823_v22, %v2825_v52 }
 0x412   : > { %2849 = vst [vmem:[#allocation2 + $0x560] sm:$0xf0] %v2835_v58  ;;  %3434 = vrot.lane.b32.xlu2 %v3422_v46, %s4126_s22 }
 0x413   : > { %v2821_v5 = vpop.permute.xlu0 %2820 }
 0x414   : > { %v2833_v44 = vsel %vm2770_vm4, %v2819_v45, %v2821_v5  ;;  %v2834_v23 = vsel %vm2770_vm4, %v2821_v5, %v2823_v22  ;;  %v6039_v60 = vpop.permute.xlu2 %3308 }
 0x415   : > { %2847 = vst [vmem:[#allocation2 + $0x228] sm:$0xf0] %v2833_v44 }
 0x416   : > { %2848 = vst [vmem:[#allocation2 + $0x68] sm:$0xf0] %v2834_v23  ;;  %3372 = vrot.lane.b32.xlu1 %v3360_v9, %s4126_s22 }
 0x418   : > { %v2829_v21 = vpop.permute.xlu1 %2828 }
 0x419   : > { %2944 = vrot.lane.b32.xlu0 %v5615_v57, %s4127_s24  ;;  %v2838_v15 = vsel %vm2770_vm4, %v2829_v21, %v2831_v37  ;;  %v6053_v57 = vld.sshfl [vmem:[#allocation1 + $0x38] sm:$0xff pattern:$0x75316420] }
 0x41a   : > { %2852 = vst [vmem:[#allocation2 + $0x208] sm:$0xf0] %v2838_v15  ;;  %3128 = vrot.lane.b32.xlu2 %v5846_v29, %s4129_s26 }
 0x41b   : > { %v2827_v45 = vpop.permute.xlu0 %2826 }
 0x41c   : > { %v2836_v4 = vsel %vm2770_vm4, %v2825_v52, %v2827_v45  ;;  %v2837_v16 = vsel %vm2770_vm4, %v2827_v45, %v2829_v21  ;;  %v6049_v20 = vpop.permute.xlu2 %3184  ;;  %v3362_v52 = vld.sshfl [vmem:[#allocation1 + $0x30] sm:$0xff pattern:$0x75316420] }
 0x41d   : > { %2850 = vst [vmem:[#allocation2 + $0x468] sm:$0xf0] %v2836_v4 }
 0x41e   : > { %2851 = vst [vmem:[#allocation2 + $0x3e8] sm:$0xf0] %v2837_v16  ;;  %3312 = vrot.lane.b32.xlu1 %v5979_v59, %s4128_s25 }
 0x41f   : > { %3417 = vst [vmem:[#allocation1 + $0x31] ss:$2 sm:$0xff] %v3405_v55 }
 0x420   : > { %v3367_v9 = vpop.permute.xlu1 %3366 }
 0x421   : > { %3250 = vrot.lane.b32.xlu0 %v5956_v19, %s4128_s25  ;;  %v3382_v29 = vsel %vm3380_vm5, %v3367_v9, %v6018_v30 }
 0x422   : > { %3396 = vst [vmem:[#allocation2 + $0x1a0] sm:$0xf] %v3382_v29  ;;  %3068 = vrot.lane.b32.xlu2 %v5823_v18, %s4130_s27 }
 0x423   : > { %v6062_v26 = vpop.permute.xlu0 %2876 }
 0x424   : > { %v3427_v59 = vpop.permute.xlu2 %3426 }
 0x426   : > { %3006 = vrot.lane.b32.xlu1 %v5795_v53, %s4130_s27  ;;  %v3424_v13 = vld.sshfl [vmem:[#allocation1 + $0x30] sm:$0xff pattern:$0x75316420] }
 0x428   : > { %v6066_v54 = vpop.permute.xlu1 %3430 }
 0x429   : > { %3190 = vrot.lane.b32.xlu0 %v5867_v43, %s4129_s26 }
 0x42a   : > { %3374 = vrot.lane.b32.xlu2 %v5992_v3, %s4126_s22 }
 0x42b   : > { %v3429_v19 = vpop.permute.xlu0 %3428 }
 0x42c   : > { %v3443_v62 = vsel %vm3380_vm5, %v3429_v19, %v6066_v54  ;;  %v3442_v18 = vsel %vm3380_vm5, %v3427_v59, %v3429_v19  ;;  %v6075_v7 = vpop.permute.xlu2 %3062 }
 0x42d   : > { %3457 = vst [vmem:[#allocation2 + $0x1a0] sm:$0xf0] %v3443_v62 }
 0x42e   : > { %3456 = vst [vmem:[#allocation2 + $0x138] sm:$0xf0] %v3442_v18  ;;  %2946 = vrot.lane.b32.xlu1 %v5768_v32, %s4127_s24 }
 0x430   : > { %v3307_v53 = vpop.permute.xlu1 %3306 }
 0x431   : > { %2884 = vrot.lane.b32.xlu0 %v5748_v36, %s4127_s24  ;;  %v3321_v43 = vsel %vm3258_vm6, %v3307_v53, %v6039_v60  ;;  %v3423_v36 = vld.sshfl [vmem:[#allocation1 + $0x28] sm:$0xff pattern:$0x75316420] }
 0x432   : > { %3335 = vst [vmem:[#allocation2 + $0x2d8] sm:$0xf0] %v3321_v43  ;;  %3314 = vrot.lane.b32.xlu2 %v5981_v11, %s4128_s25 }
 0x433   : > { %v3247_v3 = vpop.permute.xlu0 %3246 }
 0x434   : > { %v3260_v0 = vsel %vm3258_vm6, %v6029_v56, %v3247_v3  ;;  %v3647_v37 = vld [vmem:[#allocation2 + $0x1a0] sm:$0xff]  ;;  %v3305_v51 = vpop.permute.xlu2 %3304 }
 0x435   : > { %3274 = vst [vmem:[#allocation2 + $0x2d8] sm:$0xf] %v3260_v0  ;;  %3732 = vmatpush.msra.mxu3 %v3647_v37  ;;  %v3320_v32 = vsel %vm3258_vm6, %v3305_v51, %v3307_v53  ;;  %v3598_v0 = vld [vmem:[#allocation2 + $0x380] sm:$0xff]  ;;  %v3591_v51 = vld [vmem:[#allocation2 + $0x148] sm:$0xff] }
 0x436   : > { %3252 = vrot.lane.b32.xlu1 %v5958_v39, %s4128_s25  ;;  %3334 = vst [vmem:[#allocation2 + $0xf8] sm:$0xf0] %v3320_v32  ;;  %v3425_v39 = vld.sshfl [vmem:[#allocation1 + $0x38] sm:$0xff pattern:$0x75316420] }
 0x438   : > { %v6090_v28 = vpop.permute.xlu1 %3124 }
 0x439   : > { %3436 = vrot.lane.b32.xlu0 %v3423_v36, %s4126_s22 }
 0x43a   : > { %3376 = vrot.lane.b32.xlu2 %v3362_v52, %s4126_s22 }
 0x43b   : > { %v6094_v11 = vpop.permute.xlu0 %3122 }
 0x43c   : > { %v3138_v10 = vsel %vm3136_vm7, %v6094_v11, %v6090_v28  ;;  %v3640_v12 = vld [vmem:[#allocation2 + $0x2d8] sm:$0xff]  ;;  %v6099_v24 = vpop.permute.xlu2 %2940 }
 0x43d   : > { %3152 = vst [vmem:[#allocation2 + $0xb8] sm:$0xf] %v3138_v10  ;;  %3733 = vmatpush.msra.mxu3 %v3640_v12  ;;  %v3577_v12 = vld [vmem:[#allocation2 + $0x200] sm:$0xff] }
 0x43e   : > { %3192 = vrot.lane.b32.xlu1 %v5869_v33, %s4129_s26 }
 0x440   : > { %v3365_v49 = vpop.permute.xlu1 %3364 }
 0x441   : > { %3130 = vrot.lane.b32.xlu0 %v5848_v27, %s4129_s26  ;;  %v3381_v42 = vsel %vm3380_vm5, %v3365_v49, %v3367_v9  ;;  %v3604_v49 = vld [vmem:[#allocation2 + $0x280] sm:$0xff] }
 0x442   : > { %3395 = vst [vmem:[#allocation2 + $0x138] sm:$0xf] %v3381_v42  ;;  %3440 = vrot.lane.b32.xlu2 %v3425_v39, %s4126_s22 }
 0x443   : > { %v3187_v40 = vpop.permute.xlu0 %3186 }
 0x444   : > { %v3199_v46 = vsel %vm3136_vm7, %v6049_v20, %v3187_v40  ;;  %v3183_v22 = vpop.permute.xlu2 %3182 }
 0x445   : > { %3213 = vst [vmem:[#allocation2 + $0xb8] sm:$0xf0] %v3199_v46  ;;  %v3198_v33 = vsel %vm3136_vm7, %v3183_v22, %v6049_v20  ;;  %v3590_v22 = vld [vmem:[#allocation2 + $0x168] sm:$0xff] }
 0x446   : > { %3438 = vrot.lane.b32.xlu1 %v3424_v13, %s4126_s22  ;;  %3212 = vst [vmem:[#allocation2 + $0x340] sm:$0xf0] %v3198_v33  ;;  %v3597_v13 = vld [vmem:[#allocation2 + $0x180] sm:$0xff]  ;;  %v6394_v33 = vld [vmem:[#allocation4_spill] sm:$0xff] }
 0x448   : > { %v6112_v58 = vpop.permute.xlu1 %3002 }
 0x449   : > { %3378 = vrot.lane.b32.xlu0 %v6053_v57, %s4126_s22  ;;  %v3646_v27 = vld [vmem:[#allocation2 + $0x138] sm:$0xff] }
 0x44a   : > { %3692 = vmatpush.msra.mxu1 %v3646_v27  ;;  %3254 = vrot.lane.b32.xlu2 %v5925_v48, %s4128_s25  ;;  %v3583_v27 = vld [vmem:[#allocation2 + $0x418] sm:$0xff] }
 0x44b   : > { %v3001_v5 = vpop.permute.xlu0 %3000 }
 0x44c   : > { %v3016_v44 = vsel %vm3014_vm8, %v3001_v5, %v6112_v58  ;;  %v3633_v23 = vld [vmem:[#allocation2 + $0xb8] sm:$0xff]  ;;  %v2939_v21 = vpop.permute.xlu2 %2938 }
 0x44d   : > { %3030 = vst [vmem:[#allocation2] sm:$0xf] %v3016_v44  ;;  %3734 = vmatpush.msra.mxu3 %v3633_v23  ;;  %v2954_v15 = vsel %vm2892_vm9, %v2939_v21, %v6099_v24  ;;  %v6395_v44 = vld [vmem:[#allocation3_spill] sm:$0xff] }
 0x44e   : > { %3070 = vrot.lane.b32.xlu1 %v5825_v17, %s4130_s27  ;;  %2968 = vst [vmem:[#allocation2 + $0x568] sm:$0xf0] %v2954_v15  ;;  %v3576_v21 = vld [vmem:[#allocation2 + $0x408] sm:$0xff] }
 0x450   : > { %v3243_v45 = vpop.permute.xlu1 %3242 }
 0x451   : > { %3008 = vrot.lane.b32.xlu0 %v5797_v31, %s4130_s27  ;;  %v3259_v48 = vsel %vm3258_vm6, %v3243_v45, %v6029_v56  ;;  %v3571_v45 = vld [vmem:[#allocation2 + $0x128] sm:$0xff] }
 0x452   : > { %3273 = vst [vmem:[#allocation2 + $0xf8] sm:$0xf] %v3259_v48  ;;  %3318 = vrot.lane.b32.xlu2 %v5945_v14, %s4128_s25 }
 0x453   : > { %v6130_v4 = vpop.permute.xlu0 %3064 }
 0x454   : > { %v3077_v16 = vsel %vm3014_vm8, %v6075_v7, %v6130_v4  ;;  %v6135_v20 = vpop.permute.xlu2 %3248 }
 0x455   : > { %3091 = vst [vmem:[#allocation2] sm:$0xf0] %v3077_v16  ;;  %v3261_v17 = vsel %vm3258_vm6, %v3247_v3, %v6135_v20 }
 0x456   : > { %3316 = vrot.lane.b32.xlu1 %v5943_v50, %s4128_s25  ;;  %3275 = vst [vmem:[#allocation2 + $0x370] sm:$0xf] %v3261_v17 }
 0x458   : > { %v2881_v31 = vpop.permute.xlu1 %2880 }
 0x459   : > { %3256 = vrot.lane.b32.xlu0 %v5927_v8, %s4128_s25  ;;  %v3639_v14 = vld [vmem:[#allocation2 + $0xf8] sm:$0xff] }
 0x45a   : > { %3693 = vmatpush.msra.mxu1 %v3639_v14  ;;  %3132 = vrot.lane.b32.xlu2 %v5891_v41, %s4129_s26 }
 0x45b   : > { %v2879_v56 = vpop.permute.xlu0 %2878 }
 0x45c   : > { %v2893_v57 = vsel %vm2892_vm9, %v6062_v26, %v2879_v56  ;;  %v2894_v9 = vsel %vm2892_vm9, %v2879_v56, %v2881_v31  ;;  %v3626_v29 = vld [vmem:[#allocation2] sm:$0xff]  ;;  %v6148_v52 = vpop.permute.xlu2 %3188 }
 0x45d   : > { %2907 = vst [vmem:[#allocation2 + $0x568] sm:$0xf] %v2893_v57  ;;  %3735 = vmatpush.msra.mxu3 %v3626_v29  ;;  %v3200_v50 = vsel %vm3136_vm7, %v3187_v40, %v6148_v52  ;;  %v3557_v56 = vld [vmem:[#allocation2 + $0x460] sm:$0xff] }
 0x45e   : > { %2908 = vst [vmem:[#allocation2 + $0x2a8] sm:$0xf] %v2894_v9  ;;  %2948 = vrot.lane.b32.xlu1 %v5771_v38, %s4127_s24  ;;  %v3550_v9 = vld [vmem:[#allocation2 + $0x398] sm:$0xff] }
 0x45f   : > { %3214 = vst [vmem:[#allocation2 + $0x3e0] sm:$0xf0] %v3200_v50 }
 0x460   : > { %v3121_v41 = vpop.permute.xlu1 %3120 }
 0x461   : > { %2886 = vrot.lane.b32.xlu0 %v5750_v1, %s4127_s24  ;;  %v3137_v8 = vsel %vm3136_vm7, %v3121_v41, %v6094_v11  ;;  %v3584_v11 = vld [vmem:[#allocation2 + $0x588] sm:$0xff]  ;;  %v3543_v41 = vld [vmem:[#allocation2 + $0x410] sm:$0xff] }
 0x462   : > { %3151 = vst [vmem:[#allocation2 + $0x340] sm:$0xf] %v3137_v8  ;;  %3196 = vrot.lane.b32.xlu2 %v5911_v6, %s4129_s26 }
 0x463   : > { %v6160_v55 = vpop.permute.xlu0 %2942 }
 0x464   : > { %v2955_v26 = vsel %vm2892_vm9, %v6099_v24, %v6160_v55  ;;  %v6165_v59 = vpop.permute.xlu2 %2882  ;;  %v3618_v36 = vld [vmem:[#allocation2 + $0x568] sm:$0xff] }
 0x465   : > { %2969 = vst [vmem:[#allocation2 + $0x2a8] sm:$0xf0] %v2955_v26  ;;  %v2895_v38 = vsel %vm2892_vm9, %v2881_v31, %v6165_v59  ;;  %v3564_v31 = vld [vmem:[#allocation2 + $0x158] sm:$0xff] }
 0x466   : > { %3194 = vrot.lane.b32.xlu1 %v5909_v34, %s4129_s26  ;;  %2909 = vst [vmem:[#allocation2 + $0x1b0] sm:$0xf] %v2895_v38  ;;  %v3612_v34 = vld [vmem:[#allocation2 + $0x228] sm:$0xff] }
 0x468   : > { %v3061_v1 = vpop.permute.xlu1 %3060 }
 0x469   : > { %3134 = vrot.lane.b32.xlu0 %v5893_v25, %s4129_s26  ;;  %v3076_v6 = vsel %vm3014_vm8, %v3061_v1, %v6075_v7  ;;  %v3632_v19 = vld [vmem:[#allocation2 + $0x340] sm:$0xff]  ;;  %v3605_v25 = vld [vmem:[#allocation2 + $0x350] sm:$0xff]  ;;  %v3536_v1 = vld [vmem:[#allocation2 + $0x308] sm:$0xff] }
 0x46a   : > { %3090 = vst [vmem:[#allocation2 + $0x310] sm:$0xf0] %v3076_v6  ;;  %3694 = vmatpush.msra.mxu1 %v3632_v19  ;;  %3072 = vrot.lane.b32.xlu2 %v5875_v47, %s4130_s27  ;;  %v3529_v6 = vld [vmem:[#allocation2 + $0x430] sm:$0xff] }
 0x46b   : > { %v2999_v62 = vpop.permute.xlu0 %2998 }
 0x46c   : > { %v3015_v18 = vsel %vm3014_vm8, %v2999_v62, %v3001_v5  ;;  %v3619_v53 = vld [vmem:[#allocation2 + $0x2a8] sm:$0xff]  ;;  %v6178_v43 = vpop.permute.xlu2 %3434 }
 0x46d   : > { %3029 = vst [vmem:[#allocation2 + $0x310] sm:$0xf] %v3015_v18  ;;  %3736 = vmatpush.msra.mxu3 %v3619_v53  ;;  %v3522_v62 = vld [vmem:[#allocation2 + $0x368] sm:$0xff] }
 0x46e   : > { %3012 = vrot.lane.b32.xlu1 %v5856_v61, %s4130_s27 }
 0x46f   : > { %3737 = vmatpush.msra.mxu3 %v3612_v34 }
 0x470   : > { %v3433_v7 = vpop.permute.xlu1 %3432 }
 0x471   : > { %3010 = vrot.lane.b32.xlu0 %v5854_v2, %s4130_s27  ;;  %3738 = vmatpush.msra.mxu3 %v3605_v25  ;;  %v3444_v47 = vsel %vm3380_vm5, %v6066_v54, %v3433_v7  ;;  %v3445_v3 = vsel %vm3380_vm5, %v3433_v7, %v6178_v43  ;;  %v3465_v54 = vld [vmem:[#allocation2 + $0x3b0] sm:$0xff]  ;;  %v3515_v25 = vld [vmem:[#allocation2 + $0x4e0] sm:$0xff] }
 0x472   : > { %3458 = vst [vmem:[#allocation2 + $0x230] sm:$0xf0] %v3444_v47  ;;  %2890 = vrot.lane.b32.xlu2 %v5807_v35, %s4127_s24  ;;  %3722 = vmatpush.msra.mxu2 %v3465_v54  ;;  %v3611_v35 = vld [vmem:[#allocation2 + $0x1a8] sm:$0xff] }
 0x473   : > { %v6190_v37 = vpop.permute.xlu0 %3370  ;;  %3739 = vmatpush.msra.mxu3 %v3598_v0  ;;  %3459 = vst [vmem:[#allocation2 + $0x218] sm:$0xf0] %v3445_v3  ;;  %v3508_v0 = vld [vmem:[#allocation2 + $0x478] sm:$0xff] }
 0x474   : > { %v3383_v2 = vsel %vm3380_vm5, %v6018_v30, %v6190_v37  ;;  %v3625_v61 = vld [vmem:[#allocation2 + $0x310] sm:$0xff]  ;;  %v6195_v32 = vpop.permute.xlu2 %3128  ;;  %v6393_v30 = vld [vmem:[#allocation5_spill] sm:$0xff] }
 0x475   : > { %3397 = vst [vmem:[#allocation2 + $0x230] sm:$0xf] %v3383_v2  ;;  %3695 = vmatpush.msra.mxu1 %v3625_v61  ;;  %3740 = vmatpush.msra.mxu3 %v3591_v51  ;;  %v3613_v2 = vld [vmem:[#allocation2 + $0x68] sm:$0xff]  ;;  %v3606_v51 = vld [vmem:[#allocation2 + $0x390] sm:$0xff] }
 0x476   : > { %2888 = vrot.lane.b32.xlu1 %v5800_v63, %s4127_s24  ;;  %v3463_v63 = vld [vmem:[%s6387_s2] sm:$0xff]  ;;  %v3501_v61 = vld [vmem:[#allocation2 + $0x5a8] sm:$0xff] }
 0x477   : > { %3696 = vmatpush.msra.mxu1 %v3618_v36  ;;  %3741 = vmatpush.msra.mxu3 %v3584_v11  ;;  %3660 = vst [vmem:[#allocation1] ss:$2 sm:$0xff] %v3463_v63  ;;  %v3480_v63 = vld [vmem:[#allocation2 + $0x580] sm:$0xff] }
 0x478   : > { %v3127_v10 = vpop.permute.xlu1 %3126 }
 0x479   : > { %3074 = vrot.lane.b32.xlu0 %v6393_v30, %s4130_s27  ;;  %3697 = vmatpush.msra.mxu1 %v3611_v35  ;;  %v3139_v24 = vsel %vm3136_vm7, %v6090_v28, %v3127_v10  ;;  %v3140_v39 = vsel %vm3136_vm7, %v3127_v10, %v6195_v32  ;;  %v3599_v35 = vld [vmem:[#allocation2 + $0x508] sm:$0xff] }
 0x47a   : > { %3742 = vmatpush.msra.mxu3 %v3577_v12  ;;  %3153 = vst [vmem:[#allocation2 + $0x3e0] sm:$0xf] %v3139_v24  ;;  %v3487_v30 = vld [vmem:[#allocation2 + $0x188] sm:$0xff] }
 0x47b   : > { %v6208_v42 = vpop.permute.xlu0 %3310  ;;  %3698 = vmatpush.msra.mxu1 %v3604_v49  ;;  %3154 = vst [vmem:[#allocation2 + $0x538] sm:$0xf] %v3140_v39  ;;  %v3592_v24 = vld [vmem:[#allocation2 + $0x2c8] sm:$0xff] }
 0x47c   : > { %v3322_v40 = vsel %vm3258_vm6, %v6039_v60, %v6208_v42  ;;  %v3648_v28 = vld [vmem:[#allocation2 + $0x230] sm:$0xff]  ;;  %v6213_v46 = vpop.permute.xlu2 %3068 }
 0x47d   : > { %3336 = vst [vmem:[#allocation2 + $0x370] sm:$0xf0] %v3322_v40  ;;  %3699 = vmatpush.msra.mxu1 %v3597_v13  ;;  %3772 = vmatpush.msrb.mxu3 %v3648_v28  ;;  %v3473_v40 = vld [vmem:[#allocation2 + $0x510] sm:$0xff]  ;;  %v3466_v13 = vld [vmem:[#allocation2 + $0x4d8] sm:$0xff]  ;;  %v3578_v28 = vld [vmem:[#allocation2 + $0x4a0] sm:$0xff] }
 0x47e   : > { %2952 = vrot.lane.b32.xlu1 %v6394_v33, %s4127_s24  ;;  %v6225_v48 = vld.sshfl [vmem:[#allocation1 + $0x8] sm:$0xff pattern:$0x75316420]  ;;  %v6262_v11 = vld.sshfl [vmem:[#allocation1] sm:$0xff pattern:$0x75316420] }
 0x47f   : > { %3700 = vmatpush.msra.mxu1 %v3590_v22  ;;  %4050 = vmatmul.msk.f32.vlgmr.msra.gmra.mxu3 %vm3664_vm10, %v6225_v48 }
 0x480   : > { %v3067_v5 = vpop.permute.xlu1 %3066  ;;  %3723 = vmatmul.f32.vlgmr.msra.gmra.mxu2 %v6262_v11  ;;  %3683 = vmatmul.f32.vlgmr.msra.gmra.mxu0 %v6262_v11 }
 0x481   : > { %2950 = vrot.lane.b32.xlu0 %v6395_v44, %s4127_s24  ;;  %3701 = vmatpush.msra.mxu1 %v3583_v27  ;;  %v3078_v60 = vsel %vm3014_vm8, %v6130_v4, %v3067_v5  ;;  %v3079_v23 = vsel %vm3014_vm8, %v3067_v5, %v6213_v46  ;;  %v3634_v14 = vld [vmem:[#allocation2 + $0x3e0] sm:$0xff]  ;;  %v3566_v5 = vld [vmem:[#allocation2 + $0x530] sm:$0xff] }
 0x482   : > { %3092 = vst [vmem:[#allocation2 + $0x3f0] sm:$0xf0] %v3078_v60 }
 0x483   : > { %v6223_v15 = vpop.permute.xlu0 %3004  ;;  %3702 = vmatpush.msra.mxu1 %v3576_v21  ;;  %3093 = vst [vmem:[#allocation2 + $0x198] sm:$0xf0] %v3079_v23  ;;  %v3467_v21 = vld [vmem:[#allocation2 + $0x18] sm:$0xff] }
 0x484   : > { %v3017_v16 = vsel %vm3014_vm8, %v6112_v58, %v6223_v15  ;;  %v3641_v17 = vld [vmem:[#allocation2 + $0x370] sm:$0xff]  ;;  %v3375_v4 = vpop.permute.xlu2 %3374  ;;  %4049 = vmatmul.msk.f32.vlgmr.msra.gmra.mxu1 %vm3664_vm10, %v6225_v48  ;;  %3802 = vmatpush.msrb.mxu0 %v3467_v21 }
 0x485   : > { %3747 = vmatpush.msrb.mxu1 %v3571_v45  ;;  %3031 = vst [vmem:[#allocation2 + $0x3f0] sm:$0xf] %v3017_v16  ;;  %3773 = vmatpush.msrb.mxu3 %v3641_v17  ;;  %v3552_v16 = vld [vmem:[#allocation2 + $0x2c0] sm:$0xff] }
 0x487   : > { %3748 = vmatpush.msrb.mxu1 %v3564_v31  ;;  %3774 = vmatpush.msrb.mxu3 %v3634_v14 }
 0x488   : > { %v3373_v57 = vpop.permute.xlu1 %3372  ;;  %3803 = vmatmul.f32.vlgmr.msrb.gmra.mxu0 %v6262_v11 }
 0x489   : > { %3749 = vmatpush.msrb.mxu1 %v3557_v56  ;;  %v3384_v58 = vsel %vm3380_vm5, %v6190_v37, %v3373_v57  ;;  %v3385_v29 = vsel %vm3380_vm5, %v3373_v57, %v3375_v4  ;;  %v3538_v56 = vld [vmem:[#allocation2 + $0x250] sm:$0xff] }
 0x48a   : > { %3398 = vst [vmem:[#allocation2 + $0x218] sm:$0xf] %v3384_v58 }
 0x48b   : > { %3750 = vmatpush.msrb.mxu1 %v3550_v9  ;;  %v6237_v50 = vpop.permute.xlu0 %2944  ;;  %3399 = vst [vmem:[#allocation2 + $0x38] sm:$0xf] %v3385_v29  ;;  %v3531_v29 = vld [vmem:[#allocation2 + $0x90] sm:$0xff] }
 0x48c   : > { %v2956_v8 = vsel %vm2892_vm9, %v6160_v55, %v6237_v50  ;;  %v3627_v26 = vld [vmem:[#allocation2 + $0x3f0] sm:$0xff]  ;;  %v6242_v38 = vpop.permute.xlu2 %3314 }
 0x48d   : > { %3751 = vmatpush.msrb.mxu1 %v3543_v41  ;;  %2970 = vst [vmem:[#allocation2 + $0x1b0] sm:$0xf0] %v2956_v8  ;;  %3775 = vmatpush.msrb.mxu3 %v3627_v26  ;;  %v3524_v41 = vld [vmem:[#allocation2 + $0x300] sm:$0xff]  ;;  %v3607_v8 = vld [vmem:[#allocation2 + $0x268] sm:$0xff] }
 0x48f   : > { %3752 = vmatpush.msrb.mxu1 %v3536_v1  ;;  %v3517_v1 = vld [vmem:[#allocation2 + $0x2f0] sm:$0xff] }
 0x490   : > { %v3313_v19 = vpop.permute.xlu1 %3312 }
 0x491   : > { %3753 = vmatpush.msrb.mxu1 %v3529_v6  ;;  %v3323_v18 = vsel %vm3258_vm6, %v6208_v42, %v3313_v19  ;;  %v3324_v53 = vsel %vm3258_vm6, %v3313_v19, %v6242_v38  ;;  %v3649_v34 = vld [vmem:[#allocation2 + $0x218] sm:$0xff]  ;;  %v3585_v42 = vld [vmem:[#allocation2 + $0x4c0] sm:$0xff]  ;;  %v3600_v6 = vld [vmem:[#allocation2 + $0x348] sm:$0xff] }
 0x492   : > { %3337 = vst [vmem:[#allocation2 + $0x2f8] sm:$0xf0] %v3323_v18  ;;  %3812 = vmatpush.msrb.mxu2 %v3649_v34 }
 0x493   : > { %3754 = vmatpush.msrb.mxu1 %v3522_v62  ;;  %v6248_v55 = vpop.permute.xlu0 %3250  ;;  %3338 = vst [vmem:[#allocation2 + $0x288] sm:$0xf0] %v3324_v53  ;;  %v3510_v62 = vld [vmem:[#allocation2 + $0x3d8] sm:$0xff]  ;;  %v3593_v53 = vld [vmem:[#allocation2 + $0x140] sm:$0xff] }
 0x494   : > { %v3262_v7 = vsel %vm3258_vm6, %v6135_v20, %v6248_v55  ;;  %v3620_v47 = vld [vmem:[#allocation2 + $0x1b0] sm:$0xff]  ;;  %v6253_v3 = vpop.permute.xlu2 %3376  ;;  %v3494_v20 = vld [vmem:[#allocation2 + $0x488] sm:$0xff] }
 0x495   : > { %3755 = vmatpush.msrb.mxu1 %v3515_v25  ;;  %3276 = vst [vmem:[#allocation2 + $0x2f8] sm:$0xf] %v3262_v7  ;;  %3776 = vmatpush.msrb.mxu3 %v3620_v47  ;;  %v3386_v37 = vsel %vm3380_vm5, %v3375_v4, %v6253_v3  ;;  %v3545_v4 = vld [vmem:[#allocation2 + $0x338] sm:$0xff]  ;;  %v3503_v25 = vld [vmem:[#allocation2 + $0x1f0] sm:$0xff] }
 0x496   : > { %3400 = vst [vmem:[#allocation2 + $0x28] sm:$0xf] %v3386_v37  ;;  %v3586_v47 = vld [vmem:[#allocation2 + $0x118] sm:$0xff] }
 0x497   : > { %3756 = vmatpush.msrb.mxu1 %v3508_v0  ;;  %3777 = vmatpush.msrb.mxu3 %v3613_v2  ;;  %v3496_v37 = vld [vmem:[#allocation2 + $0x98] sm:$0xff] }
 0x498   : > { %v6257_v54 = vpop.permute.xlu1 %3006 }
 0x499   : > { %3757 = vmatpush.msrb.mxu1 %v3501_v61  ;;  %3778 = vmatpush.msrb.mxu3 %v3606_v51  ;;  %v3018_v36 = vsel %vm3014_vm8, %v6223_v15, %v6257_v54  ;;  %v3559_v15 = vld [vmem:[#allocation2 + $0x20] sm:$0xff]  ;;  %v3489_v61 = vld [vmem:[#allocation2 + $0xc8] sm:$0xff] }
 0x49a   : > { %3032 = vst [vmem:[#allocation2 + $0x198] sm:$0xf] %v3018_v36  ;;  %v3574_v51 = vld [vmem:[#allocation2 + $0x420] sm:$0xff] }
 0x49b   : > { %3758 = vmatpush.msrb.mxu1 %v3494_v20  ;;  %v6265_v10 = vpop.permute.xlu0 %3190  ;;  %3779 = vmatpush.msrb.mxu3 %v3599_v35 }
 0x49c   : > { %v3201_v12 = vsel %vm3136_vm7, %v6148_v52, %v6265_v10  ;;  %v3642_v39 = vld [vmem:[#allocation2 + $0x2f8] sm:$0xff]  ;;  %v6271_v49 = vpop.permute.xlu2 %3440 }
 0x49d   : > { %3759 = vmatpush.msrb.mxu1 %v3487_v30  ;;  %3215 = vst [vmem:[#allocation2 + $0x538] sm:$0xf0] %v3201_v12  ;;  %3780 = vmatpush.msrb.mxu3 %v3592_v24  ;;  %v3573_v52 = vld [vmem:[#allocation2 + $0x518] sm:$0xff] }
 0x49e   : > { %3813 = vmatpush.msrb.mxu2 %v3642_v39  ;;  %v3567_v30 = vld [vmem:[#allocation2 + $0x1d8] sm:$0xff] }
 0x49f   : > { %3760 = vmatpush.msrb.mxu1 %v3480_v63  ;;  %3781 = vmatpush.msrb.mxu3 %v3585_v42  ;;  %v3560_v63 = vld [vmem:[#allocation2 + $0x50] sm:$0xff] }
 0x4a0   : > { %v6273_v22 = vpop.permute.xlu1 %2946  ;;  %v3468_v42 = vld [vmem:[#allocation2 + $0x450] sm:$0xff] }
 0x4a1   : > { %3761 = vmatpush.msrb.mxu1 %v3473_v40  ;;  %3782 = vmatpush.msrb.mxu3 %v3578_v28  ;;  %v2957_v33 = vsel %vm2892_vm9, %v6237_v50, %v6273_v22  ;;  %v3628_v45 = vld [vmem:[#allocation2 + $0x198] sm:$0xff]  ;;  %v3614_v50 = vld [vmem:[#allocation2 + $0x560] sm:$0xff]  ;;  %v3553_v40 = vld [vmem:[#allocation2 + $0x1c8] sm:$0xff] }
 0x4a2   : > { %2971 = vst [vmem:[#allocation2 + $0x150] sm:$0xf0] %v2957_v33  ;;  %4051 = vmatmul.msk.f32.vlgmr.msrb.gmra.mxu3 %vm3664_vm10, %v6225_v48  ;;  %v3546_v28 = vld [vmem:[#allocation2 + $0x358] sm:$0xff] }
 0x4a3   : > { %3827 = vmatpush.msra.mxu3 %v3573_v52  ;;  %3762 = vmatpush.msrb.mxu1 %v3466_v13  ;;  %v6278_v27 = vpop.permute.xlu0 %2884 }
 0x4a4   : > { %3763 = vmatmul.f32.vlgmr.msrb.gmra.mxu1 %v6262_v11  ;;  %v2896_v44 = vsel %vm2892_vm9, %v6165_v59, %v6278_v27  ;;  %v3635_v60 = vld [vmem:[#allocation2 + $0x538] sm:$0xff]  ;;  %v6286_v23 = vpop.permute.xlu2 %3254 }
 0x4a5   : > { %3828 = vmatpush.msra.mxu3 %v3566_v5  ;;  %2910 = vst [vmem:[#allocation2 + $0x150] sm:$0xf] %v2896_v44  ;;  %3814 = vmatpush.msrb.mxu2 %v3635_v60  ;;  %v3539_v5 = vld [vmem:[#allocation2 + $0xe0] sm:$0xff] }
 0x4a7   : > { %3829 = vmatpush.msra.mxu3 %v3559_v15  ;;  %3815 = vmatpush.msrb.mxu2 %v3628_v45  ;;  %v3525_v45 = vld [vmem:[#allocation2 + $0xd8] sm:$0xff] }
 0x4a8   : > { %v3253_v17 = vpop.permute.xlu1 %3252 }
 0x4a9   : > { %3830 = vmatpush.msra.mxu3 %v3552_v16  ;;  %v3263_v59 = vsel %vm3258_vm6, %v6248_v55, %v3253_v17  ;;  %v3264_v31 = vsel %vm3258_vm6, %v3253_v17, %v6286_v23  ;;  %v3518_v17 = vld [vmem:[#allocation2 + $0x260] sm:$0xff] }
 0x4aa   : > { %3277 = vst [vmem:[#allocation2 + $0x288] sm:$0xf] %v3263_v59 }
 0x4ab   : > { %3831 = vmatpush.msra.mxu3 %v3545_v4  ;;  %v3437_v14 = vpop.permute.xlu0 %3436  ;;  %3278 = vst [vmem:[#allocation2 + $0x70] sm:$0xf] %v3264_v31  ;;  %v3511_v31 = vld [vmem:[#allocation2 + $0x3d0] sm:$0xff] }
 0x4ac   : > { %v3446_v57 = vsel %vm3380_vm5, %v6178_v43, %v3437_v14  ;;  %v3621_v9 = vld [vmem:[#allocation2 + $0x150] sm:$0xff]  ;;  %v6295_v58 = vpop.permute.xlu2 %3318 }
 0x4ad   : > { %3832 = vmatpush.msra.mxu3 %v3538_v56  ;;  %3460 = vst [vmem:[#allocation2 + $0x38] sm:$0xf0] %v3446_v57  ;;  %3816 = vmatpush.msrb.mxu2 %v3621_v9  ;;  %v3504_v57 = vld [vmem:[#allocation2 + $0x2e8] sm:$0xff]  ;;  %v3497_v9 = vld [vmem:[#allocation2 + $0xb0] sm:$0xff] }
 0x4af   : > { %3833 = vmatpush.msra.mxu3 %v3531_v29  ;;  %3817 = vmatpush.msrb.mxu2 %v3614_v50  ;;  %v3490_v29 = vld [vmem:[#allocation2 + $0x388] sm:$0xff] }
 0x4b0   : > { %v6297_v26 = vpop.permute.xlu1 %3192 }
 0x4b1   : > { %3834 = vmatpush.msra.mxu3 %v3524_v41  ;;  %3818 = vmatpush.msrb.mxu2 %v3607_v8  ;;  %v3202_v43 = vsel %vm3136_vm7, %v6265_v10, %v6297_v26  ;;  %v3643_v0 = vld [vmem:[#allocation2 + $0x288] sm:$0xff]  ;;  %v3482_v10 = vld [vmem:[#allocation2 + $0x540] sm:$0xff] }
 0x4b2   : > { %3216 = vst [vmem:[#allocation2 + $0x238] sm:$0xf0] %v3202_v43  ;;  %v3483_v41 = vld [vmem:[#allocation2 + $0x3c0] sm:$0xff]  ;;  %v3476_v43 = vld [vmem:[#allocation2 + $0x548] sm:$0xff] }
 0x4b3   : > { %3835 = vmatpush.msra.mxu3 %v3517_v1  ;;  %v3131_v19 = vpop.permute.xlu0 %3130  ;;  %3819 = vmatpush.msrb.mxu2 %v3600_v6  ;;  %v4131_v6 = vmov 0  }
 0x4b4   : > { %v3141_v18 = vsel %vm3136_vm7, %v6195_v32, %v3131_v19  ;;  %v3650_v34 = vld [vmem:[#allocation2 + $0x38] sm:$0xff]  ;;  %v6304_v55 = vpop.permute.xlu2 %3132  ;;  %v3579_v32 = vld [vmem:[#allocation2 + $0x5b0] sm:$0xff]  ;;  %4095 = vset.pattern.permute.xlu2 %v4131_v6  ;;  %4096 = vset.pattern.permute.xlu0 %v4131_v6 }
 0x4b5   : > { %3836 = vmatpush.msra.mxu3 %v3510_v62  ;;  %3155 = vst [vmem:[#allocation2 + $0x238] sm:$0xf] %v3141_v18  ;;  %3820 = vmatpush.msrb.mxu2 %v3593_v53  ;;  %v3142_v7 = vsel %vm3136_vm7, %v3131_v19, %v6304_v55  ;;  %v3582_v6 = vld [vmem:[#allocation2 + $0x290] sm:$0xff] }
 0x4b6   : > { %3852 = vmatpush.msra.mxu1 %v3650_v34  ;;  %3156 = vst [vmem:[#allocation2 + $0xc0] sm:$0xf] %v3142_v7  ;;  %v3608_v7 = vld [vmem:[#allocation2 + $0x30] sm:$0xff] }
 0x4b7   : > { %3837 = vmatpush.msra.mxu3 %v3503_v25  ;;  %3821 = vmatpush.msrb.mxu2 %v3586_v47  ;;  %v3615_v25 = vld [vmem:[#allocation2 + $0x468] sm:$0xff] }
 0x4b8   : > { %3853 = vmatpush.msra.mxu1 %v3643_v0  ;;  %v3439_v2 = vpop.permute.xlu1 %3438  ;;  %v3469_v0 = vld [vmem:[#allocation2 + $0x328] sm:$0xff] }
 0x4b9   : > { %3838 = vmatpush.msra.mxu3 %v3496_v37  ;;  %3822 = vmatpush.msrb.mxu2 %v3579_v32  ;;  %v3447_v20 = vsel %vm3380_vm5, %v3437_v14, %v3439_v2  ;;  %v3448_v36 = vsel %vm3380_vm5, %v3439_v2, %v6271_v49  ;;  %v3475_v49 = vld [vmem:[#allocation2 + $0x318] sm:$0xff] }
 0x4ba   : > { %3461 = vst [vmem:[#allocation2 + $0x28] sm:$0xf0] %v3447_v20  ;;  %4052 = vmatmul.msk.f32.vlgmr.msrb.gmra.mxu2 %vm3664_vm10, %v6225_v48  ;;  %v3601_v37 = vld [vmem:[#allocation2 + $0x4f8] sm:$0xff]  ;;  %v3587_v20 = vld [vmem:[#allocation2 + $0x3a0] sm:$0xff] }
 0x4bb   : > { %3839 = vmatpush.msra.mxu3 %v3489_v61  ;;  %3867 = vmatpush.msra.mxu2 %v3574_v51  ;;  %3462 = vst [vmem:[#allocation2 + $0x48] sm:$0xf0] %v3448_v36  ;;  %v3379_v35 = vpop.permute.xlu0 %3378  ;;  %v3594_v61 = vld [vmem:[#allocation2 + $0x160] sm:$0xff] }
 0x4bc   : > { %v3387_v12 = vsel %vm3380_vm5, %v6253_v3, %v3379_v35  ;;  %v3636_v24 = vld [vmem:[#allocation2 + $0x238] sm:$0xff]  ;;  %v6315_v39 = vpop.permute.xlu2 %3196  ;;  %v3580_v35 = vld [vmem:[#allocation2 + $0x210] sm:$0xff] }
 0x4bd   : > { %3840 = vmatpush.msra.mxu3 %v3482_v10  ;;  %3868 = vmatpush.msra.mxu2 %v3567_v30  ;;  %3401 = vst [vmem:[#allocation2 + $0x48] sm:$0xf] %v3387_v12  ;;  %v3575_v30 = vld [vmem:[#allocation2 + $0x438] sm:$0xff] }
 0x4be   : > { %3854 = vmatpush.msra.mxu1 %v3636_v24 }
 0x4bf   : > { %3841 = vmatpush.msra.mxu3 %v3475_v49  ;;  %3869 = vmatpush.msra.mxu2 %v3560_v63  ;;  %v3568_v49 = vld [vmem:[#allocation2 + $0xd0] sm:$0xff] }
 0x4c0   : > { %v3071_v13 = vpop.permute.xlu1 %3070 }
 0x4c1   : > { %3870 = vmatpush.msra.mxu2 %v3553_v40  ;;  %3842 = vmatpush.msra.mxu3 %v3468_v42  ;;  %v3080_v3 = vsel %vm3014_vm8, %v6213_v46, %v3071_v13  ;;  %v3651_v52 = vld [vmem:[#allocation2 + $0x28] sm:$0xff]  ;;  %v3532_v46 = vld [vmem:[#allocation2 + $0x1f8] sm:$0xff] }
 0x4c2   : > { %3843 = vmatmul.f32.vlgmr.msra.gmra.mxu3 %v6262_v11  ;;  %3094 = vst [vmem:[#allocation2 + $0x470] sm:$0xf0] %v3080_v3  ;;  %3892 = vmatpush.msra.mxu0 %v3651_v52  ;;  %v3561_v40 = vld [vmem:[#allocation2 + $0x3f8] sm:$0xff] }
 0x4c3   : > { %3871 = vmatpush.msra.mxu2 %v3546_v28  ;;  %v6320_v33 = vpop.permute.xlu0 %3008  ;;  %v3547_v28 = vld [vmem:[#allocation2 + $0x40] sm:$0xff] }
 0x4c4   : > { %v3019_v44 = vsel %vm3014_vm8, %v6257_v54, %v6320_v33  ;;  %v3652_v60 = vld [vmem:[#allocation2 + $0x48] sm:$0xff]  ;;  %v6325_v21 = vpop.permute.xlu2 %3072 }
 0x4c5   : > { %3872 = vmatpush.msra.mxu2 %v3539_v5  ;;  %3033 = vst [vmem:[#allocation2 + $0x470] sm:$0xf] %v3019_v44  ;;  %3932 = vmatpush.msrb.mxu3 %v3652_v60  ;;  %v3081_v15 = vsel %vm3014_vm8, %v3071_v13, %v6325_v21  ;;  %v3554_v13 = vld [vmem:[#allocation2 + $0x4e8] sm:$0xff] }
 0x4c6   : > { %3095 = vst [vmem:[#allocation2 + $0x2d0] sm:$0xf0] %v3081_v15  ;;  %v3519_v15 = vld [vmem:[#allocation2 + $0x558] sm:$0xff] }
 0x4c7   : > { %3873 = vmatpush.msra.mxu2 %v3532_v46  ;;  %v3526_v46 = vld [vmem:[#allocation2 + $0x1b8] sm:$0xff] }
 0x4c8   : > { %v3317_v16 = vpop.permute.xlu1 %3316 }
 0x4c9   : > { %3874 = vmatpush.msra.mxu2 %v3525_v45  ;;  %v3325_v4 = vsel %vm3258_vm6, %v6242_v38, %v3317_v16  ;;  %v3326_v54 = vsel %vm3258_vm6, %v3317_v16, %v6295_v58  ;;  %v3512_v45 = vld [vmem:[#allocation2 + $0x4a8] sm:$0xff] }
 0x4ca   : > { %3339 = vst [vmem:[#allocation2 + $0x70] sm:$0xf0] %v3325_v4  ;;  %v3505_v4 = vld [vmem:[#allocation2 + $0xa8] sm:$0xff] }
 0x4cb   : > { %3875 = vmatpush.msra.mxu2 %v3518_v17  ;;  %3340 = vst [vmem:[#allocation2 + $0x3c8] sm:$0xf0] %v3326_v54  ;;  %v3257_v59 = vpop.permute.xlu0 %3256  ;;  %v3616_v54 = vld [vmem:[#allocation2 + $0x3e8] sm:$0xff] }
 0x4cc   : > { %v3265_v14 = vsel %vm3258_vm6, %v6286_v23, %v3257_v59  ;;  %v3629_v56 = vld [vmem:[#allocation2 + $0x470] sm:$0xff]  ;;  %v2891_v36 = vpop.permute.xlu2 %2890  ;;  %v3617_v59 = vld [vmem:[#allocation2 + $0x208] sm:$0xff] }
 0x4cd   : > { %3876 = vmatpush.msra.mxu2 %v3511_v31  ;;  %3279 = vst [vmem:[#allocation2 + $0x3c8] sm:$0xf] %v3265_v14  ;;  %3855 = vmatpush.msra.mxu1 %v3629_v56  ;;  %v3498_v31 = vld [vmem:[#allocation2 + $0x2a0] sm:$0xff]  ;;  %v3609_v14 = vld [vmem:[#allocation2 + $0x298] sm:$0xff]  ;;  %v3610_v56 = vld [vmem:[#allocation2 + $0x428] sm:$0xff] }
 0x4cf   : > { %3877 = vmatpush.msra.mxu2 %v3504_v57  ;;  %v3491_v57 = vld [vmem:[#allocation2 + $0x520] sm:$0xff] }
 0x4d0   : > { %v6335_v38 = vpop.permute.xlu1 %2948 }
 0x4d1   : > { %3878 = vmatpush.msra.mxu2 %v3497_v9  ;;  %v2958_v58 = vsel %vm2892_vm9, %v6273_v22, %v6335_v38  ;;  %v3644_v50 = vld [vmem:[#allocation2 + $0x70] sm:$0xff]  ;;  %v3653_v22 = vld [vmem:[%s6388_s3] sm:$0xf] }
 0x4d2   : > { %2972 = vst [vmem:[#allocation2 + $0x550] sm:$0xf0] %v2958_v58  ;;  %3893 = vmatpush.msra.mxu0 %v3644_v50  ;;  %3656 = vperm.xlu2 %4095, %v3653_v22   ;;  %v3602_v9 = vld [vmem:[#allocation2 + $0x4b8] sm:$0xff]  ;;  %v3595_v58 = vld [vmem:[#allocation2 + $0x400] sm:$0xff] }
 0x4d3   : > { %3879 = vmatpush.msra.mxu2 %v3490_v29  ;;  %v2887_v23 = vpop.permute.xlu0 %2886  ;;  %v3484_v29 = vld [vmem:[#allocation2 + $0x330] sm:$0xff]  ;;  %v3596_v50 = vld [vmem:[#allocation2 + $0x3b8] sm:$0xff] }
 0x4d4   : > { %v2897_v8 = vsel %vm2892_vm9, %v6278_v27, %v2887_v23  ;;  %v3645_v1 = vld [vmem:[#allocation2 + $0x3c8] sm:$0xff] }
 0x4d5   : > { %3880 = vmatpush.msra.mxu2 %v3483_v41  ;;  %2911 = vst [vmem:[#allocation2 + $0x550] sm:$0xf] %v2897_v8  ;;  %3933 = vmatpush.msrb.mxu3 %v3645_v1  ;;  %v3470_v41 = vld [vmem:[#allocation2 + $0x440] sm:$0xff]  ;;  %v3589_v1 = vld [vmem:[#allocation2 + $0x278] sm:$0xff] }
 0x4d6   : > { %v3588_v8 = vld [vmem:[#allocation2 + $0x5a0] sm:$0xff] }
 0x4d7   : > { %3881 = vmatpush.msra.mxu2 %v3476_v43  ;;  %v3581_v43 = vld [vmem:[#allocation2 + $0x360] sm:$0xff] }
 0x4d8   : > { %v3195_v19 = vpop.permute.xlu1 %3194 }
 0x4d9   : > { %v3203_v62 = vsel %vm3136_vm7, %v6297_v26, %v3195_v19  ;;  %v3204_v27 = vsel %vm3136_vm7, %v3195_v19, %v6315_v39  ;;  %3882 = vmatpush.msra.mxu2 %v3469_v0 }
 0x4da   : > { %3217 = vst [vmem:[#allocation2 + $0xc0] sm:$0xf0] %v3203_v62  ;;  %3883 = vmatmul.f32.vlgmr.msra.gmra.mxu2 %v6262_v11 }
 0x4db   : > { %3218 = vst [vmem:[#allocation2 + $0x80] sm:$0xf0] %v3204_v27  ;;  %v3135_v18 = vpop.permute.xlu0 %3134 }
 0x4dc   : > { %v3143_v53 = vsel %vm3136_vm7, %v6304_v55, %v3135_v18  ;;  %v3622_v34 = vld [vmem:[#allocation2 + $0x550] sm:$0xff] }
 0x4dd   : > { %3157 = vst [vmem:[#allocation2 + $0x80] sm:$0xf] %v3143_v53  ;;  %3856 = vmatpush.msra.mxu1 %v3622_v34 }
 0x4df   : > { %3857 = vmatpush.msra.mxu1 %v3615_v25 }
 0x4e0   : > { %v3013_v47 = vpop.permute.xlu1 %3012 }
 0x4e1   : > { %3858 = vmatpush.msra.mxu1 %v3608_v7  ;;  %v3637_v26 = vld [vmem:[#allocation2 + $0xc0] sm:$0xff] }
 0x4e2   : > { %3894 = vmatpush.msra.mxu0 %v3637_v26 }
 0x4e3   : > { %v3011_v32 = vpop.permute.xlu0 %3010  ;;  %3859 = vmatpush.msra.mxu1 %v3601_v37 }
 0x4e4   : > { %v3020_v55 = vsel %vm3014_vm8, %v6320_v33, %v3011_v32  ;;  %v3021_v2 = vsel %vm3014_vm8, %v3011_v32, %v3013_v47  ;;  %v3638_v51 = vld [vmem:[#allocation2 + $0x80] sm:$0xff]  ;;  %v3540_v33 = vld [vmem:[#allocation2 + $0x10] sm:$0xff] }
 0x4e5   : > { %3034 = vst [vmem:[#allocation2 + $0x2d0] sm:$0xf] %v3020_v55  ;;  %3860 = vmatpush.msra.mxu1 %v3594_v61  ;;  %3934 = vmatpush.msrb.mxu3 %v3638_v51 }
 0x4e6   : > { %3035 = vst [vmem:[#allocation2 + $0x178] sm:$0xf] %v3021_v2 }
 0x4e7   : > { %3861 = vmatpush.msra.mxu1 %v3587_v20 }
 0x4e8   : > { %v2889_v10 = vpop.permute.xlu1 %2888 }
 0x4e9   : > { %3862 = vmatpush.msra.mxu1 %v3580_v35  ;;  %v2898_v12 = vsel %vm2892_vm9, %v2887_v23, %v2889_v10  ;;  %v2899_v24 = vsel %vm2892_vm9, %v2889_v10, %v2891_v36  ;;  %v3477_v23 = vld [vmem:[#allocation2 + $0x500] sm:$0xff] }
 0x4ea   : > { %2912 = vst [vmem:[#allocation2 + $0x448] sm:$0xf] %v2898_v12  ;;  %4053 = vmatmul.msk.f32.vlgmr.msra.gmra.mxu1 %vm3664_vm10, %v6225_v48 }
 0x4eb   : > { %3907 = vmatpush.msrb.mxu1 %v3575_v30  ;;  %v3075_v39 = vpop.permute.xlu0 %3074  ;;  %2913 = vst [vmem:[#allocation2 + $0x1d0] sm:$0xf] %v2899_v24 }
 0x4ec   : > { %v3082_v63 = vsel %vm3014_vm8, %v6325_v21, %v3075_v39  ;;  %v3630_v42 = vld [vmem:[#allocation2 + $0x2d0] sm:$0xff]  ;;  %v3533_v21 = vld [vmem:[#allocation2 + $0x578] sm:$0xff] }
 0x4ed   : > { %3908 = vmatpush.msrb.mxu1 %v3568_v49  ;;  %3096 = vst [vmem:[#allocation2 + $0x178] sm:$0xf0] %v3082_v63  ;;  %3895 = vmatpush.msra.mxu0 %v3630_v42 }
 0x4ef   : > { %3909 = vmatpush.msrb.mxu1 %v3561_v40 }
 0x4f0   : > { %v2953_v3 = vpop.permute.xlu1 %2952 }
 0x4f1   : > { %3910 = vmatpush.msrb.mxu1 %v3554_v13 }
 0x4f3   : > { %3911 = vmatpush.msrb.mxu1 %v3547_v28  ;;  %v2951_v52 = vpop.permute.xlu0 %2950 }
 0x4f4   : > { %v2959_v5 = vsel %vm2892_vm9, %v6335_v38, %v2951_v52  ;;  %v2960_v44 = vsel %vm2892_vm9, %v2951_v52, %v2953_v3  ;;  %v3631_v60 = vld [vmem:[#allocation2 + $0x178] sm:$0xff]  ;;  %v3603_v38 = vld [vmem:[#allocation2 + $0x1c0] sm:$0xff] }
 0x4f5   : > { %3912 = vmatpush.msrb.mxu1 %v3540_v33  ;;  %2973 = vst [vmem:[#allocation2 + $0x448] sm:$0xf0] %v2959_v5  ;;  %3935 = vmatpush.msrb.mxu3 %v3631_v60 }
 0x4f6   : > { %2974 = vst [vmem:[#allocation2 + $0x1d0] sm:$0xf0] %v2960_v44 }
 0x4f7   : > { %3913 = vmatpush.msrb.mxu1 %v3533_v21 }
 0x4f9   : > { %3914 = vmatpush.msrb.mxu1 %v3526_v46 }
 0x4fb   : > { %3915 = vmatpush.msrb.mxu1 %v3519_v15 }
 0x4fc   : > { %v3623_v16 = vld [vmem:[#allocation2 + $0x448] sm:$0xff] }
 0x4fd   : > { %3916 = vmatpush.msrb.mxu1 %v3512_v45  ;;  %3896 = vmatpush.msra.mxu0 %v3623_v16  ;;  %v3624_v17 = vld [vmem:[#allocation2 + $0x1d0] sm:$0xff]  ;;  %v3684_v22 = vpop.f32.mrf.mxu0 }
 0x4fe   : > { %3936 = vmatpush.msrb.mxu3 %v3624_v17 }
 0x4ff   : > { %3917 = vmatpush.msrb.mxu1 %v3505_v4  ;;  %3897 = vmatpush.msra.mxu0 %v3616_v54 }
 0x500   : > { %3937 = vmatpush.msrb.mxu3 %v3617_v59 }
 0x501   : > { %3918 = vmatpush.msrb.mxu1 %v3498_v31  ;;  %3898 = vmatpush.msra.mxu0 %v3609_v14  ;;  %v3704_v19 = vpop.f32.mrf.mxu1 }
 0x502   : > { %3938 = vmatpush.msrb.mxu3 %v3610_v56  ;;  %v3744_v27 = vpop.f32.mrf.mxu3 }
 0x503   : > { %3919 = vmatpush.msrb.mxu1 %v3491_v57  ;;  %3899 = vmatpush.msra.mxu0 %v3602_v9  ;;  %v3724_v62 = vpop.f32.mrf.mxu2 }
 0x504   : > { %3939 = vmatpush.msrb.mxu3 %v3603_v38 }
 0x505   : > { %3920 = vmatpush.msrb.mxu1 %v3484_v29  ;;  %3900 = vmatpush.msra.mxu0 %v3595_v58  ;;  %v3804_v26 = vpop.f32.mrf.mxu0 }
 0x506   : > { %3940 = vmatpush.msrb.mxu3 %v3596_v50 }
 0x507   : > { %3921 = vmatpush.msrb.mxu1 %v3477_v23  ;;  %3901 = vmatpush.msra.mxu0 %v3588_v8 }
 0x508   : > { %3941 = vmatpush.msrb.mxu3 %v3589_v1 }
 0x509   : > { %3922 = vmatpush.msrb.mxu1 %v3470_v41  ;;  %3902 = vmatpush.msra.mxu0 %v3581_v43 }
 0x50a   : > { %3923 = vmatmul.f32.vlgmr.msrb.gmra.mxu1 %v6262_v11  ;;  %3942 = vmatpush.msrb.mxu3 %v3582_v6 }
 0x50b   : > { %4054 = vmatmul.msk.f32.vlgmr.msra.gmra.mxu0 %vm3664_vm10, %v6225_v48  ;;  %4055 = vmatmul.msk.f32.vlgmr.msrb.gmra.mxu3 %vm3664_vm10, %v6225_v48 }
 0x521   : > { %v3764_v47 = vpop.f32.mrf.mxu1 }
 0x525   : > { %v3784_v48 = vpop.f32.mrf.mxu3 }
 0x52c   : > { %v3657_v18 = vpop.permute.xlu2 %3656 }
 0x52d   : > { %v3725_v53 = vadd.f32 %v3724_v62, %v3657_v18  ;;  %v3685_v34 = vadd.f32 %v3684_v22, %v3657_v18  ;;  %v3765_v37 = vadd.f32 %v3764_v47, %v3657_v18  ;;  %v3805_v55 = vadd.f32 %v3804_v26, %v3657_v18 }
 0x52f   : > { %v3745_v25 = vadd.f32 %v3744_v27, %v3725_v53  ;;  %v3705_v7 = vadd.f32 %v3704_v19, %v3685_v34  ;;  %v3785_v61 = vadd.f32 %v3784_v48, %v3765_v37 }
 0x531   : > { %v3948_v0 = vmax.f32 %v3745_v25, 0.0  ;;  %v3947_v11 = vmax.f32 %v3705_v7, 0.0  ;;  %v3949_v35 = vmax.f32 %v3785_v61, 0.0 }
 0x533   : > { %v3960_v32 = vrot.slane %v3948_v0, 4 }
 0x535   : > { %v3964_v2 = vsel %vm3963_vm11, %v3947_v11, %v3960_v32 }
 0x536   : > { %3970 = vst [vmem:[%s6373_s7] sm:$0xff] %v3964_v2 }
 0x53d   : > { %v3824_v51 = vpop.f32.mrf.mxu2 }
 0x53e   : > { %v3825_v20 = vadd.f32 %v3824_v51, %v3805_v55 }
 0x540   : > { %v3950_v36 = vmax.f32 %v3825_v20, 0.0 }
 0x542   : > { %v3961_v10 = vrot.slane %v3950_v36, 4 }
 0x544   : > { %v3965_v30 = vsel %vm3963_vm11, %v3949_v35, %v3961_v10 }
 0x545   : > { %3971 = vst [vmem:[%s6373_s7 + $0x8] sm:$0xff] %v3965_v30  ;;  %v3844_v24 = vpop.f32.mrf.mxu3 }
 0x546   : > { %v3845_v49 = vadd.f32 %v3844_v24, %v3657_v18 }
 0x55d   : > { %v3884_v39 = vpop.f32.mrf.mxu2 }
 0x55e   : > { %v3885_v63 = vadd.f32 %v3884_v39, %v3657_v18 }
 0x567   : > { %v3864_v12 = vpop.f32.mrf.mxu1 }
 0x568   : > { %v3865_v40 = vadd.f32 %v3864_v12, %v3845_v49 }
 0x56a   : > { %v3951_v52 = vmax.f32 %v3865_v40, 0.0 }
 0x587   : > { %v3924_v3 = vpop.f32.mrf.mxu1 }
 0x588   : > { %v3904_v42 = vpop.f32.mrf.mxu0  ;;  %v3925_v5 = vadd.f32 %v3924_v3, %v3657_v18 }
 0x589   : > { %v3905_v13 = vadd.f32 %v3904_v42, %v3885_v63 }
 0x58b   : > { %v3952_v28 = vmax.f32 %v3905_v13, 0.0 }
 0x58d   : > { %v3962_v33 = vrot.slane %v3952_v28, 4 }
 0x58e   : > { %v3944_v60 = vpop.f32.mrf.mxu3 }
 0x58f   : > { %v3966_v44 = vsel %vm3963_vm11, %v3951_v52, %v3962_v33  ;;  %v3945_v21 = vadd.f32 %v3944_v60, %v3925_v5 }
 0x590   : > { %3972 = vst [vmem:[%s6373_s7 + $0x10] sm:$0xff] %v3966_v44 }
 0x591   : > { %v3953_v46 = vmax.f32 %v3945_v21, 0.0 }
 0x593   : > { %3973 = vst [vmem:[%s6373_s7 + $0x18] sm:$0xf] %v3953_v46 }
 0x594 PF: > { %s14_s15 = sadd.s32 1, %s4103_s15  }
 0x595   : > { %p11_p4 = scmp.ge.s32.totalorder %s14_s15, 4  }
 0x597   :  { %13 = sbr.rel (!%p11_p4) target bundleno = 1 (0x1), region = 258 }

</bundles_post_ra>
